<compile_context>
chip_gen: v7x
topology: tpu7x:2x2x1
jax: 0.10.0
libtpu: 0.0.40
codegen_flags: <defaults>
</compile_context>

<pallas_src>
import math

import jax
import jax.numpy as jnp
from jax.experimental import pallas as pl
from jax.experimental.pallas import tpu as pltpu


def _sine_kernel(x_ref, o_ref):
    # Elementwise sin on the current (block_rows, width) VMEM tile.
    # NOTE: on v6e (borderline) and v7x (clearly) this kernel is vector-ALU
    # bound, not HBM bound - the cost is jnp.sin's full range reduction.
    # TODO(synk): if SIREN pre-activations are known bounded (|x| small), swap
    # in a Cody-Waite reduction + low-degree minimax polynomial to cut VALU
    # work ~2x on v7x.  Kept as jnp.sin to preserve full torch.sin semantics.
    o_ref[...] = jnp.sin(x_ref[...])


def sine(
    x: jax.Array,
    *,
    target_block_bytes: int = 2 * 1024 * 1024,
    small_input_bytes: int = 256 * 1024,
) -> jax.Array:
    """Elementwise sin(x); same shape/dtype as the input (matches torch.sin)."""
    orig_shape = x.shape
    dtype = x.dtype
    n = math.prod(orig_shape) if orig_shape else 1
    if n == 0:
        return x

    # Non-floating inputs: torch.sin / jnp.sin promote to float; let XLA do it.
    if not jnp.issubdtype(dtype, jnp.floating):
        return jnp.sin(x)

    itemsize = jnp.dtype(dtype).itemsize

    # Small-input fast path: fixed pallas_call/pipeline overhead dominates.
    if n * itemsize < small_input_bytes:
        return jnp.sin(x)

    # Sublane packing: f32 -> 8, bf16/f16 -> 16, 8-bit -> 32 rows per vreg tile.
    sublane = 8 * max(1, 4 // itemsize)

    # Lane width: widest multiple of 128 dividing n that still leaves
    # >= 2*sublane rows (sublane-aligned blocks + room for >= 2 grid steps).
    widths = (4096, 2048, 1024, 512, 256, 128)
    divisors = [w for w in widths if n % w == 0]
    if not divisors:
        # Ragged (n % 128 != 0): a pad + kernel + slice triple pass costs more
        # HBM traffic than a single fused XLA sin pass.
        return jnp.sin(x)
    width = None
    for w in divisors:  # widest first
        if n // w >= 2 * sublane:
            width = w
            break
    if width is None:
        width = divisors[-1]  # narrowest divisor -> most rows

    rows_total = n // width

    # Rows per block: ~target_block_bytes, sublane multiple.
    target_rows = max(sublane, target_block_bytes // (width * itemsize))
    target_rows = (target_rows // sublane) * sublane

    # v7x megacore: when possible, cap block_rows so the grid has >= 2 steps.
    if rows_total >= 2 * sublane:
        half_rows = max(sublane, (rows_total // 2 // sublane) * sublane)
        block_rows = min(target_rows, half_rows)
    else:
        block_rows = min(target_rows, max(sublane, pl.cdiv(rows_total, sublane) * sublane))

    x2d = x.reshape(rows_total, width)
    grid = (pl.cdiv(rows_total, block_rows),)  # last block may be partial (masked)

    # VMEM accounting: in + out, double-buffered.
    block_bytes = block_rows * width * itemsize
    compiler_kwargs = dict(dimension_semantics=("parallel",))
    footprint = 4 * block_bytes
    if footprint > 12 * 1024 * 1024:
        # Only needed if target_block_bytes is raised; keep headroom, stay under
        # v7x's 64 MiB physical VMEM per TensorCore.
        compiler_kwargs["vmem_limit_bytes"] = min(
            footprint + 8 * 1024 * 1024, 48 * 1024 * 1024
        )

    out2d = pl.pallas_call(
        _sine_kernel,
        out_shape=jax.ShapeDtypeStruct((rows_total, width), dtype),
        grid_spec=pl.GridSpec(
            grid=grid,
            in_specs=[pl.BlockSpec((block_rows, width), lambda i: (i, 0))],
            out_specs=pl.BlockSpec((block_rows, width), lambda i: (i, 0)),
        ),
        compiler_params=pltpu.CompilerParams(**compiler_kwargs),
        cost_estimate=pl.CostEstimate(
            flops=0, transcendentals=n, bytes_accessed=2 * n * itemsize
        ),
    )(x2d)

    return out2d.reshape(orig_shape)


if __name__ == "__main__":
    key = jax.random.PRNGKey(0)
    k1, k2, k3 = jax.random.split(key, 3)

    # 1) Module-typical small input (2,4,16,16): small-input fast path.
    x_small = jax.random.normal(k1, (2, 4, 16, 16), dtype=jnp.float32)
    y_small = sine(x_small)

    # 2) Pallas kernel path, exercising a masked partial final row-block:
    #    n = 163840 -> width 4096, rows 40, block_rows 16, grid = 3.
    x_kern = jax.random.normal(k2, (5, 8, 64, 64), dtype=jnp.float32)
    y_kern = sine(x_kern)

    # 3) Ragged fallback (n % 128 != 0).
    x_rag = jax.random.normal(k3, (2, 3, 5, 7), dtype=jnp.float32)
    y_rag = sine(x_rag)

    jax.block_until_ready((y_small, y_kern, y_rag))

    for xi, yi in ((x_small, y_small), (x_kern, y_kern), (x_rag, y_rag)):
        ref = jnp.sin(xi)
        assert yi.shape == xi.shape and yi.dtype == xi.dtype
        assert jnp.allclose(yi, ref, atol=1e-6, rtol=1e-6)

    print("KERNEL_OK")
</pallas_src>

<mosaic_0001>
module attributes {stable_mosaic.version = 11 : i64} {
  func.func @_sine_kernel(%arg0: i32, %arg1: memref<16x4096xf32, #tpu.memory_space<vmem>>, %arg2: memref<16x4096xf32, #tpu.memory_space<vmem>>) attributes {dimension_semantics = [#tpu.dimension_semantics<parallel>], iteration_bounds = array<i64: 3>, scalar_prefetch = 0 : i64, scratch_operands = 0 : i64, tpu.core_type = #tpu.core_type<tc>, window_params = [{transform_indices = @transform_0, window_bounds = array<i64: 16, 4096>}, {transform_indices = @transform_1, window_bounds = array<i64: 16, 4096>}]} {
    %c0 = arith.constant 0 : index
    %c0_0 = arith.constant 0 : index
    %0 = vector.load %arg1[%c0, %c0_0] : memref<16x4096xf32, #tpu.memory_space<vmem>>, vector<16x4096xf32>
    %1 = math.sin %0 : vector<16x4096xf32>
    %c0_1 = arith.constant 0 : index
    %c0_2 = arith.constant 0 : index
    %2 = vector.load %arg2[%c0_1, %c0_2] : memref<16x4096xf32, #tpu.memory_space<vmem>>, vector<16x4096xf32>
    tpu.vector_store %arg2[%c0_1, %c0_2], %1 {strides = array<i32>} : memref<16x4096xf32, #tpu.memory_space<vmem>>, vector<16x4096xf32>,
    return
  }
  func.func @transform_0(%arg0: i32) -> (i32, i32) {
    %c0_i32 = arith.constant 0 : i32
    %c0_i32_0 = arith.constant 0 : i32
    return %arg0, %c0_i32 : i32, i32
  }
  func.func @transform_1(%arg0: i32) -> (i32, i32) {
    %c0_i32 = arith.constant 0 : i32
    %c0_i32_0 = arith.constant 0 : i32
    return %arg0, %c0_i32 : i32, i32
  }
}

</mosaic_0001>

<bundles_post_ra>
// kernel: tpu_custom_call.1
= control target key start
LH: loop header
LB: loop body
LE: loop exit
PB: predicated region body
PF: predicated region fallthrough
CT: control target
= control target key end

     0   :  { %6 = vsyncpa [#allocation3], 0  ;;  %s13438_s0 = inlined_call_operand.hbm [shape: f32[40,4096], index: 0, kind: input, shape index: {}]   ;;  %s13439_s1 = inlined_call_operand.hbm [shape: f32[40,4096], index: 1, kind: output, shape index: {}]  }
   0x1   :  { %8 = vsyncpa [#allocation3 + $0x1], 0 }
   0x2   :  { %9 = vsyncpa [#allocation4], 0 }
   0x3   :  { %11 = vsyncpa [#allocation4 + $0x1], 0  ;;  %s8001_s6 = smov 0   ;;  %s8003_s7 = smov 0  }
   0x4   :  { %s8005_s8 = smov 0   ;;  %s8007_s9 = smov 0  }
   0x5 LB: > { %s8022_s10 = sadd.s32 4294967295, %s7977_s9   ;;  %s7034_s11 = sadd.s32 4294967294, %s7977_s9   ;;  %s7977_s9 = sphi %s8007_s9, %s13571_s9   ;;  %s7973_s8 = sphi %s8005_s8, %s13570_s8   ;;  %s7969_s7 = sphi %s8003_s7, %s13569_s7   ;;  %s7965_s6 = sphi %s8001_s6, %s13568_s6  }
   0x6   : > { %s8026_s12 = sadd.s32 1, %s7977_s9   ;;  %s24_s13 = sadd.s32 1, %s7973_s8 }
   0x7   : > { %s21_s14 = ssub.s32 %s7977_s9, %s8026_s12  ;;  %p31_p0 = scmp.ne.s32.totalorder %s7973_s8, %s7969_s7 }
   0x8   : > { %p22_p1 = scmp.eq.s32.totalorder %s21_s14, 0  ;;  %p32_p2 = scmp.eq.s32.totalorder %s7977_s9, 0 }
   0x9   : > { %p37_p3 = scmp.ne.s32.totalorder %s7969_s7, %s7965_s6  ;;  %p38_p4 = scmp.eq.s32.totalorder %s8022_s10, 0 }
   0xa   : > { %s8038_s15 = scalar_select %p22_p1, %s7973_s8, %s24_s13  }
   0xb   : > { %p33_p5 = por %p32_p2, %p31_p0  ;;  %p8040_p6 = por %p38_p4, %p37_p3 }
   0xc   : > { %p61_p7 = scmp.eq.s32.totalorder %s8022_s10, 2  ;;  %p67_p8 = scmp.eq.s32.totalorder %s7034_s11, 2 }
   0xd   : > { %p7036_p11 = scmp.ge.s32.totalorder %s7977_s9, 3 }
   0xe   : > { %p8045_p9 = por %p61_p7, %p31_p0  ;;  %p8049_p10 = por %p67_p8, %p37_p3 }
   0xf   : > { %83 = sbr.rel (%p7036_p11) target bundleno = 57 (0x39), region = 16 }
  0x10   : > { %s13442_s18 = scalar_select %p8049_p10, 1, 0 }
  0x16   : > { %86 = sbr.rel (!%p33_p5) target bundleno = 57 (0x39), region = 20  ;;  %s87_s19 = sand.u32 (%p33_p5), 1, %s7973_s8  }
  0x17   : > { %s7038_s20 = sshll.u32 (%p33_p5), %s7977_s9, 1  ;;  %s7037_s21 = sshll.u32 (%p33_p5), %s87_s19, 9 }
  0x18   : > { %s93_s22 = ssub.s32 (%p33_p5), 5, %s7038_s20  ;;  %s8059_s25 = scalar_lea.sflag (%p33_p5), [#allocation3], %s87_s19 }
  0x19   : > { %p94_p12 = scmp.lt.s32.totalorder (%p33_p5), %s93_s22, 2  ;;  %s91_s26 = scalar_lea.vmem (%p33_p5), [#allocation2], %s7037_s21 }
  0x1d   : > { %s13573_s22 = smov (!%p94_p12, %s93_s22), 2 }
  0x1e   : > { %s8056_s23 = sshll.u32 %s13573_s22, 12 }
  0x1f   : > { %s99_s24 = ssub.s32 8192, %s8056_s23 }
  0x20   : > { %100 = vsyncadd %s8059_s25, %s99_s24  ;;  %p7041_p13 = scmp.ne.s32.totalorder %s8056_s23, 0  ;;  %s7318_s27 = sshll.u32 %s7977_s9, 13 }
  0x21   : > { %s8067_s30 = scalar_lea.hbm %s13438_s0, %s7318_s27  ;;  %s106_s2 = sshll.u32 %s91_s26, 4  ;;  %s8069_s2 = int_to_ptr.vmem [resolvable:$true] %s106_s2 }
  0x22   : > { %s7883_s3 = scalar_lea.hbm %s8067_s30, %s8056_s23  ;;  %s7887_s11 = scalar_lea.hbm %s13438_s0, 20480 }
  0x23   : > { %p7884_p0 = scmp.ne.s32.totalorder %s8067_s30, %s7883_s3  ;;  %p7888_p3 = scmp.lt.u32.totalorder %s8067_s30, %s13438_s0 }
  0x24   : > { %p7889_p4 = scmp.lt.u32.totalorder %s7887_s11, %s7883_s3  ;;  %p7891_p7 = scmp.lt.u32.totalorder %s7883_s3, %s8067_s30 }
  0x25   : > { %p7885_p1 = pnand %p7884_p0, %p7041_p13 }
  0x26   : > { %p7890_p5 = por %p7889_p4, %p7888_p3 }
  0x27   : > { %p7886_p2 = pneg %p7885_p1 }
  0x28   : > { %p7892_p8 = por %p7891_p7, %p7890_p5 }
  0x2a   : > { %p7893_p11 = pnand %p7892_p8, %p7886_p2 }
  0x2c   : > { %7896 = shalt.err (!%p7893_p11)
}
  0x2d   : > { %s7897_s19 = scalar_lea.vmem %s8069_s2, %s8056_s23  ;;  %s7979_s20 = smov [#allocation2]  }
  0x2e   : > { %p7898_p12 = scmp.ne.s32.totalorder %s8069_s2, %s7897_s19  ;;  %s7901_s21 = sshll.u32 %s7979_s20, 4  ;;  %s7902_s21 = int_to_ptr.vmem [resolvable:$false] %s7901_s21 }
  0x2f   : > { %s7903_s22 = scalar_lea.vmem %s7902_s21, 16384  ;;  %p7904_p10 = scmp.lt.s32.totalorder %s8069_s2, %s7902_s21 }
  0x30   : > { %p7899_p0 = pnand %p7898_p12, %p7041_p13  ;;  %p7905_p3 = scmp.lt.s32.totalorder %s7903_s22, %s7897_s19 }
  0x32   : > { %p7900_p1 = pneg %p7899_p0  ;;  %p7906_p4 = por %p7905_p3, %p7904_p10 }
  0x34   : > { %p7907_p5 = pnand %p7906_p4, %p7900_p1 }
  0x36   : > { %7910 = shalt.err (!%p7907_p5)
}
  0x37   : > { %s7980_s24 = smov 4096   ;;  %s7981_s26 = smov 256  }
  0x38   : > { %112 = dma.hbm_to_vmem [thread:$0]  (%p7041_p13), %s8067_s30, %s8056_s23, %s8069_s2, %s8059_s25, %s7980_s24, %s7980_s24, %s7981_s26  }
  0x39 PF: > { %p7046_p2 = scmp.ge.s32.totalorder %s7977_s9, 1  ;;  %p114_p7 = scmp.lt.s32.totalorder %s7977_s9, 4 }
  0x3b   : > { %p115_p8 = pnand %p7046_p2, %p114_p7 }
  0x3c   : > { %s8099_s27 = sand.u32 (!%p115_p8), 1, %s7969_s7  }
  0x3d   : > { %118 = sbr.rel (%p115_p8) target bundleno = 1705 (0x6a9), region = 24  ;;  %s7047_s28 = sshll.u32 (!%p115_p8), %s8099_s27, 9 }
  0x3e   : > { %s121_s29 = scalar_lea.sflag (!%p115_p8), [#allocation3], %s8099_s27  ;;  %s8105_s3 = scalar_lea.vmem (!%p115_p8), [#allocation2], %s7047_s28 }
  0x44   : > { %7956 = dma.done.wait (%p8040_p6), %s121_s29, 8192  }
  0x45   : > { %7958 = vsyncadd (%p8040_p6), %s121_s29, 4294959104  ;;  %v8112_v0 = vld [vmem:[%s8105_s3] sm:$0xff]  ;;  %v8116_v2 = vld [vmem:[%s8105_s3 + $0x8] sm:$0xff]  ;;  %v7982_v24 = vmov 683565275   ;;  %s8389_s16 = scalar_lea.vmem [#allocation5], %s7047_s28 }
  0x46   : > { %v219_v1 = vand.u32 2147483647, %v8112_v0  ;;  %v222_v3 = vand.u32 2139095040, %v8112_v0  ;;  %v323_v4 = vand.u32 2147483647, %v8116_v2  ;;  %v326_v7 = vand.u32 2139095040, %v8116_v2 }
  0x47   : > { %v8126_v15 = vld [vmem:[%s8105_s3 + $0x10] sm:$0xff]  ;;  %v7983_v26 = vmov 2475754826   ;;  %v7984_v28 = vmov 2131351028   ;;  %vm221_vm12 = vcmp.lt.s32.totalorder %v8112_v0, 0 }
  0x48   : > { %v223_v5 = vshrl.u32 %v222_v3, 23  ;;  %v226_v6 = vand.u32 8388607, %v219_v1  ;;  %v327_v9 = vshrl.u32 %v326_v7, 23  ;;  %v330_v10 = vand.u32 8388607, %v323_v4 }
  0x49   : > { %v430_v22 = vand.u32 2139095040, %v8126_v15  ;;  %v7985_v30 = vmov 2102212464   ;;  %v7986_v32 = vmov 920167782   ;;  %s6940_s23 = scalar_lea.sflag [#allocation4], %s8099_s27 }
  0x4a   : > { %v7049_v8 = vadd.s32 4294967169, %v223_v5  ;;  %v227_v12 = vor.u32 8388608, %v226_v6  ;;  %v7053_v13 = vadd.s32 4294967169, %v327_v9  ;;  %v331_v14 = vor.u32 8388608, %v330_v10  ;;  %s7306_s25 = sshll.u32 (%p8045_p9), %s8022_s10, 1 }
  0x4b   : > { %v7987_v39 = vmov 1326507024   ;;  %vm8211_vm14 = vcmp.le.f32.partialorder %v219_v1, 0.7853982  ;;  %s6948_s30 = ssub.s32 (%p8045_p9), 5, %s7306_s25 }
  0x4c   : > { %v229_v11 = vadd.s32 1, %v7049_v8  ;;  %v333_v17 = vadd.s32 1, %v7053_v13  ;;  %v8128_v20 = vshll.u32 %v227_v12, 8  ;;  %v8130_v21 = vshll.u32 %v331_v14, 8  ;;  %p6949_p6 = scmp.lt.s32.totalorder (%p8045_p9), %s6948_s30, 2 }
  0x4e   : > { %vm230_vm0 = vcmp.gt.s32.totalorder %v229_v11, 0  ;;  %vm334_vm1 = vcmp.gt.s32.totalorder %v333_v17, 0 }
  0x4f   : > { %v231_v16 = vsel %vm230_vm0, %v229_v11, 0  ;;  %v335_v44 = vsel %vm334_vm1, %v333_v17, 0  ;;  %vm325_vm1 = vcmp.lt.s32.totalorder %v8116_v2, 0 }
  0x50   : > { %v232_v18 = vshrl.u32 %v231_v16, 5  ;;  %v233_v19 = vand.u32 31, %v231_v16  ;;  %v336_v47 = vshrl.u32 %v335_v44, 5  ;;  %v337_v48 = vand.u32 31, %v335_v44 }
  0x52   : > { %v234_v23 = vsub.s32 32, %v233_v19  ;;  %v236_v25 = vshll.u32 %v7982_v24, %v233_v19  ;;  %v239_v27 = vshll.u32 %v7983_v26, %v233_v19  ;;  %v242_v29 = vshll.u32 %v7984_v28, %v233_v19 }
  0x53   : > { %v245_v31 = vshll.u32 %v7985_v30, %v233_v19  ;;  %v248_v33 = vshll.u32 %v7986_v32, %v233_v19  ;;  %vm251_vm2 = vcmp.lt.s32.totalorder %v232_v18, 1  ;;  %vm252_vm3 = vcmp.lt.s32.totalorder %v232_v18, 2 }
  0x54   : > { %v235_v34 = vshrl.u32 %v7982_v24, %v234_v23  ;;  %v237_v35 = vshrl.u32 %v7983_v26, %v234_v23  ;;  %v240_v36 = vshrl.u32 %v7984_v28, %v234_v23  ;;  %v243_v37 = vshrl.u32 %v7985_v30, %v234_v23 }
  0x55   : > { %v246_v38 = vshrl.u32 %v7986_v32, %v234_v23  ;;  %v249_v40 = vshrl.u32 %v7987_v39, %v234_v23  ;;  %vm253_vm4 = vcmp.lt.s32.totalorder %v232_v18, 3  ;;  %vm254_vm5 = vcmp.lt.s32.totalorder %v232_v18, 4 }
  0x56   : > { %v238_v41 = vor.u32 %v237_v35, %v236_v25  ;;  %v241_v42 = vor.u32 %v240_v36, %v239_v27  ;;  %v244_v43 = vor.u32 %v243_v37, %v242_v29  ;;  %v338_v56 = vsub.s32 32, %v337_v48 }
  0x57   : > { %v247_v45 = vor.u32 %v246_v38, %v245_v31  ;;  %v250_v46 = vor.u32 %v249_v40, %v248_v33  ;;  %v340_v60 = vshll.u32 %v7982_v24, %v337_v48  ;;  %v343_v10 = vshll.u32 %v7983_v26, %v337_v48 }
  0x58   : > { %v255_v49 = vsel %vm251_vm2, %v235_v34, %v238_v41  ;;  %v256_v50 = vsel %vm254_vm5, %v244_v43, 2102212464  ;;  %v259_v51 = vsel %vm251_vm2, %v238_v41, %v241_v42  ;;  %v263_v52 = vsel %vm251_vm2, %v241_v42, %v244_v43 }
  0x59   : > { %v257_v53 = vsel %vm253_vm4, %v241_v42, %v256_v50  ;;  %v260_v54 = vsel %vm254_vm5, %v247_v45, 920167782  ;;  %v264_v55 = vsel %vm254_vm5, %v250_v46, 1326507024  ;;  %v339_v3 = vshrl.u32 %v7982_v24, %v338_v56 }
  0x5a   : > { %v258_v57 = vsel %vm252_vm3, %v255_v49, %v257_v53  ;;  %v261_v58 = vsel %vm253_vm4, %v244_v43, %v260_v54  ;;  %v265_v59 = vsel %vm253_vm4, %v247_v45, %v264_v55  ;;  %v341_v9 = vshrl.u32 %v7983_v26, %v338_v56 }
  0x5b   : > { %v262_v61 = vsel %vm252_vm3, %v259_v51, %v261_v58  ;;  %v266_v62 = vsel %vm252_vm3, %v263_v52, %v265_v59  ;;  %v274_v63 = vmul.u32 %v8128_v20, %v258_v57  ;;  %v344_v11 = vshrl.u32 %v7984_v28, %v338_v56 }
  0x5c   : > { %v8158_v5 = vmul.u32.u64.low %v8128_v20, %v266_v62  ;;  %v8159_v6 = vmul.u32.u64.high %v8128_v20, %v266_v62, %v8158_v5  ;;  %v8162_v7 = vmul.u32.u64.low %v8128_v20, %v262_v61  ;;  %v8163_v8 = vmul.u32.u64.high %v8128_v20, %v262_v61, %v8162_v7 }
  0x5d   : > { %v346_v12 = vshll.u32 %v7984_v28, %v337_v48  ;;  %v347_v13 = vshrl.u32 %v7985_v30, %v338_v56  ;;  %v349_v14 = vshll.u32 %v7985_v30, %v337_v48  ;;  %v350_v16 = vshrl.u32 %v7986_v32, %v338_v56 }
  0x5e   : > { %v352_v17 = vshll.u32 %v7986_v32, %v337_v48  ;;  %v342_v18 = vor.u32 %v341_v9, %v340_v60  ;;  %v345_v19 = vor.u32 %v344_v11, %v343_v10  ;;  %v353_v20 = vshrl.u32 %v7987_v39, %v338_v56  ;;  %v8198_v60 = vld [vmem:[%s8105_s3 + $0x18] sm:$0xff] }
  0x5f   : > { %vm355_vm6 = vcmp.lt.s32.totalorder %v336_v47, 1  ;;  %vm276_vm7 = vc.u32 %v8159_v6, %v8162_v7  ;;  %v277_v23 = vadd.s32 1, %v8163_v8  ;;  %v348_v25 = vor.u32 %v347_v13, %v346_v12 }
  0x60   : > { %v431_v27 = vshrl.u32 %v430_v22, 23  ;;  %v351_v29 = vor.u32 %v350_v16, %v349_v14  ;;  %v354_v31 = vor.u32 %v353_v20, %v352_v17  ;;  %vm356_vm8 = vcmp.lt.s32.totalorder %v336_v47, 2 }
  0x61   : > { %vm357_vm9 = vcmp.lt.s32.totalorder %v336_v47, 3  ;;  %v278_v33 = vsel %vm276_vm7, %v277_v23, %v8163_v8  ;;  %vm358_vm10 = vcmp.lt.s32.totalorder %v336_v47, 4  ;;  %v359_v34 = vsel %vm355_vm6, %v339_v3, %v342_v18 }
  0x62   : > { %v363_v35 = vsel %vm355_vm6, %v342_v18, %v345_v19  ;;  %v279_v36 = vadd.s32 %v278_v33, %v274_v63  ;;  %v360_v37 = vsel %vm358_vm10, %v348_v25, 2102212464  ;;  %v364_v38 = vsel %vm358_vm10, %v351_v29, 920167782 }
  0x63   : > { %v367_v40 = vsel %vm355_vm6, %v345_v19, %v348_v25  ;;  %v361_v41 = vsel %vm357_vm9, %v345_v19, %v360_v37  ;;  %v365_v42 = vsel %vm357_vm9, %v348_v25, %v364_v38  ;;  %v368_v22 = vsel %vm358_vm10, %v354_v31, 1326507024 }
  0x64   : > { %v7057_v43 = vadd.s32 4294967169, %v431_v27  ;;  %v280_v44 = vadd.s32 536870912, %v279_v36  ;;  %v366_v45 = vsel %vm356_vm8, %v363_v35, %v365_v42  ;;  %v369_v46 = vsel %vm357_vm9, %v351_v29, %v368_v22 }
  0x65   : > { %v427_v48 = vand.u32 2147483647, %v8126_v15  ;;  %v362_v49 = vsel %vm356_vm8, %v359_v34, %v361_v41  ;;  %v370_v50 = vsel %vm356_vm8, %v367_v40, %v369_v46  ;;  %v534_v9 = vand.u32 2139095040, %v8198_v60 }
  0x66   : > { %v8189_v51 = vmul.u32.u64.low %v8130_v21, %v366_v45  ;;  %v8190_v52 = vmul.u32.u64.high %v8130_v21, %v366_v45, %v8189_v51  ;;  %v281_v53 = vshrl.u32 %v280_v44, 30  ;;  %v437_v56 = vadd.s32 1, %v7057_v43 }
  0x67   : > { %v8193_v54 = vmul.u32.u64.low %v8130_v21, %v370_v50  ;;  %v8194_v55 = vmul.u32.u64.high %v8130_v21, %v370_v50, %v8193_v54  ;;  %v378_v59 = vmul.u32 %v8130_v21, %v362_v49  ;;  %v434_v47 = vand.u32 8388607, %v427_v48 }
  0x68   : > { %v282_v57 = vshll.u32 %v281_v53, 30  ;;  %v305_v58 = vsub.s32 4, %v281_v53  ;;  %v381_v61 = vadd.s32 1, %v8190_v52  ;;  %vm438_vm11 = vcmp.gt.s32.totalorder %v437_v56, 0 }
  0x69   : > { %vm380_vm13 = vc.u32 %v8194_v55, %v8189_v51  ;;  %v439_v5 = vsel %vm438_vm11, %v437_v56, 0  ;;  %v435_v11 = vor.u32 8388608, %v434_v47  ;;  %v275_v17 = vadd.s32 %v8162_v7, %v8159_v6 }
  0x6a   : > { %v283_v62 = vsub.s32 %v279_v36, %v282_v57  ;;  %v306_v63 = vsel %vm221_vm12, %v305_v58, %v281_v53  ;;  %v382_v3 = vsel %vm380_vm13, %v381_v61, %v8190_v52  ;;  %v441_v12 = vand.u32 31, %v439_v5 }
  0x6b   : > { %v383_v8 = vadd.s32 %v382_v3, %v378_v59  ;;  %v308_v14 = vsel %vm8211_vm14, 0, %v306_v63  ;;  %v8219_v20 = vshrl.u32 %v439_v5, 5  ;;  %v531_v23 = vand.u32 2147483647, %v8198_v60 }
  0x6c   : > { %v285_v21 = vsub.s32 0, %v283_v62  ;;  %v442_v18 = vsub.s32 32, %v441_v12  ;;  %v535_v1 = vshrl.u32 %v534_v9, 23  ;;  %v8222_v25 = vadd.s32 3, %v308_v14 }
  0x6d   : > { %v384_v16 = vadd.s32 536870912, %v383_v8  ;;  %v8225_v27 = vadd.s32 %v8189_v51, %v8194_v55  ;;  %v8229_v31 = vshll.u32 %v435_v11, 8  ;;  %v444_v34 = vshll.u32 %v7982_v24, %v441_v12 }
  0x6e   : > { %v7050_v13 = vmin.u32 %v285_v21, %v283_v62  ;;  %v447_v6 = vshll.u32 %v7983_v26, %v441_v12  ;;  %v450_v7 = vshll.u32 %v7984_v28, %v441_v12  ;;  %v445_v36 = vshrl.u32 %v7983_v26, %v442_v18 }
  0x6f   : > { %v8227_v29 = vshrl.u32 %v384_v16, 30  ;;  %v448_v37 = vshrl.u32 %v7984_v28, %v442_v18  ;;  %v451_v38 = vshrl.u32 %v7985_v30, %v442_v18  ;;  %v453_v40 = vshll.u32 %v7985_v30, %v441_v12 }
  0x70   : > { %v287_v19 = vclz %v7050_v13  ;;  %v454_v41 = vshrl.u32 %v7986_v32, %v442_v18  ;;  %vm459_vm0 = vcmp.lt.s32.totalorder %v8219_v20, 1  ;;  %v456_v43 = vshll.u32 %v7986_v32, %v441_v12 }
  0x71   : > { %v386_v35 = vshll.u32 %v8227_v29, 30  ;;  %v457_v44 = vshrl.u32 %v7987_v39, %v442_v18  ;;  %v443_v50 = vshrl.u32 %v7982_v24, %v442_v18  ;;  %v446_v52 = vor.u32 %v445_v36, %v444_v34 }
  0x72   : > { %v7051_v33 = vadd.s32 4294967294, %v287_v19  ;;  %v449_v53 = vor.u32 %v448_v37, %v447_v6  ;;  %v452_v54 = vor.u32 %v451_v38, %v450_v7  ;;  %v455_v57 = vor.u32 %v454_v41, %v453_v40 }
  0x73   : > { %v8241_v22 = vsub.s32 %v383_v8, %v386_v35  ;;  %vm462_vm2 = vcmp.lt.s32.totalorder %v8219_v20, 4  ;;  %v458_v59 = vor.u32 %v457_v44, %v456_v43  ;;  %v7061_v47 = vadd.s32 4294967169, %v535_v1 }
  0x74   : > { %vm7052_vm15 = vcmp.lt.s32.totalorder %v7051_v33, 0  ;;  %v464_v61 = vsel %vm462_vm2, %v452_v54, 2102212464  ;;  %vm460_vm3 = vcmp.lt.s32.totalorder %v8219_v20, 2  ;;  %vm461_vm4 = vcmp.lt.s32.totalorder %v8219_v20, 3 }
  0x75   : > { %v290_v42 = vsel %vm7052_vm15, 0, %v7051_v33  ;;  %v389_v51 = vsub.s32 0, %v8241_v22  ;;  %vm8256_vm5 = vcmp.le.f32.partialorder %v323_v4, 0.7853982  ;;  %v463_v21 = vsel %vm459_vm0, %v443_v50, %v446_v52 }
  0x76   : > { %v291_v45 = vsub.s32 32, %v290_v42  ;;  %v292_v46 = vshll.u32 %v283_v62, %v290_v42  ;;  %v295_v49 = vsub.s32 4294967266, %v290_v42  ;;  %v465_v8 = vsel %vm461_vm4, %v449_v53, %v464_v61 }
  0x77   : > { %v7054_v58 = vmin.u32 %v389_v51, %v8241_v22  ;;  %v467_v9 = vsel %vm459_vm0, %v446_v52, %v449_v53  ;;  %v409_v13 = vsub.s32 4, %v8227_v29  ;;  %v468_v4 = vsel %vm462_vm2, %v455_v57, 920167782 }
  0x78   : > { %v293_v55 = vshrl.u32 %v275_v17, %v291_v45  ;;  %v296_v56 = vadd.s32 127, %v295_v49  ;;  %v469_v16 = vsel %vm461_vm4, %v452_v54, %v468_v4  ;;  %v471_v17 = vsel %vm459_vm0, %v449_v53, %v452_v54 }
  0x79   : > { %v391_v5 = vclz %v7054_v58  ;;  %v472_v18 = vsel %vm462_vm2, %v458_v59, 1326507024  ;;  %v466_v1 = vsel %vm460_vm3, %v463_v21, %v465_v8  ;;  %v470_v33 = vsel %vm460_vm3, %v467_v9, %v469_v16 }
  0x7a   : > { %v294_v62 = vor.u32 %v293_v55, %v292_v46  ;;  %v297_v63 = vshll.u32 %v296_v56, 23  ;;  %v473_v34 = vsel %vm461_vm4, %v455_v57, %v472_v18  ;;  %v410_v20 = vsel %vm325_vm1, %v409_v13, %v8227_v29  ;;  %v8315_v57 = vld [vmem:[%s8105_s3 + $0x20] sm:$0xff] }
  0x7b   : > { %v7055_v14 = vadd.s32 4294967294, %v391_v5  ;;  %v474_v6 = vsel %vm460_vm3, %v471_v17, %v473_v34  ;;  %v8284_v7 = vmul.u32.u64.low %v8229_v31, %v470_v33  ;;  %v8285_v35 = vmul.u32.u64.high %v8229_v31, %v470_v33, %v8284_v7 }
  0x7c   : > { %v298_v11 = vor.u32 4788187, %v297_v63  ;;  %v301_v12 = vcvt.s32.f32 %v294_v62  ;;  %v8289_v38 = vmul.u32.u64.low %v8229_v31, %v474_v6  ;;  %v8290_v40 = vmul.u32.u64.high %v8229_v31, %v474_v6, %v8289_v38 }
  0x7d   : > { %vm7056_vm6 = vcmp.lt.s32.totalorder %v7055_v14, 0  ;;  %v482_v45 = vmul.u32 %v8229_v31, %v466_v1  ;;  %v538_v46 = vand.u32 8388607, %v531_v23  ;;  %v541_v49 = vadd.s32 1, %v7061_v47 }
  0x7e   : > { %v299_v19 = vand.u32 2147483647, %v298_v11  ;;  %v394_v37 = vsel %vm7056_vm6, 0, %v7055_v14  ;;  %v8300_v50 = vand.u32 3, %v8222_v25  ;;  %v412_v29 = vsel %vm8256_vm5, 0, %v410_v20 }
  0x7f   : > { %v395_v41 = vsub.s32 32, %v394_v37  ;;  %v396_v42 = vshll.u32 %v8241_v22, %v394_v37  ;;  %v399_v43 = vsub.s32 4294967266, %v394_v37  ;;  %v485_v22 = vadd.s32 1, %v8285_v35 }
  0x80   : > { %v302_v36 = vmul.f32 %v301_v12, %v299_v19  ;;  %vm484_vm7 = vc.u32 %v8290_v40, %v8284_v7  ;;  %vm542_vm8 = vcmp.gt.s32.totalorder %v541_v49, 0  ;;  %v416_v61 = vadd.s32 3, %v412_v29 }
  0x81   : > { %v397_v51 = vshrl.u32 %v8225_v27, %v395_v41  ;;  %v400_v52 = vadd.s32 127, %v399_v43  ;;  %v486_v27 = vsel %vm484_vm7, %v485_v22, %v8285_v35  ;;  %v543_v56 = vsel %vm542_vm8, %v541_v49, 0 }
  0x82   : > { %v303_v44 = vxor.u32 2147483648, %v302_v36  ;;  %v487_v55 = vadd.s32 %v486_v27, %v482_v45  ;;  %v545_v62 = vand.u32 31, %v543_v56  ;;  %v635_v63 = vand.u32 2147483647, %v8315_v57 }
  0x83   : > { %v398_v31 = vor.u32 %v397_v51, %v396_v42  ;;  %v401_v54 = vshll.u32 %v400_v52, 23  ;;  %vm315_vm9 = vcmp.eq.s32.totalorder %v8300_v50, 0  ;;  %vm318_vm10 = vcmp.eq.s32.totalorder %v8300_v50, 2 }
  0x84   : > { %v304_v53 = vsel %vm221_vm12, %v303_v44, %v302_v36  ;;  %v488_v47 = vadd.s32 536870912, %v487_v55  ;;  %v539_v5 = vor.u32 8388608, %v538_v46  ;;  %vm314_vm11 = vcmp.lt.s32.totalorder %v8300_v50, 2 }
  0x85   : > { %v307_v25 = vsel %vm8211_vm14, %v8112_v0, %v304_v53  ;;  %v402_v58 = vor.u32 4788187, %v401_v54  ;;  %v405_v59 = vcvt.s32.f32 %v398_v31  ;;  %v8323_v8 = vshrl.u32 %v543_v56, 5 }
  0x86   : > { %7627 = vcosq.f32 %v307_v25  ;;  %v8321_v21 = vshrl.u32 %v488_v47, 30  ;;  %v546_v9 = vsub.s32 32, %v545_v62  ;;  %v638_v11 = vand.u32 2139095040, %v8315_v57 }
  0x87   : > { %7629 = vsinq.f32 %v307_v25  ;;  %v403_v10 = vand.u32 2147483647, %v402_v58  ;;  %vm311_vm12 = vweird.f32 %v8112_v0  ;;  %v8327_v13 = vand.u32 3, %v416_v61 }
  0x88   : > { %v548_v4 = vshll.u32 %v7982_v24, %v545_v62  ;;  %v551_v14 = vshll.u32 %v7983_v26, %v545_v62  ;;  %v490_v16 = vshll.u32 %v8321_v21, 30  ;;  %v549_v17 = vshrl.u32 %v7983_v26, %v546_v9 }
  0x89   : > { %v406_v12 = vmul.f32 %v405_v59, %v403_v10  ;;  %v554_v18 = vshll.u32 %v7984_v28, %v545_v62  ;;  %v557_v19 = vshll.u32 %v7985_v30, %v545_v62  ;;  %v552_v33 = vshrl.u32 %v7984_v28, %v546_v9 }
  0x8a   : > { %v555_v34 = vshrl.u32 %v7985_v30, %v546_v9  ;;  %v558_v6 = vshrl.u32 %v7986_v32, %v546_v9  ;;  %v8338_v35 = vsub.s32 %v487_v55, %v490_v16  ;;  %vm563_vm13 = vcmp.lt.s32.totalorder %v8323_v8, 1 }
  0x8b   : > { %v407_v1 = vxor.u32 2147483648, %v406_v12  ;;  %v8341_v36 = vshll.u32 %v539_v5, 8  ;;  %v639_v37 = vshrl.u32 %v638_v11, 23  ;;  %v547_v41 = vshrl.u32 %v7982_v24, %v546_v9 }
  0x8c   : > { %v560_v42 = vshll.u32 %v7986_v32, %v545_v62  ;;  %v561_v43 = vshrl.u32 %v7987_v39, %v546_v9  ;;  %v493_v45 = vsub.s32 0, %v8338_v35  ;;  %v550_v46 = vor.u32 %v549_v17, %v548_v4 }
  0x8d   : > { %v408_v38 = vsel %vm325_vm1, %v407_v1, %v406_v12  ;;  %v553_v49 = vor.u32 %v552_v33, %v551_v14  ;;  %v556_v22 = vor.u32 %v555_v34, %v554_v18  ;;  %v559_v53 = vor.u32 %v558_v6, %v557_v19 }
  0x8e   : > { %v411_v44 = vsel %vm8256_vm5, %v8116_v2, %v408_v38  ;;  %v7058_v25 = vmin.u32 %v493_v45, %v8338_v35  ;;  %vm566_vm14 = vcmp.lt.s32.totalorder %v8323_v8, 4  ;;  %v562_v3 = vor.u32 %v561_v43, %v560_v42 }
  0x8f   : > { %7631 = vcosq.f32 %v411_v44  ;;  %vm564_vm15 = vcmp.lt.s32.totalorder %v8323_v8, 2  ;;  %vm565_vm0 = vcmp.lt.s32.totalorder %v8323_v8, 3  ;;  %vm419_vm1 = vcmp.eq.s32.totalorder %v8327_v13, 0 }
  0x90   : > { %v7628_v20 = vpop.eup %7627  ;;  %7633 = vsinq.f32 %v411_v44  ;;  %v495_v27 = vclz %v7058_v25  ;;  %v568_v55 = vsel %vm566_vm14, %v556_v22, 2102212464  ;;  %v571_v56 = vsel %vm563_vm13, %v550_v46, %v553_v49 }
  0x91   : > { %v7630_v51 = vpop.eup %7629  ;;  %v319_v52 = vxor.u32 2147483648, %v7628_v20  ;;  %v483_v59 = vadd.s32 %v8284_v7, %v8290_v40  ;;  %v572_v61 = vsel %vm566_vm14, %v559_v53, 920167782  ;;  %v7065_v47 = vadd.s32 4294967169, %v639_v37 }
  0x92   : > { %v316_v29 = vxor.u32 2147483648, %v7630_v51  ;;  %vm415_vm2 = vweird.f32 %v8116_v2  ;;  %vm429_vm3 = vcmp.lt.s32.totalorder %v8126_v15, 0  ;;  %v7059_v10 = vadd.s32 4294967294, %v495_v27 }
  0x93   : > { %v320_v31 = vsel %vm318_vm10, %v319_v52, %v7630_v51  ;;  %v567_v5 = vsel %vm563_vm13, %v547_v41, %v550_v46  ;;  %v573_v50 = vsel %vm565_vm0, %v556_v22, %v572_v61  ;;  %v569_v7 = vsel %vm565_vm0, %v553_v49, %v568_v55 }
  0x94   : > { %v317_v54 = vsel %vm315_vm9, %v7628_v20, %v316_v29  ;;  %v574_v40 = vsel %vm564_vm15, %v571_v56, %v573_v50  ;;  %v575_v0 = vsel %vm563_vm13, %v553_v49, %v556_v22  ;;  %v576_v9 = vsel %vm566_vm14, %v562_v3, 1326507024 }
  0x95   : > { %v321_v58 = vsel %vm314_vm11, %v317_v54, %v320_v31  ;;  %vm7060_vm4 = vcmp.lt.s32.totalorder %v7059_v10, 0  ;;  %v577_v11 = vsel %vm565_vm0, %v559_v53, %v576_v9  ;;  %vm422_vm5 = vcmp.eq.s32.totalorder %v8327_v13, 2 }
  0x96   : > { %v322_v62 = vsel %vm311_vm12, nan, %v321_v58  ;;  %v8395_v12 = vmul.u32.u64.low %v8341_v36, %v574_v40  ;;  %v8396_v4 = vmul.u32.u64.high %v8341_v36, %v574_v40, %v8395_v12  ;;  %v498_v14 = vsel %vm7060_vm4, 0, %v7059_v10 }
  0x97   : > { %6875 = vst [vmem:[%s8389_s16] sm:$0xff] %v322_v62  ;;  %v578_v16 = vsel %vm564_vm15, %v575_v0, %v577_v11  ;;  %v645_v17 = vadd.s32 1, %v7065_v47  ;;  %v499_v18 = vsub.s32 32, %v498_v14  ;;  %v500_v19 = vshll.u32 %v8338_v35, %v498_v14 }
  0x98   : > { %v503_v1 = vsub.s32 4294967266, %v498_v14  ;;  %v570_v33 = vsel %vm564_vm15, %v567_v5, %v569_v7  ;;  %v513_v6 = vsub.s32 4, %v8321_v21  ;;  %v589_v44 = vadd.s32 1, %v8396_v4 }
  0x99   : > { %v7632_v34 = vpop.eup %7631  ;;  %v8407_v37 = vmul.u32.u64.low %v8341_v36, %v578_v16  ;;  %v8408_v38 = vmul.u32.u64.high %v8341_v36, %v578_v16, %v8407_v37  ;;  %vm646_vm6 = vcmp.gt.s32.totalorder %v645_v17, 0  ;;  %v501_v43 = vshrl.u32 %v483_v59, %v499_v18 }
  0x9a   : > { %v7634_v41 = vpop.eup %7633  ;;  %v423_v42 = vxor.u32 2147483648, %v7632_v34  ;;  %v504_v20 = vadd.s32 127, %v503_v1  ;;  %vm418_vm7 = vcmp.lt.s32.totalorder %v8327_v13, 2  ;;  %v586_v8 = vmul.u32 %v8341_v36, %v570_v33 }
  0x9b   : > { %v420_v35 = vxor.u32 2147483648, %v7634_v41  ;;  %v647_v45 = vsel %vm646_vm6, %v645_v17, 0  ;;  %v502_v49 = vor.u32 %v501_v43, %v500_v19  ;;  %v642_v52 = vand.u32 8388607, %v635_v63 }
  0x9c   : > { %v424_v46 = vsel %vm422_vm5, %v423_v42, %v7634_v41  ;;  %v505_v51 = vshll.u32 %v504_v20, 23  ;;  %v514_v53 = vsel %vm429_vm3, %v513_v6, %v8321_v21  ;;  %vm588_vm8 = vc.u32 %v8408_v38, %v8395_v12  ;;  %v8456_v20 = vld [vmem:[%s8105_s3 + $0x28] sm:$0xff] }
  0x9d   : > { %v421_v22 = vsel %vm419_vm1, %v7632_v34, %v420_v35  ;;  %v649_v36 = vand.u32 31, %v647_v45  ;;  %v509_v31 = vcvt.s32.f32 %v502_v49  ;;  %v590_v3 = vsel %vm588_vm8, %v589_v44, %v8396_v4 }
  0x9e   : > { %v425_v29 = vsel %vm418_vm7, %v421_v22, %v424_v46  ;;  %v506_v25 = vor.u32 4788187, %v505_v51  ;;  %v591_v27 = vadd.s32 %v590_v3, %v586_v8  ;;  %v648_v13 = vshrl.u32 %v647_v45, 5 }
  0x9f   : > { %v426_v54 = vsel %vm415_vm2, nan, %v425_v29  ;;  %v650_v55 = vsub.s32 32, %v649_v36  ;;  %v652_v58 = vshll.u32 %v7982_v24, %v649_v36  ;;  %v655_v21 = vshll.u32 %v7983_v26, %v649_v36 }
  0xa0   : > { %v507_v56 = vand.u32 2147483647, %v506_v25  ;;  %v658_v59 = vshll.u32 %v7984_v28, %v649_v36  ;;  %6876 = vst [vmem:[%s8389_s16 + $0x8] sm:$0xff] %v426_v54  ;;  %v592_v61 = vadd.s32 536870912, %v591_v27  ;;  %v661_v10 = vshll.u32 %v7985_v30, %v649_v36 }
  0xa1   : > { %v653_v47 = vshrl.u32 %v7983_v26, %v650_v55  ;;  %v656_v62 = vshrl.u32 %v7984_v28, %v650_v55  ;;  %v659_v5 = vshrl.u32 %v7985_v30, %v650_v55  ;;  %v662_v50 = vshrl.u32 %v7986_v32, %v650_v55 }
  0xa2   : > { %v510_v2 = vmul.f32 %v509_v31, %v507_v56  ;;  %v664_v7 = vshll.u32 %v7986_v32, %v649_v36  ;;  %vm8439_vm9 = vcmp.le.f32.partialorder %v427_v48, 0.7853982  ;;  %v593_v0 = vshrl.u32 %v592_v61, 30 }
  0xa3   : > { %v643_v9 = vor.u32 8388608, %v642_v52  ;;  %v665_v11 = vshrl.u32 %v7987_v39, %v650_v55  ;;  %v516_v14 = vsel %vm8439_vm9, 0, %v514_v53  ;;  %v651_v16 = vshrl.u32 %v7982_v24, %v650_v55 }
  0xa4   : > { %v511_v4 = vxor.u32 2147483648, %v510_v2  ;;  %v654_v17 = vor.u32 %v653_v47, %v652_v58  ;;  %v594_v18 = vshll.u32 %v593_v0, 30  ;;  %v657_v19 = vor.u32 %v656_v62, %v655_v21 }
  0xa5   : > { %v660_v1 = vor.u32 %v659_v5, %v658_v59  ;;  %v663_v33 = vor.u32 %v662_v50, %v661_v10  ;;  %v666_v34 = vor.u32 %v665_v11, %v664_v7  ;;  %vm667_vm10 = vcmp.lt.s32.totalorder %v648_v13, 1 }
  0xa6   : > { %v512_v48 = vsel %vm429_vm3, %v511_v4, %v510_v2  ;;  %vm670_vm11 = vcmp.lt.s32.totalorder %v648_v13, 4  ;;  %v520_v37 = vadd.s32 3, %v516_v14  ;;  %v8452_v41 = vsub.s32 %v591_v27, %v594_v18 }
  0xa7   : > { %v515_v6 = vsel %vm8439_vm9, %v8126_v15, %v512_v48  ;;  %v672_v42 = vsel %vm670_vm11, %v660_v1, 2102212464  ;;  %vm668_vm12 = vcmp.lt.s32.totalorder %v648_v13, 2  ;;  %vm669_vm13 = vcmp.lt.s32.totalorder %v648_v13, 3 }
  0xa8   : > { %7635 = vcosq.f32 %v515_v6  ;;  %v683_v43 = vshll.u32 %v643_v9, 8  ;;  %v597_v44 = vsub.s32 0, %v8452_v41  ;;  %v671_v35 = vsel %vm667_vm10, %v651_v16, %v654_v17  ;;  %v8493_v9 = vld [vmem:[%s8105_s3 + $0x30] sm:$0xff] }
  0xa9   : > { %7637 = vsinq.f32 %v515_v6  ;;  %v675_v8 = vsel %vm667_vm10, %v654_v17, %v657_v19  ;;  %v673_v45 = vsel %vm669_vm13, %v657_v19, %v672_v42  ;;  %v676_v46 = vsel %vm670_vm11, %v663_v33, 920167782 }
  0xaa   : > { %v679_v49 = vsel %vm667_vm10, %v657_v19, %v660_v1  ;;  %v680_v51 = vsel %vm670_vm11, %v666_v34, 1326507024  ;;  %v7062_v52 = vmin.u32 %v597_v44, %v8452_v41  ;;  %v617_v22 = vsub.s32 4, %v593_v0 }
  0xab   : > { %v677_v53 = vsel %vm669_vm13, %v660_v1, %v676_v46  ;;  %v681_v36 = vsel %vm669_vm13, %v663_v33, %v680_v51  ;;  %v521_v29 = vand.u32 3, %v520_v37  ;;  %v742_v3 = vand.u32 2139095040, %v8456_v20 }
  0xac   : > { %v678_v25 = vsel %vm668_vm12, %v675_v8, %v677_v53  ;;  %v682_v31 = vsel %vm668_vm12, %v679_v49, %v681_v36  ;;  %vm519_vm14 = vweird.f32 %v8126_v15  ;;  %vm533_vm15 = vcmp.lt.s32.totalorder %v8198_v60, 0 }
  0xad   : > { %v599_v54 = vclz %v7062_v52  ;;  %v674_v27 = vsel %vm668_vm12, %v671_v35, %v673_v45  ;;  %v8471_v55 = vmul.u32.u64.low %v683_v43, %v682_v31  ;;  %v8472_v56 = vmul.u32.u64.high %v683_v43, %v682_v31, %v8471_v55 }
  0xae   : > { %v8474_v58 = vmul.u32.u64.low %v683_v43, %v678_v25  ;;  %v8475_v21 = vmul.u32.u64.high %v683_v43, %v678_v25, %v8474_v58  ;;  %vm8479_vm0 = vcmp.le.f32.partialorder %v531_v23, 0.7853982  ;;  %v618_v47 = vsel %vm533_vm15, %v617_v22, %v593_v0 }
  0xaf   : > { %v7063_v61 = vadd.s32 4294967294, %v599_v54  ;;  %v743_v62 = vshrl.u32 %v742_v3, 23  ;;  %vm522_vm1 = vcmp.lt.s32.totalorder %v521_v29, 2  ;;  %vm523_vm2 = vcmp.eq.s32.totalorder %v521_v29, 0 }
  0xb0   : > { %vm526_vm3 = vcmp.eq.s32.totalorder %v521_v29, 2  ;;  %v739_v13 = vand.u32 2147483647, %v8456_v20  ;;  %v587_v10 = vadd.s32 %v8395_v12, %v8408_v38  ;;  %v690_v2 = vmul.u32 %v683_v43, %v674_v27 }
  0xb1   : > { %vm7064_vm4 = vcmp.lt.s32.totalorder %v7063_v61, 0  ;;  %v7069_v23 = vadd.s32 4294967169, %v743_v62  ;;  %v620_v7 = vsel %vm8479_vm0, 0, %v618_v47  ;;  %vm692_vm5 = vc.u32 %v8472_v56, %v8474_v58 }
  0xb2   : > { %v7636_v5 = vpop.eup %7635  ;;  %v602_v50 = vsel %vm7064_vm4, 0, %v7063_v61  ;;  %v693_v40 = vadd.s32 1, %v8475_v21  ;;  %v746_v17 = vand.u32 8388607, %v739_v13  ;;  %v624_v6 = vadd.s32 3, %v620_v7 }
  0xb3   : > { %v7638_v0 = vpop.eup %7637  ;;  %v527_v11 = vxor.u32 2147483648, %v7636_v5  ;;  %v603_v4 = vsub.s32 32, %v602_v50  ;;  %v604_v14 = vshll.u32 %v8452_v41, %v602_v50  ;;  %v607_v12 = vsub.s32 4294967266, %v602_v50 }
  0xb4   : > { %v524_v38 = vxor.u32 2147483648, %v7638_v0  ;;  %v694_v16 = vsel %vm692_vm5, %v693_v40, %v8475_v21  ;;  %v749_v18 = vadd.s32 1, %v7069_v23  ;;  %v846_v37 = vand.u32 2139095040, %v8493_v9 }
  0xb5   : > { %v528_v19 = vsel %vm526_vm3, %v527_v11, %v7638_v0  ;;  %v605_v1 = vshrl.u32 %v587_v10, %v603_v4  ;;  %v608_v33 = vadd.s32 127, %v607_v12  ;;  %v695_v48 = vadd.s32 %v694_v16, %v690_v2 }
  0xb6   : > { %v525_v34 = vsel %vm523_vm2, %v7636_v5, %v524_v38  ;;  %vm750_vm6 = vcmp.gt.s32.totalorder %v749_v18, 0  ;;  %v747_v8 = vor.u32 8388608, %v746_v17  ;;  %v8508_v52 = vand.u32 3, %v624_v6 }
  0xb7   : > { %v529_v41 = vsel %vm522_vm1, %v525_v34, %v528_v19  ;;  %v606_v42 = vor.u32 %v605_v1, %v604_v14  ;;  %v609_v43 = vshll.u32 %v608_v33, 23  ;;  %v696_v44 = vadd.s32 536870912, %v695_v48 }
  0xb8   : > { %v530_v35 = vsel %vm519_vm14, nan, %v529_v41  ;;  %v751_v45 = vsel %vm750_vm6, %v749_v18, 0  ;;  %v843_v29 = vand.u32 2147483647, %v8493_v9  ;;  %v847_v25 = vshrl.u32 %v846_v37, 23 }
  0xb9   : > { %v610_v46 = vor.u32 4788187, %v609_v43  ;;  %v613_v49 = vcvt.s32.f32 %v606_v42  ;;  %v8505_v51 = vshrl.u32 %v696_v44, 30  ;;  %6877 = vst [vmem:[%s8389_s16 + $0x10] sm:$0xff] %v530_v35  ;;  %v753_v22 = vand.u32 31, %v751_v45 }
  0xba   : > { %v8513_v31 = vadd.s32 %v8474_v58, %v8472_v56  ;;  %v752_v15 = vshrl.u32 %v751_v45, 5  ;;  %v8515_v54 = vshll.u32 %v747_v8, 8  ;;  %v7073_v5 = vadd.s32 4294967169, %v847_v25 }
  0xbb   : > { %v611_v53 = vand.u32 2147483647, %v610_v46  ;;  %v698_v36 = vshll.u32 %v8505_v51, 30  ;;  %v754_v3 = vsub.s32 32, %v753_v22  ;;  %v756_v21 = vshll.u32 %v7982_v24, %v753_v22 }
  0xbc   : > { %v759_v61 = vshll.u32 %v7983_v26, %v753_v22  ;;  %v762_v10 = vshll.u32 %v7984_v28, %v753_v22  ;;  %v765_v56 = vshll.u32 %v7985_v30, %v753_v22  ;;  %v768_v40 = vshll.u32 %v7986_v32, %v753_v22 }
  0xbd   : > { %v614_v27 = vmul.f32 %v613_v49, %v611_v53  ;;  %v8517_v55 = vsub.s32 %v695_v48, %v698_v36  ;;  %v757_v47 = vshrl.u32 %v7983_v26, %v754_v3  ;;  %v760_v62 = vshrl.u32 %v7984_v28, %v754_v3 }
  0xbe   : > { %v763_v23 = vshrl.u32 %v7985_v30, %v754_v3  ;;  %v755_v50 = vshrl.u32 %v7982_v24, %v754_v3  ;;  %v766_v7 = vshrl.u32 %v7986_v32, %v754_v3  ;;  %vm771_vm7 = vcmp.lt.s32.totalorder %v752_v15, 1 }
  0xbf   : > { %v615_v58 = vxor.u32 2147483648, %v614_v27  ;;  %v701_v2 = vsub.s32 0, %v8517_v55  ;;  %v758_v4 = vor.u32 %v757_v47, %v756_v21  ;;  %v761_v14 = vor.u32 %v760_v62, %v759_v61 }
  0xc0   : > { %v764_v38 = vor.u32 %v763_v23, %v762_v10  ;;  %v767_v16 = vor.u32 %v766_v7, %v765_v56  ;;  %v769_v17 = vshrl.u32 %v7987_v39, %v754_v3  ;;  %vm637_vm8 = vcmp.lt.s32.totalorder %v8315_v57, 0 }
  0xc1   : > { %v616_v0 = vsel %vm533_vm15, %v615_v58, %v614_v27  ;;  %v7066_v11 = vmin.u32 %v701_v2, %v8517_v55  ;;  %v850_v19 = vand.u32 8388607, %v843_v29  ;;  %v853_v1 = vadd.s32 1, %v7073_v5  ;;  %v8572_v58 = vld [vmem:[%s8105_s3 + $0x38] sm:$0xff] }
  0xc2   : > { %v619_v12 = vsel %vm8479_vm0, %v8198_v60, %v616_v0  ;;  %v770_v33 = vor.u32 %v769_v17, %v768_v40  ;;  %vm772_vm9 = vcmp.lt.s32.totalorder %v752_v15, 2  ;;  %vm773_vm10 = vcmp.lt.s32.totalorder %v752_v15, 3 }
  0xc3   : > { %7639 = vcosq.f32 %v619_v12  ;;  %v703_v18 = vclz %v7066_v11  ;;  %vm774_vm11 = vcmp.lt.s32.totalorder %v752_v15, 4  ;;  %v775_v59 = vsel %vm771_vm7, %v755_v50, %v758_v4 }
  0xc4   : > { %7641 = vsinq.f32 %v619_v12  ;;  %v779_v34 = vsel %vm771_vm7, %v758_v4, %v761_v14  ;;  %v776_v6 = vsel %vm774_vm11, %v764_v38, 2102212464  ;;  %v780_v37 = vsel %vm774_vm11, %v767_v16, 920167782 }
  0xc5   : > { %v7067_v48 = vadd.s32 4294967294, %v703_v18  ;;  %v783_v41 = vsel %vm771_vm7, %v761_v14, %v764_v38  ;;  %v784_v42 = vsel %vm774_vm11, %v770_v33, 1326507024  ;;  %vm626_vm12 = vcmp.lt.s32.totalorder %v8508_v52, 2 }
  0xc6   : > { %vm8546_vm13 = vcmp.le.f32.partialorder %v635_v63, 0.7853982  ;;  %v777_v44 = vsel %vm773_vm10, %v761_v14, %v776_v6  ;;  %v781_v35 = vsel %vm773_vm10, %v764_v38, %v780_v37  ;;  %v785_v8 = vsel %vm773_vm10, %v767_v16, %v784_v42 }
  0xc7   : > { %vm7068_vm14 = vcmp.lt.s32.totalorder %v7067_v48, 0  ;;  %vm623_vm15 = vweird.f32 %v8198_v60  ;;  %v721_v46 = vsub.s32 4, %v8505_v51  ;;  %v782_v49 = vsel %vm772_vm9, %v779_v34, %v781_v35 }
  0xc8   : > { %v706_v45 = vsel %vm7068_vm14, 0, %v7067_v48  ;;  %v786_v22 = vsel %vm772_vm9, %v783_v41, %v785_v8  ;;  %v778_v25 = vsel %vm772_vm9, %v775_v59, %v777_v44  ;;  %vm627_vm0 = vcmp.eq.s32.totalorder %v8508_v52, 0 }
  0xc9   : > { %v707_v53 = vsub.s32 32, %v706_v45  ;;  %v708_v63 = vshll.u32 %v8517_v55, %v706_v45  ;;  %v711_v36 = vsub.s32 4294967266, %v706_v45  ;;  %vm854_vm1 = vcmp.gt.s32.totalorder %v853_v1, 0 }
  0xca   : > { %v8557_v3 = vmul.u32.u64.low %v8515_v54, %v786_v22  ;;  %v8558_v27 = vmul.u32.u64.high %v8515_v54, %v786_v22, %v8557_v3  ;;  %v8561_v21 = vmul.u32.u64.low %v8515_v54, %v782_v49  ;;  %v8562_v61 = vmul.u32.u64.high %v8515_v54, %v782_v49, %v8561_v21 }
  0xcb   : > { %v709_v47 = vshrl.u32 %v8513_v31, %v707_v53  ;;  %v712_v62 = vadd.s32 127, %v711_v36  ;;  %vm630_vm2 = vcmp.eq.s32.totalorder %v8508_v52, 2  ;;  %v722_v15 = vsel %vm637_vm8, %v721_v46, %v8505_v51 }
  0xcc   : > { %v851_v55 = vor.u32 8388608, %v850_v19  ;;  %v855_v10 = vsel %vm854_vm1, %v853_v1, 0  ;;  %v794_v5 = vmul.u32 %v8515_v54, %v778_v25  ;;  %vm796_vm3 = vc.u32 %v8558_v27, %v8561_v21 }
  0xcd   : > { %v7640_v56 = vpop.eup %7639  ;;  %v710_v2 = vor.u32 %v709_v47, %v708_v63  ;;  %v713_v23 = vshll.u32 %v712_v62, 23  ;;  %v857_v50 = vand.u32 31, %v855_v10  ;;  %v797_v40 = vadd.s32 1, %v8562_v61 }
  0xce   : > { %v7642_v7 = vpop.eup %7641  ;;  %v631_v31 = vxor.u32 2147483648, %v7640_v56  ;;  %v947_v0 = vand.u32 2147483647, %v8572_v58  ;;  %v724_v54 = vsel %vm8546_vm13, 0, %v722_v15  ;;  %v8584_v16 = vshll.u32 %v851_v55, 8 }
  0xcf   : > { %v628_v51 = vxor.u32 2147483648, %v7642_v7  ;;  %v714_v11 = vor.u32 4788187, %v713_v23  ;;  %v717_v4 = vcvt.s32.f32 %v710_v2  ;;  %v858_v14 = vsub.s32 32, %v857_v50 }
  0xd0   : > { %v632_v12 = vsel %vm630_vm2, %v631_v31, %v7642_v7  ;;  %v798_v38 = vsel %vm796_vm3, %v797_v40, %v8562_v61  ;;  %v860_v1 = vshll.u32 %v7982_v24, %v857_v50  ;;  %v863_v59 = vshll.u32 %v7983_v26, %v857_v50 }
  0xd1   : > { %v629_v17 = vsel %vm627_vm0, %v7640_v56, %v628_v51  ;;  %v715_v18 = vand.u32 2147483647, %v714_v11  ;;  %v799_v19 = vadd.s32 %v798_v38, %v794_v5  ;;  %v861_v48 = vshrl.u32 %v7983_v26, %v858_v14 }
  0xd2   : > { %v633_v33 = vsel %vm626_vm12, %v629_v17, %v632_v12  ;;  %v864_v34 = vshrl.u32 %v7984_v28, %v858_v14  ;;  %v856_v42 = vshrl.u32 %v855_v10, 5  ;;  %v866_v44 = vshll.u32 %v7984_v28, %v857_v50 }
  0xd3   : > { %v634_v6 = vsel %vm623_vm15, nan, %v633_v33  ;;  %v718_v37 = vmul.f32 %v717_v4, %v715_v18  ;;  %v800_v41 = vadd.s32 536870912, %v799_v19  ;;  %v867_v35 = vshrl.u32 %v7985_v30, %v858_v14 }
  0xd4   : > { %v869_v8 = vshll.u32 %v7985_v30, %v857_v50  ;;  %v870_v52 = vshrl.u32 %v7986_v32, %v858_v14  ;;  %6878 = vst [vmem:[%s8389_s16 + $0x18] sm:$0xff] %v634_v6  ;;  %v728_v46 = vadd.s32 3, %v724_v54  ;;  %v872_v22 = vshll.u32 %v7986_v32, %v857_v50  ;;  %v8626_v54 = vld [vmem:[%s8105_s3 + $0x40] sm:$0xff] }
  0xd5   : > { %v719_v45 = vxor.u32 2147483648, %v718_v37  ;;  %v801_v49 = vshrl.u32 %v800_v41, 30  ;;  %vm741_vm4 = vcmp.lt.s32.totalorder %v8456_v20, 0  ;;  %v859_v60 = vshrl.u32 %v7982_v24, %v858_v14 }
  0xd6   : > { %v862_v53 = vor.u32 %v861_v48, %v860_v1  ;;  %v865_v63 = vor.u32 %v864_v34, %v863_v59  ;;  %v873_v36 = vshrl.u32 %v7987_v39, %v858_v14  ;;  %v871_v61 = vor.u32 %v870_v52, %v869_v8 }
  0xd7   : > { %v720_v25 = vsel %vm637_vm8, %v719_v45, %v718_v37  ;;  %v802_v3 = vshll.u32 %v801_v49, 30  ;;  %vm875_vm5 = vcmp.lt.s32.totalorder %v856_v42, 1  ;;  %v868_v62 = vor.u32 %v867_v35, %v866_v44 }
  0xd8   : > { %v723_v47 = vsel %vm8546_vm13, %v8315_v57, %v720_v25  ;;  %v874_v15 = vor.u32 %v873_v36, %v872_v22  ;;  %vm878_vm6 = vcmp.lt.s32.totalorder %v856_v42, 4  ;;  %vm877_vm7 = vcmp.lt.s32.totalorder %v856_v42, 3 }
  0xd9   : > { %7643 = vcosq.f32 %v723_v47  ;;  %v8610_v55 = vsub.s32 %v799_v19, %v802_v3  ;;  %v950_v10 = vand.u32 2139095040, %v8572_v58  ;;  %vm876_vm9 = vcmp.lt.s32.totalorder %v856_v42, 2 }
  0xda   : > { %7645 = vsinq.f32 %v723_v47  ;;  %v880_v56 = vsel %vm878_vm6, %v868_v62, 2102212464  ;;  %v883_v2 = vsel %vm875_vm5, %v862_v53, %v865_v63  ;;  %v729_v23 = vand.u32 3, %v728_v46 }
  0xdb   : > { %v805_v43 = vsub.s32 0, %v8610_v55  ;;  %v825_v5 = vsub.s32 4, %v801_v49  ;;  %v884_v50 = vsel %vm878_vm6, %v871_v61, 920167782  ;;  %v879_v7 = vsel %vm875_vm5, %v859_v60, %v862_v53 }
  0xdc   : > { %v885_v31 = vsel %vm877_vm7, %v868_v62, %v884_v50  ;;  %v887_v40 = vsel %vm875_vm5, %v865_v63, %v868_v62  ;;  %v888_v51 = vsel %vm878_vm6, %v874_v15, 1326507024  ;;  %v881_v4 = vsel %vm877_vm7, %v865_v63, %v880_v56 }
  0xdd   : > { %v7070_v11 = vmin.u32 %v805_v43, %v8610_v55  ;;  %v886_v14 = vsel %vm876_vm9, %v883_v2, %v885_v31  ;;  %v889_v12 = vsel %vm877_vm7, %v871_v61, %v888_v51  ;;  %v951_v19 = vshrl.u32 %v950_v10, 23 }
  0xde   : > { %v890_v38 = vsel %vm876_vm9, %v887_v40, %v889_v12  ;;  %v8630_v17 = vmul.u32.u64.low %v8584_v16, %v886_v14  ;;  %v8631_v18 = vmul.u32.u64.high %v8584_v16, %v886_v14, %v8630_v17  ;;  %vm727_vm8 = vweird.f32 %v8315_v57 }
  0xdf   : > { %vm8637_vm10 = vcmp.le.f32.partialorder %v739_v13, 0.7853982  ;;  %v807_v33 = vclz %v7070_v11  ;;  %v826_v48 = vsel %vm741_vm4, %v825_v5, %v801_v49  ;;  %v882_v59 = vsel %vm876_vm9, %v879_v7, %v881_v4 }
  0xe0   : > { %v8645_v34 = vmul.u32.u64.low %v8584_v16, %v890_v38  ;;  %v8646_v6 = vmul.u32.u64.high %v8584_v16, %v890_v38, %v8645_v34  ;;  %v7077_v37 = vadd.s32 4294967169, %v951_v19  ;;  %vm730_vm11 = vcmp.lt.s32.totalorder %v729_v23, 2 }
  0xe1   : > { %vm731_vm12 = vcmp.eq.s32.totalorder %v729_v23, 0  ;;  %v7071_v41 = vadd.s32 4294967294, %v807_v33  ;;  %v1054_v44 = vand.u32 2139095040, %v8626_v54  ;;  %vm734_vm13 = vcmp.eq.s32.totalorder %v729_v23, 2 }
  0xe2   : > { %v901_v13 = vadd.s32 1, %v8631_v18  ;;  %v954_v35 = vand.u32 8388607, %v947_v0  ;;  %v957_v8 = vadd.s32 1, %v7077_v37  ;;  %v795_v42 = vadd.s32 %v8561_v21, %v8558_v27 }
  0xe3   : > { %v7644_v52 = vpop.eup %7643  ;;  %vm7072_vm14 = vcmp.lt.s32.totalorder %v7071_v41, 0  ;;  %v828_v45 = vsel %vm8637_vm10, 0, %v826_v48  ;;  %v898_v46 = vmul.u32 %v8584_v16, %v882_v59  ;;  %vm900_vm15 = vc.u32 %v8646_v6, %v8630_v17 }
  0xe4   : > { %v7646_v49 = vpop.eup %7645  ;;  %v735_v22 = vxor.u32 2147483648, %v7644_v52  ;;  %v810_v60 = vsel %vm7072_vm14, 0, %v7071_v41  ;;  %v1055_v53 = vshrl.u32 %v1054_v44, 23  ;;  %v832_v21 = vadd.s32 3, %v828_v45 }
  0xe5   : > { %v732_v63 = vxor.u32 2147483648, %v7646_v49  ;;  %v811_v36 = vsub.s32 32, %v810_v60  ;;  %v812_v25 = vshll.u32 %v8610_v55, %v810_v60  ;;  %v815_v3 = vsub.s32 4294967266, %v810_v60 }
  0xe6   : > { %v736_v27 = vsel %vm734_vm13, %v735_v22, %v7646_v49  ;;  %v902_v61 = vsel %vm900_vm15, %v901_v13, %v8631_v18  ;;  %vm958_vm0 = vcmp.gt.s32.totalorder %v957_v8, 0  ;;  %v1051_v2 = vand.u32 2147483647, %v8626_v54 }
  0xe7   : > { %v733_v16 = vsel %vm731_vm12, %v7644_v52, %v732_v63  ;;  %v813_v47 = vshrl.u32 %v795_v42, %v811_v36  ;;  %v816_v62 = vadd.s32 127, %v815_v3  ;;  %v903_v15 = vadd.s32 %v902_v61, %v898_v46 }
  0xe8   : > { %v737_v10 = vsel %vm730_vm11, %v733_v16, %v736_v27  ;;  %v959_v56 = vsel %vm958_vm0, %v957_v8, 0  ;;  %v7081_v43 = vadd.s32 4294967169, %v1055_v53  ;;  %v8667_v31 = vand.u32 3, %v832_v21 }
  0xe9   : > { %v738_v55 = vsel %vm727_vm8, nan, %v737_v10  ;;  %v814_v5 = vor.u32 %v813_v47, %v812_v25  ;;  %v817_v50 = vshll.u32 %v816_v62, 23  ;;  %v904_v7 = vadd.s32 536870912, %v903_v15 }
  0xea   : > { %v961_v40 = vand.u32 31, %v959_v56  ;;  %6879 = vst [vmem:[%s8389_s16 + $0x20] sm:$0xff] %v738_v55  ;;  %v955_v23 = vor.u32 8388608, %v954_v35  ;;  %v8672_v14 = vshrl.u32 %v959_v56, 5  ;;  %v8676_v38 = vand.u32 8388607, %v1051_v2 }
  0xeb   : > { %v818_v51 = vor.u32 4788187, %v817_v50  ;;  %v821_v11 = vcvt.s32.f32 %v814_v5  ;;  %v8670_v4 = vshrl.u32 %v904_v7, 30  ;;  %v1061_v57 = vadd.s32 1, %v7081_v43 }
  0xec   : > { %v962_v12 = vsub.s32 32, %v961_v40  ;;  %v964_v33 = vshll.u32 %v7982_v24, %v961_v40  ;;  %v967_v48 = vshll.u32 %v7983_v26, %v961_v40  ;;  %v970_v37 = vshll.u32 %v7984_v28, %v961_v40 }
  0xed   : > { %v819_v18 = vand.u32 2147483647, %v818_v51  ;;  %v906_v19 = vshll.u32 %v8670_v4, 30  ;;  %v973_v35 = vshll.u32 %v7985_v30, %v961_v40  ;;  %v899_v52 = vadd.s32 %v8630_v17, %v8646_v6 }
  0xee   : > { %v965_v59 = vshrl.u32 %v7983_v26, %v962_v12  ;;  %v968_v34 = vshrl.u32 %v7984_v28, %v962_v12  ;;  %v971_v41 = vshrl.u32 %v7985_v30, %v962_v12  ;;  %v974_v8 = vshrl.u32 %v7986_v32, %v962_v12 }
  0xef   : > { %v822_v44 = vmul.f32 %v821_v11, %v819_v18  ;;  %v8685_v13 = vsub.s32 %v903_v15, %v906_v19  ;;  %v8691_v42 = vshll.u32 %v955_v23, 8  ;;  %v1059_v45 = vor.u32 8388608, %v8676_v38 }
  0xf0   : > { %vm1062_vm1 = vcmp.gt.s32.totalorder %v1061_v57, 0  ;;  %v963_v22 = vshrl.u32 %v7982_v24, %v962_v12  ;;  %v966_v60 = vor.u32 %v965_v59, %v964_v33  ;;  %v969_v53 = vor.u32 %v968_v34, %v967_v48 }
  0xf1   : > { %v823_v46 = vxor.u32 2147483648, %v822_v44  ;;  %v909_v49 = vsub.s32 0, %v8685_v13  ;;  %v972_v63 = vor.u32 %v971_v41, %v970_v37  ;;  %v976_v36 = vshll.u32 %v7986_v32, %v961_v40 }
  0xf2   : > { %v977_v25 = vshrl.u32 %v7987_v39, %v962_v12  ;;  %vm845_vm2 = vcmp.lt.s32.totalorder %v8493_v9, 0  ;;  %v975_v3 = vor.u32 %v974_v8, %v973_v35  ;;  %vm979_vm3 = vcmp.lt.s32.totalorder %v8672_v14, 1 }
  0xf3   : > { %v824_v17 = vsel %vm741_vm4, %v823_v46, %v822_v44  ;;  %v7074_v6 = vmin.u32 %v909_v49, %v8685_v13  ;;  %vm982_vm5 = vcmp.lt.s32.totalorder %v8672_v14, 4  ;;  %v1063_v61 = vsel %vm1062_vm1, %v1061_v57, 0 }
  0xf4   : > { %v827_v27 = vsel %vm8637_vm10, %v8456_v20, %v824_v17  ;;  %v978_v21 = vor.u32 %v977_v25, %v976_v36  ;;  %vm981_vm4 = vcmp.lt.s32.totalorder %v8672_v14, 3  ;;  %v983_v47 = vsel %vm979_vm3, %v963_v22, %v966_v60 }
  0xf5   : > { %7647 = vcosq.f32 %v827_v27  ;;  %v911_v16 = vclz %v7074_v6  ;;  %vm980_vm6 = vcmp.lt.s32.totalorder %v8672_v14, 2  ;;  %v984_v62 = vsel %vm982_vm5, %v972_v63, 2102212464 }
  0xf6   : > { %7649 = vsinq.f32 %v827_v27  ;;  %v987_v1 = vsel %vm979_vm3, %v966_v60, %v969_v53  ;;  %vm838_vm7 = vcmp.eq.s32.totalorder %v8667_v31, 2  ;;  %v985_v10 = vsel %vm981_vm4, %v969_v53, %v984_v62 }
  0xf7   : > { %v7075_v15 = vadd.s32 4294967294, %v911_v16  ;;  %v988_v56 = vsel %vm982_vm5, %v975_v3, 920167782  ;;  %v991_v43 = vsel %vm979_vm3, %v969_v53, %v972_v63  ;;  %vm835_vm9 = vcmp.eq.s32.totalorder %v8667_v31, 0 }
  0xf8   : > { %v929_v55 = vsub.s32 4, %v8670_v4  ;;  %v986_v5 = vsel %vm980_vm6, %v983_v47, %v985_v10  ;;  %v989_v50 = vsel %vm981_vm4, %v972_v63, %v988_v56  ;;  %v992_v7 = vsel %vm982_vm5, %v978_v21, 1326507024 }
  0xf9   : > { %vm834_vm8 = vcmp.lt.s32.totalorder %v8667_v31, 2  ;;  %vm7076_vm10 = vcmp.lt.s32.totalorder %v7075_v15, 0  ;;  %v990_v40 = vsel %vm980_vm6, %v987_v1, %v989_v50  ;;  %v993_v51 = vsel %vm981_vm4, %v975_v3, %v992_v7 }
  0xfa   : > { %v8736_v11 = vshrl.u32 %v1063_v61, 5  ;;  %vm831_vm11 = vweird.f32 %v8456_v20  ;;  %v914_v23 = vsel %vm7076_vm10, 0, %v7075_v15  ;;  %v994_v12 = vsel %vm980_vm6, %v991_v43, %v993_v51 }
  0xfb   : > { %v8742_v57 = vmul.u32.u64.low %v8691_v42, %v990_v40  ;;  %v8743_v18 = vmul.u32.u64.high %v8691_v42, %v990_v40, %v8742_v57  ;;  %v915_v19 = vsub.s32 32, %v914_v23  ;;  %v916_v33 = vshll.u32 %v8685_v13, %v914_v23 }
  0xfc   : > { %v919_v48 = vsub.s32 4294967266, %v914_v23  ;;  %v1065_v59 = vand.u32 31, %v1063_v61  ;;  %v8750_v34 = vsel %vm845_vm2, %v929_v55, %v8670_v4  ;;  %v1002_v14 = vmul.u32 %v8691_v42, %v986_v5 }
  0xfd   : > { %v8753_v37 = vmul.u32.u64.low %v8691_v42, %v994_v12  ;;  %v8754_v41 = vmul.u32.u64.high %v8691_v42, %v994_v12, %v8753_v37  ;;  %v917_v44 = vshrl.u32 %v899_v52, %v915_v19  ;;  %vm1083_vm12 = vcmp.lt.s32.totalorder %v8736_v11, 1 }
  0xfe   : > { %v920_v35 = vadd.s32 127, %v919_v48  ;;  %v1066_v8 = vsub.s32 32, %v1065_v59  ;;  %v1005_v13 = vadd.s32 1, %v8743_v18  ;;  %v1068_v46 = vshll.u32 %v7982_v24, %v1065_v59 }
  0xff   : > { %v1071_v49 = vshll.u32 %v7983_v26, %v1065_v59  ;;  %v1074_v4 = vshll.u32 %v7984_v28, %v1065_v59  ;;  %v7648_v22 = vpop.eup %7647  ;;  %vm8764_vm13 = vcmp.le.f32.partialorder %v843_v29, 0.7853982  ;;  %v918_v52 = vor.u32 %v917_v44, %v916_v33 }
 0x100   : > { %v921_v42 = vshll.u32 %v920_v35, 23  ;;  %v1069_v53 = vshrl.u32 %v7983_v26, %v1066_v8  ;;  %v1077_v63 = vshll.u32 %v7985_v30, %v1065_v59  ;;  %v7650_v36 = vpop.eup %7649  ;;  %v839_v25 = vxor.u32 2147483648, %v7648_v22 }
 0x101   : > { %vm1004_vm14 = vc.u32 %v8754_v41, %v8742_v57  ;;  %v1067_v17 = vshrl.u32 %v7982_v24, %v1066_v8  ;;  %v1072_v6 = vshrl.u32 %v7984_v28, %v1066_v8  ;;  %v836_v3 = vxor.u32 2147483648, %v7650_v36 }
 0x102   : > { %v922_v29 = vor.u32 4788187, %v921_v42  ;;  %v925_v27 = vcvt.s32.f32 %v918_v52  ;;  %v1006_v21 = vsel %vm1004_vm14, %v1005_v13, %v8743_v18  ;;  %v840_v61 = vsel %vm838_vm7, %v839_v25, %v7650_v36 }
 0x103   : > { %v1007_v16 = vadd.s32 %v1006_v21, %v1002_v14  ;;  %v1070_v47 = vor.u32 %v1069_v53, %v1068_v46  ;;  %v1073_v62 = vor.u32 %v1072_v6, %v1071_v49  ;;  %v837_v1 = vsel %vm835_vm9, %v7648_v22, %v836_v3  ;;  %v8822_v22 = vld [vmem:[%s8105_s3 + $0x48] sm:$0xff] }
 0x104   : > { %v923_v15 = vand.u32 2147483647, %v922_v29  ;;  %v1075_v10 = vshrl.u32 %v7985_v30, %v1066_v8  ;;  %v1078_v56 = vshrl.u32 %v7986_v32, %v1066_v8  ;;  %v841_v43 = vsel %vm834_vm8, %v837_v1, %v840_v61 }
 0x105   : > { %v1008_v55 = vadd.s32 536870912, %v1007_v16  ;;  %v1080_v5 = vshll.u32 %v7986_v32, %v1065_v59  ;;  %v1081_v50 = vshrl.u32 %v7987_v39, %v1066_v8  ;;  %v842_v7 = vsel %vm831_vm11, nan, %v841_v43 }
 0x106   : > { %v926_v40 = vmul.f32 %v925_v27, %v923_v15  ;;  %v1076_v51 = vor.u32 %v1075_v10, %v1074_v4  ;;  %v1079_v23 = vor.u32 %v1078_v56, %v1077_v63  ;;  %vm1084_vm15 = vcmp.lt.s32.totalorder %v8736_v11, 2  ;;  %6880 = vst [vmem:[%s8389_s16 + $0x28] sm:$0xff] %v842_v7 }
 0x107   : > { %v1009_v12 = vshrl.u32 %v1008_v55, 30  ;;  %vm1085_vm0 = vcmp.lt.s32.totalorder %v8736_v11, 3  ;;  %vm1086_vm1 = vcmp.lt.s32.totalorder %v8736_v11, 4  ;;  %v1082_v18 = vor.u32 %v1081_v50, %v1080_v5 }
 0x108   : > { %v927_v31 = vxor.u32 2147483648, %v926_v40  ;;  %v1088_v19 = vsel %vm1086_vm1, %v1076_v51, 2102212464  ;;  %v1091_v20 = vsel %vm1083_vm12, %v1070_v47, %v1073_v62  ;;  %v932_v33 = vsel %vm8764_vm13, 0, %v8750_v34 }
 0x109   : > { %v1010_v48 = vshll.u32 %v1009_v12, 30  ;;  %v1092_v59 = vsel %vm1086_vm1, %v1079_v23, 920167782  ;;  %v1099_v37 = vshll.u32 %v1059_v45, 8  ;;  %v1087_v44 = vsel %vm1083_vm12, %v1067_v17, %v1070_v47 }
 0x10a   : > { %v928_v14 = vsel %vm845_vm2, %v927_v31, %v926_v40  ;;  %v1089_v35 = vsel %vm1085_vm0, %v1073_v62, %v1088_v19  ;;  %v1093_v34 = vsel %vm1085_vm0, %v1076_v51, %v1092_v59  ;;  %v1095_v45 = vsel %vm1083_vm12, %v1073_v62, %v1076_v51  ;;  %v8858_v51 = vld [vmem:[%s8105_s3 + $0x50] sm:$0xff] }
 0x10b   : > { %v931_v8 = vsel %vm8764_vm13, %v8493_v9, %v928_v14  ;;  %v8813_v13 = vsub.s32 %v1007_v16, %v1010_v48  ;;  %v1094_v38 = vsel %vm1084_vm15, %v1091_v20, %v1093_v34  ;;  %v936_v46 = vadd.s32 3, %v932_v33 }
 0x10c   : > { %7651 = vcosq.f32 %v931_v8  ;;  %v1033_v49 = vsub.s32 4, %v1009_v12  ;;  %v1096_v4 = vsel %vm1086_vm1, %v1082_v18, 1326507024  ;;  %v1090_v42 = vsel %vm1084_vm15, %v1087_v44, %v1089_v35 }
 0x10d   : > { %7653 = vsinq.f32 %v931_v8  ;;  %v1013_v60 = vsub.s32 0, %v8813_v13  ;;  %v1097_v52 = vsel %vm1085_vm0, %v1079_v23, %v1096_v4  ;;  %vm949_vm2 = vcmp.lt.s32.totalorder %v8572_v58, 0 }
 0x10e   : > { %v1098_v53 = vsel %vm1084_vm15, %v1095_v45, %v1097_v52  ;;  %v8831_v63 = vmul.u32.u64.low %v1099_v37, %v1094_v38  ;;  %v8832_v36 = vmul.u32.u64.high %v1099_v37, %v1094_v38, %v8831_v63  ;;  %v937_v3 = vand.u32 3, %v936_v46 }
 0x10f   : > { %v7078_v25 = vmin.u32 %v1013_v60, %v8813_v13  ;;  %v8836_v17 = vmul.u32.u64.low %v1099_v37, %v1098_v53  ;;  %v8837_v6 = vmul.u32.u64.high %v1099_v37, %v1098_v53, %v8836_v17  ;;  %v1034_v29 = vsel %vm949_vm2, %v1033_v49, %v1009_v12 }
 0x110   : > { %v1158_v27 = vand.u32 2139095040, %v8822_v22  ;;  %v1106_v61 = vmul.u32 %v1099_v37, %v1090_v42  ;;  %vm8844_vm3 = vcmp.le.f32.partialorder %v947_v0, 0.7853982  ;;  %v1109_v16 = vadd.s32 1, %v8832_v36 }
 0x111   : > { %v1015_v21 = vclz %v7078_v25  ;;  %vm935_vm5 = vweird.f32 %v8493_v9  ;;  %v1036_v1 = vsel %vm8844_vm3, 0, %v1034_v29  ;;  %vm1108_vm4 = vc.u32 %v8837_v6, %v8831_v63 }
 0x112   : > { %v1159_v47 = vshrl.u32 %v1158_v27, 23  ;;  %vm938_vm6 = vcmp.lt.s32.totalorder %v937_v3, 2  ;;  %v1110_v15 = vsel %vm1108_vm4, %v1109_v16, %v8832_v36  ;;  %v1155_v0 = vand.u32 2147483647, %v8822_v22 }
 0x113   : > { %v7079_v62 = vadd.s32 4294967294, %v1015_v21  ;;  %vm939_vm7 = vcmp.eq.s32.totalorder %v937_v3, 0  ;;  %v1003_v56 = vadd.s32 %v8742_v57, %v8754_v41  ;;  %v1111_v43 = vadd.s32 %v1110_v15, %v1106_v61 }
 0x114   : > { %v7085_v10 = vadd.s32 4294967169, %v1159_v47  ;;  %vm942_vm8 = vcmp.eq.s32.totalorder %v937_v3, 2  ;;  %v1040_v50 = vadd.s32 3, %v1036_v1  ;;  %v1162_v57 = vand.u32 8388607, %v1155_v0 }
 0x115   : > { %vm7080_vm9 = vcmp.lt.s32.totalorder %v7079_v62, 0  ;;  %v1112_v20 = vadd.s32 536870912, %v1111_v43  ;;  %v1262_v35 = vand.u32 2139095040, %v8858_v51  ;;  %v1107_v52 = vadd.s32 %v8831_v63, %v8837_v6 }
 0x116   : > { %v7652_v55 = vpop.eup %7651  ;;  %v1018_v5 = vsel %vm7080_vm9, 0, %v7079_v62  ;;  %v1165_v7 = vadd.s32 1, %v7085_v10  ;;  %v8870_v45 = vand.u32 3, %v1040_v50  ;;  %v1163_v42 = vor.u32 8388608, %v1162_v57 }
 0x117   : > { %v7654_v40 = vpop.eup %7653  ;;  %v943_v23 = vxor.u32 2147483648, %v7652_v55  ;;  %v1019_v12 = vsub.s32 32, %v1018_v5  ;;  %v1020_v31 = vshll.u32 %v8813_v13, %v1018_v5  ;;  %v1023_v18 = vsub.s32 4294967266, %v1018_v5 }
 0x118   : > { %v940_v19 = vxor.u32 2147483648, %v7654_v40  ;;  %vm1166_vm10 = vcmp.gt.s32.totalorder %v1165_v7, 0  ;;  %v8864_v14 = vshrl.u32 %v1112_v20, 30  ;;  %v1263_v17 = vshrl.u32 %v1262_v35, 23 }
 0x119   : > { %v944_v41 = vsel %vm942_vm8, %v943_v23, %v7654_v40  ;;  %v1021_v33 = vshrl.u32 %v1003_v56, %v1019_v12  ;;  %v1024_v48 = vadd.s32 127, %v1023_v18  ;;  %v1167_v59 = vsel %vm1166_vm10, %v1165_v7, 0 }
 0x11a   : > { %v941_v37 = vsel %vm939_vm7, %v7652_v55, %v940_v19  ;;  %v1169_v44 = vand.u32 31, %v1167_v59  ;;  %v1114_v46 = vshll.u32 %v8864_v14, 30  ;;  %v1259_v27 = vand.u32 2147483647, %v8858_v51 }
 0x11b   : > { %v945_v34 = vsel %vm938_vm6, %v941_v37, %v944_v41  ;;  %v1022_v8 = vor.u32 %v1021_v33, %v1020_v31  ;;  %v1025_v13 = vshll.u32 %v1024_v48, 23  ;;  %v1168_v61 = vshrl.u32 %v1167_v59, 5 }
 0x11c   : > { %v946_v38 = vsel %vm935_vm5, nan, %v945_v34  ;;  %v1170_v49 = vsub.s32 32, %v1169_v44  ;;  %v8875_v53 = vsub.s32 %v1111_v43, %v1114_v46  ;;  %v1172_v36 = vshll.u32 %v7982_v24, %v1169_v44 }
 0x11d   : > { %v1026_v4 = vor.u32 4788187, %v1025_v13  ;;  %v1029_v60 = vcvt.s32.f32 %v1022_v8  ;;  %6881 = vst [vmem:[%s8389_s16 + $0x30] sm:$0xff] %v946_v38  ;;  %v1175_v3 = vshll.u32 %v7983_v26, %v1169_v44  ;;  %v1178_v63 = vshll.u32 %v7984_v28, %v1169_v44 }
 0x11e   : > { %v1173_v25 = vshrl.u32 %v7983_v26, %v1170_v49  ;;  %v1176_v29 = vshrl.u32 %v7984_v28, %v1170_v49  ;;  %v1117_v21 = vsub.s32 0, %v8875_v53  ;;  %v1179_v6 = vshrl.u32 %v7985_v30, %v1170_v49 }
 0x11f   : > { %v1027_v9 = vand.u32 2147483647, %v1026_v4  ;;  %v1181_v47 = vshll.u32 %v7985_v30, %v1169_v44  ;;  %v1182_v62 = vshrl.u32 %v7986_v32, %v1170_v49  ;;  %v8887_v1 = vshll.u32 %v1163_v42, 8 }
 0x120   : > { %vm1053_vm11 = vcmp.lt.s32.totalorder %v8626_v54, 0  ;;  %v7082_v15 = vmin.u32 %v1117_v21, %v8875_v53  ;;  %v1174_v10 = vor.u32 %v1173_v25, %v1172_v36  ;;  %v1184_v56 = vshll.u32 %v7986_v32, %v1169_v44 }
 0x121   : > { %v1030_v16 = vmul.f32 %v1029_v60, %v1027_v9  ;;  %v7089_v43 = vadd.s32 4294967169, %v1263_v17  ;;  %v1177_v5 = vor.u32 %v1176_v29, %v1175_v3  ;;  %v1183_v50 = vor.u32 %v1182_v62, %v1181_v47 }
 0x122   : > { %v1185_v7 = vshrl.u32 %v7987_v39, %v1170_v49  ;;  %v1119_v40 = vclz %v7082_v15  ;;  %v1171_v23 = vshrl.u32 %v7982_v24, %v1170_v49  ;;  %v1180_v12 = vor.u32 %v1179_v6, %v1178_v63 }
 0x123   : > { %v1031_v55 = vxor.u32 2147483648, %v1030_v16  ;;  %vm1187_vm12 = vcmp.lt.s32.totalorder %v1168_v61, 1  ;;  %v1137_v18 = vsub.s32 4, %v8864_v14  ;;  %vm1189_vm13 = vcmp.lt.s32.totalorder %v1168_v61, 3 }
 0x124   : > { %v1186_v19 = vor.u32 %v1185_v7, %v1184_v56  ;;  %v7083_v57 = vadd.s32 4294967294, %v1119_v40  ;;  %vm1188_vm14 = vcmp.lt.s32.totalorder %v1168_v61, 2  ;;  %vm1190_vm15 = vcmp.lt.s32.totalorder %v1168_v61, 4 }
 0x125   : > { %v1032_v31 = vsel %vm949_vm2, %v1031_v55, %v1030_v16  ;;  %v1192_v41 = vsel %vm1190_vm15, %v1180_v12, 2102212464  ;;  %v1195_v33 = vsel %vm1187_vm12, %v1174_v10, %v1177_v5  ;;  %v1196_v48 = vsel %vm1190_vm15, %v1183_v50, 920167782 }
 0x126   : > { %v1035_v20 = vsel %vm8844_vm3, %v8572_v58, %v1032_v31  ;;  %vm7084_vm0 = vcmp.lt.s32.totalorder %v7083_v57, 0  ;;  %v1191_v59 = vsel %vm1187_vm12, %v1171_v23, %v1174_v10  ;;  %v1197_v37 = vsel %vm1189_vm13, %v1180_v12, %v1196_v48 }
 0x127   : > { %7655 = vcosq.f32 %v1035_v20  ;;  %v1122_v44 = vsel %vm7084_vm0, 0, %v7083_v57  ;;  %v1193_v11 = vsel %vm1189_vm13, %v1177_v5, %v1192_v41  ;;  %v1198_v35 = vsel %vm1188_vm14, %v1195_v33, %v1197_v37 }
 0x128   : > { %7657 = vsinq.f32 %v1035_v20  ;;  %v1199_v34 = vsel %vm1187_vm12, %v1177_v5, %v1180_v12  ;;  %v1123_v8 = vsub.s32 32, %v1122_v44  ;;  %v1124_v13 = vshll.u32 %v8875_v53, %v1122_v44  ;;  %v8951_v20 = vld [vmem:[%s8105_s3 + $0x58] sm:$0xff] }
 0x129   : > { %v1127_v38 = vsub.s32 4294967266, %v1122_v44  ;;  %v1200_v46 = vsel %vm1190_vm15, %v1186_v19, 1326507024  ;;  %v1138_v49 = vsel %vm1053_vm11, %v1137_v18, %v8864_v14  ;;  %v1194_v17 = vsel %vm1188_vm14, %v1191_v59, %v1193_v11 }
 0x12a   : > { %v1201_v4 = vsel %vm1189_vm13, %v1183_v50, %v1200_v46  ;;  %v8915_v60 = vmul.u32.u64.low %v8887_v1, %v1198_v35  ;;  %v8916_v42 = vmul.u32.u64.high %v8887_v1, %v1198_v35, %v8915_v60  ;;  %v1125_v36 = vshrl.u32 %v1107_v52, %v1123_v8 }
 0x12b   : > { %v1128_v25 = vadd.s32 127, %v1127_v38  ;;  %v1202_v53 = vsel %vm1188_vm14, %v1199_v34, %v1201_v4  ;;  %vm1039_vm1 = vweird.f32 %v8572_v58  ;;  %v1269_v14 = vadd.s32 1, %v7089_v43 }
 0x12c   : > { %v8923_v9 = vmul.u32.u64.low %v8887_v1, %v1202_v53  ;;  %v8924_v3 = vmul.u32.u64.high %v8887_v1, %v1202_v53, %v8923_v9  ;;  %vm8928_vm2 = vcmp.le.f32.partialorder %v1051_v2, 0.7853982  ;;  %v1126_v21 = vor.u32 %v1125_v36, %v1124_v13 }
 0x12d   : > { %v1129_v52 = vshll.u32 %v1128_v25, 23  ;;  %v8934_v63 = vand.u32 8388607, %v1259_v27  ;;  %v1140_v61 = vsel %vm8928_vm2, 0, %v1138_v49  ;;  %v1210_v6 = vmul.u32 %v8887_v1, %v1194_v17 }
 0x12e   : > { %v1213_v16 = vadd.s32 1, %v8916_v42  ;;  %vm1270_vm3 = vcmp.gt.s32.totalorder %v1269_v14, 0  ;;  %vm1042_vm5 = vcmp.lt.s32.totalorder %v8870_v45, 2  ;;  %v1133_v47 = vcvt.s32.f32 %v1126_v21 }
 0x12f   : > { %v1130_v2 = vor.u32 4788187, %v1129_v52  ;;  %v1271_v62 = vsel %vm1270_vm3, %v1269_v14, 0  ;;  %vm1043_vm4 = vcmp.eq.s32.totalorder %v8870_v45, 0  ;;  %vm1046_vm6 = vcmp.eq.s32.totalorder %v8870_v45, 2 }
 0x130   : > { %vm1212_vm7 = vc.u32 %v8924_v3, %v8915_v60  ;;  %v1273_v10 = vand.u32 31, %v1271_v62  ;;  %v1144_v55 = vadd.s32 3, %v1140_v61  ;;  %v1267_v40 = vor.u32 8388608, %v8934_v63 }
 0x131   : > { %v7656_v15 = vpop.eup %7655  ;;  %v1131_v43 = vand.u32 2147483647, %v1130_v2  ;;  %v1214_v5 = vsel %vm1212_vm7, %v1213_v16, %v8916_v42  ;;  %v8947_v18 = vshrl.u32 %v1271_v62, 5  ;;  %v1366_v49 = vand.u32 2139095040, %v8951_v20 }
 0x132   : > { %v7658_v56 = vpop.eup %7657  ;;  %v1047_v1 = vxor.u32 2147483648, %v7656_v15  ;;  %v1215_v7 = vadd.s32 %v1214_v5, %v1210_v6  ;;  %v1274_v23 = vsub.s32 32, %v1273_v10  ;;  %v1276_v19 = vshll.u32 %v7982_v24, %v1273_v10 }
 0x133   : > { %v1044_v50 = vxor.u32 2147483648, %v7658_v56  ;;  %v1134_v31 = vmul.f32 %v1133_v47, %v1131_v43  ;;  %v1279_v48 = vshll.u32 %v7983_v26, %v1273_v10  ;;  %v1282_v11 = vshll.u32 %v7984_v28, %v1273_v10 }
 0x134   : > { %v1048_v12 = vsel %vm1046_vm6, %v1047_v1, %v7658_v56  ;;  %v1216_v41 = vadd.s32 536870912, %v1215_v7  ;;  %v1277_v33 = vshrl.u32 %v7983_v26, %v1274_v23  ;;  %v1280_v44 = vshrl.u32 %v7984_v28, %v1274_v23 }
 0x135   : > { %v1045_v57 = vsel %vm1043_vm4, %v7656_v15, %v1044_v50  ;;  %v1135_v37 = vxor.u32 2147483648, %v1134_v31  ;;  %v1283_v8 = vshrl.u32 %v7985_v30, %v1274_v23  ;;  %v1285_v13 = vshll.u32 %v7985_v30, %v1273_v10 }
 0x136   : > { %v1049_v59 = vsel %vm1042_vm5, %v1045_v57, %v1048_v12  ;;  %v8963_v34 = vshrl.u32 %v1216_v41, 30  ;;  %v1275_v45 = vshrl.u32 %v7982_v24, %v1274_v23  ;;  %v1286_v46 = vshrl.u32 %v7986_v32, %v1274_v23 }
 0x137   : > { %v1050_v35 = vsel %vm1039_vm1, nan, %v1049_v59  ;;  %v1136_v38 = vsel %vm1053_vm11, %v1135_v37, %v1134_v31  ;;  %v1278_v42 = vor.u32 %v1277_v33, %v1276_v19  ;;  %v1288_v36 = vshll.u32 %v7986_v32, %v1273_v10 }
 0x138   : > { %6882 = vst [vmem:[%s8389_s16 + $0x38] sm:$0xff] %v1050_v35  ;;  %v1139_v58 = vsel %vm8928_vm2, %v8626_v54, %v1136_v38  ;;  %v1218_v4 = vshll.u32 %v8963_v34, 30  ;;  %v1281_v25 = vor.u32 %v1280_v44, %v1279_v48  ;;  %v1287_v17 = vor.u32 %v1286_v46, %v1285_v13 }
 0x139   : > { %7659 = vcosq.f32 %v1139_v58  ;;  %v1289_v53 = vshrl.u32 %v7987_v39, %v1274_v23  ;;  %v1284_v14 = vor.u32 %v1283_v8, %v1282_v11  ;;  %vm1291_vm9 = vcmp.lt.s32.totalorder %v8947_v18, 1 }
 0x13a   : > { %7661 = vsinq.f32 %v1139_v58  ;;  %v8979_v9 = vsub.s32 %v1215_v7, %v1218_v4  ;;  %vm1293_vm8 = vcmp.lt.s32.totalorder %v8947_v18, 3  ;;  %vm1294_vm10 = vcmp.lt.s32.totalorder %v8947_v18, 4 }
 0x13b   : > { %v1290_v21 = vor.u32 %v1289_v53, %v1288_v36  ;;  %v1367_v29 = vshrl.u32 %v1366_v49, 23  ;;  %v1145_v52 = vand.u32 3, %v1144_v55  ;;  %vm1292_vm11 = vcmp.lt.s32.totalorder %v8947_v18, 2 }
 0x13c   : > { %v1221_v63 = vsub.s32 0, %v8979_v9  ;;  %v1296_v61 = vsel %vm1294_vm10, %v1284_v14, 2102212464  ;;  %v1299_v6 = vsel %vm1291_vm9, %v1278_v42, %v1281_v25  ;;  %v1300_v16 = vsel %vm1294_vm10, %v1287_v17, 920167782 }
 0x13d   : > { %v1307_v2 = vshll.u32 %v1267_v40, 8  ;;  %v1363_v47 = vand.u32 2147483647, %v8951_v20  ;;  %vm1143_vm12 = vweird.f32 %v8626_v54  ;;  %vm1157_vm13 = vcmp.lt.s32.totalorder %v8822_v22, 0 }
 0x13e   : > { %v7086_v62 = vmin.u32 %v1221_v63, %v8979_v9  ;;  %v1295_v15 = vsel %vm1291_vm9, %v1275_v45, %v1278_v42  ;;  %v1297_v10 = vsel %vm1293_vm8, %v1281_v25, %v1296_v61  ;;  %v1301_v56 = vsel %vm1293_vm8, %v1284_v14, %v1300_v16 }
 0x13f   : > { %v1302_v1 = vsel %vm1292_vm11, %v1299_v6, %v1301_v56  ;;  %v1303_v43 = vsel %vm1291_vm9, %v1281_v25, %v1284_v14  ;;  %v1304_v55 = vsel %vm1294_vm10, %v1290_v21, 1326507024  ;;  %v7093_v5 = vadd.s32 4294967169, %v1367_v29 }
 0x140   : > { %vm1146_vm14 = vcmp.lt.s32.totalorder %v1145_v52, 2  ;;  %vm1147_vm15 = vcmp.eq.s32.totalorder %v1145_v52, 0  ;;  %vm1150_vm0 = vcmp.eq.s32.totalorder %v1145_v52, 2  ;;  %v1223_v50 = vclz %v7086_v62 }
 0x141   : > { %v1298_v7 = vsel %vm1292_vm11, %v1295_v15, %v1297_v10  ;;  %v1305_v40 = vsel %vm1293_vm8, %v1287_v17, %v1304_v55  ;;  %v9012_v23 = vmul.u32.u64.low %v1307_v2, %v1302_v1  ;;  %v9013_v12 = vmul.u32.u64.high %v1307_v2, %v1302_v1, %v9012_v23 }
 0x142   : > { %v7087_v31 = vadd.s32 4294967294, %v1223_v50  ;;  %v1306_v19 = vsel %vm1292_vm11, %v1303_v43, %v1305_v40  ;;  %v9020_v57 = vand.u32 8388607, %v1363_v47  ;;  %v1373_v41 = vadd.s32 1, %v7093_v5 }
 0x143   : > { %v7660_v33 = vpop.eup %7659  ;;  %v1211_v48 = vadd.s32 %v8915_v60, %v8924_v3  ;;  %v1241_v59 = vsub.s32 4, %v8963_v34  ;;  %v9025_v37 = vmul.u32.u64.low %v1307_v2, %v1306_v19  ;;  %v9026_v44 = vmul.u32.u64.high %v1307_v2, %v1306_v19, %v9025_v37 }
 0x144   : > { %v7662_v11 = vpop.eup %7661  ;;  %v1151_v35 = vxor.u32 2147483648, %v7660_v33  ;;  %vm7088_vm1 = vcmp.lt.s32.totalorder %v7087_v31, 0  ;;  %v1314_v8 = vmul.u32 %v1307_v2, %v1298_v7  ;;  %vm1374_vm2 = vcmp.gt.s32.totalorder %v1373_v41, 0 }
 0x145   : > { %v1148_v18 = vxor.u32 2147483648, %v7662_v11  ;;  %v1226_v13 = vsel %vm7088_vm1, 0, %v7087_v31  ;;  %v1317_v38 = vadd.s32 1, %v9013_v12  ;;  %v1375_v45 = vsel %vm1374_vm2, %v1373_v41, 0 }
 0x146   : > { %v1152_v46 = vsel %vm1150_vm0, %v1151_v35, %v7662_v11  ;;  %v1227_v49 = vsub.s32 32, %v1226_v13  ;;  %v1228_v60 = vshll.u32 %v8979_v9, %v1226_v13  ;;  %v1231_v3 = vsub.s32 4294967266, %v1226_v13 }
 0x147   : > { %v1149_v58 = vsel %vm1147_vm15, %v7660_v33, %v1148_v18  ;;  %vm9034_vm3 = vcmp.le.f32.partialorder %v1155_v0, 0.7853982  ;;  %v1242_v42 = vsel %vm1157_vm13, %v1241_v59, %v8963_v34  ;;  %vm1316_vm5 = vc.u32 %v9026_v44, %v9012_v23 }
 0x148   : > { %v1153_v36 = vsel %vm1146_vm14, %v1149_v58, %v1152_v46  ;;  %v1229_v25 = vshrl.u32 %v1211_v48, %v1227_v49  ;;  %v1232_v17 = vadd.s32 127, %v1231_v3  ;;  %v1318_v53 = vsel %vm1316_vm5, %v1317_v38, %v9013_v12 }
 0x149   : > { %v1154_v9 = vsel %vm1143_vm12, nan, %v1153_v36  ;;  %v1319_v0 = vadd.s32 %v1318_v53, %v1314_v8  ;;  %v9047_v14 = vshrl.u32 %v1375_v45, 5  ;;  %v1377_v21 = vand.u32 31, %v1375_v45 }
 0x14a   : > { %v1230_v29 = vor.u32 %v1229_v25, %v1228_v60  ;;  %v1233_v63 = vshll.u32 %v1232_v17, 23  ;;  %v1244_v34 = vsel %vm9034_vm3, 0, %v1242_v42  ;;  %v1371_v61 = vor.u32 8388608, %v9020_v57  ;;  %6883 = vst [vmem:[%s8389_s16 + $0x40] sm:$0xff] %v1154_v9  ;;  %v9090_v25 = vld [vmem:[%s8105_s3 + $0x60] sm:$0xff] }
 0x14b   : > { %v1320_v52 = vadd.s32 536870912, %v1319_v0  ;;  %v1378_v6 = vsub.s32 32, %v1377_v21  ;;  %v1380_v16 = vshll.u32 %v7982_v24, %v1377_v21  ;;  %v1383_v2 = vshll.u32 %v7983_v26, %v1377_v21 }
 0x14c   : > { %v1234_v54 = vor.u32 4788187, %v1233_v63  ;;  %v1237_v62 = vcvt.s32.f32 %v1230_v29  ;;  %v1386_v15 = vshll.u32 %v7984_v28, %v1377_v21  ;;  %v1389_v10 = vshll.u32 %v7985_v30, %v1377_v21 }
 0x14d   : > { %v1321_v56 = vshrl.u32 %v1320_v52, 30  ;;  %v1381_v1 = vshrl.u32 %v7983_v26, %v1378_v6  ;;  %v1384_v43 = vshrl.u32 %v7984_v28, %v1378_v6  ;;  %vm1395_vm4 = vcmp.lt.s32.totalorder %v9047_v14, 1 }
 0x14e   : > { %v1235_v55 = vand.u32 2147483647, %v1234_v54  ;;  %v1387_v5 = vshrl.u32 %v7985_v30, %v1378_v6  ;;  %v1390_v50 = vshrl.u32 %v7986_v32, %v1378_v6  ;;  %v1392_v7 = vshll.u32 %v7986_v32, %v1377_v21 }
 0x14f   : > { %v1322_v40 = vshll.u32 %v1321_v56, 30  ;;  %v1379_v12 = vshrl.u32 %v7982_v24, %v1378_v6  ;;  %v1382_v31 = vor.u32 %v1381_v1, %v1380_v16  ;;  %v1385_v19 = vor.u32 %v1384_v43, %v1383_v2 }
 0x150   : > { %v1238_v57 = vmul.f32 %v1237_v62, %v1235_v55  ;;  %v1388_v41 = vor.u32 %v1387_v5, %v1386_v15  ;;  %v1391_v33 = vor.u32 %v1390_v50, %v1389_v10  ;;  %v1393_v48 = vshrl.u32 %v7987_v39, %v1378_v6 }
 0x151   : > { %v1248_v59 = vadd.s32 3, %v1244_v34  ;;  %v9065_v37 = vsub.s32 %v1319_v0, %v1322_v40  ;;  %vm1398_vm6 = vcmp.lt.s32.totalorder %v9047_v14, 4  ;;  %vm1397_vm7 = vcmp.lt.s32.totalorder %v9047_v14, 3 }
 0x152   : > { %v1239_v11 = vxor.u32 2147483648, %v1238_v57  ;;  %v1394_v35 = vor.u32 %v1393_v48, %v1392_v7  ;;  %v1400_v8 = vsel %vm1398_vm6, %v1388_v41, 2102212464  ;;  %vm1396_vm9 = vcmp.lt.s32.totalorder %v9047_v14, 2 }
 0x153   : > { %v1325_v18 = vsub.s32 0, %v9065_v37  ;;  %v1403_v13 = vsel %vm1395_vm4, %v1382_v31, %v1385_v19  ;;  %v1411_v38 = vshll.u32 %v1371_v61, 8  ;;  %v1345_v46 = vsub.s32 4, %v1321_v56 }
 0x154   : > { %v1240_v45 = vsel %vm1157_vm13, %v1239_v11, %v1238_v57  ;;  %v1399_v49 = vsel %vm1395_vm4, %v1379_v12, %v1382_v31  ;;  %v1404_v60 = vsel %vm1398_vm6, %v1391_v33, 920167782  ;;  %v1401_v42 = vsel %vm1397_vm7, %v1385_v19, %v1400_v8  ;;  %v9132_v11 = vld [vmem:[%s8105_s3 + $0x68] sm:$0xff] }
 0x155   : > { %v1243_v3 = vsel %vm9034_vm3, %v8822_v22, %v1240_v45  ;;  %v7090_v58 = vmin.u32 %v1325_v18, %v9065_v37  ;;  %v1405_v36 = vsel %vm1397_vm7, %v1388_v41, %v1404_v60  ;;  %v1407_v53 = vsel %vm1395_vm4, %v1385_v19, %v1388_v41 }
 0x156   : > { %7663 = vcosq.f32 %v1243_v3  ;;  %v1406_v17 = vsel %vm1396_vm9, %v1403_v13, %v1405_v36  ;;  %v1408_v4 = vsel %vm1398_vm6, %v1394_v35, 1326507024  ;;  %vm1261_vm8 = vcmp.lt.s32.totalorder %v8858_v51, 0 }
 0x157   : > { %7665 = vsinq.f32 %v1243_v3  ;;  %v1327_v9 = vclz %v7090_v58  ;;  %v1346_v0 = vsel %vm1261_vm8, %v1345_v46, %v1321_v56  ;;  %v1409_v21 = vsel %vm1397_vm7, %v1391_v33, %v1408_v4 }
 0x158   : > { %v9103_v29 = vmul.u32.u64.low %v1411_v38, %v1406_v17  ;;  %v9104_v63 = vmul.u32.u64.high %v1411_v38, %v1406_v17, %v9103_v29  ;;  %v1402_v61 = vsel %vm1396_vm9, %v1399_v49, %v1401_v42  ;;  %v1410_v52 = vsel %vm1396_vm9, %v1407_v53, %v1409_v21 }
 0x159   : > { %v7091_v34 = vadd.s32 4294967294, %v1327_v9  ;;  %v1470_v6 = vand.u32 2139095040, %v9090_v25  ;;  %v1249_v16 = vand.u32 3, %v1248_v59  ;;  %vm9113_vm10 = vcmp.le.f32.partialorder %v1259_v27, 0.7853982 }
 0x15a   : > { %v9117_v54 = vmul.u32.u64.low %v1411_v38, %v1410_v52  ;;  %v9118_v62 = vmul.u32.u64.high %v1411_v38, %v1410_v52, %v9117_v54  ;;  %v1315_v15 = vadd.s32 %v9012_v23, %v9026_v44  ;;  %v1467_v10 = vand.u32 2147483647, %v9090_v25 }
 0x15b   : > { %vm7092_vm11 = vcmp.lt.s32.totalorder %v7091_v34, 0  ;;  %v1471_v14 = vshrl.u32 %v1470_v6, 23  ;;  %v1348_v1 = vsel %vm9113_vm10, 0, %v1346_v0  ;;  %v1418_v43 = vmul.u32 %v1411_v38, %v1402_v61 }
 0x15c   : > { %v1330_v56 = vsel %vm7092_vm11, 0, %v7091_v34  ;;  %v1421_v27 = vadd.s32 1, %v9104_v63  ;;  %vm1251_vm12 = vcmp.eq.s32.totalorder %v1249_v16, 0  ;;  %vm1420_vm13 = vc.u32 %v9118_v62, %v9103_v29 }
 0x15d   : > { %v1331_v55 = vsub.s32 32, %v1330_v56  ;;  %v1332_v5 = vshll.u32 %v9065_v37, %v1330_v56  ;;  %v1335_v50 = vsub.s32 4294967266, %v1330_v56  ;;  %v7097_v7 = vadd.s32 4294967169, %v1471_v14 }
 0x15e   : > { %v1422_v40 = vsel %vm1420_vm13, %v1421_v27, %v9104_v63  ;;  %vm1254_vm14 = vcmp.eq.s32.totalorder %v1249_v16, 2  ;;  %v1352_v19 = vadd.s32 3, %v1348_v1  ;;  %v1474_v41 = vand.u32 8388607, %v1467_v10 }
 0x15f   : > { %v1333_v23 = vshrl.u32 %v1315_v15, %v1331_v55  ;;  %v1336_v44 = vadd.s32 127, %v1335_v50  ;;  %v1477_v12 = vadd.s32 1, %v7097_v7  ;;  %v1423_v57 = vadd.s32 %v1422_v40, %v1418_v43 }
 0x160   : > { %v7664_v31 = vpop.eup %7663  ;;  %vm1250_vm0 = vcmp.lt.s32.totalorder %v1249_v16, 2  ;;  %vm1247_vm1 = vweird.f32 %v8822_v22  ;;  %v1475_v60 = vor.u32 8388608, %v1474_v41  ;;  %v9138_v36 = vand.u32 3, %v1352_v19 }
 0x161   : > { %v7666_v33 = vpop.eup %7665  ;;  %v1255_v48 = vxor.u32 2147483648, %v7664_v31  ;;  %v1334_v59 = vor.u32 %v1333_v23, %v1332_v5  ;;  %v1337_v37 = vshll.u32 %v1336_v44, 23  ;;  %vm1478_vm15 = vcmp.gt.s32.totalorder %v1477_v12, 0 }
 0x162   : > { %v1252_v35 = vxor.u32 2147483648, %v7666_v33  ;;  %v1424_v8 = vadd.s32 536870912, %v1423_v57  ;;  %v1479_v18 = vsel %vm1478_vm15, %v1477_v12, 0  ;;  %v1574_v17 = vand.u32 2139095040, %v9132_v11 }
 0x163   : > { %v1256_v13 = vsel %vm1254_vm14, %v1255_v48, %v7666_v33  ;;  %v1338_v38 = vor.u32 4788187, %v1337_v37  ;;  %v1341_v45 = vcvt.s32.f32 %v1334_v59  ;;  %v1481_v3 = vand.u32 31, %v1479_v18 }
 0x164   : > { %v1253_v46 = vsel %vm1251_vm12, %v7664_v31, %v1252_v35  ;;  %v9136_v49 = vshrl.u32 %v1424_v8, 30  ;;  %v1480_v22 = vshrl.u32 %v1479_v18, 5  ;;  %v1419_v21 = vadd.s32 %v9103_v29, %v9118_v62 }
 0x165   : > { %v1257_v58 = vsel %vm1250_vm0, %v1253_v46, %v1256_v13  ;;  %v1339_v42 = vand.u32 2147483647, %v1338_v38  ;;  %v1482_v9 = vsub.s32 32, %v1481_v3  ;;  %v1484_v63 = vshll.u32 %v7982_v24, %v1481_v3 }
 0x166   : > { %v1258_v53 = vsel %vm1247_vm1, nan, %v1257_v58  ;;  %v1426_v4 = vshll.u32 %v9136_v49, 30  ;;  %v1571_v34 = vand.u32 2147483647, %v9132_v11  ;;  %v1487_v6 = vshll.u32 %v7983_v26, %v1481_v3 }
 0x167   : > { %v1342_v0 = vmul.f32 %v1341_v45, %v1339_v42  ;;  %6884 = vst [vmem:[%s8389_s16 + $0x48] sm:$0xff] %v1258_v53  ;;  %v1485_v52 = vshrl.u32 %v7983_v26, %v1482_v9  ;;  %v9150_v16 = vshll.u32 %v1475_v60, 8  ;;  %v1488_v15 = vshrl.u32 %v7984_v28, %v1482_v9 }
 0x168   : > { %v9146_v61 = vsub.s32 %v1423_v57, %v1426_v4  ;;  %v1490_v14 = vshll.u32 %v7984_v28, %v1481_v3  ;;  %v1491_v29 = vshrl.u32 %v7985_v30, %v1482_v9  ;;  %v1493_v56 = vshll.u32 %v7985_v30, %v1481_v3 }
 0x169   : > { %v1343_v54 = vxor.u32 2147483648, %v1342_v0  ;;  %vm1499_vm2 = vcmp.lt.s32.totalorder %v1480_v22, 1  ;;  %v1575_v1 = vshrl.u32 %v1574_v17, 23  ;;  %v1483_v27 = vshrl.u32 %v7982_v24, %v1482_v9 }
 0x16a   : > { %v1429_v62 = vsub.s32 0, %v9146_v61  ;;  %v1486_v55 = vor.u32 %v1485_v52, %v1484_v63  ;;  %v1494_v5 = vshrl.u32 %v7986_v32, %v1482_v9  ;;  %v1489_v23 = vor.u32 %v1488_v15, %v1487_v6 }
 0x16b   : > { %v1344_v43 = vsel %vm1261_vm8, %v1343_v54, %v1342_v0  ;;  %v1496_v44 = vshll.u32 %v7986_v32, %v1481_v3  ;;  %v1492_v40 = vor.u32 %v1491_v29, %v1490_v14  ;;  %v1497_v31 = vshrl.u32 %v7987_v39, %v1482_v9 }
 0x16c   : > { %v1347_v50 = vsel %vm9113_vm10, %v8858_v51, %v1344_v43  ;;  %v7094_v7 = vmin.u32 %v1429_v62, %v9146_v61  ;;  %v1495_v12 = vor.u32 %v1494_v5, %v1493_v56  ;;  %vm1365_vm3 = vcmp.lt.s32.totalorder %v8951_v20, 0 }
 0x16d   : > { %7667 = vcosq.f32 %v1347_v50  ;;  %vm1501_vm5 = vcmp.lt.s32.totalorder %v1480_v22, 3  ;;  %v7101_v57 = vadd.s32 4294967169, %v1575_v1  ;;  %v1498_v41 = vor.u32 %v1497_v31, %v1496_v44 }
 0x16e   : > { %7669 = vsinq.f32 %v1347_v50  ;;  %v1431_v19 = vclz %v7094_v7  ;;  %vm1500_vm4 = vcmp.lt.s32.totalorder %v1480_v22, 2  ;;  %vm1502_vm6 = vcmp.lt.s32.totalorder %v1480_v22, 4 }
 0x16f   : > { %v1503_v2 = vsel %vm1499_vm2, %v1483_v27, %v1486_v55  ;;  %v1504_v48 = vsel %vm1502_vm6, %v1492_v40, 2102212464  ;;  %v1507_v59 = vsel %vm1499_vm2, %v1486_v55, %v1489_v23  ;;  %v1508_v37 = vsel %vm1502_vm6, %v1495_v12, 920167782 }
 0x170   : > { %v7095_v33 = vadd.s32 4294967294, %v1431_v19  ;;  %v1505_v35 = vsel %vm1501_vm5, %v1489_v23, %v1504_v48  ;;  %v1509_v8 = vsel %vm1501_vm5, %v1492_v40, %v1508_v37  ;;  %v1511_v18 = vsel %vm1499_vm2, %v1489_v23, %v1492_v40 }
 0x171   : > { %v1512_v13 = vsel %vm1502_vm6, %v1498_v41, 1326507024  ;;  %vm1351_vm7 = vweird.f32 %v8858_v51  ;;  %v1449_v38 = vsub.s32 4, %v9136_v49  ;;  %v1510_v45 = vsel %vm1500_vm4, %v1507_v59, %v1509_v8 }
 0x172   : > { %vm7096_vm9 = vcmp.lt.s32.totalorder %v7095_v33, 0  ;;  %v1513_v46 = vsel %vm1501_vm5, %v1495_v12, %v1512_v13  ;;  %v9179_v58 = vmul.u32.u64.low %v9150_v16, %v1510_v45  ;;  %v9180_v42 = vmul.u32.u64.high %v9150_v16, %v1510_v45, %v9179_v58 }
 0x173   : > { %v1434_v60 = vsel %vm7096_vm9, 0, %v7095_v33  ;;  %v1514_v3 = vsel %vm1500_vm4, %v1511_v18, %v1513_v46  ;;  %v1506_v9 = vsel %vm1500_vm4, %v1503_v2, %v1505_v35  ;;  %vm1355_vm8 = vcmp.eq.s32.totalorder %v9138_v36, 0 }
 0x174   : > { %v1435_v17 = vsub.s32 32, %v1434_v60  ;;  %v1436_v53 = vshll.u32 %v9146_v61, %v1434_v60  ;;  %v1439_v4 = vsub.s32 4294967266, %v1434_v60  ;;  %v1581_v52 = vadd.s32 1, %v7101_v57 }
 0x175   : > { %v9187_v0 = vmul.u32.u64.low %v9150_v16, %v1514_v3  ;;  %v9188_v63 = vmul.u32.u64.high %v9150_v16, %v1514_v3, %v9187_v0  ;;  %vm1358_vm10 = vcmp.eq.s32.totalorder %v9138_v36, 2  ;;  %v9193_v15 = vand.u32 8388607, %v1571_v34 }
 0x176   : > { %v1437_v6 = vshrl.u32 %v1419_v21, %v1435_v17  ;;  %v1440_v54 = vadd.s32 127, %v1439_v4  ;;  %v1450_v22 = vsel %vm1365_vm3, %v1449_v38, %v9136_v49  ;;  %v1522_v61 = vmul.u32 %v9150_v16, %v1506_v9  ;;  %v9237_v0 = vld [vmem:[%s8105_s3 + $0x70] sm:$0xff] }
 0x177   : > { %v7668_v14 = vpop.eup %7667  ;;  %v1525_v29 = vadd.s32 1, %v9180_v42  ;;  %vm1582_vm11 = vcmp.gt.s32.totalorder %v1581_v52, 0  ;;  %vm1354_vm12 = vcmp.lt.s32.totalorder %v9138_v36, 2  ;;  %vm9203_vm13 = vcmp.le.f32.partialorder %v1363_v47, 0.7853982 }
 0x178   : > { %v7670_v62 = vpop.eup %7669  ;;  %v1359_v56 = vxor.u32 2147483648, %v7668_v14  ;;  %v1438_v1 = vor.u32 %v1437_v6, %v1436_v53  ;;  %v1441_v43 = vshll.u32 %v1440_v54, 23  ;;  %v1583_v21 = vsel %vm1582_vm11, %v1581_v52, 0 }
 0x179   : > { %v1356_v27 = vxor.u32 2147483648, %v7670_v62  ;;  %vm1524_vm14 = vc.u32 %v9188_v63, %v9179_v58  ;;  %v1452_v47 = vsel %vm9203_vm13, 0, %v1450_v22  ;;  %v1585_v44 = vand.u32 31, %v1583_v21 }
 0x17a   : > { %v1360_v49 = vsel %vm1358_vm10, %v1359_v56, %v7670_v62  ;;  %v1442_v16 = vor.u32 4788187, %v1441_v43  ;;  %v1445_v5 = vcvt.s32.f32 %v1438_v1  ;;  %v1526_v50 = vsel %vm1524_vm14, %v1525_v29, %v9180_v42 }
 0x17b   : > { %v1357_v7 = vsel %vm1355_vm8, %v7668_v14, %v1356_v27  ;;  %v1527_v23 = vadd.s32 %v1526_v50, %v1522_v61  ;;  %v1579_v31 = vor.u32 8388608, %v9193_v15  ;;  %v9217_v19 = vshrl.u32 %v1583_v21, 5 }
 0x17c   : > { %v1361_v40 = vsel %vm1354_vm12, %v1357_v7, %v1360_v49  ;;  %v1443_v12 = vand.u32 2147483647, %v1442_v16  ;;  %v1586_v2 = vsub.s32 32, %v1585_v44  ;;  %v1588_v36 = vshll.u32 %v7982_v24, %v1585_v44 }
 0x17d   : > { %v1362_v57 = vsel %vm1351_vm7, nan, %v1361_v40  ;;  %v1528_v41 = vadd.s32 536870912, %v1527_v23  ;;  %v1456_v48 = vadd.s32 3, %v1452_v47  ;;  %v1591_v59 = vshll.u32 %v7983_v26, %v1585_v44 }
 0x17e   : > { %v1446_v33 = vmul.f32 %v1445_v5, %v1443_v12  ;;  %v1597_v37 = vshll.u32 %v7985_v30, %v1585_v44  ;;  %6885 = vst [vmem:[%s8389_s16 + $0x50] sm:$0xff] %v1362_v57  ;;  %v1589_v8 = vshrl.u32 %v7983_v26, %v1586_v2  ;;  %v1592_v18 = vshrl.u32 %v7984_v28, %v1586_v2 }
 0x17f   : > { %v1529_v35 = vshrl.u32 %v1528_v41, 30  ;;  %v1594_v51 = vshll.u32 %v7984_v28, %v1585_v44  ;;  %v1595_v38 = vshrl.u32 %v7985_v30, %v1586_v2  ;;  %v1598_v45 = vshrl.u32 %v7986_v32, %v1586_v2 }
 0x180   : > { %v1447_v13 = vxor.u32 2147483648, %v1446_v33  ;;  %v1600_v46 = vshll.u32 %v7986_v32, %v1585_v44  ;;  %v1587_v3 = vshrl.u32 %v7982_v24, %v1586_v2  ;;  %v1590_v42 = vor.u32 %v1589_v8, %v1588_v36 }
 0x181   : > { %v1530_v60 = vshll.u32 %v1529_v35, 30  ;;  %vm1603_vm15 = vcmp.lt.s32.totalorder %v9217_v19, 1  ;;  %v1593_v53 = vor.u32 %v1592_v18, %v1591_v59  ;;  %v1599_v4 = vor.u32 %v1598_v45, %v1597_v37 }
 0x182   : > { %v1448_v17 = vsel %vm1365_vm3, %v1447_v13, %v1446_v33  ;;  %v1601_v9 = vshrl.u32 %v7987_v39, %v1586_v2  ;;  %v1596_v54 = vor.u32 %v1595_v38, %v1594_v51  ;;  %vm1606_vm0 = vcmp.lt.s32.totalorder %v9217_v19, 4 }
 0x183   : > { %v1451_v52 = vsel %vm9203_vm13, %v8951_v20, %v1448_v17  ;;  %v9242_v6 = vsub.s32 %v1527_v23, %v1530_v60  ;;  %v9245_v15 = vand.u32 3, %v1456_v48  ;;  %vm1605_vm1 = vcmp.lt.s32.totalorder %v9217_v19, 3 }
 0x184   : > { %7671 = vcosq.f32 %v1451_v52  ;;  %v1602_v14 = vor.u32 %v1601_v9, %v1600_v46  ;;  %vm1604_vm2 = vcmp.lt.s32.totalorder %v9217_v19, 2  ;;  %v1608_v61 = vsel %vm1606_vm0, %v1596_v54, 2102212464 }
 0x185   : > { %7673 = vsinq.f32 %v1451_v52  ;;  %v1533_v22 = vsub.s32 0, %v9242_v6  ;;  %v1611_v29 = vsel %vm1603_vm15, %v1590_v42, %v1593_v53  ;;  %v1612_v62 = vsel %vm1606_vm0, %v1599_v4, 920167782 }
 0x186   : > { %v1619_v56 = vshll.u32 %v1579_v31, 8  ;;  %v1678_v1 = vand.u32 2139095040, %v9237_v0  ;;  %vm1469_vm3 = vcmp.lt.s32.totalorder %v9090_v25, 0  ;;  %v1607_v21 = vsel %vm1603_vm15, %v1587_v3, %v1590_v42 }
 0x187   : > { %v7098_v43 = vmin.u32 %v1533_v22, %v9242_v6  ;;  %v1613_v27 = vsel %vm1605_vm1, %v1596_v54, %v1612_v62  ;;  %v1609_v55 = vsel %vm1605_vm1, %v1593_v53, %v1608_v61  ;;  %v1615_v16 = vsel %vm1603_vm15, %v1593_v53, %v1596_v54 }
 0x188   : > { %v1614_v49 = vsel %vm1604_vm2, %v1611_v29, %v1613_v27  ;;  %v1616_v5 = vsel %vm1606_vm0, %v1602_v14, 1326507024  ;;  %vm1455_vm5 = vweird.f32 %v8951_v20  ;;  %vm1458_vm4 = vcmp.lt.s32.totalorder %v9245_v15, 2 }
 0x189   : > { %vm9275_vm6 = vcmp.le.f32.partialorder %v1467_v10, 0.7853982  ;;  %v1535_v7 = vclz %v7098_v43  ;;  %v1553_v47 = vsub.s32 4, %v1529_v35  ;;  %v1617_v23 = vsel %vm1605_vm1, %v1599_v4, %v1616_v5 }
 0x18a   : > { %v9281_v44 = vmul.u32.u64.low %v1619_v56, %v1614_v49  ;;  %v9282_v40 = vmul.u32.u64.high %v1619_v56, %v1614_v49, %v9281_v44  ;;  %v1679_v12 = vshrl.u32 %v1678_v1, 23  ;;  %vm1459_vm7 = vcmp.eq.s32.totalorder %v9245_v15, 0 }
 0x18b   : > { %v7099_v31 = vadd.s32 4294967294, %v1535_v7  ;;  %v1610_v57 = vsel %vm1604_vm2, %v1607_v21, %v1609_v55  ;;  %v1618_v10 = vsel %vm1604_vm2, %v1615_v16, %v1617_v23  ;;  %v1675_v36 = vand.u32 2147483647, %v9237_v0 }
 0x18c   : > { %v9290_v41 = vmul.u32.u64.low %v1619_v56, %v1618_v10  ;;  %v9291_v2 = vmul.u32.u64.high %v1619_v56, %v1618_v10, %v9290_v41  ;;  %v7105_v33 = vadd.s32 4294967169, %v1679_v12  ;;  %vm1462_vm9 = vcmp.eq.s32.totalorder %v9245_v15, 2 }
 0x18d   : > { %v1523_v48 = vadd.s32 %v9179_v58, %v9188_v63  ;;  %vm7100_vm8 = vcmp.lt.s32.totalorder %v7099_v31, 0  ;;  %v1554_v59 = vsel %vm1469_vm3, %v1553_v47, %v1529_v35  ;;  %v1626_v18 = vmul.u32 %v1619_v56, %v1610_v57 }
 0x18e   : > { %v7672_v37 = vpop.eup %7671  ;;  %v1538_v8 = vsel %vm7100_vm8, 0, %v7099_v31  ;;  %v1629_v19 = vadd.s32 1, %v9282_v40  ;;  %v1685_v51 = vadd.s32 1, %v7105_v33  ;;  %vm1628_vm10 = vc.u32 %v9291_v2, %v9281_v44 }
 0x18f   : > { %v7674_v13 = vpop.eup %7673  ;;  %v1463_v38 = vxor.u32 2147483648, %v7672_v37  ;;  %v1539_v45 = vsub.s32 32, %v1538_v8  ;;  %v1540_v46 = vshll.u32 %v9242_v6, %v1538_v8  ;;  %v1543_v60 = vsub.s32 4294967266, %v1538_v8  ;;  %v9313_v6 = vld [vmem:[%s8105_s3 + $0x78] sm:$0xff] }
 0x190   : > { %v1460_v3 = vxor.u32 2147483648, %v7674_v13  ;;  %v1682_v58 = vand.u32 8388607, %v1675_v36  ;;  %vm1686_vm11 = vcmp.gt.s32.totalorder %v1685_v51, 0  ;;  %v1630_v17 = vsel %vm1628_vm10, %v1629_v19, %v9282_v40 }
 0x191   : > { %v1464_v63 = vsel %vm1462_vm9, %v1463_v38, %v7674_v13  ;;  %v1541_v35 = vshrl.u32 %v1523_v48, %v1539_v45  ;;  %v1544_v42 = vadd.s32 127, %v1543_v60  ;;  %v1556_v4 = vsel %vm9275_vm6, 0, %v1554_v59 }
 0x192   : > { %v1461_v53 = vsel %vm1459_vm7, %v7672_v37, %v1460_v3  ;;  %v1631_v9 = vadd.s32 %v1630_v17, %v1626_v18  ;;  %v1687_v52 = vsel %vm1686_vm11, %v1685_v51, 0  ;;  %v1560_v43 = vadd.s32 3, %v1556_v4 }
 0x193   : > { %v1465_v54 = vsel %vm1458_vm4, %v1461_v53, %v1464_v63  ;;  %v1542_v14 = vor.u32 %v1541_v35, %v1540_v46  ;;  %v1545_v22 = vshll.u32 %v1544_v42, 23  ;;  %v1689_v62 = vand.u32 31, %v1687_v52 }
 0x194   : > { %v1466_v61 = vsel %vm1455_vm5, nan, %v1465_v54  ;;  %v1632_v29 = vadd.s32 536870912, %v1631_v9  ;;  %v1683_v21 = vor.u32 8388608, %v1682_v58  ;;  %v1688_v55 = vshrl.u32 %v1687_v52, 5 }
 0x195   : > { %v1546_v56 = vor.u32 4788187, %v1545_v22  ;;  %v1549_v1 = vcvt.s32.f32 %v1542_v14  ;;  %6886 = vst [vmem:[%s8389_s16 + $0x58] sm:$0xff] %v1466_v61  ;;  %v1690_v49 = vsub.s32 32, %v1689_v62  ;;  %v1782_v16 = vand.u32 2139095040, %v9313_v6 }
 0x196   : > { %v1633_v27 = vshrl.u32 %v1632_v29, 30  ;;  %v1692_v15 = vshll.u32 %v7982_v24, %v1689_v62  ;;  %v1695_v7 = vshll.u32 %v7983_v26, %v1689_v62  ;;  %v1698_v20 = vshll.u32 %v7984_v28, %v1689_v62 }
 0x197   : > { %v1547_v5 = vand.u32 2147483647, %v1546_v56  ;;  %v1693_v23 = vshrl.u32 %v7983_v26, %v1690_v49  ;;  %v1701_v40 = vshll.u32 %v7985_v30, %v1689_v62  ;;  %v1704_v12 = vshll.u32 %v7986_v32, %v1689_v62 }
 0x198   : > { %v1634_v47 = vshll.u32 %v1633_v27, 30  ;;  %v1696_v57 = vshrl.u32 %v7984_v28, %v1690_v49  ;;  %v1699_v10 = vshrl.u32 %v7985_v30, %v1690_v49  ;;  %v1702_v41 = vshrl.u32 %v7986_v32, %v1690_v49 }
 0x199   : > { %v1550_v31 = vmul.f32 %v1549_v1, %v1547_v5  ;;  %v9330_v33 = vand.u32 3, %v1560_v43  ;;  %v1705_v59 = vshrl.u32 %v7987_v39, %v1690_v49  ;;  %v9335_v37 = vshll.u32 %v1683_v21, 8 }
 0x19a   : > { %v9332_v48 = vsub.s32 %v1631_v9, %v1634_v47  ;;  %vm1573_vm12 = vcmp.lt.s32.totalorder %v9132_v11, 0  ;;  %v1694_v18 = vor.u32 %v1693_v23, %v1692_v15  ;;  %v1697_v19 = vor.u32 %v1696_v57, %v1695_v7 }
 0x19b   : > { %v1551_v8 = vxor.u32 2147483648, %v1550_v31  ;;  %v1783_v51 = vshrl.u32 %v1782_v16, 23  ;;  %v1700_v38 = vor.u32 %v1699_v10, %v1698_v20  ;;  %v1703_v45 = vor.u32 %v1702_v41, %v1701_v40 }
 0x19c   : > { %v1637_v13 = vsub.s32 0, %v9332_v48  ;;  %vm1707_vm13 = vcmp.lt.s32.totalorder %v1688_v55, 1  ;;  %v1691_v60 = vshrl.u32 %v7982_v24, %v1690_v49  ;;  %v1706_v3 = vor.u32 %v1705_v59, %v1704_v12 }
 0x19d   : > { %v1552_v46 = vsel %vm1469_vm3, %v1551_v8, %v1550_v31  ;;  %vm1710_vm14 = vcmp.lt.s32.totalorder %v1688_v55, 4  ;;  %vm1709_vm15 = vcmp.lt.s32.totalorder %v1688_v55, 3  ;;  %vm9349_vm0 = vcmp.le.f32.partialorder %v1571_v34, 0.7853982 }
 0x19e   : > { %v1555_v58 = vsel %vm9275_vm6, %v9090_v25, %v1552_v46  ;;  %v7102_v63 = vmin.u32 %v1637_v13, %v9332_v48  ;;  %v1712_v35 = vsel %vm1710_vm14, %v1700_v38, 2102212464  ;;  %vm1708_vm1 = vcmp.lt.s32.totalorder %v1688_v55, 2 }
 0x19f   : > { %7675 = vcosq.f32 %v1555_v58  ;;  %v1715_v17 = vsel %vm1707_vm13, %v1694_v18, %v1697_v19  ;;  %v1716_v53 = vsel %vm1710_vm14, %v1703_v45, 920167782  ;;  %v1657_v4 = vsub.s32 4, %v1633_v27 }
 0x1a0   : > { %7677 = vsinq.f32 %v1555_v58  ;;  %v1639_v50 = vclz %v7102_v63  ;;  %v1779_v9 = vand.u32 2147483647, %v9313_v6  ;;  %v1711_v52 = vsel %vm1707_vm13, %v1691_v60, %v1694_v18 }
 0x1a1   : > { %v1713_v54 = vsel %vm1709_vm15, %v1697_v19, %v1712_v35  ;;  %v1717_v14 = vsel %vm1709_vm15, %v1700_v38, %v1716_v53  ;;  %v1719_v34 = vsel %vm1707_vm13, %v1697_v19, %v1700_v38  ;;  %v1627_v22 = vadd.s32 %v9281_v44, %v9291_v2 }
 0x1a2   : > { %v7103_v61 = vadd.s32 4294967294, %v1639_v50  ;;  %v1718_v29 = vsel %vm1708_vm1, %v1715_v17, %v1717_v14  ;;  %v1720_v62 = vsel %vm1710_vm14, %v1706_v3, 1326507024  ;;  %v7109_v21 = vadd.s32 4294967169, %v1783_v51 }
 0x1a3   : > { %v1721_v56 = vsel %vm1709_vm15, %v1703_v45, %v1720_v62  ;;  %v9366_v1 = vmul.u32.u64.low %v9335_v37, %v1718_v29  ;;  %v9367_v43 = vmul.u32.u64.high %v9335_v37, %v1718_v29, %v9366_v1  ;;  %vm1559_vm2 = vweird.f32 %v9090_v25 }
 0x1a4   : > { %vm7104_vm3 = vcmp.lt.s32.totalorder %v7103_v61, 0  ;;  %v1658_v49 = vsel %vm1573_vm12, %v1657_v4, %v1633_v27  ;;  %v1714_v44 = vsel %vm1708_vm1, %v1711_v52, %v1713_v54  ;;  %v1722_v2 = vsel %vm1708_vm1, %v1719_v34, %v1721_v56 }
 0x1a5   : > { %v1642_v16 = vsel %vm7104_vm3, 0, %v7103_v61  ;;  %v9376_v5 = vmul.u32.u64.low %v9335_v37, %v1722_v2  ;;  %v9377_v15 = vmul.u32.u64.high %v9335_v37, %v1722_v2, %v9376_v5  ;;  %v1789_v7 = vadd.s32 1, %v7109_v21 }
 0x1a6   : > { %vm1562_vm5 = vcmp.lt.s32.totalorder %v9330_v33, 2  ;;  %v1643_v20 = vsub.s32 32, %v1642_v16  ;;  %v1644_v47 = vshll.u32 %v9332_v48, %v1642_v16  ;;  %v1647_v23 = vsub.s32 4294967266, %v1642_v16 }
 0x1a7   : > { %v1730_v40 = vmul.u32 %v9335_v37, %v1714_v44  ;;  %v1733_v27 = vadd.s32 1, %v9367_v43  ;;  %v1786_v55 = vand.u32 8388607, %v1779_v9  ;;  %vm1790_vm4 = vcmp.gt.s32.totalorder %v1789_v7, 0 }
 0x1a8   : > { %v1645_v12 = vshrl.u32 %v1627_v22, %v1643_v20  ;;  %v1648_v31 = vadd.s32 127, %v1647_v23  ;;  %v1660_v57 = vsel %vm9349_vm0, 0, %v1658_v49  ;;  %v1791_v10 = vsel %vm1790_vm4, %v1789_v7, 0 }
 0x1a9   : > { %v7676_v41 = vpop.eup %7675  ;;  %vm1563_vm6 = vcmp.eq.s32.totalorder %v9330_v33, 0  ;;  %vm1566_vm7 = vcmp.eq.s32.totalorder %v9330_v33, 2  ;;  %vm1732_vm9 = vc.u32 %v9377_v15, %v9366_v1  ;;  %v1793_v48 = vand.u32 31, %v1791_v10 }
 0x1aa   : > { %v7678_v59 = vpop.eup %7677  ;;  %v1567_v37 = vxor.u32 2147483648, %v7676_v41  ;;  %v1646_v8 = vor.u32 %v1645_v12, %v1644_v47  ;;  %v1649_v18 = vshll.u32 %v1648_v31, 23  ;;  %v1734_v19 = vsel %vm1732_vm9, %v1733_v27, %v9367_v43 }
 0x1ab   : > { %v1564_v51 = vxor.u32 2147483648, %v7678_v59  ;;  %v1664_v13 = vadd.s32 3, %v1660_v57  ;;  %v1735_v38 = vadd.s32 %v1734_v19, %v1730_v40  ;;  %v1794_v45 = vsub.s32 32, %v1793_v48 }
 0x1ac   : > { %v1568_v46 = vsel %vm1566_vm7, %v1567_v37, %v7678_v59  ;;  %v1650_v60 = vor.u32 4788187, %v1649_v18  ;;  %v1653_v3 = vcvt.s32.f32 %v1646_v8  ;;  %v1787_v58 = vor.u32 8388608, %v1786_v55  ;;  %v9419_v55 = vld [vmem:[%s8105_s3 + $0x80] sm:$0xff] }
 0x1ad   : > { %v1565_v63 = vsel %vm1563_vm6, %v7676_v41, %v1564_v51  ;;  %v1736_v35 = vadd.s32 536870912, %v1735_v38  ;;  %v1796_v17 = vshll.u32 %v7982_v24, %v1793_v48  ;;  %v1799_v53 = vshll.u32 %v7983_v26, %v1793_v48 }
 0x1ae   : > { %v1569_v50 = vsel %vm1562_vm5, %v1565_v63, %v1568_v46  ;;  %v1651_v4 = vand.u32 2147483647, %v1650_v60  ;;  %v1797_v52 = vshrl.u32 %v7983_v26, %v1794_v45  ;;  %v1800_v54 = vshrl.u32 %v7984_v28, %v1794_v45 }
 0x1af   : > { %v1570_v14 = vsel %vm1559_vm2, nan, %v1569_v50  ;;  %v1737_v34 = vshrl.u32 %v1736_v35, 30  ;;  %v1802_v22 = vshll.u32 %v7984_v28, %v1793_v48  ;;  %v1803_v61 = vshrl.u32 %v7985_v30, %v1794_v45 }
 0x1b0   : > { %v1654_v29 = vmul.f32 %v1653_v3, %v1651_v4  ;;  %v1792_v62 = vshrl.u32 %v1791_v10, 5  ;;  %v1805_v56 = vshll.u32 %v7985_v30, %v1793_v48  ;;  %v1806_v33 = vshrl.u32 %v7986_v32, %v1794_v45  ;;  %6887 = vst [vmem:[%s8389_s16 + $0x60] sm:$0xff] %v1570_v14 }
 0x1b1   : > { %v9407_v43 = vand.u32 3, %v1664_v13  ;;  %v1738_v21 = vshll.u32 %v1737_v34, 30  ;;  %v1808_v49 = vshll.u32 %v7986_v32, %v1793_v48  ;;  %v9410_v25 = vshll.u32 %v1787_v58, 8 }
 0x1b2   : > { %v1655_v44 = vxor.u32 2147483648, %v1654_v29  ;;  %v1795_v2 = vshrl.u32 %v7982_v24, %v1794_v45  ;;  %v1807_v16 = vor.u32 %v1806_v33, %v1805_v56  ;;  %v1809_v5 = vshrl.u32 %v7987_v39, %v1794_v45 }
 0x1b3   : > { %v9414_v7 = vsub.s32 %v1735_v38, %v1738_v21  ;;  %v1798_v20 = vor.u32 %v1797_v52, %v1796_v17  ;;  %v1801_v47 = vor.u32 %v1800_v54, %v1799_v53  ;;  %v1804_v23 = vor.u32 %v1803_v61, %v1802_v22 }
 0x1b4   : > { %v1656_v40 = vsel %vm1573_vm12, %v1655_v44, %v1654_v29  ;;  %v1810_v27 = vor.u32 %v1809_v5, %v1808_v49  ;;  %vm1811_vm8 = vcmp.lt.s32.totalorder %v1792_v62, 1  ;;  %vm1814_vm10 = vcmp.lt.s32.totalorder %v1792_v62, 4 }
 0x1b5   : > { %v1659_v12 = vsel %vm9349_vm0, %v9132_v11, %v1656_v40  ;;  %v1741_v31 = vsub.s32 0, %v9414_v7  ;;  %vm1812_vm11 = vcmp.lt.s32.totalorder %v1792_v62, 2  ;;  %vm1813_vm13 = vcmp.lt.s32.totalorder %v1792_v62, 3 }
 0x1b6   : > { %7679 = vcosq.f32 %v1659_v12  ;;  %v1815_v57 = vsel %vm1811_vm8, %v1795_v2, %v1798_v20  ;;  %v1816_v10 = vsel %vm1814_vm10, %v1804_v23, 2102212464  ;;  %v1820_v41 = vsel %vm1814_vm10, %v1807_v16, 920167782 }
 0x1b7   : > { %7681 = vsinq.f32 %v1659_v12  ;;  %v7106_v48 = vmin.u32 %v1741_v31, %v9414_v7  ;;  %v1817_v59 = vsel %vm1813_vm13, %v1801_v47, %v1816_v10  ;;  %v1819_v37 = vsel %vm1811_vm8, %v1798_v20, %v1801_v47 }
 0x1b8   : > { %v1821_v42 = vsel %vm1813_vm13, %v1804_v23, %v1820_v41  ;;  %v1823_v8 = vsel %vm1811_vm8, %v1801_v47, %v1804_v23  ;;  %v1824_v18 = vsel %vm1814_vm10, %v1810_v27, 1326507024  ;;  %v1886_v19 = vand.u32 2139095040, %v9419_v55 }
 0x1b9   : > { %vm1677_vm12 = vcmp.lt.s32.totalorder %v9237_v0, 0  ;;  %v1743_v51 = vclz %v7106_v48  ;;  %v1761_v13 = vsub.s32 4, %v1737_v34  ;;  %vm9438_vm14 = vcmp.le.f32.partialorder %v1675_v36, 0.7853982 }
 0x1ba   : > { %v1818_v45 = vsel %vm1812_vm11, %v1815_v57, %v1817_v59  ;;  %v1822_v46 = vsel %vm1812_vm11, %v1819_v37, %v1821_v42  ;;  %v1825_v60 = vsel %vm1813_vm13, %v1807_v16, %v1824_v18  ;;  %vm1663_vm15 = vweird.f32 %v9132_v11 }
 0x1bb   : > { %v7107_v3 = vadd.s32 4294967294, %v1743_v51  ;;  %v1826_v58 = vsel %vm1812_vm11, %v1823_v8, %v1825_v60  ;;  %v9448_v63 = vmul.u32.u64.low %v9410_v25, %v1822_v46  ;;  %v9449_v35 = vmul.u32.u64.high %v9410_v25, %v1822_v46, %v9448_v63  ;;  %v9483_v8 = vld [vmem:[%s8105_s3 + $0x88] sm:$0xff] }
 0x1bc   : > { %vm1666_vm0 = vcmp.lt.s32.totalorder %v9407_v43, 2  ;;  %v9454_v36 = vmul.u32.u64.low %v9410_v25, %v1826_v58  ;;  %v9455_v17 = vmul.u32.u64.high %v9410_v25, %v1826_v58, %v9454_v36  ;;  %v1887_v53 = vshrl.u32 %v1886_v19, 23 }
 0x1bd   : > { %vm1667_vm1 = vcmp.eq.s32.totalorder %v9407_v43, 0  ;;  %v1731_v50 = vadd.s32 %v9366_v1, %v9377_v15  ;;  %vm7108_vm2 = vcmp.lt.s32.totalorder %v7107_v3, 0  ;;  %v1762_v4 = vsel %vm1677_vm12, %v1761_v13, %v1737_v34 }
 0x1be   : > { %v1746_v52 = vsel %vm7108_vm2, 0, %v7107_v3  ;;  %v1834_v54 = vmul.u32 %v9410_v25, %v1818_v45  ;;  %v1883_v14 = vand.u32 2147483647, %v9419_v55  ;;  %v7113_v22 = vadd.s32 4294967169, %v1887_v53 }
 0x1bf   : > { %v1747_v61 = vsub.s32 32, %v1746_v52  ;;  %v1748_v29 = vshll.u32 %v9414_v7, %v1746_v52  ;;  %v1751_v62 = vsub.s32 4294967266, %v1746_v52  ;;  %v1837_v56 = vadd.s32 1, %v9449_v35 }
 0x1c0   : > { %v7680_v33 = vpop.eup %7679  ;;  %vm1670_vm3 = vcmp.eq.s32.totalorder %v9407_v43, 2  ;;  %v1764_v1 = vsel %vm9438_vm14, 0, %v1762_v4  ;;  %vm1836_vm5 = vc.u32 %v9455_v17, %v9448_v63  ;;  %v1893_v15 = vadd.s32 1, %v7113_v22 }
 0x1c1   : > { %v7682_v34 = vpop.eup %7681  ;;  %v1671_v21 = vxor.u32 2147483648, %v7680_v33  ;;  %v1749_v49 = vshrl.u32 %v1731_v50, %v1747_v61  ;;  %v1752_v25 = vadd.s32 127, %v1751_v62  ;;  %v1838_v44 = vsel %vm1836_vm5, %v1837_v56, %v9449_v35 }
 0x1c2   : > { %v1668_v2 = vxor.u32 2147483648, %v7682_v34  ;;  %v1839_v16 = vadd.s32 %v1838_v44, %v1834_v54  ;;  %v1890_v5 = vand.u32 8388607, %v1883_v14  ;;  %vm1894_vm4 = vcmp.gt.s32.totalorder %v1893_v15, 0 }
 0x1c3   : > { %v1672_v7 = vsel %vm1670_vm3, %v1671_v21, %v7682_v34  ;;  %v1750_v20 = vor.u32 %v1749_v49, %v1748_v29  ;;  %v1753_v47 = vshll.u32 %v1752_v25, 23  ;;  %v1895_v23 = vsel %vm1894_vm4, %v1893_v15, 0 }
 0x1c4   : > { %v1669_v40 = vsel %vm1667_vm1, %v7680_v33, %v1668_v2  ;;  %v1840_v27 = vadd.s32 536870912, %v1839_v16  ;;  %v1897_v12 = vand.u32 31, %v1895_v23  ;;  %v1768_v41 = vadd.s32 3, %v1764_v1 }
 0x1c5   : > { %v1673_v31 = vsel %vm1666_vm0, %v1669_v40, %v1672_v7  ;;  %v1754_v57 = vor.u32 4788187, %v1753_v47  ;;  %v1757_v10 = vcvt.s32.f32 %v1750_v20  ;;  %v1891_v37 = vor.u32 8388608, %v1890_v5 }
 0x1c6   : > { %v1674_v48 = vsel %vm1663_vm15, nan, %v1673_v31  ;;  %v9480_v59 = vshrl.u32 %v1840_v27, 30  ;;  %v1898_v42 = vsub.s32 32, %v1897_v12  ;;  %v1896_v19 = vshrl.u32 %v1895_v23, 5 }
 0x1c7   : > { %v1755_v18 = vand.u32 2147483647, %v1754_v57  ;;  %v1900_v51 = vshll.u32 %v7982_v24, %v1897_v12  ;;  %v1903_v13 = vshll.u32 %v7983_v26, %v1897_v12  ;;  %6888 = vst [vmem:[%s8389_s16 + $0x68] sm:$0xff] %v1674_v48  ;;  %v1906_v11 = vshll.u32 %v7984_v28, %v1897_v12 }
 0x1c8   : > { %v1842_v43 = vshll.u32 %v9480_v59, 30  ;;  %v1901_v45 = vshrl.u32 %v7983_v26, %v1898_v42  ;;  %v1909_v46 = vshll.u32 %v7985_v30, %v1897_v12  ;;  %v1904_v3 = vshrl.u32 %v7984_v28, %v1898_v42 }
 0x1c9   : > { %v1758_v60 = vmul.f32 %v1757_v10, %v1755_v18  ;;  %v1907_v58 = vshrl.u32 %v7985_v30, %v1898_v42  ;;  %v1910_v35 = vshrl.u32 %v7986_v32, %v1898_v42  ;;  %v9495_v36 = vand.u32 3, %v1768_v41 }
 0x1ca   : > { %v9497_v53 = vsub.s32 %v1839_v16, %v1842_v43  ;;  %v1912_v50 = vshll.u32 %v7986_v32, %v1897_v12  ;;  %v1990_v4 = vand.u32 2139095040, %v9483_v8  ;;  %v1835_v54 = vadd.s32 %v9448_v63, %v9455_v17 }
 0x1cb   : > { %v1759_v52 = vxor.u32 2147483648, %v1758_v60  ;;  %v1899_v22 = vshrl.u32 %v7982_v24, %v1898_v42  ;;  %v9504_v61 = vshll.u32 %v1891_v37, 8  ;;  %v1902_v62 = vor.u32 %v1901_v45, %v1900_v51 }
 0x1cc   : > { %v1845_v29 = vsub.s32 0, %v9497_v53  ;;  %v1905_v56 = vor.u32 %v1904_v3, %v1903_v13  ;;  %v1913_v33 = vshrl.u32 %v7987_v39, %v1898_v42  ;;  %v1908_v15 = vor.u32 %v1907_v58, %v1906_v11 }
 0x1cd   : > { %v1760_v1 = vsel %vm1677_vm12, %v1759_v52, %v1758_v60  ;;  %v1911_v34 = vor.u32 %v1910_v35, %v1909_v46  ;;  %vm1915_vm6 = vcmp.lt.s32.totalorder %v1896_v19, 1  ;;  %v1991_v49 = vshrl.u32 %v1990_v4, 23 }
 0x1ce   : > { %v1763_v63 = vsel %vm9438_vm14, %v9237_v0, %v1760_v1  ;;  %v7110_v17 = vmin.u32 %v1845_v29, %v9497_v53  ;;  %v1914_v21 = vor.u32 %v1913_v33, %v1912_v50  ;;  %vm1781_vm7 = vcmp.lt.s32.totalorder %v9313_v6, 0 }
 0x1cf   : > { %7683 = vcosq.f32 %v1763_v63  ;;  %vm1916_vm9 = vcmp.lt.s32.totalorder %v1896_v19, 2  ;;  %vm1917_vm8 = vcmp.lt.s32.totalorder %v1896_v19, 3  ;;  %vm1918_vm10 = vcmp.lt.s32.totalorder %v1896_v19, 4 }
 0x1d0   : > { %7685 = vsinq.f32 %v1763_v63  ;;  %v1847_v25 = vclz %v7110_v17  ;;  %v1919_v44 = vsel %vm1915_vm6, %v1899_v22, %v1902_v62  ;;  %v1923_v2 = vsel %vm1915_vm6, %v1902_v62, %v1905_v56 }
 0x1d1   : > { %v1865_v16 = vsub.s32 4, %v9480_v59  ;;  %v1920_v38 = vsel %vm1918_vm10, %v1908_v15, 2102212464  ;;  %v1924_v5 = vsel %vm1918_vm10, %v1911_v34, 920167782  ;;  %v1927_v7 = vsel %vm1915_vm6, %v1905_v56, %v1908_v15 }
 0x1d2   : > { %v7111_v20 = vadd.s32 4294967294, %v1847_v25  ;;  %v1921_v47 = vsel %vm1917_vm8, %v1905_v56, %v1920_v38  ;;  %v1925_v23 = vsel %vm1917_vm8, %v1908_v15, %v1924_v5  ;;  %v1928_v40 = vsel %vm1918_vm10, %v1914_v21, 1326507024 }
 0x1d3   : > { %v1922_v27 = vsel %vm1916_vm9, %v1919_v44, %v1921_v47  ;;  %v1926_v12 = vsel %vm1916_vm9, %v1923_v2, %v1925_v23  ;;  %v1929_v31 = vsel %vm1917_vm8, %v1911_v34, %v1928_v40  ;;  %v7117_v57 = vadd.s32 4294967169, %v1991_v49 }
 0x1d4   : > { %vm7112_vm11 = vcmp.lt.s32.totalorder %v7111_v20, 0  ;;  %v1930_v10 = vsel %vm1916_vm9, %v1927_v7, %v1929_v31  ;;  %v9526_v41 = vmul.u32.u64.low %v9504_v61, %v1926_v12  ;;  %v9527_v48 = vmul.u32.u64.high %v9504_v61, %v1926_v12, %v9526_v41 }
 0x1d5   : > { %v1850_v37 = vsel %vm7112_vm11, 0, %v7111_v20  ;;  %v9531_v42 = vmul.u32.u64.low %v9504_v61, %v1930_v10  ;;  %v9532_v18 = vmul.u32.u64.high %v9504_v61, %v1930_v10, %v9531_v42  ;;  %v1987_v51 = vand.u32 2147483647, %v9483_v8 }
 0x1d6   : > { %vm9537_vm13 = vcmp.le.f32.partialorder %v1779_v9, 0.7853982  ;;  %v1851_v19 = vsub.s32 32, %v1850_v37  ;;  %v1852_v43 = vshll.u32 %v9497_v53, %v1850_v37  ;;  %v1855_v45 = vsub.s32 4294967266, %v1850_v37 }
 0x1d7   : > { %vm1770_vm12 = vcmp.lt.s32.totalorder %v9495_v36, 2  ;;  %vm1771_vm14 = vcmp.eq.s32.totalorder %v9495_v36, 0  ;;  %v1938_v11 = vmul.u32 %v9504_v61, %v1922_v27  ;;  %v1997_v46 = vadd.s32 1, %v7117_v57 }
 0x1d8   : > { %v1853_v60 = vshrl.u32 %v1835_v54, %v1851_v19  ;;  %v1856_v3 = vadd.s32 127, %v1855_v45  ;;  %v1866_v9 = vsel %vm1781_vm7, %v1865_v16, %v9480_v59  ;;  %v1941_v58 = vadd.s32 1, %v9527_v48 }
 0x1d9   : > { %v7684_v35 = vpop.eup %7683  ;;  %vm1774_vm15 = vcmp.eq.s32.totalorder %v9495_v36, 2  ;;  %vm1940_vm0 = vc.u32 %v9532_v18, %v9526_v41  ;;  %v1994_v53 = vand.u32 8388607, %v1987_v51  ;;  %vm1998_vm1 = vcmp.gt.s32.totalorder %v1997_v46, 0 }
 0x1da   : > { %v7686_v50 = vpop.eup %7685  ;;  %v1775_v4 = vxor.u32 2147483648, %v7684_v35  ;;  %v1854_v52 = vor.u32 %v1853_v60, %v1852_v43  ;;  %v1857_v54 = vshll.u32 %v1856_v3, 23  ;;  %v1942_v22 = vsel %vm1940_vm0, %v1941_v58, %v9527_v48  ;;  %v9589_v3 = vld [vmem:[%s8105_s3 + $0x90] sm:$0xff] }
 0x1db   : > { %v1772_v61 = vxor.u32 2147483648, %v7686_v50  ;;  %v1868_v59 = vsel %vm9537_vm13, 0, %v1866_v9  ;;  %v1943_v29 = vadd.s32 %v1942_v22, %v1938_v11  ;;  %v1999_v62 = vsel %vm1998_vm1, %v1997_v46, 0 }
 0x1dc   : > { %vm1767_vm2 = vweird.f32 %v9237_v0  ;;  %v1776_v56 = vsel %vm1774_vm15, %v1775_v4, %v7686_v50  ;;  %v1858_v33 = vor.u32 4788187, %v1857_v54  ;;  %v1861_v1 = vcvt.s32.f32 %v1854_v52 }
 0x1dd   : > { %v1773_v15 = vsel %vm1771_vm14, %v7684_v35, %v1772_v61  ;;  %v1944_v34 = vadd.s32 536870912, %v1943_v29  ;;  %v2001_v63 = vand.u32 31, %v1999_v62  ;;  %v1872_v49 = vadd.s32 3, %v1868_v59 }
 0x1de   : > { %v1777_v17 = vsel %vm1770_vm12, %v1773_v15, %v1776_v56  ;;  %v1859_v21 = vand.u32 2147483647, %v1858_v33  ;;  %v1995_v25 = vor.u32 8388608, %v1994_v53  ;;  %v2000_v16 = vshrl.u32 %v1999_v62, 5 }
 0x1df   : > { %v1778_v44 = vsel %vm1767_vm2, nan, %v1777_v17  ;;  %v9562_v2 = vshrl.u32 %v1944_v34, 30  ;;  %v2002_v0 = vsub.s32 32, %v2001_v63  ;;  %v2004_v5 = vshll.u32 %v7982_v24, %v2001_v63 }
 0x1e0   : > { %v1862_v38 = vmul.f32 %v1861_v1, %v1859_v21  ;;  %v2007_v7 = vshll.u32 %v7983_v26, %v2001_v63  ;;  %6889 = vst [vmem:[%s8389_s16 + $0x70] sm:$0xff] %v1778_v44  ;;  %v2010_v36 = vshll.u32 %v7984_v28, %v2001_v63  ;;  %v2013_v23 = vshll.u32 %v7985_v30, %v2001_v63 }
 0x1e1   : > { %v1946_v20 = vshll.u32 %v9562_v2, 30  ;;  %v2005_v47 = vshrl.u32 %v7983_v26, %v2002_v0  ;;  %v2008_v27 = vshrl.u32 %v7984_v28, %v2002_v0  ;;  %v2011_v12 = vshrl.u32 %v7985_v30, %v2002_v0 }
 0x1e2   : > { %v1863_v40 = vxor.u32 2147483648, %v1862_v38  ;;  %v2014_v31 = vshrl.u32 %v7986_v32, %v2002_v0  ;;  %v9574_v57 = vand.u32 3, %v1872_v49  ;;  %vm2019_vm3 = vcmp.lt.s32.totalorder %v2000_v16, 1 }
 0x1e3   : > { %v9576_v10 = vsub.s32 %v1943_v29, %v1946_v20  ;;  %v9578_v48 = vshll.u32 %v1995_v25, 8  ;;  %v2006_v42 = vor.u32 %v2005_v47, %v2004_v5  ;;  %v2009_v19 = vor.u32 %v2008_v27, %v2007_v7 }
 0x1e4   : > { %v1864_v37 = vsel %vm1781_vm7, %v1863_v40, %v1862_v38  ;;  %v2016_v43 = vshll.u32 %v7986_v32, %v2001_v63  ;;  %v2003_v46 = vshrl.u32 %v7982_v24, %v2002_v0  ;;  %v2015_v60 = vor.u32 %v2014_v31, %v2013_v23 }
 0x1e5   : > { %v1867_v45 = vsel %vm9537_vm13, %v9313_v6, %v1864_v37  ;;  %v1949_v11 = vsub.s32 0, %v9576_v10  ;;  %v2012_v9 = vor.u32 %v2011_v12, %v2010_v36  ;;  %v2017_v58 = vshrl.u32 %v7987_v39, %v2002_v0 }
 0x1e6   : > { %7687 = vcosq.f32 %v1867_v45  ;;  %vm2022_vm5 = vcmp.lt.s32.totalorder %v2000_v16, 4  ;;  %vm2020_vm4 = vcmp.lt.s32.totalorder %v2000_v16, 2  ;;  %vm2021_vm6 = vcmp.lt.s32.totalorder %v2000_v16, 3 }
 0x1e7   : > { %7689 = vsinq.f32 %v1867_v45  ;;  %v7114_v35 = vmin.u32 %v1949_v11, %v9576_v10  ;;  %v2018_v53 = vor.u32 %v2017_v58, %v2016_v43  ;;  %v2024_v13 = vsel %vm2022_vm5, %v2012_v9, 2102212464 }
 0x1e8   : > { %v2027_v50 = vsel %vm2019_vm3, %v2006_v42, %v2009_v19  ;;  %v2028_v4 = vsel %vm2022_vm5, %v2015_v60, 920167782  ;;  %v1939_v52 = vadd.s32 %v9526_v41, %v9532_v18  ;;  %v2023_v22 = vsel %vm2019_vm3, %v2003_v46, %v2006_v42 }
 0x1e9   : > { %v1951_v54 = vclz %v7114_v35  ;;  %v2094_v61 = vand.u32 2139095040, %v9589_v3  ;;  %v2025_v59 = vsel %vm2021_vm6, %v2009_v19, %v2024_v13  ;;  %v2029_v29 = vsel %vm2021_vm6, %v2012_v9, %v2028_v4 }
 0x1ea   : > { %v2031_v62 = vsel %vm2019_vm3, %v2009_v19, %v2012_v9  ;;  %v2032_v56 = vsel %vm2022_vm5, %v2018_v53, 1326507024  ;;  %vm1871_vm7 = vweird.f32 %v9313_v6  ;;  %v1969_v1 = vsub.s32 4, %v9562_v2 }
 0x1eb   : > { %v7115_v33 = vadd.s32 4294967294, %v1951_v54  ;;  %v2030_v41 = vsel %vm2020_vm4, %v2027_v50, %v2029_v29  ;;  %v2033_v18 = vsel %vm2021_vm6, %v2015_v60, %v2032_v56  ;;  %v2026_v15 = vsel %vm2020_vm4, %v2023_v22, %v2025_v59 }
 0x1ec   : > { %v2034_v34 = vsel %vm2020_vm4, %v2031_v62, %v2033_v18  ;;  %v9611_v63 = vmul.u32.u64.low %v9578_v48, %v2030_v41  ;;  %v9612_v17 = vmul.u32.u64.high %v9578_v48, %v2030_v41, %v9611_v63  ;;  %v2095_v25 = vshrl.u32 %v2094_v61, 23  ;;  %v9656_v62 = vld [vmem:[%s8105_s3 + $0x98] sm:$0xff] }
 0x1ed   : > { %vm7116_vm9 = vcmp.lt.s32.totalorder %v7115_v33, 0  ;;  %v9616_v21 = vmul.u32.u64.low %v9578_v48, %v2034_v34  ;;  %v9617_v49 = vmul.u32.u64.high %v9578_v48, %v2034_v34, %v9616_v21  ;;  %vm1874_vm8 = vcmp.lt.s32.totalorder %v9574_v57, 2 }
 0x1ee   : > { %vm9622_vm10 = vcmp.le.f32.partialorder %v1883_v14, 0.7853982  ;;  %vm1885_vm11 = vcmp.lt.s32.totalorder %v9419_v55, 0  ;;  %v1954_v16 = vsel %vm7116_vm9, 0, %v7115_v33  ;;  %v7121_v7 = vadd.s32 4294967169, %v2095_v25 }
 0x1ef   : > { %v1955_v0 = vsub.s32 32, %v1954_v16  ;;  %v1956_v38 = vshll.u32 %v9576_v10, %v1954_v16  ;;  %v1959_v5 = vsub.s32 4294967266, %v1954_v16  ;;  %vm1875_vm13 = vcmp.eq.s32.totalorder %v9574_v57, 0 }
 0x1f0   : > { %v7688_v20 = vpop.eup %7687  ;;  %vm1878_vm12 = vcmp.eq.s32.totalorder %v9574_v57, 2  ;;  %v2042_v47 = vmul.u32 %v9578_v48, %v2026_v15  ;;  %v2045_v14 = vadd.s32 1, %v9612_v17  ;;  %v1970_v12 = vsel %vm1885_vm11, %v1969_v1, %v9562_v2 }
 0x1f1   : > { %v7690_v36 = vpop.eup %7689  ;;  %v1879_v23 = vxor.u32 2147483648, %v7688_v20  ;;  %v1957_v40 = vshrl.u32 %v1939_v52, %v1955_v0  ;;  %v1960_v27 = vadd.s32 127, %v1959_v5  ;;  %vm2044_vm14 = vc.u32 %v9617_v49, %v9611_v63 }
 0x1f2   : > { %v1876_v31 = vxor.u32 2147483648, %v7690_v36  ;;  %v2091_v10 = vand.u32 2147483647, %v9589_v3  ;;  %v2101_v37 = vadd.s32 1, %v7121_v7  ;;  %v2046_v43 = vsel %vm2044_vm14, %v2045_v14, %v9612_v17 }
 0x1f3   : > { %v1880_v42 = vsel %vm1878_vm12, %v1879_v23, %v7690_v36  ;;  %v1958_v19 = vor.u32 %v1957_v40, %v1956_v38  ;;  %v1961_v48 = vshll.u32 %v1960_v27, 23  ;;  %v1972_v11 = vsel %vm9622_vm10, 0, %v1970_v12 }
 0x1f4   : > { %v1877_v45 = vsel %vm1875_vm13, %v7688_v20, %v1876_v31  ;;  %v2047_v2 = vadd.s32 %v2046_v43, %v2042_v47  ;;  %vm2102_vm15 = vcmp.gt.s32.totalorder %v2101_v37, 0  ;;  %v1976_v4 = vadd.s32 3, %v1972_v11 }
 0x1f5   : > { %v1881_v46 = vsel %vm1874_vm8, %v1877_v45, %v1880_v42  ;;  %v1962_v60 = vor.u32 4788187, %v1961_v48  ;;  %v1965_v9 = vcvt.s32.f32 %v1958_v19  ;;  %v2103_v58 = vsel %vm2102_vm15, %v2101_v37, 0 }
 0x1f6   : > { %v1882_v35 = vsel %vm1871_vm7, nan, %v1881_v46  ;;  %v2048_v53 = vadd.s32 536870912, %v2047_v2  ;;  %v2105_v13 = vand.u32 31, %v2103_v58  ;;  %v2098_v54 = vand.u32 8388607, %v2091_v10 }
 0x1f7   : > { %v1963_v50 = vand.u32 2147483647, %v1962_v60  ;;  %6890 = vst [vmem:[%s8389_s16 + $0x78] sm:$0xff] %v1882_v35  ;;  %v9650_v22 = vshrl.u32 %v2103_v58, 5  ;;  %v9664_v21 = vand.u32 3, %v1976_v4  ;;  %vm1989_vm0 = vcmp.lt.s32.totalorder %v9483_v8, 0 }
 0x1f8   : > { %v2049_v52 = vshrl.u32 %v2048_v53, 30  ;;  %v2106_v57 = vsub.s32 32, %v2105_v13  ;;  %v2108_v59 = vshll.u32 %v7982_v24, %v2105_v13  ;;  %v2111_v29 = vshll.u32 %v7983_v26, %v2105_v13 }
 0x1f9   : > { %v1966_v61 = vmul.f32 %v1965_v9, %v1963_v50  ;;  %v2114_v6 = vshll.u32 %v7984_v28, %v2105_v13  ;;  %v2117_v1 = vshll.u32 %v7985_v30, %v2105_v13  ;;  %v2120_v41 = vshll.u32 %v7986_v32, %v2105_v13 }
 0x1fa   : > { %v2050_v56 = vshll.u32 %v2049_v52, 30  ;;  %v2109_v33 = vshrl.u32 %v7983_v26, %v2106_v57  ;;  %v2112_v15 = vshrl.u32 %v7984_v28, %v2106_v57  ;;  %v2115_v34 = vshrl.u32 %v7985_v30, %v2106_v57 }
 0x1fb   : > { %v1967_v18 = vxor.u32 2147483648, %v1966_v61  ;;  %v2118_v17 = vshrl.u32 %v7986_v32, %v2106_v57  ;;  %v2099_v16 = vor.u32 8388608, %v2098_v54  ;;  %v2121_v0 = vshrl.u32 %v7987_v39, %v2106_v57 }
 0x1fc   : > { %v9666_v25 = vsub.s32 %v2047_v2, %v2050_v56  ;;  %v2107_v5 = vshrl.u32 %v7982_v24, %v2106_v57  ;;  %v2110_v7 = vor.u32 %v2109_v33, %v2108_v59  ;;  %v2198_v20 = vand.u32 2139095040, %v9656_v62 }
 0x1fd   : > { %v1968_v38 = vsel %vm1885_vm11, %v1967_v18, %v1966_v61  ;;  %v2113_v36 = vor.u32 %v2112_v15, %v2111_v29  ;;  %v2116_v23 = vor.u32 %v2115_v34, %v2114_v6  ;;  %v2119_v40 = vor.u32 %v2118_v17, %v2117_v1 }
 0x1fe   : > { %v1971_v47 = vsel %vm9622_vm10, %v9419_v55, %v1968_v38  ;;  %v2053_v14 = vsub.s32 0, %v9666_v25  ;;  %v2122_v27 = vor.u32 %v2121_v0, %v2120_v41  ;;  %vm2123_vm1 = vcmp.lt.s32.totalorder %v9650_v22, 1 }
 0x1ff   : > { %7691 = vcosq.f32 %v1971_v47  ;;  %vm9681_vm2 = vcmp.le.f32.partialorder %v1987_v51, 0.7853982  ;;  %v2139_v44 = vshll.u32 %v2099_v16, 8  ;;  %v2073_v37 = vsub.s32 4, %v2049_v52 }
 0x200   : > { %7693 = vsinq.f32 %v1971_v47  ;;  %v7118_v31 = vmin.u32 %v2053_v14, %v9666_v25  ;;  %vm2125_vm3 = vcmp.lt.s32.totalorder %v9650_v22, 3  ;;  %vm2126_vm5 = vcmp.lt.s32.totalorder %v9650_v22, 4 }
 0x201   : > { %v2199_v42 = vshrl.u32 %v2198_v20, 23  ;;  %vm2124_vm4 = vcmp.lt.s32.totalorder %v9650_v22, 2  ;;  %v2131_v48 = vsel %vm2123_vm1, %v2110_v7, %v2113_v36  ;;  %v2135_v43 = vsel %vm2123_vm1, %v2113_v36, %v2116_v23 }
 0x202   : > { %v2055_v19 = vclz %v7118_v31  ;;  %vm1978_vm6 = vcmp.lt.s32.totalorder %v9664_v21, 2  ;;  %v2127_v51 = vsel %vm2123_vm1, %v2107_v5, %v2110_v7  ;;  %v2128_v45 = vsel %vm2126_vm5, %v2116_v23, 2102212464 }
 0x203   : > { %v2132_v11 = vsel %vm2126_vm5, %v2119_v40, 920167782  ;;  %v2136_v2 = vsel %vm2126_vm5, %v2122_v27, 1326507024  ;;  %vm1975_vm7 = vweird.f32 %v9419_v55  ;;  %v2129_v60 = vsel %vm2125_vm3, %v2113_v36, %v2128_v45 }
 0x204   : > { %v7119_v46 = vadd.s32 4294967294, %v2055_v19  ;;  %v2133_v9 = vsel %vm2125_vm3, %v2116_v23, %v2132_v11  ;;  %v2137_v58 = vsel %vm2125_vm3, %v2119_v40, %v2136_v2  ;;  %v2043_v35 = vadd.s32 %v9611_v63, %v9617_v49 }
 0x205   : > { %v2134_v53 = vsel %vm2124_vm4, %v2131_v48, %v2133_v9  ;;  %v2138_v13 = vsel %vm2124_vm4, %v2135_v43, %v2137_v58  ;;  %v7125_v50 = vadd.s32 4294967169, %v2199_v42  ;;  %v2074_v4 = vsel %vm1989_vm0, %v2073_v37, %v2049_v52 }
 0x206   : > { %vm7120_vm9 = vcmp.lt.s32.totalorder %v7119_v46, 0  ;;  %v9705_v54 = vmul.u32.u64.low %v2139_v44, %v2138_v13  ;;  %v9706_v57 = vmul.u32.u64.high %v2139_v44, %v2138_v13, %v9705_v54  ;;  %v2130_v59 = vsel %vm2124_vm4, %v2127_v51, %v2129_v60 }
 0x207   : > { %v2058_v61 = vsel %vm7120_vm9, 0, %v7119_v46  ;;  %v9710_v29 = vmul.u32.u64.low %v2139_v44, %v2134_v53  ;;  %v9711_v63 = vmul.u32.u64.high %v2139_v44, %v2134_v53, %v9710_v29  ;;  %v2205_v33 = vadd.s32 1, %v7125_v50 }
 0x208   : > { %v2059_v49 = vsub.s32 32, %v2058_v61  ;;  %v2060_v6 = vshll.u32 %v9666_v25, %v2058_v61  ;;  %v2063_v56 = vsub.s32 4294967266, %v2058_v61  ;;  %vm1979_vm8 = vcmp.eq.s32.totalorder %v9664_v21, 0 }
 0x209   : > { %v7692_v1 = vpop.eup %7691  ;;  %vm1982_vm10 = vcmp.eq.s32.totalorder %v9664_v21, 2  ;;  %v2076_v52 = vsel %vm9681_vm2, 0, %v2074_v4  ;;  %v2195_v22 = vand.u32 2147483647, %v9656_v62  ;;  %v2146_v17 = vmul.u32 %v2139_v44, %v2130_v59 }
 0x20a   : > { %v7694_v41 = vpop.eup %7693  ;;  %v1983_v18 = vxor.u32 2147483648, %v7692_v1  ;;  %v2061_v15 = vshrl.u32 %v2043_v35, %v2059_v49  ;;  %v2064_v34 = vadd.s32 127, %v2063_v56  ;;  %vm2148_vm11 = vc.u32 %v9706_v57, %v9710_v29  ;;  %v9750_v56 = vld [vmem:[%s8105_s3 + $0xa0] sm:$0xff] }
 0x20b   : > { %v1980_v16 = vxor.u32 2147483648, %v7694_v41  ;;  %v2149_v25 = vadd.s32 1, %v9711_v63  ;;  %vm2206_vm13 = vcmp.gt.s32.totalorder %v2205_v33, 0  ;;  %v2202_v14 = vand.u32 8388607, %v2195_v22 }
 0x20c   : > { %v1984_v0 = vsel %vm1982_vm10, %v1983_v18, %v7694_v41  ;;  %v2062_v38 = vor.u32 %v2061_v15, %v2060_v6  ;;  %v2065_v5 = vshll.u32 %v2064_v34, 23  ;;  %v2207_v7 = vsel %vm2206_vm13, %v2205_v33, 0 }
 0x20d   : > { %v1981_v20 = vsel %vm1979_vm8, %v7692_v1, %v1980_v16  ;;  %v2150_v47 = vsel %vm2148_vm11, %v2149_v25, %v9711_v63  ;;  %v2209_v36 = vand.u32 31, %v2207_v7  ;;  %v2080_v37 = vadd.s32 3, %v2076_v52 }
 0x20e   : > { %v1985_v23 = vsel %vm1978_vm6, %v1981_v20, %v1984_v0  ;;  %v2066_v40 = vor.u32 4788187, %v2065_v5  ;;  %v2069_v27 = vcvt.s32.f32 %v2062_v38  ;;  %v2151_v31 = vadd.s32 %v2150_v47, %v2146_v17 }
 0x20f   : > { %v1986_v44 = vsel %vm1975_vm7, nan, %v1985_v23  ;;  %v2210_v42 = vsub.s32 32, %v2209_v36  ;;  %v2212_v19 = vshll.u32 %v7982_v24, %v2209_v36  ;;  %v2215_v51 = vshll.u32 %v7983_v26, %v2209_v36 }
 0x210   : > { %v2067_v48 = vand.u32 2147483647, %v2066_v40  ;;  %v2152_v43 = vadd.s32 536870912, %v2151_v31  ;;  %v2218_v45 = vshll.u32 %v7984_v28, %v2209_v36  ;;  %6891 = vst [vmem:[%s8389_s16 + $0x80] sm:$0xff] %v1986_v44  ;;  %v2221_v55 = vshll.u32 %v7985_v30, %v2209_v36 }
 0x211   : > { %v2213_v21 = vshrl.u32 %v7983_v26, %v2210_v42  ;;  %v2216_v11 = vshrl.u32 %v7984_v28, %v2210_v42  ;;  %v2219_v2 = vshrl.u32 %v7985_v30, %v2210_v42  ;;  %v2208_v9 = vshrl.u32 %v2207_v7, 5 }
 0x212   : > { %v2070_v46 = vmul.f32 %v2069_v27, %v2067_v48  ;;  %v9740_v60 = vshrl.u32 %v2152_v43, 30  ;;  %v2222_v58 = vshrl.u32 %v7986_v32, %v2210_v42  ;;  %v2203_v35 = vor.u32 8388608, %v2202_v14 }
 0x213   : > { %v2224_v53 = vshll.u32 %v7986_v32, %v2209_v36  ;;  %v2225_v13 = vshrl.u32 %v7987_v39, %v2210_v42  ;;  %v9745_v4 = vand.u32 3, %v2080_v37  ;;  %v2211_v61 = vshrl.u32 %v7982_v24, %v2210_v42 }
 0x214   : > { %v2071_v50 = vxor.u32 2147483648, %v2070_v46  ;;  %v2154_v54 = vshll.u32 %v9740_v60, 30  ;;  %v2214_v59 = vor.u32 %v2213_v21, %v2212_v19  ;;  %v2217_v63 = vor.u32 %v2216_v11, %v2215_v51 }
 0x215   : > { %v2220_v49 = vor.u32 %v2219_v2, %v2218_v45  ;;  %v2223_v6 = vor.u32 %v2222_v58, %v2221_v55  ;;  %vm2227_vm12 = vcmp.lt.s32.totalorder %v2208_v9, 1  ;;  %vm2230_vm14 = vcmp.lt.s32.totalorder %v2208_v9, 4 }
 0x216   : > { %v2072_v33 = vsel %vm1989_vm0, %v2071_v50, %v2070_v46  ;;  %v9754_v1 = vsub.s32 %v2151_v31, %v2154_v54  ;;  %v2226_v41 = vor.u32 %v2225_v13, %v2224_v53  ;;  %vm2229_vm15 = vcmp.lt.s32.totalorder %v2208_v9, 3 }
 0x217   : > { %v2075_v52 = vsel %vm9681_vm2, %v9483_v8, %v2072_v33  ;;  %v2243_v18 = vshll.u32 %v2203_v35, 8  ;;  %vm2228_vm1 = vcmp.lt.s32.totalorder %v2208_v9, 2  ;;  %v2232_v34 = vsel %vm2230_vm14, %v2220_v49, 2102212464 }
 0x218   : > { %7695 = vcosq.f32 %v2075_v52  ;;  %v2157_v15 = vsub.s32 0, %v9754_v1  ;;  %v2235_v17 = vsel %vm2227_vm12, %v2214_v59, %v2217_v63  ;;  %v2236_v16 = vsel %vm2230_vm14, %v2223_v6, 920167782 }
 0x219   : > { %7697 = vsinq.f32 %v2075_v52  ;;  %v2302_v25 = vand.u32 2139095040, %v9750_v56  ;;  %v2231_v12 = vsel %vm2227_vm12, %v2211_v61, %v2214_v59  ;;  %v2237_v38 = vsel %vm2229_vm15, %v2220_v49, %v2236_v16 }
 0x21a   : > { %v7122_v0 = vmin.u32 %v2157_v15, %v9754_v1  ;;  %v2233_v5 = vsel %vm2229_vm15, %v2217_v63, %v2232_v34  ;;  %v2238_v7 = vsel %vm2228_vm1, %v2235_v17, %v2237_v38  ;;  %v2239_v20 = vsel %vm2227_vm12, %v2217_v63, %v2220_v49 }
 0x21b   : > { %v2240_v47 = vsel %vm2230_vm14, %v2226_v41, 1326507024  ;;  %vm2082_vm0 = vcmp.lt.s32.totalorder %v9745_v4, 2  ;;  %vm2093_vm2 = vcmp.lt.s32.totalorder %v9589_v3, 0  ;;  %v2303_v27 = vshrl.u32 %v2302_v25, 23 }
 0x21c   : > { %v2159_v14 = vclz %v7122_v0  ;;  %v2241_v36 = vsel %vm2229_vm15, %v2223_v6, %v2240_v47  ;;  %v9774_v23 = vmul.u32.u64.low %v2243_v18, %v2238_v7  ;;  %v9775_v40 = vmul.u32.u64.high %v2243_v18, %v2238_v7, %v9774_v23  ;;  %v9803_v6 = vld [vmem:[%s8105_s3 + $0xa8] sm:$0xff] }
 0x21d   : > { %v2177_v44 = vsub.s32 4, %v9740_v60  ;;  %v2234_v37 = vsel %vm2228_vm1, %v2231_v12, %v2233_v5  ;;  %v2242_v42 = vsel %vm2228_vm1, %v2239_v20, %v2241_v36  ;;  %v2299_v43 = vand.u32 2147483647, %v9750_v56 }
 0x21e   : > { %v7123_v31 = vadd.s32 4294967294, %v2159_v14  ;;  %v9781_v19 = vmul.u32.u64.low %v2243_v18, %v2242_v42  ;;  %v9782_v48 = vmul.u32.u64.high %v2243_v18, %v2242_v42, %v9781_v19  ;;  %v7129_v51 = vadd.s32 4294967169, %v2303_v27 }
 0x21f   : > { %vm2083_vm3 = vcmp.eq.s32.totalorder %v9745_v4, 0  ;;  %vm2086_vm5 = vcmp.eq.s32.totalorder %v9745_v4, 2  ;;  %v2147_v45 = vadd.s32 %v9710_v29, %v9706_v57  ;;  %v2250_v11 = vmul.u32 %v2243_v18, %v2234_v37 }
 0x220   : > { %vm7124_vm4 = vcmp.lt.s32.totalorder %v7123_v31, 0  ;;  %v2253_v2 = vadd.s32 1, %v9775_v40  ;;  %v2309_v55 = vadd.s32 1, %v7129_v51  ;;  %v2178_v53 = vsel %vm2093_vm2, %v2177_v44, %v9740_v60 }
 0x221   : > { %v2162_v21 = vsel %vm7124_vm4, 0, %v7123_v31  ;;  %vm2252_vm6 = vc.u32 %v9782_v48, %v9774_v23  ;;  %v2306_v57 = vand.u32 8388607, %v2299_v43  ;;  %vm2079_vm9 = vweird.f32 %v9483_v8 }
 0x222   : > { %v7696_v46 = vpop.eup %7695  ;;  %v2163_v9 = vsub.s32 32, %v2162_v21  ;;  %v2164_v58 = vshll.u32 %v9754_v1, %v2162_v21  ;;  %v2167_v35 = vsub.s32 4294967266, %v2162_v21  ;;  %vm2310_vm7 = vcmp.gt.s32.totalorder %v2309_v55, 0 }
 0x223   : > { %v7698_v13 = vpop.eup %7697  ;;  %v2087_v50 = vxor.u32 2147483648, %v7696_v46  ;;  %v2254_v59 = vsel %vm2252_vm6, %v2253_v2, %v9775_v40  ;;  %v2311_v49 = vsel %vm2310_vm7, %v2309_v55, 0  ;;  %vm9809_vm8 = vcmp.le.f32.partialorder %v2091_v10, 0.7853982 }
 0x224   : > { %v2084_v29 = vxor.u32 2147483648, %v7698_v13  ;;  %v2165_v54 = vshrl.u32 %v2147_v45, %v2163_v9  ;;  %v2168_v61 = vadd.s32 127, %v2167_v35  ;;  %v2255_v60 = vadd.s32 %v2254_v59, %v2250_v11 }
 0x225   : > { %v2088_v63 = vsel %vm2086_vm5, %v2087_v50, %v7698_v13  ;;  %v2180_v18 = vsel %vm9809_vm8, 0, %v2178_v53  ;;  %v2313_v34 = vand.u32 31, %v2311_v49  ;;  %v2307_v0 = vor.u32 8388608, %v2306_v57 }
 0x226   : > { %v2085_v33 = vsel %vm2083_vm3, %v7696_v46, %v2084_v29  ;;  %v2166_v52 = vor.u32 %v2165_v54, %v2164_v58  ;;  %v2169_v41 = vshll.u32 %v2168_v61, 23  ;;  %v2256_v15 = vadd.s32 536870912, %v2255_v60 }
 0x227   : > { %v2089_v8 = vsel %vm2082_vm0, %v2085_v33, %v2088_v63  ;;  %v2312_v10 = vshrl.u32 %v2311_v49, 5  ;;  %v2314_v38 = vsub.s32 32, %v2313_v34  ;;  %v2406_v5 = vand.u32 2139095040, %v9803_v6 }
 0x228   : > { %v2090_v17 = vsel %vm2079_vm9, nan, %v2089_v8  ;;  %v2170_v16 = vor.u32 4788187, %v2169_v41  ;;  %v2173_v25 = vcvt.s32.f32 %v2166_v52  ;;  %v9817_v12 = vshrl.u32 %v2256_v15, 30 }
 0x229   : > { %6892 = vst [vmem:[%s8389_s16 + $0x88] sm:$0xff] %v2090_v17  ;;  %v2316_v4 = vshll.u32 %v7982_v24, %v2313_v34  ;;  %v2319_v20 = vshll.u32 %v7983_v26, %v2313_v34  ;;  %v2322_v47 = vshll.u32 %v7984_v28, %v2313_v34  ;;  %v2317_v36 = vshrl.u32 %v7983_v26, %v2314_v38 }
 0x22a   : > { %v2171_v7 = vand.u32 2147483647, %v2170_v16  ;;  %v2258_v14 = vshll.u32 %v9817_v12, 30  ;;  %v2325_v40 = vshll.u32 %v7985_v30, %v2313_v34  ;;  %v2328_v27 = vshll.u32 %v7986_v32, %v2313_v34 }
 0x22b   : > { %v2320_v44 = vshrl.u32 %v7984_v28, %v2314_v38  ;;  %v2323_v37 = vshrl.u32 %v7985_v30, %v2314_v38  ;;  %v2326_v42 = vshrl.u32 %v7986_v32, %v2314_v38  ;;  %v2184_v19 = vadd.s32 3, %v2180_v18 }
 0x22c   : > { %v2174_v31 = vmul.f32 %v2173_v25, %v2171_v7  ;;  %v9831_v51 = vsub.s32 %v2255_v60, %v2258_v14  ;;  %v2329_v45 = vshrl.u32 %v7987_v39, %v2314_v38  ;;  %v9834_v21 = vshll.u32 %v2307_v0, 8 }
 0x22d   : > { %v2318_v2 = vor.u32 %v2317_v36, %v2316_v4  ;;  %v2321_v55 = vor.u32 %v2320_v44, %v2319_v20  ;;  %v2407_v46 = vshrl.u32 %v2406_v5, 23  ;;  %v2315_v58 = vshrl.u32 %v7982_v24, %v2314_v38 }
 0x22e   : > { %v2175_v11 = vxor.u32 2147483648, %v2174_v31  ;;  %v2261_v9 = vsub.s32 0, %v9831_v51  ;;  %v2327_v35 = vor.u32 %v2326_v42, %v2325_v40  ;;  %vm2331_vm10 = vcmp.lt.s32.totalorder %v2312_v10, 1 }
 0x22f   : > { %v2324_v13 = vor.u32 %v2323_v37, %v2322_v47  ;;  %v2330_v50 = vor.u32 %v2329_v45, %v2328_v27  ;;  %vm2334_vm11 = vcmp.lt.s32.totalorder %v2312_v10, 4  ;;  %vm2332_vm13 = vcmp.lt.s32.totalorder %v2312_v10, 2 }
 0x230   : > { %v2176_v53 = vsel %vm2093_vm2, %v2175_v11, %v2174_v31  ;;  %v7126_v29 = vmin.u32 %v2261_v9, %v9831_v51  ;;  %vm2333_vm12 = vcmp.lt.s32.totalorder %v2312_v10, 3  ;;  %vm2197_vm14 = vcmp.lt.s32.totalorder %v9656_v62, 0 }
 0x231   : > { %v2179_v57 = vsel %vm9809_vm8, %v9589_v3, %v2176_v53  ;;  %v2336_v54 = vsel %vm2334_vm11, %v2324_v13, 2102212464  ;;  %v2339_v61 = vsel %vm2331_vm10, %v2318_v2, %v2321_v55  ;;  %v2340_v59 = vsel %vm2334_vm11, %v2327_v35, 920167782 }
 0x232   : > { %7699 = vcosq.f32 %v2179_v57  ;;  %v2263_v63 = vclz %v7126_v29  ;;  %v2403_v60 = vand.u32 2147483647, %v9803_v6  ;;  %v7133_v49 = vadd.s32 4294967169, %v2407_v46 }
 0x233   : > { %7701 = vsinq.f32 %v2179_v57  ;;  %v2335_v33 = vsel %vm2331_vm10, %v2315_v58, %v2318_v2  ;;  %v2337_v1 = vsel %vm2333_vm12, %v2321_v55, %v2336_v54  ;;  %v2341_v52 = vsel %vm2333_vm12, %v2324_v13, %v2340_v59 }
 0x234   : > { %v2343_v41 = vsel %vm2331_vm10, %v2321_v55, %v2324_v13  ;;  %vm9855_vm15 = vcmp.le.f32.partialorder %v2195_v22, 0.7853982  ;;  %v2251_v18 = vadd.s32 %v9774_v23, %v9782_v48  ;;  %v7127_v15 = vadd.s32 4294967294, %v2263_v63 }
 0x235   : > { %v2342_v34 = vsel %vm2332_vm13, %v2339_v61, %v2341_v52  ;;  %v2344_v17 = vsel %vm2334_vm11, %v2330_v50, 1326507024  ;;  %v2281_v16 = vsub.s32 4, %v9817_v12  ;;  %vm2183_vm1 = vweird.f32 %v9589_v3 }
 0x236   : > { %v2345_v25 = vsel %vm2333_vm12, %v2327_v35, %v2344_v17  ;;  %v9866_v0 = vmul.u32.u64.low %v9834_v21, %v2342_v34  ;;  %v9867_v38 = vmul.u32.u64.high %v9834_v21, %v2342_v34, %v9866_v0  ;;  %vm7128_vm0 = vcmp.lt.s32.totalorder %v7127_v15, 0 }
 0x237   : > { %v2338_v22 = vsel %vm2332_vm13, %v2335_v33, %v2337_v1  ;;  %v2346_v23 = vsel %vm2332_vm13, %v2343_v41, %v2345_v25  ;;  %v2413_v48 = vadd.s32 1, %v7133_v49  ;;  %v2185_v5 = vand.u32 3, %v2184_v19 }
 0x238   : > { %v2266_v7 = vsel %vm7128_vm0, 0, %v7127_v15  ;;  %v9874_v4 = vmul.u32.u64.low %v9834_v21, %v2346_v23  ;;  %v9875_v20 = vmul.u32.u64.high %v9834_v21, %v2346_v23, %v9874_v4  ;;  %v2354_v40 = vmul.u32 %v9834_v21, %v2338_v22 }
 0x239   : > { %v2267_v47 = vsub.s32 32, %v2266_v7  ;;  %v2268_v14 = vshll.u32 %v9831_v51, %v2266_v7  ;;  %v2271_v36 = vsub.s32 4294967266, %v2266_v7  ;;  %vm2414_vm2 = vcmp.gt.s32.totalorder %v2413_v48, 0 }
 0x23a   : > { %v2357_v27 = vadd.s32 1, %v9867_v38  ;;  %v2410_v10 = vand.u32 8388607, %v2403_v60  ;;  %v2415_v31 = vsel %vm2414_vm2, %v2413_v48, 0  ;;  %v2282_v42 = vsel %vm2197_vm14, %v2281_v16, %v9817_v12 }
 0x23b   : > { %v2269_v44 = vshrl.u32 %v2251_v18, %v2267_v47  ;;  %v2272_v37 = vadd.s32 127, %v2271_v36  ;;  %v2417_v19 = vand.u32 31, %v2415_v31  ;;  %vm2186_vm3 = vcmp.lt.s32.totalorder %v2185_v5, 2 }
 0x23c   : > { %v7700_v45 = vpop.eup %7699  ;;  %vm2187_vm5 = vcmp.eq.s32.totalorder %v2185_v5, 0  ;;  %vm2190_vm4 = vcmp.eq.s32.totalorder %v2185_v5, 2  ;;  %vm2356_vm6 = vc.u32 %v9875_v20, %v9866_v0  ;;  %v2284_v9 = vsel %vm9855_vm15, 0, %v2282_v42 }
 0x23d   : > { %v7702_v51 = vpop.eup %7701  ;;  %v2191_v21 = vxor.u32 2147483648, %v7700_v45  ;;  %v2270_v11 = vor.u32 %v2269_v44, %v2268_v14  ;;  %v2273_v2 = vshll.u32 %v2272_v37, 23  ;;  %v2358_v55 = vsel %vm2356_vm6, %v2357_v27, %v9867_v38 }
 0x23e   : > { %v2188_v46 = vxor.u32 2147483648, %v7702_v51  ;;  %v2359_v58 = vadd.s32 %v2358_v55, %v2354_v40  ;;  %v2418_v12 = vsub.s32 32, %v2417_v19  ;;  %v2411_v50 = vor.u32 8388608, %v2410_v10 }
 0x23f   : > { %v2192_v35 = vsel %vm2190_vm4, %v2191_v21, %v7702_v51  ;;  %v2274_v53 = vor.u32 4788187, %v2273_v2  ;;  %v2277_v13 = vcvt.s32.f32 %v2270_v11  ;;  %v2420_v54 = vshll.u32 %v7982_v24, %v2417_v19 }
 0x240   : > { %v2189_v57 = vsel %vm2187_vm5, %v7700_v45, %v2188_v46  ;;  %v2360_v29 = vadd.s32 536870912, %v2359_v58  ;;  %v2423_v61 = vshll.u32 %v7983_v26, %v2417_v19  ;;  %v2421_v49 = vshrl.u32 %v7983_v26, %v2418_v12 }
 0x241   : > { %v2193_v59 = vsel %vm2186_vm3, %v2189_v57, %v2192_v35  ;;  %v2275_v63 = vand.u32 2147483647, %v2274_v53  ;;  %v2424_v33 = vshrl.u32 %v7984_v28, %v2418_v12  ;;  %v2426_v41 = vshll.u32 %v7984_v28, %v2417_v19 }
 0x242   : > { %v2194_v1 = vsel %vm2183_vm1, nan, %v2193_v59  ;;  %v2361_v52 = vshrl.u32 %v2360_v29, 30  ;;  %v2427_v18 = vshrl.u32 %v7985_v30, %v2418_v12  ;;  %v2416_v34 = vshrl.u32 %v2415_v31, 5 }
 0x243   : > { %v2278_v15 = vmul.f32 %v2277_v13, %v2275_v63  ;;  %v2429_v17 = vshll.u32 %v7985_v30, %v2417_v19  ;;  %v2430_v16 = vshrl.u32 %v7986_v32, %v2418_v12  ;;  %6893 = vst [vmem:[%s8389_s16 + $0x90] sm:$0xff] %v2194_v1  ;;  %v2288_v25 = vadd.s32 3, %v2284_v9 }
 0x244   : > { %v2362_v38 = vshll.u32 %v2361_v52, 30  ;;  %v2432_v22 = vshll.u32 %v7986_v32, %v2417_v19  ;;  %v9904_v23 = vshll.u32 %v2411_v50, 8  ;;  %v2419_v48 = vshrl.u32 %v7982_v24, %v2418_v12  ;;  %v9920_v19 = vld [vmem:[%s8105_s3 + $0xb0] sm:$0xff] }
 0x245   : > { %v2279_v3 = vxor.u32 2147483648, %v2278_v15  ;;  %v2431_v5 = vor.u32 %v2430_v16, %v2429_v17  ;;  %v2433_v7 = vshrl.u32 %v7987_v39, %v2418_v12  ;;  %v2422_v47 = vor.u32 %v2421_v49, %v2420_v54 }
 0x246   : > { %v9908_v4 = vsub.s32 %v2359_v58, %v2362_v38  ;;  %v2425_v14 = vor.u32 %v2424_v33, %v2423_v61  ;;  %v2428_v36 = vor.u32 %v2427_v18, %v2426_v41  ;;  %vm2435_vm7 = vcmp.lt.s32.totalorder %v2416_v34, 1 }
 0x247   : > { %v2280_v40 = vsel %vm2197_vm14, %v2279_v3, %v2278_v15  ;;  %v2434_v27 = vor.u32 %v2433_v7, %v2432_v22  ;;  %vm2438_vm9 = vcmp.lt.s32.totalorder %v2416_v34, 4  ;;  %vm2436_vm8 = vcmp.lt.s32.totalorder %v2416_v34, 2 }
 0x248   : > { %v2283_v10 = vsel %vm9855_vm15, %v9656_v62, %v2280_v40  ;;  %v2365_v31 = vsub.s32 0, %v9908_v4  ;;  %vm2437_vm10 = vcmp.lt.s32.totalorder %v2416_v34, 3  ;;  %v2439_v44 = vsel %vm2435_vm7, %v2419_v48, %v2422_v47 }
 0x249   : > { %7703 = vcosq.f32 %v2283_v10  ;;  %v2440_v37 = vsel %vm2438_vm9, %v2428_v36, 2102212464  ;;  %v2444_v42 = vsel %vm2438_vm9, %v2431_v5, 920167782  ;;  %v2443_v8 = vsel %vm2435_vm7, %v2422_v47, %v2425_v14 }
 0x24a   : > { %7705 = vsinq.f32 %v2283_v10  ;;  %v7130_v45 = vmin.u32 %v2365_v31, %v9908_v4  ;;  %v2441_v51 = vsel %vm2437_vm10, %v2425_v14, %v2440_v37  ;;  %v2289_v21 = vand.u32 3, %v2288_v25 }
 0x24b   : > { %v2445_v11 = vsel %vm2437_vm10, %v2428_v36, %v2444_v42  ;;  %v2447_v2 = vsel %vm2435_vm7, %v2425_v14, %v2428_v36  ;;  %v2448_v55 = vsel %vm2438_vm9, %v2434_v27, 1326507024  ;;  %vm9930_vm11 = vcmp.le.f32.partialorder %v2299_v43, 0.7853982 }
 0x24c   : > { %vm2301_vm13 = vcmp.lt.s32.totalorder %v9750_v56, 0  ;;  %v2367_v9 = vclz %v7130_v45  ;;  %v2385_v58 = vsub.s32 4, %v2361_v52  ;;  %v2442_v12 = vsel %vm2436_vm8, %v2439_v44, %v2441_v51 }
 0x24d   : > { %v2446_v35 = vsel %vm2436_vm8, %v2443_v8, %v2445_v11  ;;  %v2449_v53 = vsel %vm2437_vm10, %v2431_v5, %v2448_v55  ;;  %v2510_v13 = vand.u32 2139095040, %v9920_v19  ;;  %vm2287_vm12 = vweird.f32 %v9656_v62 }
 0x24e   : > { %v7131_v50 = vadd.s32 4294967294, %v2367_v9  ;;  %v2450_v43 = vsel %vm2436_vm8, %v2447_v2, %v2449_v53  ;;  %v9942_v57 = vmul.u32.u64.low %v9904_v23, %v2446_v35  ;;  %v9943_v29 = vmul.u32.u64.high %v9904_v23, %v2446_v35, %v9942_v57  ;;  %v9972_v2 = vld [vmem:[%s8105_s3 + $0xb8] sm:$0xff] }
 0x24f   : > { %vm2290_vm14 = vcmp.lt.s32.totalorder %v2289_v21, 2  ;;  %v9947_v54 = vmul.u32.u64.low %v9904_v23, %v2450_v43  ;;  %v9948_v61 = vmul.u32.u64.high %v9904_v23, %v2450_v43, %v9947_v54  ;;  %v2511_v59 = vshrl.u32 %v2510_v13, 23 }
 0x250   : > { %vm2291_vm15 = vcmp.eq.s32.totalorder %v2289_v21, 0  ;;  %v2355_v63 = vadd.s32 %v9866_v0, %v9875_v20  ;;  %vm7132_vm1 = vcmp.lt.s32.totalorder %v7131_v50, 0  ;;  %v2386_v49 = vsel %vm2301_vm13, %v2385_v58, %v2361_v52 }
 0x251   : > { %v2370_v33 = vsel %vm7132_vm1, 0, %v7131_v50  ;;  %v2458_v1 = vmul.u32 %v9904_v23, %v2442_v12  ;;  %v2507_v41 = vand.u32 2147483647, %v9920_v19  ;;  %v7137_v18 = vadd.s32 4294967169, %v2511_v59 }
 0x252   : > { %v2371_v15 = vsub.s32 32, %v2370_v33  ;;  %v2372_v34 = vshll.u32 %v9908_v4, %v2370_v33  ;;  %v2375_v17 = vsub.s32 4294967266, %v2370_v33  ;;  %v2461_v16 = vadd.s32 1, %v9943_v29 }
 0x253   : > { %v7704_v25 = vpop.eup %7703  ;;  %vm2294_vm0 = vcmp.eq.s32.totalorder %v2289_v21, 2  ;;  %v2388_v0 = vsel %vm9930_vm11, 0, %v2386_v49  ;;  %vm2460_vm2 = vc.u32 %v9948_v61, %v9942_v57  ;;  %v2517_v20 = vadd.s32 1, %v7137_v18 }
 0x254   : > { %v7706_v52 = vpop.eup %7705  ;;  %v2295_v38 = vxor.u32 2147483648, %v7704_v25  ;;  %v2373_v22 = vshrl.u32 %v2355_v63, %v2371_v15  ;;  %v2376_v23 = vadd.s32 127, %v2375_v17  ;;  %v2462_v3 = vsel %vm2460_vm2, %v2461_v16, %v9943_v29 }
 0x255   : > { %v2292_v48 = vxor.u32 2147483648, %v7706_v52  ;;  %v2463_v5 = vadd.s32 %v2462_v3, %v2458_v1  ;;  %v2514_v7 = vand.u32 8388607, %v2507_v41  ;;  %vm2518_vm3 = vcmp.gt.s32.totalorder %v2517_v20, 0 }
 0x256   : > { %v2296_v4 = vsel %vm2294_vm0, %v2295_v38, %v7706_v52  ;;  %v2374_v47 = vor.u32 %v2373_v22, %v2372_v34  ;;  %v2377_v14 = vshll.u32 %v2376_v23, 23  ;;  %v2519_v36 = vsel %vm2518_vm3, %v2517_v20, 0 }
 0x257   : > { %v2293_v40 = vsel %vm2291_vm15, %v7704_v25, %v2292_v48  ;;  %v2464_v27 = vadd.s32 536870912, %v2463_v5  ;;  %v2521_v10 = vand.u32 31, %v2519_v36  ;;  %v2392_v42 = vadd.s32 3, %v2388_v0 }
 0x258   : > { %v2297_v31 = vsel %vm2290_vm14, %v2293_v40, %v2296_v4  ;;  %v2378_v44 = vor.u32 4788187, %v2377_v14  ;;  %v2381_v37 = vcvt.s32.f32 %v2374_v47  ;;  %v2515_v8 = vor.u32 8388608, %v2514_v7 }
 0x259   : > { %v2298_v45 = vsel %vm2287_vm12, nan, %v2297_v31  ;;  %v9969_v51 = vshrl.u32 %v2464_v27, 30  ;;  %v2522_v11 = vsub.s32 32, %v2521_v10  ;;  %v2520_v9 = vshrl.u32 %v2519_v36, 5 }
 0x25a   : > { %v2379_v55 = vand.u32 2147483647, %v2378_v44  ;;  %v2524_v58 = vshll.u32 %v7982_v24, %v2521_v10  ;;  %v2527_v12 = vshll.u32 %v7983_v26, %v2521_v10  ;;  %6894 = vst [vmem:[%s8389_s16 + $0x98] sm:$0xff] %v2298_v45  ;;  %v2530_v62 = vshll.u32 %v7984_v28, %v2521_v10 }
 0x25b   : > { %v2466_v21 = vshll.u32 %v9969_v51, 30  ;;  %v2525_v35 = vshrl.u32 %v7983_v26, %v2522_v11  ;;  %v2533_v53 = vshll.u32 %v7985_v30, %v2521_v10  ;;  %v2528_v50 = vshrl.u32 %v7984_v28, %v2522_v11 }
 0x25c   : > { %v2382_v13 = vmul.f32 %v2381_v37, %v2379_v55  ;;  %v2531_v43 = vshrl.u32 %v7985_v30, %v2522_v11  ;;  %v2534_v29 = vshrl.u32 %v7986_v32, %v2522_v11  ;;  %v9984_v54 = vand.u32 3, %v2392_v42 }
 0x25d   : > { %v9986_v59 = vsub.s32 %v2463_v5, %v2466_v21  ;;  %v2536_v63 = vshll.u32 %v7986_v32, %v2521_v10  ;;  %v2614_v49 = vand.u32 2139095040, %v9972_v2  ;;  %v2459_v1 = vadd.s32 %v9942_v57, %v9948_v61 }
 0x25e   : > { %v2383_v33 = vxor.u32 2147483648, %v2382_v13  ;;  %v2523_v18 = vshrl.u32 %v7982_v24, %v2522_v11  ;;  %v9993_v15 = vshll.u32 %v2515_v8, 8  ;;  %v2526_v17 = vor.u32 %v2525_v35, %v2524_v58 }
 0x25f   : > { %v2469_v34 = vsub.s32 0, %v9986_v59  ;;  %v2529_v16 = vor.u32 %v2528_v50, %v2527_v12  ;;  %v2537_v25 = vshrl.u32 %v7987_v39, %v2522_v11  ;;  %v2532_v20 = vor.u32 %v2531_v43, %v2530_v62 }
 0x260   : > { %v2384_v0 = vsel %vm2301_vm13, %v2383_v33, %v2382_v13  ;;  %v2535_v52 = vor.u32 %v2534_v29, %v2533_v53  ;;  %vm2539_vm5 = vcmp.lt.s32.totalorder %v2520_v9, 1  ;;  %v2615_v22 = vshrl.u32 %v2614_v49, 23 }
 0x261   : > { %v2387_v57 = vsel %vm9930_vm11, %v9750_v56, %v2384_v0  ;;  %v7134_v61 = vmin.u32 %v2469_v34, %v9986_v59  ;;  %v2538_v38 = vor.u32 %v2537_v25, %v2536_v63  ;;  %vm2405_vm4 = vcmp.lt.s32.totalorder %v9803_v6, 0 }
 0x262   : > { %7707 = vcosq.f32 %v2387_v57  ;;  %vm2540_vm6 = vcmp.lt.s32.totalorder %v2520_v9, 2  ;;  %vm2541_vm7 = vcmp.lt.s32.totalorder %v2520_v9, 3  ;;  %vm2542_vm9 = vcmp.lt.s32.totalorder %v2520_v9, 4 }
 0x263   : > { %7709 = vsinq.f32 %v2387_v57  ;;  %v2471_v23 = vclz %v7134_v61  ;;  %v2543_v3 = vsel %vm2539_vm5, %v2523_v18, %v2526_v17  ;;  %v2547_v48 = vsel %vm2539_vm5, %v2526_v17, %v2529_v16 }
 0x264   : > { %v2489_v5 = vsub.s32 4, %v9969_v51  ;;  %v2544_v46 = vsel %vm2542_vm9, %v2532_v20, 2102212464  ;;  %v2548_v7 = vsel %vm2542_vm9, %v2535_v52, 920167782  ;;  %v2551_v4 = vsel %vm2539_vm5, %v2529_v16, %v2532_v20 }
 0x265   : > { %v7135_v47 = vadd.s32 4294967294, %v2471_v23  ;;  %v2545_v14 = vsel %vm2541_vm7, %v2529_v16, %v2544_v46  ;;  %v2549_v36 = vsel %vm2541_vm7, %v2532_v20, %v2548_v7  ;;  %v2552_v40 = vsel %vm2542_vm9, %v2538_v38, 1326507024 }
 0x266   : > { %v2546_v27 = vsel %vm2540_vm6, %v2543_v3, %v2545_v14  ;;  %v2550_v10 = vsel %vm2540_vm6, %v2547_v48, %v2549_v36  ;;  %v2553_v31 = vsel %vm2541_vm7, %v2535_v52, %v2552_v40  ;;  %v7141_v44 = vadd.s32 4294967169, %v2615_v22 }
 0x267   : > { %vm7136_vm8 = vcmp.lt.s32.totalorder %v7135_v47, 0  ;;  %v2554_v37 = vsel %vm2540_vm6, %v2551_v4, %v2553_v31  ;;  %v10015_v42 = vmul.u32.u64.low %v9993_v15, %v2550_v10  ;;  %v10016_v45 = vmul.u32.u64.high %v9993_v15, %v2550_v10, %v10015_v42 }
 0x268   : > { %v2474_v8 = vsel %vm7136_vm8, 0, %v7135_v47  ;;  %v10020_v11 = vmul.u32.u64.low %v9993_v15, %v2554_v37  ;;  %v10021_v55 = vmul.u32.u64.high %v9993_v15, %v2554_v37, %v10020_v11  ;;  %v2611_v58 = vand.u32 2147483647, %v9972_v2 }
 0x269   : > { %vm10026_vm10 = vcmp.le.f32.partialorder %v2403_v60, 0.7853982  ;;  %v2475_v9 = vsub.s32 32, %v2474_v8  ;;  %v2476_v21 = vshll.u32 %v9986_v59, %v2474_v8  ;;  %v2479_v35 = vsub.s32 4294967266, %v2474_v8 }
 0x26a   : > { %vm2394_vm11 = vcmp.lt.s32.totalorder %v9984_v54, 2  ;;  %vm2395_vm13 = vcmp.eq.s32.totalorder %v9984_v54, 0  ;;  %v2562_v62 = vmul.u32 %v9993_v15, %v2546_v27  ;;  %v2621_v53 = vadd.s32 1, %v7141_v44 }
 0x26b   : > { %v2477_v13 = vshrl.u32 %v2459_v1, %v2475_v9  ;;  %v2480_v50 = vadd.s32 127, %v2479_v35  ;;  %v2490_v60 = vsel %vm2405_vm4, %v2489_v5, %v9969_v51  ;;  %v2565_v43 = vadd.s32 1, %v10016_v45 }
 0x26c   : > { %v7708_v29 = vpop.eup %7707  ;;  %vm2398_vm12 = vcmp.eq.s32.totalorder %v9984_v54, 2  ;;  %vm2564_vm14 = vc.u32 %v10021_v55, %v10015_v42  ;;  %v2618_v59 = vand.u32 8388607, %v2611_v58  ;;  %vm2622_vm15 = vcmp.gt.s32.totalorder %v2621_v53, 0 }
 0x26d   : > { %v7710_v63 = vpop.eup %7709  ;;  %v2399_v49 = vxor.u32 2147483648, %v7708_v29  ;;  %v2478_v33 = vor.u32 %v2477_v13, %v2476_v21  ;;  %v2481_v1 = vshll.u32 %v2480_v50, 23  ;;  %v2566_v18 = vsel %vm2564_vm14, %v2565_v43, %v10016_v45  ;;  %v10078_v50 = vld [vmem:[%s8105_s3 + $0xc0] sm:$0xff] }
 0x26e   : > { %v2396_v15 = vxor.u32 2147483648, %v7710_v63  ;;  %v2492_v51 = vsel %vm10026_vm10, 0, %v2490_v60  ;;  %v2567_v34 = vadd.s32 %v2566_v18, %v2562_v62  ;;  %v2623_v17 = vsel %vm2622_vm15, %v2621_v53, 0 }
 0x26f   : > { %vm2391_vm1 = vweird.f32 %v9750_v56  ;;  %v2400_v16 = vsel %vm2398_vm12, %v2399_v49, %v7710_v63  ;;  %v2482_v25 = vor.u32 4788187, %v2481_v1  ;;  %v2485_v0 = vcvt.s32.f32 %v2478_v33 }
 0x270   : > { %v2397_v20 = vsel %vm2395_vm13, %v7708_v29, %v2396_v15  ;;  %v2568_v52 = vadd.s32 536870912, %v2567_v34  ;;  %v2625_v57 = vand.u32 31, %v2623_v17  ;;  %v2496_v22 = vadd.s32 3, %v2492_v51 }
 0x271   : > { %v2401_v61 = vsel %vm2394_vm11, %v2397_v20, %v2400_v16  ;;  %v2483_v38 = vand.u32 2147483647, %v2482_v25  ;;  %v2619_v23 = vor.u32 8388608, %v2618_v59  ;;  %v2624_v5 = vshrl.u32 %v2623_v17, 5 }
 0x272   : > { %v2402_v3 = vsel %vm2391_vm1, nan, %v2401_v61  ;;  %v10051_v48 = vshrl.u32 %v2568_v52, 30  ;;  %v2626_v56 = vsub.s32 32, %v2625_v57  ;;  %v2628_v7 = vshll.u32 %v7982_v24, %v2625_v57 }
 0x273   : > { %v2486_v46 = vmul.f32 %v2485_v0, %v2483_v38  ;;  %v2631_v4 = vshll.u32 %v7983_v26, %v2625_v57  ;;  %6895 = vst [vmem:[%s8389_s16 + $0xa0] sm:$0xff] %v2402_v3  ;;  %v2634_v54 = vshll.u32 %v7984_v28, %v2625_v57  ;;  %v2637_v36 = vshll.u32 %v7985_v30, %v2625_v57 }
 0x274   : > { %v2570_v47 = vshll.u32 %v10051_v48, 30  ;;  %v2629_v14 = vshrl.u32 %v7983_v26, %v2626_v56  ;;  %v2632_v27 = vshrl.u32 %v7984_v28, %v2626_v56  ;;  %v2635_v10 = vshrl.u32 %v7985_v30, %v2626_v56 }
 0x275   : > { %v2487_v40 = vxor.u32 2147483648, %v2486_v46  ;;  %v2638_v31 = vshrl.u32 %v7986_v32, %v2626_v56  ;;  %v10063_v44 = vand.u32 3, %v2496_v22  ;;  %vm2643_vm0 = vcmp.lt.s32.totalorder %v2624_v5, 1 }
 0x276   : > { %v10065_v37 = vsub.s32 %v2567_v34, %v2570_v47  ;;  %v10067_v45 = vshll.u32 %v2619_v23, 8  ;;  %v2630_v11 = vor.u32 %v2629_v14, %v2628_v7  ;;  %v2633_v9 = vor.u32 %v2632_v27, %v2631_v4 }
 0x277   : > { %v2488_v8 = vsel %vm2405_vm4, %v2487_v40, %v2486_v46  ;;  %v2640_v21 = vshll.u32 %v7986_v32, %v2625_v57  ;;  %v2627_v53 = vshrl.u32 %v7982_v24, %v2626_v56  ;;  %v2639_v13 = vor.u32 %v2638_v31, %v2637_v36 }
 0x278   : > { %v2491_v35 = vsel %vm10026_vm10, %v9803_v6, %v2488_v8  ;;  %v2573_v62 = vsub.s32 0, %v10065_v37  ;;  %v2636_v60 = vor.u32 %v2635_v10, %v2634_v54  ;;  %v2641_v43 = vshrl.u32 %v7987_v39, %v2626_v56 }
 0x279   : > { %7711 = vcosq.f32 %v2491_v35  ;;  %vm2646_vm2 = vcmp.lt.s32.totalorder %v2624_v5, 4  ;;  %vm2644_vm3 = vcmp.lt.s32.totalorder %v2624_v5, 2  ;;  %vm2645_vm5 = vcmp.lt.s32.totalorder %v2624_v5, 3 }
 0x27a   : > { %7713 = vsinq.f32 %v2491_v35  ;;  %v7138_v29 = vmin.u32 %v2573_v62, %v10065_v37  ;;  %v2642_v59 = vor.u32 %v2641_v43, %v2640_v21  ;;  %v2648_v12 = vsel %vm2646_vm2, %v2636_v60, 2102212464 }
 0x27b   : > { %v2651_v63 = vsel %vm2643_vm0, %v2630_v11, %v2633_v9  ;;  %v2652_v49 = vsel %vm2646_vm2, %v2639_v13, 920167782  ;;  %v2563_v33 = vadd.s32 %v10015_v42, %v10021_v55  ;;  %v2647_v18 = vsel %vm2643_vm0, %v2627_v53, %v2630_v11 }
 0x27c   : > { %v2575_v1 = vclz %v7138_v29  ;;  %v2718_v15 = vand.u32 2139095040, %v10078_v50  ;;  %v2649_v51 = vsel %vm2645_vm5, %v2633_v9, %v2648_v12  ;;  %v2653_v34 = vsel %vm2645_vm5, %v2636_v60, %v2652_v49 }
 0x27d   : > { %v2655_v17 = vsel %vm2643_vm0, %v2633_v9, %v2636_v60  ;;  %v2656_v16 = vsel %vm2646_vm2, %v2642_v59, 1326507024  ;;  %vm2495_vm4 = vweird.f32 %v9803_v6  ;;  %v2593_v0 = vsub.s32 4, %v10051_v48 }
 0x27e   : > { %v7139_v25 = vadd.s32 4294967294, %v2575_v1  ;;  %v2654_v42 = vsel %vm2644_vm3, %v2651_v63, %v2653_v34  ;;  %v2657_v55 = vsel %vm2645_vm5, %v2639_v13, %v2656_v16  ;;  %v2650_v20 = vsel %vm2644_vm3, %v2647_v18, %v2649_v51 }
 0x27f   : > { %v2658_v52 = vsel %vm2644_vm3, %v2655_v17, %v2657_v55  ;;  %v10100_v57 = vmul.u32.u64.low %v10067_v45, %v2654_v42  ;;  %v10101_v61 = vmul.u32.u64.high %v10067_v45, %v2654_v42, %v10100_v57  ;;  %v2719_v23 = vshrl.u32 %v2718_v15, 23  ;;  %v10145_v17 = vld [vmem:[%s8105_s3 + $0xc8] sm:$0xff] }
 0x280   : > { %vm7140_vm6 = vcmp.lt.s32.totalorder %v7139_v25, 0  ;;  %v10105_v38 = vmul.u32.u64.low %v10067_v45, %v2658_v52  ;;  %v10106_v22 = vmul.u32.u64.high %v10067_v45, %v2658_v52, %v10105_v38  ;;  %vm2498_vm7 = vcmp.lt.s32.totalorder %v10063_v44, 2 }
 0x281   : > { %vm10111_vm9 = vcmp.le.f32.partialorder %v2507_v41, 0.7853982  ;;  %vm2509_vm8 = vcmp.lt.s32.totalorder %v9920_v19, 0  ;;  %v2578_v5 = vsel %vm7140_vm6, 0, %v7139_v25  ;;  %v7145_v4 = vadd.s32 4294967169, %v2719_v23 }
 0x282   : > { %v2579_v56 = vsub.s32 32, %v2578_v5  ;;  %v2580_v46 = vshll.u32 %v10065_v37, %v2578_v5  ;;  %v2583_v7 = vsub.s32 4294967266, %v2578_v5  ;;  %vm2499_vm10 = vcmp.eq.s32.totalorder %v10063_v44, 0 }
 0x283   : > { %v7712_v47 = vpop.eup %7711  ;;  %vm2502_vm11 = vcmp.eq.s32.totalorder %v10063_v44, 2  ;;  %v2666_v14 = vmul.u32 %v10067_v45, %v2650_v20  ;;  %v2669_v41 = vadd.s32 1, %v10101_v61  ;;  %v2594_v10 = vsel %vm2509_vm8, %v2593_v0, %v10051_v48 }
 0x284   : > { %v7714_v54 = vpop.eup %7713  ;;  %v2503_v36 = vxor.u32 2147483648, %v7712_v47  ;;  %v2581_v40 = vshrl.u32 %v2563_v33, %v2579_v56  ;;  %v2584_v27 = vadd.s32 127, %v2583_v7  ;;  %vm2668_vm13 = vc.u32 %v10106_v22, %v10100_v57 }
 0x285   : > { %v2500_v31 = vxor.u32 2147483648, %v7714_v54  ;;  %v2715_v37 = vand.u32 2147483647, %v10078_v50  ;;  %v2725_v8 = vadd.s32 1, %v7145_v4  ;;  %v2670_v21 = vsel %vm2668_vm13, %v2669_v41, %v10101_v61 }
 0x286   : > { %v2504_v11 = vsel %vm2502_vm11, %v2503_v36, %v7714_v54  ;;  %v2582_v9 = vor.u32 %v2581_v40, %v2580_v46  ;;  %v2585_v45 = vshll.u32 %v2584_v27, 23  ;;  %v2596_v62 = vsel %vm10111_vm9, 0, %v2594_v10 }
 0x287   : > { %v2501_v35 = vsel %vm2499_vm10, %v7712_v47, %v2500_v31  ;;  %v2671_v48 = vadd.s32 %v2670_v21, %v2666_v14  ;;  %vm2726_vm12 = vcmp.gt.s32.totalorder %v2725_v8, 0  ;;  %v2600_v49 = vadd.s32 3, %v2596_v62 }
 0x288   : > { %v2505_v53 = vsel %vm2498_vm7, %v2501_v35, %v2504_v11  ;;  %v2586_v13 = vor.u32 4788187, %v2585_v45  ;;  %v2589_v60 = vcvt.s32.f32 %v2582_v9  ;;  %v2727_v43 = vsel %vm2726_vm12, %v2725_v8, 0 }
 0x289   : > { %v2506_v29 = vsel %vm2495_vm4, nan, %v2505_v53  ;;  %v2672_v59 = vadd.s32 536870912, %v2671_v48  ;;  %v2729_v12 = vand.u32 31, %v2727_v43  ;;  %v2722_v1 = vand.u32 8388607, %v2715_v37 }
 0x28a   : > { %v2587_v63 = vand.u32 2147483647, %v2586_v13  ;;  %6896 = vst [vmem:[%s8389_s16 + $0xa8] sm:$0xff] %v2506_v29  ;;  %v10139_v18 = vshrl.u32 %v2727_v43, 5  ;;  %v10153_v38 = vand.u32 3, %v2600_v49  ;;  %vm2613_vm14 = vcmp.lt.s32.totalorder %v9972_v2, 0 }
 0x28b   : > { %v2673_v33 = vshrl.u32 %v2672_v59, 30  ;;  %v2730_v44 = vsub.s32 32, %v2729_v12  ;;  %v2732_v51 = vshll.u32 %v7982_v24, %v2729_v12  ;;  %v2735_v34 = vshll.u32 %v7983_v26, %v2729_v12 }
 0x28c   : > { %v2590_v15 = vmul.f32 %v2589_v60, %v2587_v63  ;;  %v2738_v6 = vshll.u32 %v7984_v28, %v2729_v12  ;;  %v2741_v0 = vshll.u32 %v7985_v30, %v2729_v12  ;;  %v2744_v42 = vshll.u32 %v7986_v32, %v2729_v12 }
 0x28d   : > { %v2674_v16 = vshll.u32 %v2673_v33, 30  ;;  %v2733_v25 = vshrl.u32 %v7983_v26, %v2730_v44  ;;  %v2736_v20 = vshrl.u32 %v7984_v28, %v2730_v44  ;;  %v2739_v52 = vshrl.u32 %v7985_v30, %v2730_v44 }
 0x28e   : > { %v2591_v55 = vxor.u32 2147483648, %v2590_v15  ;;  %v2742_v61 = vshrl.u32 %v7986_v32, %v2730_v44  ;;  %v2723_v5 = vor.u32 8388608, %v2722_v1  ;;  %v2745_v56 = vshrl.u32 %v7987_v39, %v2730_v44 }
 0x28f   : > { %v10155_v23 = vsub.s32 %v2671_v48, %v2674_v16  ;;  %v2731_v7 = vshrl.u32 %v7982_v24, %v2730_v44  ;;  %v2734_v4 = vor.u32 %v2733_v25, %v2732_v51  ;;  %v2822_v47 = vand.u32 2139095040, %v10145_v17 }
 0x290   : > { %v2592_v46 = vsel %vm2509_vm8, %v2591_v55, %v2590_v15  ;;  %v2737_v54 = vor.u32 %v2736_v20, %v2735_v34  ;;  %v2740_v36 = vor.u32 %v2739_v52, %v2738_v6  ;;  %v2743_v40 = vor.u32 %v2742_v61, %v2741_v0 }
 0x291   : > { %v2595_v14 = vsel %vm10111_vm9, %v9920_v19, %v2592_v46  ;;  %v2677_v41 = vsub.s32 0, %v10155_v23  ;;  %v2746_v27 = vor.u32 %v2745_v56, %v2744_v42  ;;  %vm2747_vm15 = vcmp.lt.s32.totalorder %v10139_v18, 1 }
 0x292   : > { %7715 = vcosq.f32 %v2595_v14  ;;  %vm10170_vm1 = vcmp.le.f32.partialorder %v2611_v58, 0.7853982  ;;  %v2763_v3 = vshll.u32 %v2723_v5, 8  ;;  %v2697_v8 = vsub.s32 4, %v2673_v33 }
 0x293   : > { %7717 = vsinq.f32 %v2595_v14  ;;  %v7142_v31 = vmin.u32 %v2677_v41, %v10155_v23  ;;  %vm2749_vm0 = vcmp.lt.s32.totalorder %v10139_v18, 3  ;;  %vm2750_vm2 = vcmp.lt.s32.totalorder %v10139_v18, 4 }
 0x294   : > { %v2823_v11 = vshrl.u32 %v2822_v47, 23  ;;  %vm2748_vm3 = vcmp.lt.s32.totalorder %v10139_v18, 2  ;;  %v2755_v45 = vsel %vm2747_vm15, %v2734_v4, %v2737_v54  ;;  %v2759_v21 = vsel %vm2747_vm15, %v2737_v54, %v2740_v36 }
 0x295   : > { %v2679_v9 = vclz %v7142_v31  ;;  %vm2602_vm5 = vcmp.lt.s32.totalorder %v10153_v38, 2  ;;  %v2751_v58 = vsel %vm2747_vm15, %v2731_v7, %v2734_v4  ;;  %v2752_v35 = vsel %vm2750_vm2, %v2740_v36, 2102212464 }
 0x296   : > { %v2756_v62 = vsel %vm2750_vm2, %v2743_v40, 920167782  ;;  %v2760_v48 = vsel %vm2750_vm2, %v2746_v27, 1326507024  ;;  %vm2599_vm4 = vweird.f32 %v9920_v19  ;;  %v2753_v13 = vsel %vm2749_vm0, %v2737_v54, %v2752_v35 }
 0x297   : > { %v7143_v53 = vadd.s32 4294967294, %v2679_v9  ;;  %v2757_v60 = vsel %vm2749_vm0, %v2740_v36, %v2756_v62  ;;  %v2761_v43 = vsel %vm2749_vm0, %v2743_v40, %v2760_v48  ;;  %v2667_v29 = vadd.s32 %v10100_v57, %v10106_v22 }
 0x298   : > { %v2758_v59 = vsel %vm2748_vm3, %v2755_v45, %v2757_v60  ;;  %v2762_v12 = vsel %vm2748_vm3, %v2759_v21, %v2761_v43  ;;  %v7149_v63 = vadd.s32 4294967169, %v2823_v11  ;;  %v2698_v49 = vsel %vm2613_vm14, %v2697_v8, %v2673_v33 }
 0x299   : > { %vm7144_vm6 = vcmp.lt.s32.totalorder %v7143_v53, 0  ;;  %v10194_v1 = vmul.u32.u64.low %v2763_v3, %v2762_v12  ;;  %v10195_v44 = vmul.u32.u64.high %v2763_v3, %v2762_v12, %v10194_v1  ;;  %v2754_v51 = vsel %vm2748_vm3, %v2751_v58, %v2753_v13 }
 0x29a   : > { %v2682_v15 = vsel %vm7144_vm6, 0, %v7143_v53  ;;  %v10199_v34 = vmul.u32.u64.low %v2763_v3, %v2758_v59  ;;  %v10200_v57 = vmul.u32.u64.high %v2763_v3, %v2758_v59, %v10199_v34  ;;  %v2829_v25 = vadd.s32 1, %v7149_v63 }
 0x29b   : > { %v2683_v22 = vsub.s32 32, %v2682_v15  ;;  %v2684_v6 = vshll.u32 %v10155_v23, %v2682_v15  ;;  %v2687_v16 = vsub.s32 4294967266, %v2682_v15  ;;  %vm2603_vm7 = vcmp.eq.s32.totalorder %v10153_v38, 0 }
 0x29c   : > { %v7716_v0 = vpop.eup %7715  ;;  %vm2606_vm9 = vcmp.eq.s32.totalorder %v10153_v38, 2  ;;  %v2700_v33 = vsel %vm10170_vm1, 0, %v2698_v49  ;;  %v2819_v18 = vand.u32 2147483647, %v10145_v17  ;;  %v2770_v61 = vmul.u32 %v2763_v3, %v2754_v51 }
 0x29d   : > { %v7718_v42 = vpop.eup %7717  ;;  %v2607_v55 = vxor.u32 2147483648, %v7716_v0  ;;  %v2685_v20 = vshrl.u32 %v2667_v29, %v2683_v22  ;;  %v2688_v52 = vadd.s32 127, %v2687_v16  ;;  %vm2772_vm8 = vc.u32 %v10195_v44, %v10199_v34  ;;  %v10239_v16 = vld [vmem:[%s8105_s3 + $0xd0] sm:$0xff] }
 0x29e   : > { %v2604_v5 = vxor.u32 2147483648, %v7718_v42  ;;  %v2773_v23 = vadd.s32 1, %v10200_v57  ;;  %vm2830_vm10 = vcmp.gt.s32.totalorder %v2829_v25, 0  ;;  %v2826_v41 = vand.u32 8388607, %v2819_v18 }
 0x29f   : > { %v2608_v56 = vsel %vm2606_vm9, %v2607_v55, %v7718_v42  ;;  %v2686_v46 = vor.u32 %v2685_v20, %v2684_v6  ;;  %v2689_v7 = vshll.u32 %v2688_v52, 23  ;;  %v2831_v4 = vsel %vm2830_vm10, %v2829_v25, 0 }
 0x2a0   : > { %v2605_v47 = vsel %vm2603_vm7, %v7716_v0, %v2604_v5  ;;  %v2774_v14 = vsel %vm2772_vm8, %v2773_v23, %v10200_v57  ;;  %v2833_v54 = vand.u32 31, %v2831_v4  ;;  %v2704_v8 = vadd.s32 3, %v2700_v33 }
 0x2a1   : > { %v2609_v36 = vsel %vm2602_vm5, %v2605_v47, %v2608_v56  ;;  %v2690_v40 = vor.u32 4788187, %v2689_v7  ;;  %v2693_v27 = vcvt.s32.f32 %v2686_v46  ;;  %v2775_v31 = vadd.s32 %v2774_v14, %v2770_v61 }
 0x2a2   : > { %v2610_v3 = vsel %vm2599_vm4, nan, %v2609_v36  ;;  %v2834_v11 = vsub.s32 32, %v2833_v54  ;;  %v2836_v9 = vshll.u32 %v7982_v24, %v2833_v54  ;;  %v2839_v58 = vshll.u32 %v7983_v26, %v2833_v54 }
 0x2a3   : > { %v2691_v45 = vand.u32 2147483647, %v2690_v40  ;;  %v2776_v21 = vadd.s32 536870912, %v2775_v31  ;;  %v2842_v35 = vshll.u32 %v7984_v28, %v2833_v54  ;;  %6897 = vst [vmem:[%s8389_s16 + $0xb0] sm:$0xff] %v2610_v3  ;;  %v2845_v19 = vshll.u32 %v7985_v30, %v2833_v54 }
 0x2a4   : > { %v2837_v38 = vshrl.u32 %v7983_v26, %v2834_v11  ;;  %v2840_v62 = vshrl.u32 %v7984_v28, %v2834_v11  ;;  %v2843_v48 = vshrl.u32 %v7985_v30, %v2834_v11  ;;  %v2832_v60 = vshrl.u32 %v2831_v4, 5 }
 0x2a5   : > { %v2694_v53 = vmul.f32 %v2693_v27, %v2691_v45  ;;  %v10229_v13 = vshrl.u32 %v2776_v21, 30  ;;  %v2846_v43 = vshrl.u32 %v7986_v32, %v2834_v11  ;;  %v2827_v29 = vor.u32 8388608, %v2826_v41 }
 0x2a6   : > { %v2848_v59 = vshll.u32 %v7986_v32, %v2833_v54  ;;  %v2849_v12 = vshrl.u32 %v7987_v39, %v2834_v11  ;;  %v10234_v49 = vand.u32 3, %v2704_v8  ;;  %v2835_v15 = vshrl.u32 %v7982_v24, %v2834_v11 }
 0x2a7   : > { %v2695_v63 = vxor.u32 2147483648, %v2694_v53  ;;  %v2778_v1 = vshll.u32 %v10229_v13, 30  ;;  %v2838_v51 = vor.u32 %v2837_v38, %v2836_v9  ;;  %v2841_v57 = vor.u32 %v2840_v62, %v2839_v58 }
 0x2a8   : > { %v2844_v22 = vor.u32 %v2843_v48, %v2842_v35  ;;  %v2847_v6 = vor.u32 %v2846_v43, %v2845_v19  ;;  %vm2851_vm11 = vcmp.lt.s32.totalorder %v2832_v60, 1  ;;  %vm2854_vm13 = vcmp.lt.s32.totalorder %v2832_v60, 4 }
 0x2a9   : > { %v2696_v25 = vsel %vm2613_vm14, %v2695_v63, %v2694_v53  ;;  %v10243_v0 = vsub.s32 %v2775_v31, %v2778_v1  ;;  %v2850_v42 = vor.u32 %v2849_v12, %v2848_v59  ;;  %vm2853_vm12 = vcmp.lt.s32.totalorder %v2832_v60, 3 }
 0x2aa   : > { %v2699_v33 = vsel %vm10170_vm1, %v9972_v2, %v2696_v25  ;;  %v2867_v55 = vshll.u32 %v2827_v29, 8  ;;  %vm2852_vm15 = vcmp.lt.s32.totalorder %v2832_v60, 2  ;;  %v2856_v52 = vsel %vm2854_vm13, %v2844_v22, 2102212464 }
 0x2ab   : > { %7719 = vcosq.f32 %v2699_v33  ;;  %v2781_v20 = vsub.s32 0, %v10243_v0  ;;  %v2859_v61 = vsel %vm2851_vm11, %v2838_v51, %v2841_v57  ;;  %v2860_v5 = vsel %vm2854_vm13, %v2847_v6, 920167782 }
 0x2ac   : > { %7721 = vsinq.f32 %v2699_v33  ;;  %v2926_v23 = vand.u32 2139095040, %v10239_v16  ;;  %v2855_v10 = vsel %vm2851_vm11, %v2835_v15, %v2838_v51  ;;  %v2861_v46 = vsel %vm2853_vm12, %v2844_v22, %v2860_v5 }
 0x2ad   : > { %v7146_v56 = vmin.u32 %v2781_v20, %v10243_v0  ;;  %v2857_v7 = vsel %vm2853_vm12, %v2841_v57, %v2856_v52  ;;  %v2862_v4 = vsel %vm2852_vm15, %v2859_v61, %v2861_v46  ;;  %v2863_v47 = vsel %vm2851_vm11, %v2841_v57, %v2844_v22 }
 0x2ae   : > { %v2864_v14 = vsel %vm2854_vm13, %v2850_v42, 1326507024  ;;  %vm2706_vm14 = vcmp.lt.s32.totalorder %v10234_v49, 2  ;;  %vm2717_vm1 = vcmp.lt.s32.totalorder %v10078_v50, 0  ;;  %v2927_v27 = vshrl.u32 %v2926_v23, 23 }
 0x2af   : > { %v2783_v41 = vclz %v7146_v56  ;;  %v2865_v54 = vsel %vm2853_vm12, %v2847_v6, %v2864_v14  ;;  %v10263_v36 = vmul.u32.u64.low %v2867_v55, %v2862_v4  ;;  %v10264_v40 = vmul.u32.u64.high %v2867_v55, %v2862_v4, %v10263_v36  ;;  %v10292_v6 = vld [vmem:[%s8105_s3 + $0xd8] sm:$0xff] }
 0x2b0   : > { %v2801_v3 = vsub.s32 4, %v10229_v13  ;;  %v2858_v8 = vsel %vm2852_vm15, %v2855_v10, %v2857_v7  ;;  %v2866_v11 = vsel %vm2852_vm15, %v2863_v47, %v2865_v54  ;;  %v2923_v21 = vand.u32 2147483647, %v10239_v16 }
 0x2b1   : > { %v7147_v31 = vadd.s32 4294967294, %v2783_v41  ;;  %v10270_v9 = vmul.u32.u64.low %v2867_v55, %v2866_v11  ;;  %v10271_v45 = vmul.u32.u64.high %v2867_v55, %v2866_v11, %v10270_v9  ;;  %v7153_v58 = vadd.s32 4294967169, %v2927_v27 }
 0x2b2   : > { %vm2707_vm0 = vcmp.eq.s32.totalorder %v10234_v49, 0  ;;  %vm2710_vm2 = vcmp.eq.s32.totalorder %v10234_v49, 2  ;;  %v2771_v35 = vadd.s32 %v10199_v34, %v10195_v44  ;;  %v2874_v62 = vmul.u32 %v2867_v55, %v2858_v8 }
 0x2b3   : > { %vm7148_vm3 = vcmp.lt.s32.totalorder %v7147_v31, 0  ;;  %v2877_v48 = vadd.s32 1, %v10264_v40  ;;  %v2933_v19 = vadd.s32 1, %v7153_v58  ;;  %v2802_v59 = vsel %vm2717_vm1, %v2801_v3, %v10229_v13 }
 0x2b4   : > { %v2786_v38 = vsel %vm7148_vm3, 0, %v7147_v31  ;;  %vm2876_vm5 = vc.u32 %v10271_v45, %v10263_v36  ;;  %v2930_v44 = vand.u32 8388607, %v2923_v21  ;;  %vm2703_vm6 = vweird.f32 %v9972_v2 }
 0x2b5   : > { %v7720_v53 = vpop.eup %7719  ;;  %v2787_v60 = vsub.s32 32, %v2786_v38  ;;  %v2788_v43 = vshll.u32 %v10243_v0, %v2786_v38  ;;  %v2791_v29 = vsub.s32 4294967266, %v2786_v38  ;;  %vm2934_vm4 = vcmp.gt.s32.totalorder %v2933_v19, 0 }
 0x2b6   : > { %v7722_v12 = vpop.eup %7721  ;;  %v2711_v63 = vxor.u32 2147483648, %v7720_v53  ;;  %v2878_v51 = vsel %vm2876_vm5, %v2877_v48, %v10264_v40  ;;  %v2935_v22 = vsel %vm2934_vm4, %v2933_v19, 0  ;;  %vm10298_vm7 = vcmp.le.f32.partialorder %v2715_v37, 0.7853982 }
 0x2b7   : > { %v2708_v34 = vxor.u32 2147483648, %v7722_v12  ;;  %v2789_v1 = vshrl.u32 %v2771_v35, %v2787_v60  ;;  %v2792_v15 = vadd.s32 127, %v2791_v29  ;;  %v2879_v13 = vadd.s32 %v2878_v51, %v2874_v62 }
 0x2b8   : > { %v2712_v57 = vsel %vm2710_vm2, %v2711_v63, %v7722_v12  ;;  %v2804_v55 = vsel %vm10298_vm7, 0, %v2802_v59  ;;  %v2937_v52 = vand.u32 31, %v2935_v22  ;;  %v2931_v56 = vor.u32 8388608, %v2930_v44 }
 0x2b9   : > { %v2709_v25 = vsel %vm2707_vm0, %v7720_v53, %v2708_v34  ;;  %v2790_v33 = vor.u32 %v2789_v1, %v2788_v43  ;;  %v2793_v42 = vshll.u32 %v2792_v15, 23  ;;  %v2880_v20 = vadd.s32 536870912, %v2879_v13 }
 0x2ba   : > { %v2713_v2 = vsel %vm2706_vm14, %v2709_v25, %v2712_v57  ;;  %v2936_v37 = vshrl.u32 %v2935_v22, 5  ;;  %v2938_v46 = vsub.s32 32, %v2937_v52  ;;  %v3030_v7 = vand.u32 2139095040, %v10292_v6 }
 0x2bb   : > { %v2714_v61 = vsel %vm2703_vm6, nan, %v2713_v2  ;;  %v2794_v5 = vor.u32 4788187, %v2793_v42  ;;  %v2797_v23 = vcvt.s32.f32 %v2790_v33  ;;  %v10306_v10 = vshrl.u32 %v2880_v20, 30 }
 0x2bc   : > { %6898 = vst [vmem:[%s8389_s16 + $0xb8] sm:$0xff] %v2714_v61  ;;  %v2940_v49 = vshll.u32 %v7982_v24, %v2937_v52  ;;  %v2943_v47 = vshll.u32 %v7983_v26, %v2937_v52  ;;  %v2946_v14 = vshll.u32 %v7984_v28, %v2937_v52  ;;  %v2941_v54 = vshrl.u32 %v7983_v26, %v2938_v46 }
 0x2bd   : > { %v2795_v4 = vand.u32 2147483647, %v2794_v5  ;;  %v2882_v41 = vshll.u32 %v10306_v10, 30  ;;  %v2949_v40 = vshll.u32 %v7985_v30, %v2937_v52  ;;  %v2952_v27 = vshll.u32 %v7986_v32, %v2937_v52 }
 0x2be   : > { %v2944_v3 = vshrl.u32 %v7984_v28, %v2938_v46  ;;  %v2947_v8 = vshrl.u32 %v7985_v30, %v2938_v46  ;;  %v2950_v11 = vshrl.u32 %v7986_v32, %v2938_v46  ;;  %v2808_v9 = vadd.s32 3, %v2804_v55 }
 0x2bf   : > { %v2798_v31 = vmul.f32 %v2797_v23, %v2795_v4  ;;  %v10320_v58 = vsub.s32 %v2879_v13, %v2882_v41  ;;  %v2953_v35 = vshrl.u32 %v7987_v39, %v2938_v46  ;;  %v10323_v38 = vshll.u32 %v2931_v56, 8 }
 0x2c0   : > { %v2942_v48 = vor.u32 %v2941_v54, %v2940_v49  ;;  %v2945_v19 = vor.u32 %v2944_v3, %v2943_v47  ;;  %v3031_v53 = vshrl.u32 %v3030_v7, 23  ;;  %v2939_v43 = vshrl.u32 %v7982_v24, %v2938_v46 }
 0x2c1   : > { %v2799_v62 = vxor.u32 2147483648, %v2798_v31  ;;  %v2885_v60 = vsub.s32 0, %v10320_v58  ;;  %v2951_v29 = vor.u32 %v2950_v11, %v2949_v40  ;;  %vm2955_vm9 = vcmp.lt.s32.totalorder %v2936_v37, 1 }
 0x2c2   : > { %v2948_v12 = vor.u32 %v2947_v8, %v2946_v14  ;;  %v2954_v63 = vor.u32 %v2953_v35, %v2952_v27  ;;  %vm2958_vm8 = vcmp.lt.s32.totalorder %v2936_v37, 4  ;;  %vm2956_vm10 = vcmp.lt.s32.totalorder %v2936_v37, 2 }
 0x2c3   : > { %v2800_v59 = vsel %vm2717_vm1, %v2799_v62, %v2798_v31  ;;  %v7150_v34 = vmin.u32 %v2885_v60, %v10320_v58  ;;  %vm2957_vm11 = vcmp.lt.s32.totalorder %v2936_v37, 3  ;;  %vm2821_vm13 = vcmp.lt.s32.totalorder %v10145_v17, 0 }
 0x2c4   : > { %v2803_v44 = vsel %vm10298_vm7, %v10078_v50, %v2800_v59  ;;  %v2960_v1 = vsel %vm2958_vm8, %v2948_v12, 2102212464  ;;  %v2963_v15 = vsel %vm2955_vm9, %v2942_v48, %v2945_v19  ;;  %v2964_v51 = vsel %vm2958_vm8, %v2951_v29, 920167782 }
 0x2c5   : > { %7723 = vcosq.f32 %v2803_v44  ;;  %v2887_v57 = vclz %v7150_v34  ;;  %v3027_v13 = vand.u32 2147483647, %v10292_v6  ;;  %v7157_v22 = vadd.s32 4294967169, %v3031_v53 }
 0x2c6   : > { %7725 = vsinq.f32 %v2803_v44  ;;  %v2959_v25 = vsel %vm2955_vm9, %v2939_v43, %v2942_v48  ;;  %v2961_v0 = vsel %vm2957_vm11, %v2945_v19, %v2960_v1  ;;  %v2965_v33 = vsel %vm2957_vm11, %v2948_v12, %v2964_v51 }
 0x2c7   : > { %v2967_v42 = vsel %vm2955_vm9, %v2945_v19, %v2948_v12  ;;  %vm10344_vm12 = vcmp.le.f32.partialorder %v2819_v18, 0.7853982  ;;  %v2875_v55 = vadd.s32 %v10263_v36, %v10271_v45  ;;  %v7151_v20 = vadd.s32 4294967294, %v2887_v57 }
 0x2c8   : > { %v2966_v52 = vsel %vm2956_vm10, %v2963_v15, %v2965_v33  ;;  %v2968_v61 = vsel %vm2958_vm8, %v2954_v63, 1326507024  ;;  %v2905_v5 = vsub.s32 4, %v10306_v10  ;;  %vm2807_vm15 = vweird.f32 %v10078_v50 }
 0x2c9   : > { %v2969_v23 = vsel %vm2957_vm11, %v2951_v29, %v2968_v61  ;;  %v10355_v56 = vmul.u32.u64.low %v10323_v38, %v2966_v52  ;;  %v10356_v46 = vmul.u32.u64.high %v10323_v38, %v2966_v52, %v10355_v56  ;;  %vm7152_vm14 = vcmp.lt.s32.totalorder %v7151_v20, 0 }
 0x2ca   : > { %v2962_v18 = vsel %vm2956_vm10, %v2959_v25, %v2961_v0  ;;  %v2970_v36 = vsel %vm2956_vm10, %v2967_v42, %v2969_v23  ;;  %v3037_v45 = vadd.s32 1, %v7157_v22  ;;  %v2809_v7 = vand.u32 3, %v2808_v9 }
 0x2cb   : > { %v2890_v4 = vsel %vm7152_vm14, 0, %v7151_v20  ;;  %v10363_v49 = vmul.u32.u64.low %v10323_v38, %v2970_v36  ;;  %v10364_v47 = vmul.u32.u64.high %v10323_v38, %v2970_v36, %v10363_v49  ;;  %v2978_v40 = vmul.u32 %v10323_v38, %v2962_v18 }
 0x2cc   : > { %v2891_v14 = vsub.s32 32, %v2890_v4  ;;  %v2892_v41 = vshll.u32 %v10320_v58, %v2890_v4  ;;  %v2895_v54 = vsub.s32 4294967266, %v2890_v4  ;;  %vm3038_vm1 = vcmp.gt.s32.totalorder %v3037_v45, 0 }
 0x2cd   : > { %v2981_v27 = vadd.s32 1, %v10356_v46  ;;  %v3034_v37 = vand.u32 8388607, %v3027_v13  ;;  %v3039_v31 = vsel %vm3038_vm1, %v3037_v45, 0  ;;  %v2906_v11 = vsel %vm2821_vm13, %v2905_v5, %v10306_v10 }
 0x2ce   : > { %v2893_v3 = vshrl.u32 %v2875_v55, %v2891_v14  ;;  %v2896_v8 = vadd.s32 127, %v2895_v54  ;;  %v3041_v9 = vand.u32 31, %v3039_v31  ;;  %vm2810_vm0 = vcmp.lt.s32.totalorder %v2809_v7, 2 }
 0x2cf   : > { %v7724_v35 = vpop.eup %7723  ;;  %vm2811_vm2 = vcmp.eq.s32.totalorder %v2809_v7, 0  ;;  %vm2814_vm3 = vcmp.eq.s32.totalorder %v2809_v7, 2  ;;  %vm2980_vm5 = vc.u32 %v10364_v47, %v10355_v56  ;;  %v2908_v60 = vsel %vm10344_vm12, 0, %v2906_v11 }
 0x2d0   : > { %v7726_v58 = vpop.eup %7725  ;;  %v2815_v38 = vxor.u32 2147483648, %v7724_v35  ;;  %v2894_v62 = vor.u32 %v2893_v3, %v2892_v41  ;;  %v2897_v48 = vshll.u32 %v2896_v8, 23  ;;  %v2982_v19 = vsel %vm2980_vm5, %v2981_v27, %v10356_v46 }
 0x2d1   : > { %v2812_v53 = vxor.u32 2147483648, %v7726_v58  ;;  %v2983_v43 = vadd.s32 %v2982_v19, %v2978_v40  ;;  %v3042_v10 = vsub.s32 32, %v3041_v9  ;;  %v3035_v63 = vor.u32 8388608, %v3034_v37 }
 0x2d2   : > { %v2816_v29 = vsel %vm2814_vm3, %v2815_v38, %v7726_v58  ;;  %v2898_v59 = vor.u32 4788187, %v2897_v48  ;;  %v2901_v12 = vcvt.s32.f32 %v2894_v62  ;;  %v3044_v1 = vshll.u32 %v7982_v24, %v3041_v9 }
 0x2d3   : > { %v2813_v44 = vsel %vm2811_vm2, %v7724_v35, %v2812_v53  ;;  %v2984_v34 = vadd.s32 536870912, %v2983_v43  ;;  %v3047_v15 = vshll.u32 %v7983_v26, %v3041_v9  ;;  %v3045_v22 = vshrl.u32 %v7983_v26, %v3042_v10 }
 0x2d4   : > { %v2817_v51 = vsel %vm2810_vm0, %v2813_v44, %v2816_v29  ;;  %v2899_v57 = vand.u32 2147483647, %v2898_v59  ;;  %v3048_v25 = vshrl.u32 %v7984_v28, %v3042_v10  ;;  %v3050_v42 = vshll.u32 %v7984_v28, %v3041_v9 }
 0x2d5   : > { %v2818_v0 = vsel %vm2807_vm15, nan, %v2817_v51  ;;  %v2985_v33 = vshrl.u32 %v2984_v34, 30  ;;  %v3051_v55 = vshrl.u32 %v7985_v30, %v3042_v10  ;;  %v3040_v52 = vshrl.u32 %v3039_v31, 5 }
 0x2d6   : > { %v2902_v20 = vmul.f32 %v2901_v12, %v2899_v57  ;;  %v3053_v61 = vshll.u32 %v7985_v30, %v3041_v9  ;;  %v3054_v5 = vshrl.u32 %v7986_v32, %v3042_v10  ;;  %6899 = vst [vmem:[%s8389_s16 + $0xc0] sm:$0xff] %v2818_v0  ;;  %v2912_v23 = vadd.s32 3, %v2908_v60 }
 0x2d7   : > { %v2986_v46 = vshll.u32 %v2985_v33, 30  ;;  %v3056_v18 = vshll.u32 %v7986_v32, %v3041_v9  ;;  %v10393_v36 = vshll.u32 %v3035_v63, 8  ;;  %v3043_v45 = vshrl.u32 %v7982_v24, %v3042_v10  ;;  %v10409_v9 = vld [vmem:[%s8105_s3 + $0xe0] sm:$0xff] }
 0x2d8   : > { %v2903_v50 = vxor.u32 2147483648, %v2902_v20  ;;  %v3055_v7 = vor.u32 %v3054_v5, %v3053_v61  ;;  %v3057_v4 = vshrl.u32 %v7987_v39, %v3042_v10  ;;  %v3046_v14 = vor.u32 %v3045_v22, %v3044_v1 }
 0x2d9   : > { %v10397_v49 = vsub.s32 %v2983_v43, %v2986_v46  ;;  %v3049_v41 = vor.u32 %v3048_v25, %v3047_v15  ;;  %v3052_v54 = vor.u32 %v3051_v55, %v3050_v42  ;;  %vm3059_vm4 = vcmp.lt.s32.totalorder %v3040_v52, 1 }
 0x2da   : > { %v2904_v40 = vsel %vm2821_vm13, %v2903_v50, %v2902_v20  ;;  %v3058_v27 = vor.u32 %v3057_v4, %v3056_v18  ;;  %vm3062_vm6 = vcmp.lt.s32.totalorder %v3040_v52, 4  ;;  %vm3060_vm7 = vcmp.lt.s32.totalorder %v3040_v52, 2 }
 0x2db   : > { %v2907_v37 = vsel %vm10344_vm12, %v10145_v17, %v2904_v40  ;;  %v2989_v31 = vsub.s32 0, %v10397_v49  ;;  %vm3061_vm9 = vcmp.lt.s32.totalorder %v3040_v52, 3  ;;  %v3063_v3 = vsel %vm3059_vm4, %v3043_v45, %v3046_v14 }
 0x2dc   : > { %7727 = vcosq.f32 %v2907_v37  ;;  %v3064_v8 = vsel %vm3062_vm6, %v3052_v54, 2102212464  ;;  %v3068_v11 = vsel %vm3062_vm6, %v3055_v7, 920167782  ;;  %v3067_v2 = vsel %vm3059_vm4, %v3046_v14, %v3049_v41 }
 0x2dd   : > { %7729 = vsinq.f32 %v2907_v37  ;;  %v7154_v35 = vmin.u32 %v2989_v31, %v10397_v49  ;;  %v3065_v58 = vsel %vm3061_vm9, %v3049_v41, %v3064_v8  ;;  %v2913_v38 = vand.u32 3, %v2912_v23 }
 0x2de   : > { %v3069_v62 = vsel %vm3061_vm9, %v3052_v54, %v3068_v11  ;;  %v3071_v48 = vsel %vm3059_vm4, %v3049_v41, %v3052_v54  ;;  %v3072_v19 = vsel %vm3062_vm6, %v3058_v27, 1326507024  ;;  %vm10419_vm8 = vcmp.le.f32.partialorder %v2923_v21, 0.7853982 }
 0x2df   : > { %vm2925_vm10 = vcmp.lt.s32.totalorder %v10239_v16, 0  ;;  %v2991_v60 = vclz %v7154_v35  ;;  %v3009_v43 = vsub.s32 4, %v2985_v33  ;;  %v3066_v10 = vsel %vm3060_vm7, %v3063_v3, %v3065_v58 }
 0x2e0   : > { %v3070_v29 = vsel %vm3060_vm7, %v3067_v2, %v3069_v62  ;;  %v3073_v59 = vsel %vm3061_vm9, %v3055_v7, %v3072_v19  ;;  %v3134_v12 = vand.u32 2139095040, %v10409_v9  ;;  %vm2911_vm11 = vweird.f32 %v10145_v17 }
 0x2e1   : > { %v7155_v63 = vadd.s32 4294967294, %v2991_v60  ;;  %v3074_v21 = vsel %vm3060_vm7, %v3071_v48, %v3073_v59  ;;  %v10431_v44 = vmul.u32.u64.low %v10393_v36, %v3070_v29  ;;  %v10432_v34 = vmul.u32.u64.high %v10393_v36, %v3070_v29, %v10431_v44  ;;  %v10461_v48 = vld [vmem:[%s8105_s3 + $0xe8] sm:$0xff] }
 0x2e2   : > { %vm2914_vm13 = vcmp.lt.s32.totalorder %v2913_v38, 2  ;;  %v10436_v1 = vmul.u32.u64.low %v10393_v36, %v3074_v21  ;;  %v10437_v15 = vmul.u32.u64.high %v10393_v36, %v3074_v21, %v10436_v1  ;;  %v3135_v51 = vshrl.u32 %v3134_v12, 23 }
 0x2e3   : > { %vm2915_vm12 = vcmp.eq.s32.totalorder %v2913_v38, 0  ;;  %v2979_v57 = vadd.s32 %v10355_v56, %v10364_v47  ;;  %vm7156_vm15 = vcmp.lt.s32.totalorder %v7155_v63, 0  ;;  %v3010_v22 = vsel %vm2925_vm10, %v3009_v43, %v2985_v33 }
 0x2e4   : > { %v2994_v25 = vsel %vm7156_vm15, 0, %v7155_v63  ;;  %v3082_v0 = vmul.u32 %v10393_v36, %v3066_v10  ;;  %v3131_v42 = vand.u32 2147483647, %v10409_v9  ;;  %v7161_v55 = vadd.s32 4294967169, %v3135_v51 }
 0x2e5   : > { %v2995_v20 = vsub.s32 32, %v2994_v25  ;;  %v2996_v52 = vshll.u32 %v10397_v49, %v2994_v25  ;;  %v2999_v61 = vsub.s32 4294967266, %v2994_v25  ;;  %v3085_v5 = vadd.s32 1, %v10432_v34 }
 0x2e6   : > { %v7728_v23 = vpop.eup %7727  ;;  %vm2918_vm14 = vcmp.eq.s32.totalorder %v2913_v38, 2  ;;  %v3012_v56 = vsel %vm10419_vm8, 0, %v3010_v22  ;;  %vm3084_vm1 = vc.u32 %v10437_v15, %v10431_v44  ;;  %v3141_v47 = vadd.s32 1, %v7161_v55 }
 0x2e7   : > { %v7730_v33 = vpop.eup %7729  ;;  %v2919_v46 = vxor.u32 2147483648, %v7728_v23  ;;  %v2997_v18 = vshrl.u32 %v2979_v57, %v2995_v20  ;;  %v3000_v36 = vadd.s32 127, %v2999_v61  ;;  %v3086_v50 = vsel %vm3084_vm1, %v3085_v5, %v10432_v34 }
 0x2e8   : > { %v2916_v45 = vxor.u32 2147483648, %v7730_v33  ;;  %v3087_v7 = vadd.s32 %v3086_v50, %v3082_v0  ;;  %v3138_v4 = vand.u32 8388607, %v3131_v42  ;;  %vm3142_vm0 = vcmp.gt.s32.totalorder %v3141_v47, 0 }
 0x2e9   : > { %v2920_v49 = vsel %vm2918_vm14, %v2919_v46, %v7730_v33  ;;  %v2998_v14 = vor.u32 %v2997_v18, %v2996_v52  ;;  %v3001_v41 = vshll.u32 %v3000_v36, 23  ;;  %v3143_v54 = vsel %vm3142_vm0, %v3141_v47, 0 }
 0x2ea   : > { %v2917_v40 = vsel %vm2915_vm12, %v7728_v23, %v2916_v45  ;;  %v3088_v27 = vadd.s32 536870912, %v3087_v7  ;;  %v3145_v37 = vand.u32 31, %v3143_v54  ;;  %v3016_v11 = vadd.s32 3, %v3012_v56 }
 0x2eb   : > { %v2921_v31 = vsel %vm2914_vm13, %v2917_v40, %v2920_v49  ;;  %v3002_v3 = vor.u32 4788187, %v3001_v41  ;;  %v3005_v8 = vcvt.s32.f32 %v2998_v14  ;;  %v3139_v2 = vor.u32 8388608, %v3138_v4 }
 0x2ec   : > { %v2922_v35 = vsel %vm2911_vm11, nan, %v2921_v31  ;;  %v10458_v58 = vshrl.u32 %v3088_v27, 30  ;;  %v3146_v62 = vsub.s32 32, %v3145_v37  ;;  %v3144_v60 = vshrl.u32 %v3143_v54, 5 }
 0x2ed   : > { %v3003_v19 = vand.u32 2147483647, %v3002_v3  ;;  %v3148_v43 = vshll.u32 %v7982_v24, %v3145_v37  ;;  %v3151_v10 = vshll.u32 %v7983_v26, %v3145_v37  ;;  %6900 = vst [vmem:[%s8389_s16 + $0xc8] sm:$0xff] %v2922_v35  ;;  %v3154_v17 = vshll.u32 %v7984_v28, %v3145_v37 }
 0x2ee   : > { %v3090_v38 = vshll.u32 %v10458_v58, 30  ;;  %v3149_v29 = vshrl.u32 %v7983_v26, %v3146_v62  ;;  %v3157_v59 = vshll.u32 %v7985_v30, %v3145_v37  ;;  %v3152_v63 = vshrl.u32 %v7984_v28, %v3146_v62 }
 0x2ef   : > { %v3006_v12 = vmul.f32 %v3005_v8, %v3003_v19  ;;  %v3155_v21 = vshrl.u32 %v7985_v30, %v3146_v62  ;;  %v3158_v34 = vshrl.u32 %v7986_v32, %v3146_v62  ;;  %v10473_v1 = vand.u32 3, %v3016_v11 }
 0x2f0   : > { %v10475_v51 = vsub.s32 %v3087_v7, %v3090_v38  ;;  %v3160_v57 = vshll.u32 %v7986_v32, %v3145_v37  ;;  %v3238_v22 = vand.u32 2139095040, %v10461_v48  ;;  %v3083_v0 = vadd.s32 %v10431_v44, %v10437_v15 }
 0x2f1   : > { %v3007_v25 = vxor.u32 2147483648, %v3006_v12  ;;  %v3147_v55 = vshrl.u32 %v7982_v24, %v3146_v62  ;;  %v10482_v20 = vshll.u32 %v3139_v2, 8  ;;  %v3150_v61 = vor.u32 %v3149_v29, %v3148_v43 }
 0x2f2   : > { %v3093_v52 = vsub.s32 0, %v10475_v51  ;;  %v3153_v5 = vor.u32 %v3152_v63, %v3151_v10  ;;  %v3161_v23 = vshrl.u32 %v7987_v39, %v3146_v62  ;;  %v3156_v47 = vor.u32 %v3155_v21, %v3154_v17 }
 0x2f3   : > { %v3008_v56 = vsel %vm2925_vm10, %v3007_v25, %v3006_v12  ;;  %v3159_v33 = vor.u32 %v3158_v34, %v3157_v59  ;;  %vm3163_vm2 = vcmp.lt.s32.totalorder %v3144_v60, 1  ;;  %v3239_v18 = vshrl.u32 %v3238_v22, 23 }
 0x2f4   : > { %v3011_v44 = vsel %vm10419_vm8, %v10239_v16, %v3008_v56  ;;  %v7158_v15 = vmin.u32 %v3093_v52, %v10475_v51  ;;  %v3162_v46 = vor.u32 %v3161_v23, %v3160_v57  ;;  %vm3029_vm3 = vcmp.lt.s32.totalorder %v10292_v6, 0 }
 0x2f5   : > { %7731 = vcosq.f32 %v3011_v44  ;;  %vm3164_vm5 = vcmp.lt.s32.totalorder %v3144_v60, 2  ;;  %vm3165_vm4 = vcmp.lt.s32.totalorder %v3144_v60, 3  ;;  %vm3166_vm6 = vcmp.lt.s32.totalorder %v3144_v60, 4 }
 0x2f6   : > { %7733 = vsinq.f32 %v3011_v44  ;;  %v3095_v36 = vclz %v7158_v15  ;;  %v3167_v50 = vsel %vm3163_vm2, %v3147_v55, %v3150_v61  ;;  %v3171_v45 = vsel %vm3163_vm2, %v3150_v61, %v3153_v5 }
 0x2f7   : > { %v3113_v7 = vsub.s32 4, %v10458_v58  ;;  %v3168_v53 = vsel %vm3166_vm6, %v3156_v47, 2102212464  ;;  %v3172_v4 = vsel %vm3166_vm6, %v3159_v33, 920167782  ;;  %v3175_v49 = vsel %vm3163_vm2, %v3153_v5, %v3156_v47 }
 0x2f8   : > { %v7159_v14 = vadd.s32 4294967294, %v3095_v36  ;;  %v3169_v41 = vsel %vm3165_vm4, %v3153_v5, %v3168_v53  ;;  %v3173_v54 = vsel %vm3165_vm4, %v3156_v47, %v3172_v4  ;;  %v3176_v40 = vsel %vm3166_vm6, %v3162_v46, 1326507024 }
 0x2f9   : > { %v3170_v27 = vsel %vm3164_vm5, %v3167_v50, %v3169_v41  ;;  %v3174_v37 = vsel %vm3164_vm5, %v3171_v45, %v3173_v54  ;;  %v3177_v31 = vsel %vm3165_vm4, %v3159_v33, %v3176_v40  ;;  %v7165_v3 = vadd.s32 4294967169, %v3239_v18 }
 0x2fa   : > { %vm7160_vm7 = vcmp.lt.s32.totalorder %v7159_v14, 0  ;;  %v3178_v8 = vsel %vm3164_vm5, %v3175_v49, %v3177_v31  ;;  %v10504_v11 = vmul.u32.u64.low %v10482_v20, %v3174_v37  ;;  %v10505_v35 = vmul.u32.u64.high %v10482_v20, %v3174_v37, %v10504_v11 }
 0x2fb   : > { %v3098_v2 = vsel %vm7160_vm7, 0, %v7159_v14  ;;  %v10509_v62 = vmul.u32.u64.low %v10482_v20, %v3178_v8  ;;  %v10510_v19 = vmul.u32.u64.high %v10482_v20, %v3178_v8, %v10509_v62  ;;  %v3235_v43 = vand.u32 2147483647, %v10461_v48 }
 0x2fc   : > { %vm10515_vm9 = vcmp.le.f32.partialorder %v3027_v13, 0.7853982  ;;  %v3099_v60 = vsub.s32 32, %v3098_v2  ;;  %v3100_v38 = vshll.u32 %v10475_v51, %v3098_v2  ;;  %v3103_v29 = vsub.s32 4294967266, %v3098_v2 }
 0x2fd   : > { %vm3018_vm8 = vcmp.lt.s32.totalorder %v10473_v1, 2  ;;  %vm3019_vm10 = vcmp.eq.s32.totalorder %v10473_v1, 0  ;;  %v3186_v17 = vmul.u32 %v10482_v20, %v3170_v27  ;;  %v3245_v59 = vadd.s32 1, %v7165_v3 }
 0x2fe   : > { %v3101_v12 = vshrl.u32 %v3083_v0, %v3099_v60  ;;  %v3104_v63 = vadd.s32 127, %v3103_v29  ;;  %v3114_v13 = vsel %vm3029_vm3, %v3113_v7, %v10458_v58  ;;  %v3189_v21 = vadd.s32 1, %v10505_v35 }
 0x2ff   : > { %v7732_v34 = vpop.eup %7731  ;;  %vm3022_vm11 = vcmp.eq.s32.totalorder %v10473_v1, 2  ;;  %vm3188_vm13 = vc.u32 %v10510_v19, %v10504_v11  ;;  %v3242_v51 = vand.u32 8388607, %v3235_v43  ;;  %vm3246_vm12 = vcmp.gt.s32.totalorder %v3245_v59, 0 }
 0x300   : > { %v7734_v57 = vpop.eup %7733  ;;  %v3023_v22 = vxor.u32 2147483648, %v7732_v34  ;;  %v3102_v25 = vor.u32 %v3101_v12, %v3100_v38  ;;  %v3105_v0 = vshll.u32 %v3104_v63, 23  ;;  %v3190_v55 = vsel %vm3188_vm13, %v3189_v21, %v10505_v35  ;;  %v10567_v63 = vld [vmem:[%s8105_s3 + $0xf0] sm:$0xff] }
 0x301   : > { %v3020_v20 = vxor.u32 2147483648, %v7734_v57  ;;  %v3116_v58 = vsel %vm10515_vm9, 0, %v3114_v13  ;;  %v3191_v52 = vadd.s32 %v3190_v55, %v3186_v17  ;;  %v3247_v61 = vsel %vm3246_vm12, %v3245_v59, 0 }
 0x302   : > { %vm3015_vm15 = vweird.f32 %v10239_v16  ;;  %v3024_v5 = vsel %vm3022_vm11, %v3023_v22, %v7734_v57  ;;  %v3106_v23 = vor.u32 4788187, %v3105_v0  ;;  %v3109_v56 = vcvt.s32.f32 %v3102_v25 }
 0x303   : > { %v3021_v47 = vsel %vm3019_vm10, %v7732_v34, %v3020_v20  ;;  %v3192_v33 = vadd.s32 536870912, %v3191_v52  ;;  %v3249_v44 = vand.u32 31, %v3247_v61  ;;  %v3120_v18 = vadd.s32 3, %v3116_v58 }
 0x304   : > { %v3025_v15 = vsel %vm3018_vm8, %v3021_v47, %v3024_v5  ;;  %v3107_v46 = vand.u32 2147483647, %v3106_v23  ;;  %v3243_v36 = vor.u32 8388608, %v3242_v51  ;;  %v3248_v7 = vshrl.u32 %v3247_v61, 5 }
 0x305   : > { %v3026_v50 = vsel %vm3015_vm15, nan, %v3025_v15  ;;  %v10540_v45 = vshrl.u32 %v3192_v33, 30  ;;  %v3250_v16 = vsub.s32 32, %v3249_v44  ;;  %v3252_v4 = vshll.u32 %v7982_v24, %v3249_v44 }
 0x306   : > { %v3110_v53 = vmul.f32 %v3109_v56, %v3107_v46  ;;  %v3255_v49 = vshll.u32 %v7983_v26, %v3249_v44  ;;  %6901 = vst [vmem:[%s8389_s16 + $0xd0] sm:$0xff] %v3026_v50  ;;  %v3258_v1 = vshll.u32 %v7984_v28, %v3249_v44  ;;  %v3261_v54 = vshll.u32 %v7985_v30, %v3249_v44 }
 0x307   : > { %v3194_v14 = vshll.u32 %v10540_v45, 30  ;;  %v3253_v41 = vshrl.u32 %v7983_v26, %v3250_v16  ;;  %v3256_v27 = vshrl.u32 %v7984_v28, %v3250_v16  ;;  %v3259_v37 = vshrl.u32 %v7985_v30, %v3250_v16 }
 0x308   : > { %v3111_v40 = vxor.u32 2147483648, %v3110_v53  ;;  %v3262_v31 = vshrl.u32 %v7986_v32, %v3250_v16  ;;  %v10552_v3 = vand.u32 3, %v3120_v18  ;;  %vm3267_vm14 = vcmp.lt.s32.totalorder %v3248_v7, 1 }
 0x309   : > { %v10554_v8 = vsub.s32 %v3191_v52, %v3194_v14  ;;  %v10556_v35 = vshll.u32 %v3243_v36, 8  ;;  %v3254_v62 = vor.u32 %v3253_v41, %v3252_v4  ;;  %v3257_v60 = vor.u32 %v3256_v27, %v3255_v49 }
 0x30a   : > { %v3112_v2 = vsel %vm3029_vm3, %v3111_v40, %v3110_v53  ;;  %v3264_v38 = vshll.u32 %v7986_v32, %v3249_v44  ;;  %v3251_v59 = vshrl.u32 %v7982_v24, %v3250_v16  ;;  %v3263_v12 = vor.u32 %v3262_v31, %v3261_v54 }
 0x30b   : > { %v3115_v29 = vsel %vm10515_vm9, %v10292_v6, %v3112_v2  ;;  %v3197_v17 = vsub.s32 0, %v10554_v8  ;;  %v3260_v13 = vor.u32 %v3259_v37, %v3258_v1  ;;  %v3265_v21 = vshrl.u32 %v7987_v39, %v3250_v16 }
 0x30c   : > { %7735 = vcosq.f32 %v3115_v29  ;;  %vm3270_vm1 = vcmp.lt.s32.totalorder %v3248_v7, 4  ;;  %vm3268_vm0 = vcmp.lt.s32.totalorder %v3248_v7, 2  ;;  %vm3269_vm2 = vcmp.lt.s32.totalorder %v3248_v7, 3 }
 0x30d   : > { %7737 = vsinq.f32 %v3115_v29  ;;  %v7162_v34 = vmin.u32 %v3197_v17, %v10554_v8  ;;  %v3266_v51 = vor.u32 %v3265_v21, %v3264_v38  ;;  %v3272_v10 = vsel %vm3270_vm1, %v3260_v13, 2102212464 }
 0x30e   : > { %v3275_v57 = vsel %vm3267_vm14, %v3254_v62, %v3257_v60  ;;  %v3276_v22 = vsel %vm3270_vm1, %v3263_v12, 920167782  ;;  %v3187_v25 = vadd.s32 %v10504_v11, %v10510_v19  ;;  %v3271_v55 = vsel %vm3267_vm14, %v3251_v59, %v3254_v62 }
 0x30f   : > { %v3199_v0 = vclz %v7162_v34  ;;  %v3342_v20 = vand.u32 2139095040, %v10567_v63  ;;  %v3273_v58 = vsel %vm3269_vm2, %v3257_v60, %v3272_v10  ;;  %v3277_v52 = vsel %vm3269_vm2, %v3260_v13, %v3276_v22 }
 0x310   : > { %v3279_v61 = vsel %vm3267_vm14, %v3257_v60, %v3260_v13  ;;  %v3280_v5 = vsel %vm3270_vm1, %v3266_v51, 1326507024  ;;  %vm3119_vm3 = vweird.f32 %v10292_v6  ;;  %v3217_v56 = vsub.s32 4, %v10540_v45 }
 0x311   : > { %v7163_v23 = vadd.s32 4294967294, %v3199_v0  ;;  %v3278_v11 = vsel %vm3268_vm0, %v3275_v57, %v3277_v52  ;;  %v3281_v19 = vsel %vm3269_vm2, %v3263_v12, %v3280_v5  ;;  %v3274_v47 = vsel %vm3268_vm0, %v3271_v55, %v3273_v58 }
 0x312   : > { %v3282_v33 = vsel %vm3268_vm0, %v3279_v61, %v3281_v19  ;;  %v10589_v44 = vmul.u32.u64.low %v10556_v35, %v3278_v11  ;;  %v10590_v15 = vmul.u32.u64.high %v10556_v35, %v3278_v11, %v10589_v44  ;;  %v3343_v36 = vshrl.u32 %v3342_v20, 23  ;;  %v10634_v61 = vld [vmem:[%s8105_s3 + $0xf8] sm:$0xff] }
 0x313   : > { %vm7164_vm5 = vcmp.lt.s32.totalorder %v7163_v23, 0  ;;  %v10594_v46 = vmul.u32.u64.low %v10556_v35, %v3282_v33  ;;  %v10595_v18 = vmul.u32.u64.high %v10556_v35, %v3282_v33, %v10594_v46  ;;  %vm3122_vm4 = vcmp.lt.s32.totalorder %v10552_v3, 2 }
 0x314   : > { %vm10600_vm6 = vcmp.le.f32.partialorder %v3131_v42, 0.7853982  ;;  %vm3133_vm7 = vcmp.lt.s32.totalorder %v10409_v9, 0  ;;  %v3202_v7 = vsel %vm7164_vm5, 0, %v7163_v23  ;;  %v7169_v49 = vadd.s32 4294967169, %v3343_v36 }
 0x315   : > { %v3203_v16 = vsub.s32 32, %v3202_v7  ;;  %v3204_v53 = vshll.u32 %v10554_v8, %v3202_v7  ;;  %v3207_v4 = vsub.s32 4294967266, %v3202_v7  ;;  %vm3123_vm9 = vcmp.eq.s32.totalorder %v10552_v3, 0 }
 0x316   : > { %v7736_v14 = vpop.eup %7735  ;;  %vm3126_vm8 = vcmp.eq.s32.totalorder %v10552_v3, 2  ;;  %v3290_v41 = vmul.u32 %v10556_v35, %v3274_v47  ;;  %v3293_v42 = vadd.s32 1, %v10590_v15  ;;  %v3218_v37 = vsel %vm3133_vm7, %v3217_v56, %v10540_v45 }
 0x317   : > { %v7738_v1 = vpop.eup %7737  ;;  %v3127_v54 = vxor.u32 2147483648, %v7736_v14  ;;  %v3205_v40 = vshrl.u32 %v3187_v25, %v3203_v16  ;;  %v3208_v27 = vadd.s32 127, %v3207_v4  ;;  %vm3292_vm10 = vc.u32 %v10595_v18, %v10589_v44 }
 0x318   : > { %v3124_v31 = vxor.u32 2147483648, %v7738_v1  ;;  %v3339_v8 = vand.u32 2147483647, %v10567_v63  ;;  %v3349_v2 = vadd.s32 1, %v7169_v49  ;;  %v3294_v38 = vsel %vm3292_vm10, %v3293_v42, %v10590_v15 }
 0x319   : > { %v3128_v62 = vsel %vm3126_vm8, %v3127_v54, %v7738_v1  ;;  %v3206_v60 = vor.u32 %v3205_v40, %v3204_v53  ;;  %v3209_v35 = vshll.u32 %v3208_v27, 23  ;;  %v3220_v17 = vsel %vm10600_vm6, 0, %v3218_v37 }
 0x31a   : > { %v3125_v29 = vsel %vm3123_vm9, %v7736_v14, %v3124_v31  ;;  %v3295_v45 = vadd.s32 %v3294_v38, %v3290_v41  ;;  %vm3350_vm11 = vcmp.gt.s32.totalorder %v3349_v2, 0  ;;  %v3224_v22 = vadd.s32 3, %v3220_v17 }
 0x31b   : > { %v3129_v59 = vsel %vm3122_vm4, %v3125_v29, %v3128_v62  ;;  %v3210_v12 = vor.u32 4788187, %v3209_v35  ;;  %v3213_v13 = vcvt.s32.f32 %v3206_v60  ;;  %v3351_v21 = vsel %vm3350_vm11, %v3349_v2, 0 }
 0x31c   : > { %v3130_v34 = vsel %vm3119_vm3, nan, %v3129_v59  ;;  %v3296_v51 = vadd.s32 536870912, %v3295_v45  ;;  %v3353_v10 = vand.u32 31, %v3351_v21  ;;  %v3346_v0 = vand.u32 8388607, %v3339_v8 }
 0x31d   : > { %v3211_v57 = vand.u32 2147483647, %v3210_v12  ;;  %6902 = vst [vmem:[%s8389_s16 + $0xd8] sm:$0xff] %v3130_v34  ;;  %v10628_v55 = vshrl.u32 %v3351_v21, 5  ;;  %v10642_v46 = vand.u32 3, %v3224_v22  ;;  %vm3237_vm13 = vcmp.lt.s32.totalorder %v10461_v48, 0 }
 0x31e   : > { %v3297_v25 = vshrl.u32 %v3296_v51, 30  ;;  %v3354_v3 = vsub.s32 32, %v3353_v10  ;;  %v3356_v58 = vshll.u32 %v7982_v24, %v3353_v10  ;;  %v3359_v52 = vshll.u32 %v7983_v26, %v3353_v10 }
 0x31f   : > { %v3214_v20 = vmul.f32 %v3213_v13, %v3211_v57  ;;  %v3362_v6 = vshll.u32 %v7984_v28, %v3353_v10  ;;  %v3365_v56 = vshll.u32 %v7985_v30, %v3353_v10  ;;  %v3368_v11 = vshll.u32 %v7986_v32, %v3353_v10 }
 0x320   : > { %v3298_v5 = vshll.u32 %v3297_v25, 30  ;;  %v3357_v23 = vshrl.u32 %v7983_v26, %v3354_v3  ;;  %v3360_v47 = vshrl.u32 %v7984_v28, %v3354_v3  ;;  %v3363_v33 = vshrl.u32 %v7985_v30, %v3354_v3 }
 0x321   : > { %v3215_v19 = vxor.u32 2147483648, %v3214_v20  ;;  %v3366_v15 = vshrl.u32 %v7986_v32, %v3354_v3  ;;  %v3347_v7 = vor.u32 8388608, %v3346_v0  ;;  %v3369_v16 = vshrl.u32 %v7987_v39, %v3354_v3 }
 0x322   : > { %v10644_v36 = vsub.s32 %v3295_v45, %v3298_v5  ;;  %v3355_v4 = vshrl.u32 %v7982_v24, %v3354_v3  ;;  %v3358_v49 = vor.u32 %v3357_v23, %v3356_v58  ;;  %v3446_v14 = vand.u32 2139095040, %v10634_v61 }
 0x323   : > { %v3216_v53 = vsel %vm3133_vm7, %v3215_v19, %v3214_v20  ;;  %v3361_v1 = vor.u32 %v3360_v47, %v3359_v52  ;;  %v3364_v54 = vor.u32 %v3363_v33, %v3362_v6  ;;  %v3367_v40 = vor.u32 %v3366_v15, %v3365_v56 }
 0x324   : > { %v3219_v41 = vsel %vm10600_vm6, %v10409_v9, %v3216_v53  ;;  %v3301_v42 = vsub.s32 0, %v10644_v36  ;;  %v3370_v27 = vor.u32 %v3369_v16, %v3368_v11  ;;  %vm3371_vm12 = vcmp.lt.s32.totalorder %v10628_v55, 1 }
 0x325   : > { %7739 = vcosq.f32 %v3219_v41  ;;  %vm10659_vm15 = vcmp.le.f32.partialorder %v3235_v43, 0.7853982  ;;  %v3387_v50 = vshll.u32 %v3347_v7, 8  ;;  %v3321_v2 = vsub.s32 4, %v3297_v25 }
 0x326   : > { %7741 = vsinq.f32 %v3219_v41  ;;  %v7166_v31 = vmin.u32 %v3301_v42, %v10644_v36  ;;  %vm3373_vm14 = vcmp.lt.s32.totalorder %v10628_v55, 3  ;;  %vm3374_vm1 = vcmp.lt.s32.totalorder %v10628_v55, 4 }
 0x327   : > { %v3447_v62 = vshrl.u32 %v3446_v14, 23  ;;  %vm3372_vm0 = vcmp.lt.s32.totalorder %v10628_v55, 2  ;;  %v3379_v35 = vsel %vm3371_vm12, %v3358_v49, %v3361_v1  ;;  %v3383_v38 = vsel %vm3371_vm12, %v3361_v1, %v3364_v54 }
 0x328   : > { %v3303_v60 = vclz %v7166_v31  ;;  %vm3226_vm2 = vcmp.lt.s32.totalorder %v10642_v46, 2  ;;  %v3375_v43 = vsel %vm3371_vm12, %v3355_v4, %v3358_v49  ;;  %v3376_v29 = vsel %vm3374_vm1, %v3364_v54, 2102212464 }
 0x329   : > { %v3380_v17 = vsel %vm3374_vm1, %v3367_v40, 920167782  ;;  %v3384_v45 = vsel %vm3374_vm1, %v3370_v27, 1326507024  ;;  %vm3223_vm3 = vweird.f32 %v10409_v9  ;;  %v3377_v12 = vsel %vm3373_vm14, %v3361_v1, %v3376_v29 }
 0x32a   : > { %v7167_v59 = vadd.s32 4294967294, %v3303_v60  ;;  %v3381_v13 = vsel %vm3373_vm14, %v3364_v54, %v3380_v17  ;;  %v3385_v21 = vsel %vm3373_vm14, %v3367_v40, %v3384_v45  ;;  %v3291_v34 = vadd.s32 %v10589_v44, %v10595_v18 }
 0x32b   : > { %v3382_v51 = vsel %vm3372_vm0, %v3379_v35, %v3381_v13  ;;  %v3386_v10 = vsel %vm3372_vm0, %v3383_v38, %v3385_v21  ;;  %v7173_v57 = vadd.s32 4294967169, %v3447_v62  ;;  %v3322_v22 = vsel %vm3237_vm13, %v3321_v2, %v3297_v25 }
 0x32c   : > { %vm7168_vm5 = vcmp.lt.s32.totalorder %v7167_v59, 0  ;;  %v10683_v0 = vmul.u32.u64.low %v3387_v50, %v3386_v10  ;;  %v10684_v3 = vmul.u32.u64.high %v3387_v50, %v3386_v10, %v10683_v0  ;;  %v3378_v58 = vsel %vm3372_vm0, %v3375_v43, %v3377_v12 }
 0x32d   : > { %v3306_v20 = vsel %vm7168_vm5, 0, %v7167_v59  ;;  %v10688_v52 = vmul.u32.u64.low %v3387_v50, %v3382_v51  ;;  %v10689_v44 = vmul.u32.u64.high %v3387_v50, %v3382_v51, %v10688_v52  ;;  %v3453_v23 = vadd.s32 1, %v7173_v57 }
 0x32e   : > { %v3307_v18 = vsub.s32 32, %v3306_v20  ;;  %v3308_v6 = vshll.u32 %v10644_v36, %v3306_v20  ;;  %v3311_v5 = vsub.s32 4294967266, %v3306_v20  ;;  %vm3227_vm4 = vcmp.eq.s32.totalorder %v10642_v46, 0 }
 0x32f   : > { %v7740_v56 = vpop.eup %7739  ;;  %vm3230_vm6 = vcmp.eq.s32.totalorder %v10642_v46, 2  ;;  %v3324_v25 = vsel %vm10659_vm15, 0, %v3322_v22  ;;  %v3443_v55 = vand.u32 2147483647, %v10634_v61  ;;  %v3394_v15 = vmul.u32 %v3387_v50, %v3378_v58 }
 0x330   : > { %v7742_v11 = vpop.eup %7741  ;;  %v3231_v19 = vxor.u32 2147483648, %v7740_v56  ;;  %v3309_v47 = vshrl.u32 %v3291_v34, %v3307_v18  ;;  %v3312_v33 = vadd.s32 127, %v3311_v5  ;;  %vm3396_vm7 = vc.u32 %v10684_v3, %v10688_v52  ;;  %v10728_v5 = vld [vmem:[%s8105_s3 + $0x100] sm:$0xff] }
 0x331   : > { %v3228_v7 = vxor.u32 2147483648, %v7742_v11  ;;  %v3397_v36 = vadd.s32 1, %v10689_v44  ;;  %vm3454_vm9 = vcmp.gt.s32.totalorder %v3453_v23, 0  ;;  %v3450_v42 = vand.u32 8388607, %v3443_v55 }
 0x332   : > { %v3232_v16 = vsel %vm3230_vm6, %v3231_v19, %v7742_v11  ;;  %v3310_v53 = vor.u32 %v3309_v47, %v3308_v6  ;;  %v3313_v4 = vshll.u32 %v3312_v33, 23  ;;  %v3455_v49 = vsel %vm3454_vm9, %v3453_v23, 0 }
 0x333   : > { %v3229_v14 = vsel %vm3227_vm4, %v7740_v56, %v3228_v7  ;;  %v3398_v41 = vsel %vm3396_vm7, %v3397_v36, %v10689_v44  ;;  %v3457_v1 = vand.u32 31, %v3455_v49  ;;  %v3328_v2 = vadd.s32 3, %v3324_v25 }
 0x334   : > { %v3233_v54 = vsel %vm3226_vm2, %v3229_v14, %v3232_v16  ;;  %v3314_v40 = vor.u32 4788187, %v3313_v4  ;;  %v3317_v27 = vcvt.s32.f32 %v3310_v53  ;;  %v3399_v31 = vadd.s32 %v3398_v41, %v3394_v15 }
 0x335   : > { %v3234_v50 = vsel %vm3223_vm3, nan, %v3233_v54  ;;  %v3458_v62 = vsub.s32 32, %v3457_v1  ;;  %v3460_v60 = vshll.u32 %v7982_v24, %v3457_v1  ;;  %v3463_v43 = vshll.u32 %v7983_v26, %v3457_v1 }
 0x336   : > { %v3315_v35 = vand.u32 2147483647, %v3314_v40  ;;  %v3400_v38 = vadd.s32 536870912, %v3399_v31  ;;  %v3466_v29 = vshll.u32 %v7984_v28, %v3457_v1  ;;  %6903 = vst [vmem:[%s8389_s16 + $0xe0] sm:$0xff] %v3234_v50  ;;  %v3469_v9 = vshll.u32 %v7985_v30, %v3457_v1 }
 0x337   : > { %v3461_v46 = vshrl.u32 %v7983_v26, %v3458_v62  ;;  %v3464_v17 = vshrl.u32 %v7984_v28, %v3458_v62  ;;  %v3467_v45 = vshrl.u32 %v7985_v30, %v3458_v62  ;;  %v3456_v13 = vshrl.u32 %v3455_v49, 5 }
 0x338   : > { %v3318_v59 = vmul.f32 %v3317_v27, %v3315_v35  ;;  %v10718_v12 = vshrl.u32 %v3400_v38, 30  ;;  %v3470_v21 = vshrl.u32 %v7986_v32, %v3458_v62  ;;  %v3451_v34 = vor.u32 8388608, %v3450_v42 }
 0x339   : > { %v3472_v51 = vshll.u32 %v7986_v32, %v3457_v1  ;;  %v3473_v10 = vshrl.u32 %v7987_v39, %v3458_v62  ;;  %v10723_v22 = vand.u32 3, %v3328_v2  ;;  %v3459_v20 = vshrl.u32 %v7982_v24, %v3458_v62 }
 0x33a   : > { %v3319_v57 = vxor.u32 2147483648, %v3318_v59  ;;  %v3402_v0 = vshll.u32 %v10718_v12, 30  ;;  %v3462_v58 = vor.u32 %v3461_v46, %v3460_v60  ;;  %v3465_v44 = vor.u32 %v3464_v17, %v3463_v43 }
 0x33b   : > { %v3468_v18 = vor.u32 %v3467_v45, %v3466_v29  ;;  %v3471_v6 = vor.u32 %v3470_v21, %v3469_v9  ;;  %vm3475_vm8 = vcmp.lt.s32.totalorder %v3456_v13, 1  ;;  %vm3478_vm10 = vcmp.lt.s32.totalorder %v3456_v13, 4 }
 0x33c   : > { %v3320_v23 = vsel %vm3237_vm13, %v3319_v57, %v3318_v59  ;;  %v10732_v56 = vsub.s32 %v3399_v31, %v3402_v0  ;;  %v3474_v11 = vor.u32 %v3473_v10, %v3472_v51  ;;  %vm3477_vm11 = vcmp.lt.s32.totalorder %v3456_v13, 3 }
 0x33d   : > { %v3323_v25 = vsel %vm10659_vm15, %v10461_v48, %v3320_v23  ;;  %v3491_v19 = vshll.u32 %v3451_v34, 8  ;;  %vm3476_vm12 = vcmp.lt.s32.totalorder %v3456_v13, 2  ;;  %v3480_v33 = vsel %vm3478_vm10, %v3468_v18, 2102212464 }
 0x33e   : > { %7743 = vcosq.f32 %v3323_v25  ;;  %v3405_v47 = vsub.s32 0, %v10732_v56  ;;  %v3483_v15 = vsel %vm3475_vm8, %v3462_v58, %v3465_v44  ;;  %v3484_v7 = vsel %vm3478_vm10, %v3471_v6, 920167782 }
 0x33f   : > { %7745 = vsinq.f32 %v3323_v25  ;;  %v3550_v36 = vand.u32 2139095040, %v10728_v5  ;;  %v3479_v37 = vsel %vm3475_vm8, %v3459_v20, %v3462_v58  ;;  %v3485_v53 = vsel %vm3477_vm11, %v3468_v18, %v3484_v7 }
 0x340   : > { %v7170_v16 = vmin.u32 %v3405_v47, %v10732_v56  ;;  %v3481_v4 = vsel %vm3477_vm11, %v3465_v44, %v3480_v33  ;;  %v3486_v49 = vsel %vm3476_vm12, %v3483_v15, %v3485_v53  ;;  %v3487_v14 = vsel %vm3475_vm8, %v3465_v44, %v3468_v18 }
 0x341   : > { %v3488_v41 = vsel %vm3478_vm10, %v3474_v11, 1326507024  ;;  %vm3330_vm13 = vcmp.lt.s32.totalorder %v10723_v22, 2  ;;  %vm3341_vm15 = vcmp.lt.s32.totalorder %v10567_v63, 0  ;;  %v3551_v27 = vshrl.u32 %v3550_v36, 23 }
 0x342   : > { %v3407_v42 = vclz %v7170_v16  ;;  %v3489_v1 = vsel %vm3477_vm11, %v3471_v6, %v3488_v41  ;;  %v10752_v54 = vmul.u32.u64.low %v3491_v19, %v3486_v49  ;;  %v10753_v40 = vmul.u32.u64.high %v3491_v19, %v3486_v49, %v10752_v54  ;;  %v10781_v6 = vld [vmem:[%s8105_s3 + $0x108] sm:$0xff] }
 0x343   : > { %v3425_v50 = vsub.s32 4, %v10718_v12  ;;  %v3482_v2 = vsel %vm3476_vm12, %v3479_v37, %v3481_v4  ;;  %v3490_v62 = vsel %vm3476_vm12, %v3487_v14, %v3489_v1  ;;  %v3547_v38 = vand.u32 2147483647, %v10728_v5 }
 0x344   : > { %v7171_v31 = vadd.s32 4294967294, %v3407_v42  ;;  %v10759_v60 = vmul.u32.u64.low %v3491_v19, %v3490_v62  ;;  %v10760_v35 = vmul.u32.u64.high %v3491_v19, %v3490_v62, %v10759_v60  ;;  %v7177_v43 = vadd.s32 4294967169, %v3551_v27 }
 0x345   : > { %vm3331_vm14 = vcmp.eq.s32.totalorder %v10723_v22, 0  ;;  %vm3334_vm1 = vcmp.eq.s32.totalorder %v10723_v22, 2  ;;  %v3395_v29 = vadd.s32 %v10688_v52, %v10684_v3  ;;  %v3498_v17 = vmul.u32 %v3491_v19, %v3482_v2 }
 0x346   : > { %vm7172_vm0 = vcmp.lt.s32.totalorder %v7171_v31, 0  ;;  %v3501_v45 = vadd.s32 1, %v10753_v40  ;;  %v3557_v9 = vadd.s32 1, %v7177_v43  ;;  %v3426_v51 = vsel %vm3341_vm15, %v3425_v50, %v10718_v12 }
 0x347   : > { %v3410_v46 = vsel %vm7172_vm0, 0, %v7171_v31  ;;  %vm3500_vm2 = vc.u32 %v10760_v35, %v10752_v54  ;;  %v3554_v3 = vand.u32 8388607, %v3547_v38  ;;  %vm3327_vm5 = vweird.f32 %v10461_v48 }
 0x348   : > { %v7744_v59 = vpop.eup %7743  ;;  %v3411_v13 = vsub.s32 32, %v3410_v46  ;;  %v3412_v21 = vshll.u32 %v10732_v56, %v3410_v46  ;;  %v3415_v34 = vsub.s32 4294967266, %v3410_v46  ;;  %vm3558_vm3 = vcmp.gt.s32.totalorder %v3557_v9, 0 }
 0x349   : > { %v7746_v10 = vpop.eup %7745  ;;  %v3335_v57 = vxor.u32 2147483648, %v7744_v59  ;;  %v3502_v58 = vsel %vm3500_vm2, %v3501_v45, %v10753_v40  ;;  %v3559_v18 = vsel %vm3558_vm3, %v3557_v9, 0  ;;  %vm10787_vm4 = vcmp.le.f32.partialorder %v3339_v8, 0.7853982 }
 0x34a   : > { %v3332_v52 = vxor.u32 2147483648, %v7746_v10  ;;  %v3413_v0 = vshrl.u32 %v3395_v29, %v3411_v13  ;;  %v3416_v20 = vadd.s32 127, %v3415_v34  ;;  %v3503_v12 = vadd.s32 %v3502_v58, %v3498_v17 }
 0x34b   : > { %v3336_v44 = vsel %vm3334_vm1, %v3335_v57, %v7746_v10  ;;  %v3428_v19 = vsel %vm10787_vm4, 0, %v3426_v51  ;;  %v3561_v33 = vand.u32 31, %v3559_v18  ;;  %v3555_v16 = vor.u32 8388608, %v3554_v3 }
 0x34c   : > { %v3333_v23 = vsel %vm3331_vm14, %v7744_v59, %v3332_v52  ;;  %v3414_v25 = vor.u32 %v3413_v0, %v3412_v21  ;;  %v3417_v11 = vshll.u32 %v3416_v20, 23  ;;  %v3504_v47 = vadd.s32 536870912, %v3503_v12 }
 0x34d   : > { %v3337_v48 = vsel %vm3330_vm13, %v3333_v23, %v3336_v44  ;;  %v3560_v8 = vshrl.u32 %v3559_v18, 5  ;;  %v3562_v53 = vsub.s32 32, %v3561_v33  ;;  %v3654_v4 = vand.u32 2139095040, %v10781_v6 }
 0x34e   : > { %v3338_v15 = vsel %vm3327_vm5, nan, %v3337_v48  ;;  %v3418_v7 = vor.u32 4788187, %v3417_v11  ;;  %v3421_v36 = vcvt.s32.f32 %v3414_v25  ;;  %v10795_v37 = vshrl.u32 %v3504_v47, 30 }
 0x34f   : > { %6904 = vst [vmem:[%s8389_s16 + $0xe8] sm:$0xff] %v3338_v15  ;;  %v3564_v22 = vshll.u32 %v7982_v24, %v3561_v33  ;;  %v3567_v14 = vshll.u32 %v7983_v26, %v3561_v33  ;;  %v3570_v41 = vshll.u32 %v7984_v28, %v3561_v33  ;;  %v3565_v1 = vshrl.u32 %v7983_v26, %v3562_v53 }
 0x350   : > { %v3419_v49 = vand.u32 2147483647, %v3418_v7  ;;  %v3506_v42 = vshll.u32 %v10795_v37, 30  ;;  %v3573_v40 = vshll.u32 %v7985_v30, %v3561_v33  ;;  %v3576_v27 = vshll.u32 %v7986_v32, %v3561_v33 }
 0x351   : > { %v3568_v50 = vshrl.u32 %v7984_v28, %v3562_v53  ;;  %v3571_v2 = vshrl.u32 %v7985_v30, %v3562_v53  ;;  %v3574_v62 = vshrl.u32 %v7986_v32, %v3562_v53  ;;  %v3432_v60 = vadd.s32 3, %v3428_v19 }
 0x352   : > { %v3422_v31 = vmul.f32 %v3421_v36, %v3419_v49  ;;  %v10809_v43 = vsub.s32 %v3503_v12, %v3506_v42  ;;  %v3577_v29 = vshrl.u32 %v7987_v39, %v3562_v53  ;;  %v10812_v46 = vshll.u32 %v3555_v16, 8 }
 0x353   : > { %v3566_v45 = vor.u32 %v3565_v1, %v3564_v22  ;;  %v3569_v9 = vor.u32 %v3568_v50, %v3567_v14  ;;  %v3655_v59 = vshrl.u32 %v3654_v4, 23  ;;  %v3563_v21 = vshrl.u32 %v7982_v24, %v3562_v53 }
 0x354   : > { %v3423_v17 = vxor.u32 2147483648, %v3422_v31  ;;  %v3509_v13 = vsub.s32 0, %v10809_v43  ;;  %v3575_v34 = vor.u32 %v3574_v62, %v3573_v40  ;;  %vm3579_vm6 = vcmp.lt.s32.totalorder %v3560_v8, 1 }
 0x355   : > { %v3572_v10 = vor.u32 %v3571_v2, %v3570_v41  ;;  %v3578_v57 = vor.u32 %v3577_v29, %v3576_v27  ;;  %vm3582_vm7 = vcmp.lt.s32.totalorder %v3560_v8, 4  ;;  %vm3580_vm9 = vcmp.lt.s32.totalorder %v3560_v8, 2 }
 0x356   : > { %v3424_v51 = vsel %vm3341_vm15, %v3423_v17, %v3422_v31  ;;  %v7174_v52 = vmin.u32 %v3509_v13, %v10809_v43  ;;  %vm3581_vm8 = vcmp.lt.s32.totalorder %v3560_v8, 3  ;;  %vm3445_vm10 = vcmp.lt.s32.totalorder %v10634_v61, 0 }
 0x357   : > { %v3427_v3 = vsel %vm10787_vm4, %v10567_v63, %v3424_v51  ;;  %v3584_v0 = vsel %vm3582_vm7, %v3572_v10, 2102212464  ;;  %v3587_v20 = vsel %vm3579_vm6, %v3566_v45, %v3569_v9  ;;  %v3588_v58 = vsel %vm3582_vm7, %v3575_v34, 920167782 }
 0x358   : > { %7747 = vcosq.f32 %v3427_v3  ;;  %v3511_v44 = vclz %v7174_v52  ;;  %v3651_v12 = vand.u32 2147483647, %v10781_v6  ;;  %v7181_v18 = vadd.s32 4294967169, %v3655_v59 }
 0x359   : > { %7749 = vsinq.f32 %v3427_v3  ;;  %v3583_v23 = vsel %vm3579_vm6, %v3563_v21, %v3566_v45  ;;  %v3585_v56 = vsel %vm3581_vm8, %v3569_v9, %v3584_v0  ;;  %v3589_v25 = vsel %vm3581_vm8, %v3572_v10, %v3588_v58 }
 0x35a   : > { %v3591_v11 = vsel %vm3579_vm6, %v3569_v9, %v3572_v10  ;;  %vm10833_vm11 = vcmp.le.f32.partialorder %v3443_v55, 0.7853982  ;;  %v3499_v19 = vadd.s32 %v10752_v54, %v10760_v35  ;;  %v7175_v47 = vadd.s32 4294967294, %v3511_v44 }
 0x35b   : > { %v3590_v33 = vsel %vm3580_vm9, %v3587_v20, %v3589_v25  ;;  %v3592_v15 = vsel %vm3582_vm7, %v3578_v57, 1326507024  ;;  %v3529_v7 = vsub.s32 4, %v10795_v37  ;;  %vm3431_vm12 = vweird.f32 %v10567_v63 }
 0x35c   : > { %v3593_v36 = vsel %vm3581_vm8, %v3575_v34, %v3592_v15  ;;  %v10844_v16 = vmul.u32.u64.low %v10812_v46, %v3590_v33  ;;  %v10845_v53 = vmul.u32.u64.high %v10812_v46, %v3590_v33, %v10844_v16  ;;  %vm7176_vm13 = vcmp.lt.s32.totalorder %v7175_v47, 0 }
 0x35d   : > { %v3586_v55 = vsel %vm3580_vm9, %v3583_v23, %v3585_v56  ;;  %v3594_v54 = vsel %vm3580_vm9, %v3591_v11, %v3593_v36  ;;  %v3661_v35 = vadd.s32 1, %v7181_v18  ;;  %v3433_v4 = vand.u32 3, %v3432_v60 }
 0x35e   : > { %v3514_v49 = vsel %vm7176_vm13, 0, %v7175_v47  ;;  %v10852_v22 = vmul.u32.u64.low %v10812_v46, %v3594_v54  ;;  %v10853_v14 = vmul.u32.u64.high %v10812_v46, %v3594_v54, %v10852_v22  ;;  %v3602_v40 = vmul.u32 %v10812_v46, %v3586_v55 }
 0x35f   : > { %v3515_v41 = vsub.s32 32, %v3514_v49  ;;  %v3516_v42 = vshll.u32 %v10809_v43, %v3514_v49  ;;  %v3519_v1 = vsub.s32 4294967266, %v3514_v49  ;;  %vm3662_vm15 = vcmp.gt.s32.totalorder %v3661_v35, 0 }
 0x360   : > { %v3605_v27 = vadd.s32 1, %v10845_v53  ;;  %v3658_v8 = vand.u32 8388607, %v3651_v12  ;;  %v3663_v31 = vsel %vm3662_vm15, %v3661_v35, 0  ;;  %v3530_v62 = vsel %vm3445_vm10, %v3529_v7, %v10795_v37 }
 0x361   : > { %v3517_v50 = vshrl.u32 %v3499_v19, %v3515_v41  ;;  %v3520_v2 = vadd.s32 127, %v3519_v1  ;;  %v3665_v60 = vand.u32 31, %v3663_v31  ;;  %vm3434_vm14 = vcmp.lt.s32.totalorder %v3433_v4, 2 }
 0x362   : > { %v7748_v29 = vpop.eup %7747  ;;  %vm3435_vm1 = vcmp.eq.s32.totalorder %v3433_v4, 0  ;;  %vm3438_vm0 = vcmp.eq.s32.totalorder %v3433_v4, 2  ;;  %vm3604_vm2 = vc.u32 %v10853_v14, %v10844_v16  ;;  %v3532_v13 = vsel %vm10833_vm11, 0, %v3530_v62 }
 0x363   : > { %v7750_v43 = vpop.eup %7749  ;;  %v3439_v46 = vxor.u32 2147483648, %v7748_v29  ;;  %v3518_v17 = vor.u32 %v3517_v50, %v3516_v42  ;;  %v3521_v45 = vshll.u32 %v3520_v2, 23  ;;  %v3606_v9 = vsel %vm3604_vm2, %v3605_v27, %v10845_v53 }
 0x364   : > { %v3436_v59 = vxor.u32 2147483648, %v7750_v43  ;;  %v3607_v21 = vadd.s32 %v3606_v9, %v3602_v40  ;;  %v3666_v37 = vsub.s32 32, %v3665_v60  ;;  %v3659_v57 = vor.u32 8388608, %v3658_v8 }
 0x365   : > { %v3440_v34 = vsel %vm3438_vm0, %v3439_v46, %v7750_v43  ;;  %v3522_v51 = vor.u32 4788187, %v3521_v45  ;;  %v3525_v10 = vcvt.s32.f32 %v3518_v17  ;;  %v3668_v0 = vshll.u32 %v7982_v24, %v3665_v60 }
 0x366   : > { %v3437_v3 = vsel %vm3435_vm1, %v7748_v29, %v3436_v59  ;;  %v3608_v52 = vadd.s32 536870912, %v3607_v21  ;;  %v3671_v20 = vshll.u32 %v7983_v26, %v3665_v60  ;;  %v3669_v18 = vshrl.u32 %v7983_v26, %v3666_v37 }
 0x367   : > { %v3441_v58 = vsel %vm3434_vm14, %v3437_v3, %v3440_v34  ;;  %v3523_v44 = vand.u32 2147483647, %v3522_v51  ;;  %v3672_v23 = vshrl.u32 %v7984_v28, %v3666_v37  ;;  %v3674_v11 = vshll.u32 %v7984_v28, %v3665_v60 }
 0x368   : > { %v3442_v56 = vsel %vm3431_vm12, nan, %v3441_v58  ;;  %v3609_v25 = vshrl.u32 %v3608_v52, 30  ;;  %v3675_v19 = vshrl.u32 %v7985_v30, %v3666_v37  ;;  %v3664_v33 = vshrl.u32 %v3663_v31, 5 }
 0x369   : > { %v3526_v47 = vmul.f32 %v3525_v10, %v3523_v44  ;;  %v3677_v15 = vshll.u32 %v7985_v30, %v3665_v60  ;;  %v3678_v7 = vshrl.u32 %v7986_v32, %v3666_v37  ;;  %6905 = vst [vmem:[%s8389_s16 + $0xf0] sm:$0xff] %v3442_v56  ;;  %v3536_v36 = vadd.s32 3, %v3532_v13 }
 0x36a   : > { %v3610_v53 = vshll.u32 %v3609_v25, 30  ;;  %v3680_v55 = vshll.u32 %v7986_v32, %v3665_v60  ;;  %v10882_v54 = vshll.u32 %v3659_v57, 8  ;;  %v3667_v35 = vshrl.u32 %v7982_v24, %v3666_v37  ;;  %v10898_v60 = vld [vmem:[%s8105_s3 + $0x110] sm:$0xff] }
 0x36b   : > { %v3527_v63 = vxor.u32 2147483648, %v3526_v47  ;;  %v3679_v4 = vor.u32 %v3678_v7, %v3677_v15  ;;  %v3681_v49 = vshrl.u32 %v7987_v39, %v3666_v37  ;;  %v3670_v41 = vor.u32 %v3669_v18, %v3668_v0 }
 0x36c   : > { %v10886_v22 = vsub.s32 %v3607_v21, %v3610_v53  ;;  %v3673_v42 = vor.u32 %v3672_v23, %v3671_v20  ;;  %v3676_v1 = vor.u32 %v3675_v19, %v3674_v11  ;;  %vm3683_vm3 = vcmp.lt.s32.totalorder %v3664_v33, 1 }
 0x36d   : > { %v3528_v40 = vsel %vm3445_vm10, %v3527_v63, %v3526_v47  ;;  %v3682_v27 = vor.u32 %v3681_v49, %v3680_v55  ;;  %vm3686_vm5 = vcmp.lt.s32.totalorder %v3664_v33, 4  ;;  %vm3684_vm4 = vcmp.lt.s32.totalorder %v3664_v33, 2 }
 0x36e   : > { %v3531_v8 = vsel %vm10833_vm11, %v10634_v61, %v3528_v40  ;;  %v3613_v31 = vsub.s32 0, %v10886_v22  ;;  %vm3685_vm6 = vcmp.lt.s32.totalorder %v3664_v33, 3  ;;  %v3687_v50 = vsel %vm3683_vm3, %v3667_v35, %v3670_v41 }
 0x36f   : > { %7751 = vcosq.f32 %v3531_v8  ;;  %v3688_v2 = vsel %vm3686_vm5, %v3676_v1, 2102212464  ;;  %v3692_v62 = vsel %vm3686_vm5, %v3679_v4, 920167782  ;;  %v3691_v48 = vsel %vm3683_vm3, %v3670_v41, %v3673_v42 }
 0x370   : > { %7753 = vsinq.f32 %v3531_v8  ;;  %v7178_v29 = vmin.u32 %v3613_v31, %v10886_v22  ;;  %v3689_v43 = vsel %vm3685_vm6, %v3673_v42, %v3688_v2  ;;  %v3537_v46 = vand.u32 3, %v3536_v36 }
 0x371   : > { %v3693_v17 = vsel %vm3685_vm6, %v3676_v1, %v3692_v62  ;;  %v3695_v45 = vsel %vm3683_vm3, %v3673_v42, %v3676_v1  ;;  %v3696_v9 = vsel %vm3686_vm5, %v3682_v27, 1326507024  ;;  %vm10908_vm7 = vcmp.le.f32.partialorder %v3547_v38, 0.7853982 }
 0x372   : > { %vm3549_vm9 = vcmp.lt.s32.totalorder %v10728_v5, 0  ;;  %v3615_v13 = vclz %v7178_v29  ;;  %v3633_v21 = vsub.s32 4, %v3609_v25  ;;  %v3690_v37 = vsel %vm3684_vm4, %v3687_v50, %v3689_v43 }
 0x373   : > { %v3694_v34 = vsel %vm3684_vm4, %v3691_v48, %v3693_v17  ;;  %v3697_v51 = vsel %vm3685_vm6, %v3679_v4, %v3696_v9  ;;  %v3758_v10 = vand.u32 2139095040, %v10898_v60  ;;  %vm3535_vm8 = vweird.f32 %v10634_v61 }
 0x374   : > { %v7179_v57 = vadd.s32 4294967294, %v3615_v13  ;;  %v3698_v38 = vsel %vm3684_vm4, %v3695_v45, %v3697_v51  ;;  %v10920_v3 = vmul.u32.u64.low %v10882_v54, %v3694_v34  ;;  %v10921_v52 = vmul.u32.u64.high %v10882_v54, %v3694_v34, %v10920_v3  ;;  %v10950_v45 = vld [vmem:[%s8105_s3 + $0x118] sm:$0xff] }
 0x375   : > { %vm3538_vm10 = vcmp.lt.s32.totalorder %v3537_v46, 2  ;;  %v10925_v0 = vmul.u32.u64.low %v10882_v54, %v3698_v38  ;;  %v10926_v20 = vmul.u32.u64.high %v10882_v54, %v3698_v38, %v10925_v0  ;;  %v3759_v58 = vshrl.u32 %v3758_v10, 23 }
 0x376   : > { %vm3539_vm11 = vcmp.eq.s32.totalorder %v3537_v46, 0  ;;  %v3603_v44 = vadd.s32 %v10844_v16, %v10853_v14  ;;  %vm7180_vm12 = vcmp.lt.s32.totalorder %v7179_v57, 0  ;;  %v3634_v18 = vsel %vm3549_vm9, %v3633_v21, %v3609_v25 }
 0x377   : > { %v3618_v23 = vsel %vm7180_vm12, 0, %v7179_v57  ;;  %v3706_v56 = vmul.u32 %v10882_v54, %v3690_v37  ;;  %v3755_v11 = vand.u32 2147483647, %v10898_v60  ;;  %v7185_v19 = vadd.s32 4294967169, %v3759_v58 }
 0x378   : > { %v3619_v47 = vsub.s32 32, %v3618_v23  ;;  %v3620_v33 = vshll.u32 %v10886_v22, %v3618_v23  ;;  %v3623_v15 = vsub.s32 4294967266, %v3618_v23  ;;  %v3709_v7 = vadd.s32 1, %v10921_v52 }
 0x379   : > { %v7752_v36 = vpop.eup %7751  ;;  %vm3542_vm13 = vcmp.eq.s32.totalorder %v3537_v46, 2  ;;  %v3636_v16 = vsel %vm10908_vm7, 0, %v3634_v18  ;;  %vm3708_vm15 = vc.u32 %v10926_v20, %v10920_v3  ;;  %v3765_v14 = vadd.s32 1, %v7185_v19 }
 0x37a   : > { %v7754_v25 = vpop.eup %7753  ;;  %v3543_v53 = vxor.u32 2147483648, %v7752_v36  ;;  %v3621_v55 = vshrl.u32 %v3603_v44, %v3619_v47  ;;  %v3624_v54 = vadd.s32 127, %v3623_v15  ;;  %v3710_v63 = vsel %vm3708_vm15, %v3709_v7, %v10921_v52 }
 0x37b   : > { %v3540_v35 = vxor.u32 2147483648, %v7754_v25  ;;  %v3711_v4 = vadd.s32 %v3710_v63, %v3706_v56  ;;  %v3762_v49 = vand.u32 8388607, %v3755_v11  ;;  %vm3766_vm14 = vcmp.gt.s32.totalorder %v3765_v14, 0 }
 0x37c   : > { %v3544_v22 = vsel %vm3542_vm13, %v3543_v53, %v7754_v25  ;;  %v3622_v41 = vor.u32 %v3621_v55, %v3620_v33  ;;  %v3625_v42 = vshll.u32 %v3624_v54, 23  ;;  %v3767_v1 = vsel %vm3766_vm14, %v3765_v14, 0 }
 0x37d   : > { %v3541_v40 = vsel %vm3539_vm11, %v7752_v36, %v3540_v35  ;;  %v3712_v27 = vadd.s32 536870912, %v3711_v4  ;;  %v3769_v8 = vand.u32 31, %v3767_v1  ;;  %v3640_v62 = vadd.s32 3, %v3636_v16 }
 0x37e   : > { %v3545_v31 = vsel %vm3538_vm10, %v3541_v40, %v3544_v22  ;;  %v3626_v50 = vor.u32 4788187, %v3625_v42  ;;  %v3629_v2 = vcvt.s32.f32 %v3622_v41  ;;  %v3763_v48 = vor.u32 8388608, %v3762_v49 }
 0x37f   : > { %v3546_v29 = vsel %vm3535_vm8, nan, %v3545_v31  ;;  %v10947_v43 = vshrl.u32 %v3712_v27, 30  ;;  %v3770_v17 = vsub.s32 32, %v3769_v8  ;;  %v3768_v13 = vshrl.u32 %v3767_v1, 5 }
 0x380   : > { %v3627_v9 = vand.u32 2147483647, %v3626_v50  ;;  %v3772_v21 = vshll.u32 %v7982_v24, %v3769_v8  ;;  %v3775_v37 = vshll.u32 %v7983_v26, %v3769_v8  ;;  %6906 = vst [vmem:[%s8389_s16 + $0xf8] sm:$0xff] %v3546_v29  ;;  %v3778_v61 = vshll.u32 %v7984_v28, %v3769_v8 }
 0x381   : > { %v3714_v46 = vshll.u32 %v10947_v43, 30  ;;  %v3773_v34 = vshrl.u32 %v7983_v26, %v3770_v17  ;;  %v3781_v51 = vshll.u32 %v7985_v30, %v3769_v8  ;;  %v3776_v57 = vshrl.u32 %v7984_v28, %v3770_v17 }
 0x382   : > { %v3630_v10 = vmul.f32 %v3629_v2, %v3627_v9  ;;  %v3779_v38 = vshrl.u32 %v7985_v30, %v3770_v17  ;;  %v3782_v52 = vshrl.u32 %v7986_v32, %v3770_v17  ;;  %v10962_v0 = vand.u32 3, %v3640_v62 }
 0x383   : > { %v10964_v58 = vsub.s32 %v3711_v4, %v3714_v46  ;;  %v3784_v44 = vshll.u32 %v7986_v32, %v3769_v8  ;;  %v3862_v18 = vand.u32 2139095040, %v10950_v45  ;;  %v3707_v56 = vadd.s32 %v10920_v3, %v10926_v20 }
 0x384   : > { %v3631_v23 = vxor.u32 2147483648, %v3630_v10  ;;  %v3771_v19 = vshrl.u32 %v7982_v24, %v3770_v17  ;;  %v10971_v47 = vshll.u32 %v3763_v48, 8  ;;  %v3774_v15 = vor.u32 %v3773_v34, %v3772_v21 }
 0x385   : > { %v3717_v33 = vsub.s32 0, %v10964_v58  ;;  %v3777_v7 = vor.u32 %v3776_v57, %v3775_v37  ;;  %v3785_v36 = vshrl.u32 %v7987_v39, %v3770_v17  ;;  %v3780_v14 = vor.u32 %v3779_v38, %v3778_v61 }
 0x386   : > { %v3632_v16 = vsel %vm3549_vm9, %v3631_v23, %v3630_v10  ;;  %v3783_v25 = vor.u32 %v3782_v52, %v3781_v51  ;;  %vm3787_vm1 = vcmp.lt.s32.totalorder %v3768_v13, 1  ;;  %v3863_v55 = vshrl.u32 %v3862_v18, 23 }
 0x387   : > { %v3635_v3 = vsel %vm10908_vm7, %v10728_v5, %v3632_v16  ;;  %v7182_v20 = vmin.u32 %v3717_v33, %v10964_v58  ;;  %v3786_v53 = vor.u32 %v3785_v36, %v3784_v44  ;;  %vm3653_vm0 = vcmp.lt.s32.totalorder %v10781_v6, 0 }
 0x388   : > { %7755 = vcosq.f32 %v3635_v3  ;;  %vm3788_vm2 = vcmp.lt.s32.totalorder %v3768_v13, 2  ;;  %vm3789_vm3 = vcmp.lt.s32.totalorder %v3768_v13, 3  ;;  %vm3790_vm5 = vcmp.lt.s32.totalorder %v3768_v13, 4 }
 0x389   : > { %7757 = vsinq.f32 %v3635_v3  ;;  %v3719_v54 = vclz %v7182_v20  ;;  %v3791_v63 = vsel %vm3787_vm1, %v3771_v19, %v3774_v15  ;;  %v3795_v35 = vsel %vm3787_vm1, %v3774_v15, %v3777_v7 }
 0x38a   : > { %v3737_v4 = vsub.s32 4, %v10947_v43  ;;  %v3792_v59 = vsel %vm3790_vm5, %v3780_v14, 2102212464  ;;  %v3796_v49 = vsel %vm3790_vm5, %v3783_v25, 920167782  ;;  %v3799_v22 = vsel %vm3787_vm1, %v3777_v7, %v3780_v14 }
 0x38b   : > { %v7183_v41 = vadd.s32 4294967294, %v3719_v54  ;;  %v3793_v42 = vsel %vm3789_vm3, %v3777_v7, %v3792_v59  ;;  %v3797_v1 = vsel %vm3789_vm3, %v3780_v14, %v3796_v49  ;;  %v3800_v40 = vsel %vm3790_vm5, %v3786_v53, 1326507024 }
 0x38c   : > { %v3794_v27 = vsel %vm3788_vm2, %v3791_v63, %v3793_v42  ;;  %v3798_v8 = vsel %vm3788_vm2, %v3795_v35, %v3797_v1  ;;  %v3801_v31 = vsel %vm3789_vm3, %v3783_v25, %v3800_v40  ;;  %v7189_v50 = vadd.s32 4294967169, %v3863_v55 }
 0x38d   : > { %vm7184_vm4 = vcmp.lt.s32.totalorder %v7183_v41, 0  ;;  %v3802_v2 = vsel %vm3788_vm2, %v3799_v22, %v3801_v31  ;;  %v10993_v62 = vmul.u32.u64.low %v10971_v47, %v3798_v8  ;;  %v10994_v29 = vmul.u32.u64.high %v10971_v47, %v3798_v8, %v10993_v62 }
 0x38e   : > { %v3722_v48 = vsel %vm7184_vm4, 0, %v7183_v41  ;;  %v10998_v17 = vmul.u32.u64.low %v10971_v47, %v3802_v2  ;;  %v10999_v9 = vmul.u32.u64.high %v10971_v47, %v3802_v2, %v10998_v17  ;;  %v3859_v21 = vand.u32 2147483647, %v10950_v45 }
 0x38f   : > { %vm11004_vm6 = vcmp.le.f32.partialorder %v3651_v12, 0.7853982  ;;  %v3723_v13 = vsub.s32 32, %v3722_v48  ;;  %v3724_v46 = vshll.u32 %v10964_v58, %v3722_v48  ;;  %v3727_v34 = vsub.s32 4294967266, %v3722_v48 }
 0x390   : > { %vm3642_vm7 = vcmp.lt.s32.totalorder %v10962_v0, 2  ;;  %vm3643_vm9 = vcmp.eq.s32.totalorder %v10962_v0, 0  ;;  %v3810_v61 = vmul.u32 %v10971_v47, %v3794_v27  ;;  %v3869_v51 = vadd.s32 1, %v7189_v50 }
 0x391   : > { %v3725_v10 = vshrl.u32 %v3707_v56, %v3723_v13  ;;  %v3728_v57 = vadd.s32 127, %v3727_v34  ;;  %v3738_v12 = vsel %vm3653_vm0, %v3737_v4, %v10947_v43  ;;  %v3813_v38 = vadd.s32 1, %v10994_v29 }
 0x392   : > { %v7756_v52 = vpop.eup %7755  ;;  %vm3646_vm8 = vcmp.eq.s32.totalorder %v10962_v0, 2  ;;  %vm3812_vm10 = vc.u32 %v10999_v9, %v10993_v62  ;;  %v3866_v58 = vand.u32 8388607, %v3859_v21  ;;  %vm3870_vm11 = vcmp.gt.s32.totalorder %v3869_v51, 0 }
 0x393   : > { %v7758_v44 = vpop.eup %7757  ;;  %v3647_v18 = vxor.u32 2147483648, %v7756_v52  ;;  %v3726_v23 = vor.u32 %v3725_v10, %v3724_v46  ;;  %v3729_v56 = vshll.u32 %v3728_v57, 23  ;;  %v3814_v19 = vsel %vm3812_vm10, %v3813_v38, %v10994_v29  ;;  %v11056_v57 = vld [vmem:[%s8105_s3 + $0x120] sm:$0xff] }
 0x394   : > { %v3644_v47 = vxor.u32 2147483648, %v7758_v44  ;;  %v3740_v43 = vsel %vm11004_vm6, 0, %v3738_v12  ;;  %v3815_v33 = vadd.s32 %v3814_v19, %v3810_v61  ;;  %v3871_v15 = vsel %vm3870_vm11, %v3869_v51, 0 }
 0x395   : > { %vm3639_vm12 = vweird.f32 %v10728_v5  ;;  %v3648_v7 = vsel %vm3646_vm8, %v3647_v18, %v7758_v44  ;;  %v3730_v36 = vor.u32 4788187, %v3729_v56  ;;  %v3733_v16 = vcvt.s32.f32 %v3726_v23 }
 0x396   : > { %v3645_v14 = vsel %vm3643_vm9, %v7756_v52, %v3644_v47  ;;  %v3816_v25 = vadd.s32 536870912, %v3815_v33  ;;  %v3873_v3 = vand.u32 31, %v3871_v15  ;;  %v3744_v55 = vadd.s32 3, %v3740_v43 }
 0x397   : > { %v3649_v20 = vsel %vm3642_vm7, %v3645_v14, %v3648_v7  ;;  %v3731_v53 = vand.u32 2147483647, %v3730_v36  ;;  %v3867_v54 = vor.u32 8388608, %v3866_v58  ;;  %v3872_v4 = vshrl.u32 %v3871_v15, 5 }
 0x398   : > { %v3650_v63 = vsel %vm3639_vm12, nan, %v3649_v20  ;;  %v11029_v35 = vshrl.u32 %v3816_v25, 30  ;;  %v3874_v5 = vsub.s32 32, %v3873_v3  ;;  %v3876_v49 = vshll.u32 %v7982_v24, %v3873_v3 }
 0x399   : > { %v3734_v59 = vmul.f32 %v3733_v16, %v3731_v53  ;;  %v3879_v22 = vshll.u32 %v7983_v26, %v3873_v3  ;;  %6907 = vst [vmem:[%s8389_s16 + $0x100] sm:$0xff] %v3650_v63  ;;  %v3882_v0 = vshll.u32 %v7984_v28, %v3873_v3  ;;  %v3885_v1 = vshll.u32 %v7985_v30, %v3873_v3 }
 0x39a   : > { %v3818_v41 = vshll.u32 %v11029_v35, 30  ;;  %v3877_v42 = vshrl.u32 %v7983_v26, %v3874_v5  ;;  %v3880_v27 = vshrl.u32 %v7984_v28, %v3874_v5  ;;  %v3883_v8 = vshrl.u32 %v7985_v30, %v3874_v5 }
 0x39b   : > { %v3735_v40 = vxor.u32 2147483648, %v3734_v59  ;;  %v3886_v31 = vshrl.u32 %v7986_v32, %v3874_v5  ;;  %v11041_v50 = vand.u32 3, %v3744_v55  ;;  %vm3891_vm13 = vcmp.lt.s32.totalorder %v3872_v4, 1 }
 0x39c   : > { %v11043_v2 = vsub.s32 %v3815_v33, %v3818_v41  ;;  %v11045_v29 = vshll.u32 %v3867_v54, 8  ;;  %v3878_v17 = vor.u32 %v3877_v42, %v3876_v49  ;;  %v3881_v13 = vor.u32 %v3880_v27, %v3879_v22 }
 0x39d   : > { %v3736_v48 = vsel %vm3653_vm0, %v3735_v40, %v3734_v59  ;;  %v3888_v46 = vshll.u32 %v7986_v32, %v3873_v3  ;;  %v3875_v51 = vshrl.u32 %v7982_v24, %v3874_v5  ;;  %v3887_v10 = vor.u32 %v3886_v31, %v3885_v1 }
 0x39e   : > { %v3739_v34 = vsel %vm11004_vm6, %v10781_v6, %v3736_v48  ;;  %v3821_v61 = vsub.s32 0, %v11043_v2  ;;  %v3884_v12 = vor.u32 %v3883_v8, %v3882_v0  ;;  %v3889_v38 = vshrl.u32 %v7987_v39, %v3874_v5 }
 0x39f   : > { %7759 = vcosq.f32 %v3739_v34  ;;  %vm3894_vm15 = vcmp.lt.s32.totalorder %v3872_v4, 4  ;;  %vm3892_vm14 = vcmp.lt.s32.totalorder %v3872_v4, 2  ;;  %vm3893_vm1 = vcmp.lt.s32.totalorder %v3872_v4, 3 }
 0x3a0   : > { %7761 = vsinq.f32 %v3739_v34  ;;  %v7186_v52 = vmin.u32 %v3821_v61, %v11043_v2  ;;  %v3890_v58 = vor.u32 %v3889_v38, %v3888_v46  ;;  %v3896_v37 = vsel %vm3894_vm15, %v3884_v12, 2102212464 }
 0x3a1   : > { %v3899_v44 = vsel %vm3891_vm13, %v3878_v17, %v3881_v13  ;;  %v3900_v18 = vsel %vm3894_vm15, %v3887_v10, 920167782  ;;  %v3811_v23 = vadd.s32 %v10993_v62, %v10999_v9  ;;  %v3895_v19 = vsel %vm3891_vm13, %v3875_v51, %v3878_v17 }
 0x3a2   : > { %v3823_v56 = vclz %v7186_v52  ;;  %v3966_v47 = vand.u32 2139095040, %v11056_v57  ;;  %v3897_v43 = vsel %vm3893_vm1, %v3881_v13, %v3896_v37  ;;  %v3901_v33 = vsel %vm3893_vm1, %v3884_v12, %v3900_v18 }
 0x3a3   : > { %v3903_v15 = vsel %vm3891_vm13, %v3881_v13, %v3884_v12  ;;  %v3904_v7 = vsel %vm3894_vm15, %v3890_v58, 1326507024  ;;  %vm3743_vm0 = vweird.f32 %v10781_v6  ;;  %v3841_v16 = vsub.s32 4, %v11029_v35 }
 0x3a4   : > { %v7187_v36 = vadd.s32 4294967294, %v3823_v56  ;;  %v3902_v62 = vsel %vm3892_vm14, %v3899_v44, %v3901_v33  ;;  %v3905_v9 = vsel %vm3893_vm1, %v3887_v10, %v3904_v7  ;;  %v3898_v14 = vsel %vm3892_vm14, %v3895_v19, %v3897_v43 }
 0x3a5   : > { %v3906_v25 = vsel %vm3892_vm14, %v3903_v15, %v3905_v9  ;;  %v11078_v3 = vmul.u32.u64.low %v11045_v29, %v3902_v62  ;;  %v11079_v20 = vmul.u32.u64.high %v11045_v29, %v3902_v62, %v11078_v3  ;;  %v3967_v54 = vshrl.u32 %v3966_v47, 23  ;;  %v11123_v15 = vld [vmem:[%s8105_s3 + $0x128] sm:$0xff] }
 0x3a6   : > { %vm7188_vm2 = vcmp.lt.s32.totalorder %v7187_v36, 0  ;;  %v11083_v53 = vmul.u32.u64.low %v11045_v29, %v3906_v25  ;;  %v11084_v55 = vmul.u32.u64.high %v11045_v29, %v3906_v25, %v11083_v53  ;;  %vm3746_vm3 = vcmp.lt.s32.totalorder %v11041_v50, 2 }
 0x3a7   : > { %vm11089_vm5 = vcmp.le.f32.partialorder %v3755_v11, 0.7853982  ;;  %vm3757_vm4 = vcmp.lt.s32.totalorder %v10898_v60, 0  ;;  %v3826_v4 = vsel %vm7188_vm2, 0, %v7187_v36  ;;  %v7193_v22 = vadd.s32 4294967169, %v3967_v54 }
 0x3a8   : > { %v3827_v5 = vsub.s32 32, %v3826_v4  ;;  %v3828_v59 = vshll.u32 %v11043_v2, %v3826_v4  ;;  %v3831_v49 = vsub.s32 4294967266, %v3826_v4  ;;  %vm3747_vm6 = vcmp.eq.s32.totalorder %v11041_v50, 0 }
 0x3a9   : > { %v7760_v41 = vpop.eup %7759  ;;  %vm3750_vm7 = vcmp.eq.s32.totalorder %v11041_v50, 2  ;;  %v3914_v42 = vmul.u32 %v11045_v29, %v3898_v14  ;;  %v3917_v11 = vadd.s32 1, %v11079_v20  ;;  %v3842_v8 = vsel %vm3757_vm4, %v3841_v16, %v11029_v35 }
 0x3aa   : > { %v7762_v0 = vpop.eup %7761  ;;  %v3751_v1 = vxor.u32 2147483648, %v7760_v41  ;;  %v3829_v40 = vshrl.u32 %v3811_v23, %v3827_v5  ;;  %v3832_v27 = vadd.s32 127, %v3831_v49  ;;  %vm3916_vm9 = vc.u32 %v11084_v55, %v11078_v3 }
 0x3ab   : > { %v3748_v31 = vxor.u32 2147483648, %v7762_v0  ;;  %v3963_v2 = vand.u32 2147483647, %v11056_v57  ;;  %v3973_v48 = vadd.s32 1, %v7193_v22  ;;  %v3918_v46 = vsel %vm3916_vm9, %v3917_v11, %v11079_v20 }
 0x3ac   : > { %v3752_v17 = vsel %vm3750_vm7, %v3751_v1, %v7762_v0  ;;  %v3830_v13 = vor.u32 %v3829_v40, %v3828_v59  ;;  %v3833_v29 = vshll.u32 %v3832_v27, 23  ;;  %v3844_v61 = vsel %vm11089_vm5, 0, %v3842_v8 }
 0x3ad   : > { %v3749_v34 = vsel %vm3747_vm6, %v7760_v41, %v3748_v31  ;;  %v3919_v35 = vadd.s32 %v3918_v46, %v3914_v42  ;;  %vm3974_vm8 = vcmp.gt.s32.totalorder %v3973_v48, 0  ;;  %v3848_v18 = vadd.s32 3, %v3844_v61 }
 0x3ae   : > { %v3753_v51 = vsel %vm3746_vm3, %v3749_v34, %v3752_v17  ;;  %v3834_v10 = vor.u32 4788187, %v3833_v29  ;;  %v3837_v12 = vcvt.s32.f32 %v3830_v13  ;;  %v3975_v38 = vsel %vm3974_vm8, %v3973_v48, 0 }
 0x3af   : > { %v3754_v52 = vsel %vm3743_vm0, nan, %v3753_v51  ;;  %v3920_v58 = vadd.s32 536870912, %v3919_v35  ;;  %v3977_v37 = vand.u32 31, %v3975_v38  ;;  %v3970_v56 = vand.u32 8388607, %v3963_v2 }
 0x3b0   : > { %v3835_v44 = vand.u32 2147483647, %v3834_v10  ;;  %6908 = vst [vmem:[%s8389_s16 + $0x108] sm:$0xff] %v3754_v52  ;;  %v11117_v19 = vshrl.u32 %v3975_v38, 5  ;;  %v11131_v53 = vand.u32 3, %v3848_v18  ;;  %vm3861_vm10 = vcmp.lt.s32.totalorder %v10950_v45, 0 }
 0x3b1   : > { %v3921_v23 = vshrl.u32 %v3920_v58, 30  ;;  %v3978_v50 = vsub.s32 32, %v3977_v37  ;;  %v3980_v43 = vshll.u32 %v7982_v24, %v3977_v37  ;;  %v3983_v33 = vshll.u32 %v7983_v26, %v3977_v37 }
 0x3b2   : > { %v3838_v47 = vmul.f32 %v3837_v12, %v3835_v44  ;;  %v3986_v6 = vshll.u32 %v7984_v28, %v3977_v37  ;;  %v3989_v16 = vshll.u32 %v7985_v30, %v3977_v37  ;;  %v3992_v62 = vshll.u32 %v7986_v32, %v3977_v37 }
 0x3b3   : > { %v3922_v7 = vshll.u32 %v3921_v23, 30  ;;  %v3981_v36 = vshrl.u32 %v7983_v26, %v3978_v50  ;;  %v3984_v14 = vshrl.u32 %v7984_v28, %v3978_v50  ;;  %v3987_v25 = vshrl.u32 %v7985_v30, %v3978_v50 }
 0x3b4   : > { %v3839_v9 = vxor.u32 2147483648, %v3838_v47  ;;  %v3990_v20 = vshrl.u32 %v7986_v32, %v3978_v50  ;;  %v3971_v4 = vor.u32 8388608, %v3970_v56  ;;  %v3993_v5 = vshrl.u32 %v7987_v39, %v3978_v50 }
 0x3b5   : > { %v11133_v54 = vsub.s32 %v3919_v35, %v3922_v7  ;;  %v3979_v49 = vshrl.u32 %v7982_v24, %v3978_v50  ;;  %v3982_v22 = vor.u32 %v3981_v36, %v3980_v43  ;;  %v4070_v41 = vand.u32 2139095040, %v11123_v15 }
 0x3b6   : > { %v3840_v59 = vsel %vm3757_vm4, %v3839_v9, %v3838_v47  ;;  %v3985_v0 = vor.u32 %v3984_v14, %v3983_v33  ;;  %v3988_v1 = vor.u32 %v3987_v25, %v3986_v6  ;;  %v3991_v40 = vor.u32 %v3990_v20, %v3989_v16 }
 0x3b7   : > { %v3843_v42 = vsel %vm11089_vm5, %v10898_v60, %v3840_v59  ;;  %v3925_v11 = vsub.s32 0, %v11133_v54  ;;  %v3994_v27 = vor.u32 %v3993_v5, %v3992_v62  ;;  %vm3995_vm11 = vcmp.lt.s32.totalorder %v11117_v19, 1 }
 0x3b8   : > { %7763 = vcosq.f32 %v3843_v42  ;;  %vm11148_vm12 = vcmp.le.f32.partialorder %v3859_v21, 0.7853982  ;;  %v4011_v63 = vshll.u32 %v3971_v4, 8  ;;  %v3945_v48 = vsub.s32 4, %v3921_v23 }
 0x3b9   : > { %7765 = vsinq.f32 %v3843_v42  ;;  %v7190_v31 = vmin.u32 %v3925_v11, %v11133_v54  ;;  %vm3997_vm13 = vcmp.lt.s32.totalorder %v11117_v19, 3  ;;  %vm3998_vm15 = vcmp.lt.s32.totalorder %v11117_v19, 4 }
 0x3ba   : > { %v4071_v17 = vshrl.u32 %v4070_v41, 23  ;;  %vm3996_vm14 = vcmp.lt.s32.totalorder %v11117_v19, 2  ;;  %v4003_v29 = vsel %vm3995_vm11, %v3982_v22, %v3985_v0  ;;  %v4007_v46 = vsel %vm3995_vm11, %v3985_v0, %v3988_v1 }
 0x3bb   : > { %v3927_v13 = vclz %v7190_v31  ;;  %vm3850_vm1 = vcmp.lt.s32.totalorder %v11131_v53, 2  ;;  %v3999_v21 = vsel %vm3995_vm11, %v3979_v49, %v3982_v22  ;;  %v4000_v34 = vsel %vm3998_vm15, %v3988_v1, 2102212464 }
 0x3bc   : > { %v4004_v61 = vsel %vm3998_vm15, %v3991_v40, 920167782  ;;  %v4008_v35 = vsel %vm3998_vm15, %v3994_v27, 1326507024  ;;  %vm3847_vm0 = vweird.f32 %v10898_v60  ;;  %v4001_v10 = vsel %vm3997_vm13, %v3985_v0, %v4000_v34 }
 0x3bd   : > { %v7191_v51 = vadd.s32 4294967294, %v3927_v13  ;;  %v4005_v12 = vsel %vm3997_vm13, %v3988_v1, %v4004_v61  ;;  %v4009_v38 = vsel %vm3997_vm13, %v3991_v40, %v4008_v35  ;;  %v3915_v52 = vadd.s32 %v11078_v3, %v11084_v55 }
 0x3be   : > { %v4006_v58 = vsel %vm3996_vm14, %v4003_v29, %v4005_v12  ;;  %v4010_v37 = vsel %vm3996_vm14, %v4007_v46, %v4009_v38  ;;  %v7197_v44 = vadd.s32 4294967169, %v4071_v17  ;;  %v3946_v18 = vsel %vm3861_vm10, %v3945_v48, %v3921_v23 }
 0x3bf   : > { %vm7192_vm2 = vcmp.lt.s32.totalorder %v7191_v51, 0  ;;  %v11172_v56 = vmul.u32.u64.low %v4011_v63, %v4010_v37  ;;  %v11173_v50 = vmul.u32.u64.high %v4011_v63, %v4010_v37, %v11172_v56  ;;  %v4002_v43 = vsel %vm3996_vm14, %v3999_v21, %v4001_v10 }
 0x3c0   : > { %v3930_v47 = vsel %vm7192_vm2, 0, %v7191_v51  ;;  %v11177_v33 = vmul.u32.u64.low %v4011_v63, %v4006_v58  ;;  %v11178_v3 = vmul.u32.u64.high %v4011_v63, %v4006_v58, %v11177_v33  ;;  %v4077_v36 = vadd.s32 1, %v7197_v44 }
 0x3c1   : > { %v3931_v55 = vsub.s32 32, %v3930_v47  ;;  %v3932_v6 = vshll.u32 %v11133_v54, %v3930_v47  ;;  %v3935_v7 = vsub.s32 4294967266, %v3930_v47  ;;  %vm3851_vm3 = vcmp.eq.s32.totalorder %v11131_v53, 0 }
 0x3c2   : > { %v7764_v16 = vpop.eup %7763  ;;  %vm3854_vm5 = vcmp.eq.s32.totalorder %v11131_v53, 2  ;;  %v3948_v23 = vsel %vm11148_vm12, 0, %v3946_v18  ;;  %v4067_v19 = vand.u32 2147483647, %v11123_v15  ;;  %v4018_v20 = vmul.u32 %v4011_v63, %v4002_v43 }
 0x3c3   : > { %v7766_v62 = vpop.eup %7765  ;;  %v3855_v9 = vxor.u32 2147483648, %v7764_v16  ;;  %v3933_v14 = vshrl.u32 %v3915_v52, %v3931_v55  ;;  %v3936_v25 = vadd.s32 127, %v3935_v7  ;;  %vm4020_vm4 = vc.u32 %v11173_v50, %v11177_v33  ;;  %v11217_v7 = vld [vmem:[%s8105_s3 + $0x130] sm:$0xff] }
 0x3c4   : > { %v3852_v4 = vxor.u32 2147483648, %v7766_v62  ;;  %v4021_v54 = vadd.s32 1, %v11178_v3  ;;  %vm4078_vm6 = vcmp.gt.s32.totalorder %v4077_v36, 0  ;;  %v4074_v11 = vand.u32 8388607, %v4067_v19 }
 0x3c5   : > { %v3856_v5 = vsel %vm3854_vm5, %v3855_v9, %v7766_v62  ;;  %v3934_v59 = vor.u32 %v3933_v14, %v3932_v6  ;;  %v3937_v49 = vshll.u32 %v3936_v25, 23  ;;  %v4079_v22 = vsel %vm4078_vm6, %v4077_v36, 0 }
 0x3c6   : > { %v3853_v41 = vsel %vm3851_vm3, %v7764_v16, %v3852_v4  ;;  %v4022_v42 = vsel %vm4020_vm4, %v4021_v54, %v11178_v3  ;;  %v4081_v0 = vand.u32 31, %v4079_v22  ;;  %v3952_v48 = vadd.s32 3, %v3948_v23 }
 0x3c7   : > { %v3857_v1 = vsel %vm3850_vm1, %v3853_v41, %v3856_v5  ;;  %v3938_v40 = vor.u32 4788187, %v3937_v49  ;;  %v3941_v27 = vcvt.s32.f32 %v3934_v59  ;;  %v4023_v31 = vadd.s32 %v4022_v42, %v4018_v20 }
 0x3c8   : > { %v3858_v63 = vsel %vm3847_vm0, nan, %v3857_v1  ;;  %v4082_v17 = vsub.s32 32, %v4081_v0  ;;  %v4084_v13 = vshll.u32 %v7982_v24, %v4081_v0  ;;  %v4087_v21 = vshll.u32 %v7983_v26, %v4081_v0 }
 0x3c9   : > { %v3939_v29 = vand.u32 2147483647, %v3938_v40  ;;  %v4024_v46 = vadd.s32 536870912, %v4023_v31  ;;  %v4090_v34 = vshll.u32 %v7984_v28, %v4081_v0  ;;  %6909 = vst [vmem:[%s8389_s16 + $0x110] sm:$0xff] %v3858_v63  ;;  %v4093_v60 = vshll.u32 %v7985_v30, %v4081_v0 }
 0x3ca   : > { %v4085_v53 = vshrl.u32 %v7983_v26, %v4082_v17  ;;  %v4088_v61 = vshrl.u32 %v7984_v28, %v4082_v17  ;;  %v4091_v35 = vshrl.u32 %v7985_v30, %v4082_v17  ;;  %v4080_v12 = vshrl.u32 %v4079_v22, 5 }
 0x3cb   : > { %v3942_v51 = vmul.f32 %v3941_v27, %v3939_v29  ;;  %v11207_v10 = vshrl.u32 %v4024_v46, 30  ;;  %v4094_v38 = vshrl.u32 %v7986_v32, %v4082_v17  ;;  %v4075_v52 = vor.u32 8388608, %v4074_v11 }
 0x3cc   : > { %v4096_v58 = vshll.u32 %v7986_v32, %v4081_v0  ;;  %v4097_v37 = vshrl.u32 %v7987_v39, %v4082_v17  ;;  %v11212_v18 = vand.u32 3, %v3952_v48  ;;  %v4083_v47 = vshrl.u32 %v7982_v24, %v4082_v17 }
 0x3cd   : > { %v3943_v44 = vxor.u32 2147483648, %v3942_v51  ;;  %v4026_v56 = vshll.u32 %v11207_v10, 30  ;;  %v4086_v43 = vor.u32 %v4085_v53, %v4084_v13  ;;  %v4089_v3 = vor.u32 %v4088_v61, %v4087_v21 }
 0x3ce   : > { %v4092_v55 = vor.u32 %v4091_v35, %v4090_v34  ;;  %v4095_v6 = vor.u32 %v4094_v38, %v4093_v60  ;;  %vm4099_vm7 = vcmp.lt.s32.totalorder %v4080_v12, 1  ;;  %vm4102_vm9 = vcmp.lt.s32.totalorder %v4080_v12, 4 }
 0x3cf   : > { %v3944_v36 = vsel %vm3861_vm10, %v3943_v44, %v3942_v51  ;;  %v11221_v16 = vsub.s32 %v4023_v31, %v4026_v56  ;;  %v4098_v62 = vor.u32 %v4097_v37, %v4096_v58  ;;  %vm4101_vm8 = vcmp.lt.s32.totalorder %v4080_v12, 3 }
 0x3d0   : > { %v3947_v23 = vsel %vm11148_vm12, %v10950_v45, %v3944_v36  ;;  %v4115_v9 = vshll.u32 %v4075_v52, 8  ;;  %vm4100_vm11 = vcmp.lt.s32.totalorder %v4080_v12, 2  ;;  %v4104_v25 = vsel %vm4102_vm9, %v4092_v55, 2102212464 }
 0x3d1   : > { %7767 = vcosq.f32 %v3947_v23  ;;  %v4029_v14 = vsub.s32 0, %v11221_v16  ;;  %v4107_v20 = vsel %vm4099_vm7, %v4086_v43, %v4089_v3  ;;  %v4108_v4 = vsel %vm4102_vm9, %v4095_v6, 920167782 }
 0x3d2   : > { %7769 = vsinq.f32 %v3947_v23  ;;  %v4174_v54 = vand.u32 2139095040, %v11217_v7  ;;  %v4103_v8 = vsel %vm4099_vm7, %v4083_v47, %v4086_v43  ;;  %v4109_v59 = vsel %vm4101_vm8, %v4092_v55, %v4108_v4 }
 0x3d3   : > { %v7194_v5 = vmin.u32 %v4029_v14, %v11221_v16  ;;  %v4105_v49 = vsel %vm4101_vm8, %v4089_v3, %v4104_v25  ;;  %v4110_v22 = vsel %vm4100_vm11, %v4107_v20, %v4109_v59  ;;  %v4111_v41 = vsel %vm4099_vm7, %v4089_v3, %v4092_v55 }
 0x3d4   : > { %v4112_v42 = vsel %vm4102_vm9, %v4098_v62, 1326507024  ;;  %vm3954_vm10 = vcmp.lt.s32.totalorder %v11212_v18, 2  ;;  %vm3965_vm12 = vcmp.lt.s32.totalorder %v11056_v57, 0  ;;  %v4175_v27 = vshrl.u32 %v4174_v54, 23 }
 0x3d5   : > { %v4031_v11 = vclz %v7194_v5  ;;  %v4113_v0 = vsel %vm4101_vm8, %v4095_v6, %v4112_v42  ;;  %v11241_v1 = vmul.u32.u64.low %v4115_v9, %v4110_v22  ;;  %v11242_v40 = vmul.u32.u64.high %v4115_v9, %v4110_v22, %v11241_v1  ;;  %v11270_v6 = vld [vmem:[%s8105_s3 + $0x138] sm:$0xff] }
 0x3d6   : > { %v4049_v63 = vsub.s32 4, %v11207_v10  ;;  %v4106_v48 = vsel %vm4100_vm11, %v4103_v8, %v4105_v49  ;;  %v4114_v17 = vsel %vm4100_vm11, %v4111_v41, %v4113_v0  ;;  %v4171_v46 = vand.u32 2147483647, %v11217_v7 }
 0x3d7   : > { %v7195_v31 = vadd.s32 4294967294, %v4031_v11  ;;  %v11248_v13 = vmul.u32.u64.low %v4115_v9, %v4114_v17  ;;  %v11249_v29 = vmul.u32.u64.high %v4115_v9, %v4114_v17, %v11248_v13  ;;  %v7201_v21 = vadd.s32 4294967169, %v4175_v27 }
 0x3d8   : > { %vm3955_vm13 = vcmp.eq.s32.totalorder %v11212_v18, 0  ;;  %vm3958_vm15 = vcmp.eq.s32.totalorder %v11212_v18, 2  ;;  %v4019_v34 = vadd.s32 %v11177_v33, %v11173_v50  ;;  %v4122_v61 = vmul.u32 %v4115_v9, %v4106_v48 }
 0x3d9   : > { %vm7196_vm14 = vcmp.lt.s32.totalorder %v7195_v31, 0  ;;  %v4125_v35 = vadd.s32 1, %v11242_v40  ;;  %v4181_v60 = vadd.s32 1, %v7201_v21  ;;  %v4050_v58 = vsel %vm3965_vm12, %v4049_v63, %v11207_v10 }
 0x3da   : > { %v4034_v53 = vsel %vm7196_vm14, 0, %v7195_v31  ;;  %vm4124_vm1 = vc.u32 %v11249_v29, %v11241_v1  ;;  %v4178_v50 = vand.u32 8388607, %v4171_v46  ;;  %vm3951_vm2 = vweird.f32 %v10950_v45 }
 0x3db   : > { %v7768_v51 = vpop.eup %7767  ;;  %v4035_v12 = vsub.s32 32, %v4034_v53  ;;  %v4036_v38 = vshll.u32 %v11221_v16, %v4034_v53  ;;  %v4039_v52 = vsub.s32 4294967266, %v4034_v53  ;;  %vm4182_vm0 = vcmp.gt.s32.totalorder %v4181_v60, 0 }
 0x3dc   : > { %v7770_v37 = vpop.eup %7769  ;;  %v3959_v44 = vxor.u32 2147483648, %v7768_v51  ;;  %v4126_v43 = vsel %vm4124_vm1, %v4125_v35, %v11242_v40  ;;  %v4183_v55 = vsel %vm4182_vm0, %v4181_v60, 0  ;;  %vm11276_vm3 = vcmp.le.f32.partialorder %v3963_v2, 0.7853982 }
 0x3dd   : > { %v3956_v33 = vxor.u32 2147483648, %v7770_v37  ;;  %v4037_v56 = vshrl.u32 %v4019_v34, %v4035_v12  ;;  %v4040_v47 = vadd.s32 127, %v4039_v52  ;;  %v4127_v10 = vadd.s32 %v4126_v43, %v4122_v61 }
 0x3de   : > { %v3960_v3 = vsel %vm3958_vm15, %v3959_v44, %v7770_v37  ;;  %v4052_v9 = vsel %vm11276_vm3, 0, %v4050_v58  ;;  %v4185_v25 = vand.u32 31, %v4183_v55  ;;  %v4179_v5 = vor.u32 8388608, %v4178_v50 }
 0x3df   : > { %v3957_v36 = vsel %vm3955_vm13, %v7768_v51, %v3956_v33  ;;  %v4038_v23 = vor.u32 %v4037_v56, %v4036_v38  ;;  %v4041_v62 = vshll.u32 %v4040_v47, 23  ;;  %v4128_v14 = vadd.s32 536870912, %v4127_v10 }
 0x3e0   : > { %v3961_v45 = vsel %vm3954_vm10, %v3957_v36, %v3960_v3  ;;  %v4184_v2 = vshrl.u32 %v4183_v55, 5  ;;  %v4186_v59 = vsub.s32 32, %v4185_v25  ;;  %v4278_v49 = vand.u32 2139095040, %v11270_v6 }
 0x3e1   : > { %v3962_v20 = vsel %vm3951_vm2, nan, %v3961_v45  ;;  %v4042_v4 = vor.u32 4788187, %v4041_v62  ;;  %v4045_v54 = vcvt.s32.f32 %v4038_v23  ;;  %v11284_v8 = vshrl.u32 %v4128_v14, 30 }
 0x3e2   : > { %6910 = vst [vmem:[%s8389_s16 + $0x118] sm:$0xff] %v3962_v20  ;;  %v4188_v18 = vshll.u32 %v7982_v24, %v4185_v25  ;;  %v4191_v41 = vshll.u32 %v7983_v26, %v4185_v25  ;;  %v4194_v42 = vshll.u32 %v7984_v28, %v4185_v25  ;;  %v4189_v0 = vshrl.u32 %v7983_v26, %v4186_v59 }
 0x3e3   : > { %v4043_v22 = vand.u32 2147483647, %v4042_v4  ;;  %v4130_v11 = vshll.u32 %v11284_v8, 30  ;;  %v4197_v40 = vshll.u32 %v7985_v30, %v4185_v25  ;;  %v4200_v27 = vshll.u32 %v7986_v32, %v4185_v25 }
 0x3e4   : > { %v4192_v63 = vshrl.u32 %v7984_v28, %v4186_v59  ;;  %v4195_v48 = vshrl.u32 %v7985_v30, %v4186_v59  ;;  %v4198_v17 = vshrl.u32 %v7986_v32, %v4186_v59  ;;  %v4056_v13 = vadd.s32 3, %v4052_v9 }
 0x3e5   : > { %v4046_v31 = vmul.f32 %v4045_v54, %v4043_v22  ;;  %v11298_v21 = vsub.s32 %v4127_v10, %v4130_v11  ;;  %v4201_v34 = vshrl.u32 %v7987_v39, %v4186_v59  ;;  %v11301_v53 = vshll.u32 %v4179_v5, 8 }
 0x3e6   : > { %v4190_v35 = vor.u32 %v4189_v0, %v4188_v18  ;;  %v4193_v60 = vor.u32 %v4192_v63, %v4191_v41  ;;  %v4279_v51 = vshrl.u32 %v4278_v49, 23  ;;  %v4187_v38 = vshrl.u32 %v7982_v24, %v4186_v59 }
 0x3e7   : > { %v4047_v61 = vxor.u32 2147483648, %v4046_v31  ;;  %v4133_v12 = vsub.s32 0, %v11298_v21  ;;  %v4199_v52 = vor.u32 %v4198_v17, %v4197_v40  ;;  %vm4203_vm5 = vcmp.lt.s32.totalorder %v4184_v2, 1 }
 0x3e8   : > { %v4196_v37 = vor.u32 %v4195_v48, %v4194_v42  ;;  %v4202_v44 = vor.u32 %v4201_v34, %v4200_v27  ;;  %vm4206_vm4 = vcmp.lt.s32.totalorder %v4184_v2, 4  ;;  %vm4204_vm6 = vcmp.lt.s32.totalorder %v4184_v2, 2 }
 0x3e9   : > { %v4048_v58 = vsel %vm3965_vm12, %v4047_v61, %v4046_v31  ;;  %v7198_v33 = vmin.u32 %v4133_v12, %v11298_v21  ;;  %vm4205_vm7 = vcmp.lt.s32.totalorder %v4184_v2, 3  ;;  %vm4069_vm9 = vcmp.lt.s32.totalorder %v11123_v15, 0 }
 0x3ea   : > { %v4051_v50 = vsel %vm11276_vm3, %v11056_v57, %v4048_v58  ;;  %v4208_v56 = vsel %vm4206_vm4, %v4196_v37, 2102212464  ;;  %v4211_v47 = vsel %vm4203_vm5, %v4190_v35, %v4193_v60  ;;  %v4212_v43 = vsel %vm4206_vm4, %v4199_v52, 920167782 }
 0x3eb   : > { %7771 = vcosq.f32 %v4051_v50  ;;  %v4135_v3 = vclz %v7198_v33  ;;  %v4275_v10 = vand.u32 2147483647, %v11270_v6  ;;  %v7205_v55 = vadd.s32 4294967169, %v4279_v51 }
 0x3ec   : > { %7773 = vsinq.f32 %v4051_v50  ;;  %v4207_v36 = vsel %vm4203_vm5, %v4187_v38, %v4190_v35  ;;  %v4209_v16 = vsel %vm4205_vm7, %v4193_v60, %v4208_v56  ;;  %v4213_v23 = vsel %vm4205_vm7, %v4196_v37, %v4212_v43 }
 0x3ed   : > { %v4215_v62 = vsel %vm4203_vm5, %v4193_v60, %v4196_v37  ;;  %vm11322_vm8 = vcmp.le.f32.partialorder %v4067_v19, 0.7853982  ;;  %v4123_v9 = vadd.s32 %v11241_v1, %v11249_v29  ;;  %v7199_v14 = vadd.s32 4294967294, %v4135_v3 }
 0x3ee   : > { %v4214_v25 = vsel %vm4204_vm6, %v4211_v47, %v4213_v23  ;;  %v4216_v20 = vsel %vm4206_vm4, %v4202_v44, 1326507024  ;;  %v4153_v4 = vsub.s32 4, %v11284_v8  ;;  %vm4055_vm11 = vweird.f32 %v11056_v57 }
 0x3ef   : > { %v4217_v54 = vsel %vm4205_vm7, %v4199_v52, %v4216_v20  ;;  %v11333_v5 = vmul.u32.u64.low %v11301_v53, %v4214_v25  ;;  %v11334_v59 = vmul.u32.u64.high %v11301_v53, %v4214_v25, %v11333_v5  ;;  %vm7200_vm10 = vcmp.lt.s32.totalorder %v7199_v14, 0 }
 0x3f0   : > { %v4210_v19 = vsel %vm4204_vm6, %v4207_v36, %v4209_v16  ;;  %v4218_v1 = vsel %vm4204_vm6, %v4215_v62, %v4217_v54  ;;  %v4285_v29 = vadd.s32 1, %v7205_v55  ;;  %v4057_v49 = vand.u32 3, %v4056_v13 }
 0x3f1   : > { %v4138_v22 = vsel %vm7200_vm10, 0, %v7199_v14  ;;  %v11341_v18 = vmul.u32.u64.low %v11301_v53, %v4218_v1  ;;  %v11342_v41 = vmul.u32.u64.high %v11301_v53, %v4218_v1, %v11341_v18  ;;  %v4226_v40 = vmul.u32 %v11301_v53, %v4210_v19 }
 0x3f2   : > { %v4139_v42 = vsub.s32 32, %v4138_v22  ;;  %v4140_v11 = vshll.u32 %v11298_v21, %v4138_v22  ;;  %v4143_v0 = vsub.s32 4294967266, %v4138_v22  ;;  %vm4286_vm12 = vcmp.gt.s32.totalorder %v4285_v29, 0 }
 0x3f3   : > { %v4229_v27 = vadd.s32 1, %v11334_v59  ;;  %v4282_v2 = vand.u32 8388607, %v4275_v10  ;;  %v4287_v31 = vsel %vm4286_vm12, %v4285_v29, 0  ;;  %v4154_v17 = vsel %vm4069_vm9, %v4153_v4, %v11284_v8 }
 0x3f4   : > { %v4141_v63 = vshrl.u32 %v4123_v9, %v4139_v42  ;;  %v4144_v48 = vadd.s32 127, %v4143_v0  ;;  %v4289_v13 = vand.u32 31, %v4287_v31  ;;  %vm4058_vm13 = vcmp.lt.s32.totalorder %v4057_v49, 2 }
 0x3f5   : > { %v7772_v34 = vpop.eup %7771  ;;  %vm4059_vm15 = vcmp.eq.s32.totalorder %v4057_v49, 0  ;;  %vm4062_vm14 = vcmp.eq.s32.totalorder %v4057_v49, 2  ;;  %vm4228_vm1 = vc.u32 %v11342_v41, %v11333_v5  ;;  %v4156_v12 = vsel %vm11322_vm8, 0, %v4154_v17 }
 0x3f6   : > { %v7774_v21 = vpop.eup %7773  ;;  %v4063_v53 = vxor.u32 2147483648, %v7772_v34  ;;  %v4142_v61 = vor.u32 %v4141_v63, %v4140_v11  ;;  %v4145_v35 = vshll.u32 %v4144_v48, 23  ;;  %v4230_v60 = vsel %vm4228_vm1, %v4229_v27, %v11334_v59 }
 0x3f7   : > { %v4060_v51 = vxor.u32 2147483648, %v7774_v21  ;;  %v4231_v38 = vadd.s32 %v4230_v60, %v4226_v40  ;;  %v4290_v8 = vsub.s32 32, %v4289_v13  ;;  %v4283_v44 = vor.u32 8388608, %v4282_v2 }
 0x3f8   : > { %v4064_v52 = vsel %vm4062_vm14, %v4063_v53, %v7774_v21  ;;  %v4146_v58 = vor.u32 4788187, %v4145_v35  ;;  %v4149_v37 = vcvt.s32.f32 %v4142_v61  ;;  %v4292_v56 = vshll.u32 %v7982_v24, %v4289_v13 }
 0x3f9   : > { %v4061_v50 = vsel %vm4059_vm15, %v7772_v34, %v4060_v51  ;;  %v4232_v33 = vadd.s32 536870912, %v4231_v38  ;;  %v4295_v47 = vshll.u32 %v7983_v26, %v4289_v13  ;;  %v4293_v55 = vshrl.u32 %v7983_v26, %v4290_v8 }
 0x3fa   : > { %v4065_v43 = vsel %vm4058_vm13, %v4061_v50, %v4064_v52  ;;  %v4147_v3 = vand.u32 2147483647, %v4146_v58  ;;  %v4296_v36 = vshrl.u32 %v7984_v28, %v4290_v8  ;;  %v4298_v62 = vshll.u32 %v7984_v28, %v4289_v13 }
 0x3fb   : > { %v4066_v16 = vsel %vm4055_vm11, nan, %v4065_v43  ;;  %v4233_v23 = vshrl.u32 %v4232_v33, 30  ;;  %v4299_v9 = vshrl.u32 %v7985_v30, %v4290_v8  ;;  %v4288_v25 = vshrl.u32 %v4287_v31, 5 }
 0x3fc   : > { %v4150_v14 = vmul.f32 %v4149_v37, %v4147_v3  ;;  %v4301_v20 = vshll.u32 %v7985_v30, %v4289_v13  ;;  %v4302_v4 = vshrl.u32 %v7986_v32, %v4290_v8  ;;  %6911 = vst [vmem:[%s8389_s16 + $0x120] sm:$0xff] %v4066_v16  ;;  %v4160_v54 = vadd.s32 3, %v4156_v12 }
 0x3fd   : > { %v4234_v59 = vshll.u32 %v4233_v23, 30  ;;  %v4304_v19 = vshll.u32 %v7986_v32, %v4289_v13  ;;  %v11371_v1 = vshll.u32 %v4283_v44, 8  ;;  %v4291_v29 = vshrl.u32 %v7982_v24, %v4290_v8  ;;  %v11387_v13 = vld [vmem:[%s8105_s3 + $0x140] sm:$0xff] }
 0x3fe   : > { %v4151_v57 = vxor.u32 2147483648, %v4150_v14  ;;  %v4303_v49 = vor.u32 %v4302_v4, %v4301_v20  ;;  %v4305_v22 = vshrl.u32 %v7987_v39, %v4290_v8  ;;  %v4294_v42 = vor.u32 %v4293_v55, %v4292_v56 }
 0x3ff   : > { %v11375_v18 = vsub.s32 %v4231_v38, %v4234_v59  ;;  %v4297_v11 = vor.u32 %v4296_v36, %v4295_v47  ;;  %v4300_v0 = vor.u32 %v4299_v9, %v4298_v62  ;;  %vm4307_vm0 = vcmp.lt.s32.totalorder %v4288_v25, 1 }
 0x400   : > { %v4152_v40 = vsel %vm4069_vm9, %v4151_v57, %v4150_v14  ;;  %v4306_v27 = vor.u32 %v4305_v22, %v4304_v19  ;;  %vm4310_vm2 = vcmp.lt.s32.totalorder %v4288_v25, 4  ;;  %vm4308_vm3 = vcmp.lt.s32.totalorder %v4288_v25, 2 }
 0x401   : > { %v4155_v2 = vsel %vm11322_vm8, %v11123_v15, %v4152_v40  ;;  %v4237_v31 = vsub.s32 0, %v11375_v18  ;;  %vm4309_vm5 = vcmp.lt.s32.totalorder %v4288_v25, 3  ;;  %v4311_v63 = vsel %vm4307_vm0, %v4291_v29, %v4294_v42 }
 0x402   : > { %7775 = vcosq.f32 %v4155_v2  ;;  %v4312_v48 = vsel %vm4310_vm2, %v4300_v0, 2102212464  ;;  %v4316_v17 = vsel %vm4310_vm2, %v4303_v49, 920167782  ;;  %v4315_v45 = vsel %vm4307_vm0, %v4294_v42, %v4297_v11 }
 0x403   : > { %7777 = vsinq.f32 %v4155_v2  ;;  %v7202_v34 = vmin.u32 %v4237_v31, %v11375_v18  ;;  %v4313_v21 = vsel %vm4309_vm5, %v4297_v11, %v4312_v48  ;;  %v4161_v53 = vand.u32 3, %v4160_v54 }
 0x404   : > { %v4317_v61 = vsel %vm4309_vm5, %v4300_v0, %v4316_v17  ;;  %v4319_v35 = vsel %vm4307_vm0, %v4297_v11, %v4300_v0  ;;  %v4320_v60 = vsel %vm4310_vm2, %v4306_v27, 1326507024  ;;  %vm11397_vm4 = vcmp.le.f32.partialorder %v4171_v46, 0.7853982 }
 0x405   : > { %vm4173_vm6 = vcmp.lt.s32.totalorder %v11217_v7, 0  ;;  %v4239_v12 = vclz %v7202_v34  ;;  %v4257_v38 = vsub.s32 4, %v4233_v23  ;;  %v4314_v8 = vsel %vm4308_vm3, %v4311_v63, %v4313_v21 }
 0x406   : > { %v4318_v52 = vsel %vm4308_vm3, %v4315_v45, %v4317_v61  ;;  %v4321_v58 = vsel %vm4309_vm5, %v4303_v49, %v4320_v60  ;;  %v4382_v37 = vand.u32 2139095040, %v11387_v13  ;;  %vm4159_vm7 = vweird.f32 %v11123_v15 }
 0x407   : > { %v7203_v44 = vadd.s32 4294967294, %v4239_v12  ;;  %v4322_v46 = vsel %vm4308_vm3, %v4319_v35, %v4321_v58  ;;  %v11409_v50 = vmul.u32.u64.low %v11371_v1, %v4318_v52  ;;  %v11410_v33 = vmul.u32.u64.high %v11371_v1, %v4318_v52, %v11409_v50  ;;  %v11439_v35 = vld [vmem:[%s8105_s3 + $0x148] sm:$0xff] }
 0x408   : > { %vm4162_vm9 = vcmp.lt.s32.totalorder %v4161_v53, 2  ;;  %v11414_v56 = vmul.u32.u64.low %v11371_v1, %v4322_v46  ;;  %v11415_v47 = vmul.u32.u64.high %v11371_v1, %v4322_v46, %v11414_v56  ;;  %v4383_v43 = vshrl.u32 %v4382_v37, 23 }
 0x409   : > { %vm4163_vm8 = vcmp.eq.s32.totalorder %v4161_v53, 0  ;;  %v4227_v3 = vadd.s32 %v11333_v5, %v11342_v41  ;;  %vm7204_vm11 = vcmp.lt.s32.totalorder %v7203_v44, 0  ;;  %v4258_v55 = vsel %vm4173_vm6, %v4257_v38, %v4233_v23 }
 0x40a   : > { %v4242_v36 = vsel %vm7204_vm11, 0, %v7203_v44  ;;  %v4330_v16 = vmul.u32 %v11371_v1, %v4314_v8  ;;  %v4379_v62 = vand.u32 2147483647, %v11387_v13  ;;  %v7209_v9 = vadd.s32 4294967169, %v4383_v43 }
 0x40b   : > { %v4243_v14 = vsub.s32 32, %v4242_v36  ;;  %v4244_v25 = vshll.u32 %v11375_v18, %v4242_v36  ;;  %v4247_v20 = vsub.s32 4294967266, %v4242_v36  ;;  %v4333_v4 = vadd.s32 1, %v11410_v33 }
 0x40c   : > { %v7776_v54 = vpop.eup %7775  ;;  %vm4166_vm10 = vcmp.eq.s32.totalorder %v4161_v53, 2  ;;  %v4260_v5 = vsel %vm11397_vm4, 0, %v4258_v55  ;;  %vm4332_vm12 = vc.u32 %v11415_v47, %v11409_v50  ;;  %v4389_v41 = vadd.s32 1, %v7209_v9 }
 0x40d   : > { %v7778_v23 = vpop.eup %7777  ;;  %v4167_v59 = vxor.u32 2147483648, %v7776_v54  ;;  %v4245_v19 = vshrl.u32 %v4227_v3, %v4243_v14  ;;  %v4248_v1 = vadd.s32 127, %v4247_v20  ;;  %v4334_v57 = vsel %vm4332_vm12, %v4333_v4, %v11410_v33 }
 0x40e   : > { %v4164_v29 = vxor.u32 2147483648, %v7778_v23  ;;  %v4335_v49 = vadd.s32 %v4334_v57, %v4330_v16  ;;  %v4386_v22 = vand.u32 8388607, %v4379_v62  ;;  %vm4390_vm13 = vcmp.gt.s32.totalorder %v4389_v41, 0 }
 0x40f   : > { %v4168_v18 = vsel %vm4166_vm10, %v4167_v59, %v7778_v23  ;;  %v4246_v42 = vor.u32 %v4245_v19, %v4244_v25  ;;  %v4249_v11 = vshll.u32 %v4248_v1, 23  ;;  %v4391_v0 = vsel %vm4390_vm13, %v4389_v41, 0 }
 0x410   : > { %v4165_v40 = vsel %vm4163_vm8, %v7776_v54, %v4164_v29  ;;  %v4336_v27 = vadd.s32 536870912, %v4335_v49  ;;  %v4393_v2 = vand.u32 31, %v4391_v0  ;;  %v4264_v17 = vadd.s32 3, %v4260_v5 }
 0x411   : > { %v4169_v31 = vsel %vm4162_vm9, %v4165_v40, %v4168_v18  ;;  %v4250_v63 = vor.u32 4788187, %v4249_v11  ;;  %v4253_v48 = vcvt.s32.f32 %v4246_v42  ;;  %v4387_v45 = vor.u32 8388608, %v4386_v22 }
 0x412   : > { %v4170_v34 = vsel %vm4159_vm7, nan, %v4169_v31  ;;  %v11436_v21 = vshrl.u32 %v4336_v27, 30  ;;  %v4394_v61 = vsub.s32 32, %v4393_v2  ;;  %v4392_v12 = vshrl.u32 %v4391_v0, 5 }
 0x413   : > { %v4251_v60 = vand.u32 2147483647, %v4250_v63  ;;  %v4396_v38 = vshll.u32 %v7982_v24, %v4393_v2  ;;  %v4399_v8 = vshll.u32 %v7983_v26, %v4393_v2  ;;  %6912 = vst [vmem:[%s8389_s16 + $0x128] sm:$0xff] %v4170_v34  ;;  %v4402_v15 = vshll.u32 %v7984_v28, %v4393_v2 }
 0x414   : > { %v4338_v53 = vshll.u32 %v11436_v21, 30  ;;  %v4397_v52 = vshrl.u32 %v7983_v26, %v4394_v61  ;;  %v4405_v58 = vshll.u32 %v7985_v30, %v4393_v2  ;;  %v4400_v44 = vshrl.u32 %v7984_v28, %v4394_v61 }
 0x415   : > { %v4254_v37 = vmul.f32 %v4253_v48, %v4251_v60  ;;  %v4403_v46 = vshrl.u32 %v7985_v30, %v4394_v61  ;;  %v4406_v33 = vshrl.u32 %v7986_v32, %v4394_v61  ;;  %v11451_v56 = vand.u32 3, %v4264_v17 }
 0x416   : > { %v11453_v43 = vsub.s32 %v4335_v49, %v4338_v53  ;;  %v4408_v3 = vshll.u32 %v7986_v32, %v4393_v2  ;;  %v4486_v55 = vand.u32 2139095040, %v11439_v35  ;;  %v4331_v16 = vadd.s32 %v11409_v50, %v11415_v47 }
 0x417   : > { %v4255_v36 = vxor.u32 2147483648, %v4254_v37  ;;  %v4395_v9 = vshrl.u32 %v7982_v24, %v4394_v61  ;;  %v11460_v14 = vshll.u32 %v4387_v45, 8  ;;  %v4398_v20 = vor.u32 %v4397_v52, %v4396_v38 }
 0x418   : > { %v4341_v25 = vsub.s32 0, %v11453_v43  ;;  %v4401_v4 = vor.u32 %v4400_v44, %v4399_v8  ;;  %v4409_v54 = vshrl.u32 %v7987_v39, %v4394_v61  ;;  %v4404_v41 = vor.u32 %v4403_v46, %v4402_v15 }
 0x419   : > { %v4256_v5 = vsel %vm4173_vm6, %v4255_v36, %v4254_v37  ;;  %v4407_v23 = vor.u32 %v4406_v33, %v4405_v58  ;;  %vm4411_vm15 = vcmp.lt.s32.totalorder %v4392_v12, 1  ;;  %v4487_v19 = vshrl.u32 %v4486_v55, 23 }
 0x41a   : > { %v4259_v50 = vsel %vm11397_vm4, %v11217_v7, %v4256_v5  ;;  %v7206_v47 = vmin.u32 %v4341_v25, %v11453_v43  ;;  %v4410_v59 = vor.u32 %v4409_v54, %v4408_v3  ;;  %vm4277_vm14 = vcmp.lt.s32.totalorder %v11270_v6, 0 }
 0x41b   : > { %7779 = vcosq.f32 %v4259_v50  ;;  %vm4412_vm1 = vcmp.lt.s32.totalorder %v4392_v12, 2  ;;  %vm4413_vm0 = vcmp.lt.s32.totalorder %v4392_v12, 3  ;;  %vm4414_vm2 = vcmp.lt.s32.totalorder %v4392_v12, 4 }
 0x41c   : > { %7781 = vsinq.f32 %v4259_v50  ;;  %v4343_v1 = vclz %v7206_v47  ;;  %v4415_v57 = vsel %vm4411_vm15, %v4395_v9, %v4398_v20  ;;  %v4419_v29 = vsel %vm4411_vm15, %v4398_v20, %v4401_v4 }
 0x41d   : > { %v4361_v49 = vsub.s32 4, %v11436_v21  ;;  %v4416_v51 = vsel %vm4414_vm2, %v4404_v41, 2102212464  ;;  %v4420_v22 = vsel %vm4414_vm2, %v4407_v23, 920167782  ;;  %v4423_v18 = vsel %vm4411_vm15, %v4401_v4, %v4404_v41 }
 0x41e   : > { %v7207_v42 = vadd.s32 4294967294, %v4343_v1  ;;  %v4417_v11 = vsel %vm4413_vm0, %v4401_v4, %v4416_v51  ;;  %v4421_v0 = vsel %vm4413_vm0, %v4404_v41, %v4420_v22  ;;  %v4424_v40 = vsel %vm4414_vm2, %v4410_v59, 1326507024 }
 0x41f   : > { %v4418_v27 = vsel %vm4412_vm1, %v4415_v57, %v4417_v11  ;;  %v4422_v2 = vsel %vm4412_vm1, %v4419_v29, %v4421_v0  ;;  %v4425_v31 = vsel %vm4413_vm0, %v4407_v23, %v4424_v40  ;;  %v7213_v63 = vadd.s32 4294967169, %v4487_v19 }
 0x420   : > { %vm7208_vm3 = vcmp.lt.s32.totalorder %v7207_v42, 0  ;;  %v4426_v48 = vsel %vm4412_vm1, %v4423_v18, %v4425_v31  ;;  %v11482_v17 = vmul.u32.u64.low %v11460_v14, %v4422_v2  ;;  %v11483_v34 = vmul.u32.u64.high %v11460_v14, %v4422_v2, %v11482_v17 }
 0x421   : > { %v4346_v45 = vsel %vm7208_vm3, 0, %v7207_v42  ;;  %v11487_v61 = vmul.u32.u64.low %v11460_v14, %v4426_v48  ;;  %v11488_v60 = vmul.u32.u64.high %v11460_v14, %v4426_v48, %v11487_v61  ;;  %v4483_v38 = vand.u32 2147483647, %v11439_v35 }
 0x422   : > { %vm11493_vm5 = vcmp.le.f32.partialorder %v4275_v10, 0.7853982  ;;  %v4347_v12 = vsub.s32 32, %v4346_v45  ;;  %v4348_v53 = vshll.u32 %v11453_v43, %v4346_v45  ;;  %v4351_v52 = vsub.s32 4294967266, %v4346_v45 }
 0x423   : > { %vm4266_vm4 = vcmp.lt.s32.totalorder %v11451_v56, 2  ;;  %vm4267_vm6 = vcmp.eq.s32.totalorder %v11451_v56, 0  ;;  %v4434_v15 = vmul.u32 %v11460_v14, %v4418_v27  ;;  %v4493_v58 = vadd.s32 1, %v7213_v63 }
 0x424   : > { %v4349_v37 = vshrl.u32 %v4331_v16, %v4347_v12  ;;  %v4352_v44 = vadd.s32 127, %v4351_v52  ;;  %v4362_v10 = vsel %vm4277_vm14, %v4361_v49, %v11436_v21  ;;  %v4437_v46 = vadd.s32 1, %v11483_v34 }
 0x425   : > { %v7780_v33 = vpop.eup %7779  ;;  %vm4270_vm7 = vcmp.eq.s32.totalorder %v11451_v56, 2  ;;  %vm4436_vm9 = vc.u32 %v11488_v60, %v11482_v17  ;;  %v4490_v43 = vand.u32 8388607, %v4483_v38  ;;  %vm4494_vm8 = vcmp.gt.s32.totalorder %v4493_v58, 0 }
 0x426   : > { %v7782_v3 = vpop.eup %7781  ;;  %v4271_v55 = vxor.u32 2147483648, %v7780_v33  ;;  %v4350_v36 = vor.u32 %v4349_v37, %v4348_v53  ;;  %v4353_v16 = vshll.u32 %v4352_v44, 23  ;;  %v4438_v9 = vsel %vm4436_vm9, %v4437_v46, %v11483_v34  ;;  %v11545_v44 = vld [vmem:[%s8105_s3 + $0x150] sm:$0xff] }
 0x427   : > { %v4268_v14 = vxor.u32 2147483648, %v7782_v3  ;;  %v4364_v21 = vsel %vm11493_vm5, 0, %v4362_v10  ;;  %v4439_v25 = vadd.s32 %v4438_v9, %v4434_v15  ;;  %v4495_v20 = vsel %vm4494_vm8, %v4493_v58, 0 }
 0x428   : > { %vm4263_vm11 = vweird.f32 %v11217_v7  ;;  %v4272_v4 = vsel %vm4270_vm7, %v4271_v55, %v7782_v3  ;;  %v4354_v54 = vor.u32 4788187, %v4353_v16  ;;  %v4357_v5 = vcvt.s32.f32 %v4350_v36 }
 0x429   : > { %v4269_v41 = vsel %vm4267_vm6, %v7780_v33, %v4268_v14  ;;  %v4440_v23 = vadd.s32 536870912, %v4439_v25  ;;  %v4497_v50 = vand.u32 31, %v4495_v20  ;;  %v4368_v19 = vadd.s32 3, %v4364_v21 }
 0x42a   : > { %v4273_v47 = vsel %vm4266_vm4, %v4269_v41, %v4272_v4  ;;  %v4355_v59 = vand.u32 2147483647, %v4354_v54  ;;  %v4491_v1 = vor.u32 8388608, %v4490_v43  ;;  %v4496_v49 = vshrl.u32 %v4495_v20, 5 }
 0x42b   : > { %v4274_v57 = vsel %vm4263_vm11, nan, %v4273_v47  ;;  %v11518_v29 = vshrl.u32 %v4440_v23, 30  ;;  %v4498_v7 = vsub.s32 32, %v4497_v50  ;;  %v4500_v22 = vshll.u32 %v7982_v24, %v4497_v50 }
 0x42c   : > { %v4358_v51 = vmul.f32 %v4357_v5, %v4355_v59  ;;  %v4503_v18 = vshll.u32 %v7983_v26, %v4497_v50  ;;  %6913 = vst [vmem:[%s8389_s16 + $0x130] sm:$0xff] %v4274_v57  ;;  %v4506_v56 = vshll.u32 %v7984_v28, %v4497_v50  ;;  %v4509_v0 = vshll.u32 %v7985_v30, %v4497_v50 }
 0x42d   : > { %v4442_v42 = vshll.u32 %v11518_v29, 30  ;;  %v4501_v11 = vshrl.u32 %v7983_v26, %v4498_v7  ;;  %v4504_v27 = vshrl.u32 %v7984_v28, %v4498_v7  ;;  %v4507_v2 = vshrl.u32 %v7985_v30, %v4498_v7 }
 0x42e   : > { %v4359_v40 = vxor.u32 2147483648, %v4358_v51  ;;  %v4510_v31 = vshrl.u32 %v7986_v32, %v4498_v7  ;;  %v11530_v63 = vand.u32 3, %v4368_v19  ;;  %vm4515_vm10 = vcmp.lt.s32.totalorder %v4496_v49, 1 }
 0x42f   : > { %v11532_v48 = vsub.s32 %v4439_v25, %v4442_v42  ;;  %v11534_v34 = vshll.u32 %v4491_v1, 8  ;;  %v4502_v61 = vor.u32 %v4501_v11, %v4500_v22  ;;  %v4505_v12 = vor.u32 %v4504_v27, %v4503_v18 }
 0x430   : > { %v4360_v45 = vsel %vm4277_vm14, %v4359_v40, %v4358_v51  ;;  %v4512_v53 = vshll.u32 %v7986_v32, %v4497_v50  ;;  %v4499_v58 = vshrl.u32 %v7982_v24, %v4498_v7  ;;  %v4511_v37 = vor.u32 %v4510_v31, %v4509_v0 }
 0x431   : > { %v4363_v52 = vsel %vm11493_vm5, %v11270_v6, %v4360_v45  ;;  %v4445_v15 = vsub.s32 0, %v11532_v48  ;;  %v4508_v10 = vor.u32 %v4507_v2, %v4506_v56  ;;  %v4513_v46 = vshrl.u32 %v7987_v39, %v4498_v7 }
 0x432   : > { %7783 = vcosq.f32 %v4363_v52  ;;  %vm4518_vm12 = vcmp.lt.s32.totalorder %v4496_v49, 4  ;;  %vm4516_vm13 = vcmp.lt.s32.totalorder %v4496_v49, 2  ;;  %vm4517_vm15 = vcmp.lt.s32.totalorder %v4496_v49, 3 }
 0x433   : > { %7785 = vsinq.f32 %v4363_v52  ;;  %v7210_v33 = vmin.u32 %v4445_v15, %v11532_v48  ;;  %v4514_v43 = vor.u32 %v4513_v46, %v4512_v53  ;;  %v4520_v8 = vsel %vm4518_vm12, %v4508_v10, 2102212464 }
 0x434   : > { %v4523_v3 = vsel %vm4515_vm10, %v4502_v61, %v4505_v12  ;;  %v4524_v55 = vsel %vm4518_vm12, %v4511_v37, 920167782  ;;  %v4435_v36 = vadd.s32 %v11482_v17, %v11488_v60  ;;  %v4519_v9 = vsel %vm4515_vm10, %v4499_v58, %v4502_v61 }
 0x435   : > { %v4447_v16 = vclz %v7210_v33  ;;  %v4590_v14 = vand.u32 2139095040, %v11545_v44  ;;  %v4521_v21 = vsel %vm4517_vm15, %v4505_v12, %v4520_v8  ;;  %v4525_v25 = vsel %vm4517_vm15, %v4508_v10, %v4524_v55 }
 0x436   : > { %v4527_v20 = vsel %vm4515_vm10, %v4505_v12, %v4508_v10  ;;  %v4528_v4 = vsel %vm4518_vm12, %v4514_v43, 1326507024  ;;  %vm4367_vm14 = vweird.f32 %v11270_v6  ;;  %v4465_v5 = vsub.s32 4, %v11518_v29 }
 0x437   : > { %v7211_v54 = vadd.s32 4294967294, %v4447_v16  ;;  %v4526_v17 = vsel %vm4516_vm13, %v4523_v3, %v4525_v25  ;;  %v4529_v60 = vsel %vm4517_vm15, %v4511_v37, %v4528_v4  ;;  %v4522_v41 = vsel %vm4516_vm13, %v4519_v9, %v4521_v21 }
 0x438   : > { %v4530_v23 = vsel %vm4516_vm13, %v4527_v20, %v4529_v60  ;;  %v11567_v50 = vmul.u32.u64.low %v11534_v34, %v4526_v17  ;;  %v11568_v47 = vmul.u32.u64.high %v11534_v34, %v4526_v17, %v11567_v50  ;;  %v4591_v1 = vshrl.u32 %v4590_v14, 23  ;;  %v11612_v20 = vld [vmem:[%s8105_s3 + $0x158] sm:$0xff] }
 0x439   : > { %vm7212_vm1 = vcmp.lt.s32.totalorder %v7211_v54, 0  ;;  %v11572_v59 = vmul.u32.u64.low %v11534_v34, %v4530_v23  ;;  %v11573_v19 = vmul.u32.u64.high %v11534_v34, %v4530_v23, %v11572_v59  ;;  %vm4370_vm0 = vcmp.lt.s32.totalorder %v11530_v63, 2 }
 0x43a   : > { %vm11578_vm2 = vcmp.le.f32.partialorder %v4379_v62, 0.7853982  ;;  %vm4381_vm3 = vcmp.lt.s32.totalorder %v11387_v13, 0  ;;  %v4450_v49 = vsel %vm7212_vm1, 0, %v7211_v54  ;;  %v7217_v18 = vadd.s32 4294967169, %v4591_v1 }
 0x43b   : > { %v4451_v7 = vsub.s32 32, %v4450_v49  ;;  %v4452_v51 = vshll.u32 %v11532_v48, %v4450_v49  ;;  %v4455_v22 = vsub.s32 4294967266, %v4450_v49  ;;  %vm4371_vm5 = vcmp.eq.s32.totalorder %v11530_v63, 0 }
 0x43c   : > { %v7784_v42 = vpop.eup %7783  ;;  %vm4374_vm4 = vcmp.eq.s32.totalorder %v11530_v63, 2  ;;  %v4538_v11 = vmul.u32 %v11534_v34, %v4522_v41  ;;  %v4541_v62 = vadd.s32 1, %v11568_v47  ;;  %v4466_v2 = vsel %vm4381_vm3, %v4465_v5, %v11518_v29 }
 0x43d   : > { %v7786_v56 = vpop.eup %7785  ;;  %v4375_v0 = vxor.u32 2147483648, %v7784_v42  ;;  %v4453_v40 = vshrl.u32 %v4435_v36, %v4451_v7  ;;  %v4456_v27 = vadd.s32 127, %v4455_v22  ;;  %vm4540_vm6 = vc.u32 %v11573_v19, %v11567_v50 }
 0x43e   : > { %v4372_v31 = vxor.u32 2147483648, %v7786_v56  ;;  %v4587_v48 = vand.u32 2147483647, %v11545_v44  ;;  %v4597_v45 = vadd.s32 1, %v7217_v18  ;;  %v4542_v53 = vsel %vm4540_vm6, %v4541_v62, %v11568_v47 }
 0x43f   : > { %v4376_v61 = vsel %vm4374_vm4, %v4375_v0, %v7786_v56  ;;  %v4454_v12 = vor.u32 %v4453_v40, %v4452_v51  ;;  %v4457_v34 = vshll.u32 %v4456_v27, 23  ;;  %v4468_v15 = vsel %vm11578_vm2, 0, %v4466_v2 }
 0x440   : > { %v4373_v52 = vsel %vm4371_vm5, %v7784_v42, %v4372_v31  ;;  %v4543_v29 = vadd.s32 %v4542_v53, %v4538_v11  ;;  %vm4598_vm7 = vcmp.gt.s32.totalorder %v4597_v45, 0  ;;  %v4472_v55 = vadd.s32 3, %v4468_v15 }
 0x441   : > { %v4377_v58 = vsel %vm4370_vm0, %v4373_v52, %v4376_v61  ;;  %v4458_v37 = vor.u32 4788187, %v4457_v34  ;;  %v4461_v10 = vcvt.s32.f32 %v4454_v12  ;;  %v4599_v46 = vsel %vm4598_vm7, %v4597_v45, 0 }
 0x442   : > { %v4378_v33 = vsel %vm4367_vm14, nan, %v4377_v58  ;;  %v4544_v43 = vadd.s32 536870912, %v4543_v29  ;;  %v4601_v8 = vand.u32 31, %v4599_v46  ;;  %v4594_v16 = vand.u32 8388607, %v4587_v48 }
 0x443   : > { %v4459_v3 = vand.u32 2147483647, %v4458_v37  ;;  %6914 = vst [vmem:[%s8389_s16 + $0x138] sm:$0xff] %v4378_v33  ;;  %v11606_v9 = vshrl.u32 %v4599_v46, 5  ;;  %v11620_v59 = vand.u32 3, %v4472_v55  ;;  %vm4485_vm9 = vcmp.lt.s32.totalorder %v11439_v35, 0 }
 0x444   : > { %v4545_v36 = vshrl.u32 %v4544_v43, 30  ;;  %v4602_v63 = vsub.s32 32, %v4601_v8  ;;  %v4604_v21 = vshll.u32 %v7982_v24, %v4601_v8  ;;  %v4607_v25 = vshll.u32 %v7983_v26, %v4601_v8 }
 0x445   : > { %v4462_v14 = vmul.f32 %v4461_v10, %v4459_v3  ;;  %v4610_v6 = vshll.u32 %v7984_v28, %v4601_v8  ;;  %v4613_v5 = vshll.u32 %v7985_v30, %v4601_v8  ;;  %v4616_v17 = vshll.u32 %v7986_v32, %v4601_v8 }
 0x446   : > { %v4546_v4 = vshll.u32 %v4545_v36, 30  ;;  %v4605_v54 = vshrl.u32 %v7983_v26, %v4602_v63  ;;  %v4608_v41 = vshrl.u32 %v7984_v28, %v4602_v63  ;;  %v4611_v23 = vshrl.u32 %v7985_v30, %v4602_v63 }
 0x447   : > { %v4463_v60 = vxor.u32 2147483648, %v4462_v14  ;;  %v4614_v47 = vshrl.u32 %v7986_v32, %v4602_v63  ;;  %v4595_v49 = vor.u32 8388608, %v4594_v16  ;;  %v4617_v7 = vshrl.u32 %v7987_v39, %v4602_v63 }
 0x448   : > { %v11622_v1 = vsub.s32 %v4543_v29, %v4546_v4  ;;  %v4603_v22 = vshrl.u32 %v7982_v24, %v4602_v63  ;;  %v4606_v18 = vor.u32 %v4605_v54, %v4604_v21  ;;  %v4694_v42 = vand.u32 2139095040, %v11612_v20 }
 0x449   : > { %v4464_v51 = vsel %vm4381_vm3, %v4463_v60, %v4462_v14  ;;  %v4609_v56 = vor.u32 %v4608_v41, %v4607_v25  ;;  %v4612_v0 = vor.u32 %v4611_v23, %v4610_v6  ;;  %v4615_v40 = vor.u32 %v4614_v47, %v4613_v5 }
 0x44a   : > { %v4467_v11 = vsel %vm11578_vm2, %v11387_v13, %v4464_v51  ;;  %v4549_v62 = vsub.s32 0, %v11622_v1  ;;  %v4618_v27 = vor.u32 %v4617_v7, %v4616_v17  ;;  %vm4619_vm8 = vcmp.lt.s32.totalorder %v11606_v9, 1 }
 0x44b   : > { %7787 = vcosq.f32 %v4467_v11  ;;  %vm11637_vm11 = vcmp.le.f32.partialorder %v4483_v38, 0.7853982  ;;  %v4635_v57 = vshll.u32 %v4595_v49, 8  ;;  %v4569_v45 = vsub.s32 4, %v4545_v36 }
 0x44c   : > { %7789 = vsinq.f32 %v4467_v11  ;;  %v7214_v31 = vmin.u32 %v4549_v62, %v11622_v1  ;;  %vm4621_vm10 = vcmp.lt.s32.totalorder %v11606_v9, 3  ;;  %vm4622_vm12 = vcmp.lt.s32.totalorder %v11606_v9, 4 }
 0x44d   : > { %v4695_v61 = vshrl.u32 %v4694_v42, 23  ;;  %vm4620_vm13 = vcmp.lt.s32.totalorder %v11606_v9, 2  ;;  %v4627_v34 = vsel %vm4619_vm8, %v4606_v18, %v4609_v56  ;;  %v4631_v53 = vsel %vm4619_vm8, %v4609_v56, %v4612_v0 }
 0x44e   : > { %v4551_v12 = vclz %v7214_v31  ;;  %vm4474_vm15 = vcmp.lt.s32.totalorder %v11620_v59, 2  ;;  %v4623_v38 = vsel %vm4619_vm8, %v4603_v22, %v4606_v18  ;;  %v4624_v52 = vsel %vm4622_vm12, %v4612_v0, 2102212464 }
 0x44f   : > { %v4628_v15 = vsel %vm4622_vm12, %v4615_v40, 920167782  ;;  %v4632_v29 = vsel %vm4622_vm12, %v4618_v27, 1326507024  ;;  %vm4471_vm14 = vweird.f32 %v11387_v13  ;;  %v4625_v37 = vsel %vm4621_vm10, %v4609_v56, %v4624_v52 }
 0x450   : > { %v7215_v58 = vadd.s32 4294967294, %v4551_v12  ;;  %v4629_v10 = vsel %vm4621_vm10, %v4612_v0, %v4628_v15  ;;  %v4633_v46 = vsel %vm4621_vm10, %v4615_v40, %v4632_v29  ;;  %v4539_v33 = vadd.s32 %v11567_v50, %v11573_v19 }
 0x451   : > { %v4630_v43 = vsel %vm4620_vm13, %v4627_v34, %v4629_v10  ;;  %v4634_v8 = vsel %vm4620_vm13, %v4631_v53, %v4633_v46  ;;  %v7221_v3 = vadd.s32 4294967169, %v4695_v61  ;;  %v4570_v55 = vsel %vm4485_vm9, %v4569_v45, %v4545_v36 }
 0x452   : > { %vm7216_vm1 = vcmp.lt.s32.totalorder %v7215_v58, 0  ;;  %v11661_v16 = vmul.u32.u64.low %v4635_v57, %v4634_v8  ;;  %v11662_v63 = vmul.u32.u64.high %v4635_v57, %v4634_v8, %v11661_v16  ;;  %v4626_v21 = vsel %vm4620_vm13, %v4623_v38, %v4625_v37 }
 0x453   : > { %v4554_v14 = vsel %vm7216_vm1, 0, %v7215_v58  ;;  %v11666_v25 = vmul.u32.u64.low %v4635_v57, %v4630_v43  ;;  %v11667_v50 = vmul.u32.u64.high %v4635_v57, %v4630_v43, %v11666_v25  ;;  %v4701_v54 = vadd.s32 1, %v7221_v3 }
 0x454   : > { %v4555_v19 = vsub.s32 32, %v4554_v14  ;;  %v4556_v6 = vshll.u32 %v11622_v1, %v4554_v14  ;;  %v4559_v4 = vsub.s32 4294967266, %v4554_v14  ;;  %vm4475_vm0 = vcmp.eq.s32.totalorder %v11620_v59, 0 }
 0x455   : > { %v7788_v5 = vpop.eup %7787  ;;  %vm4478_vm2 = vcmp.eq.s32.totalorder %v11620_v59, 2  ;;  %v4572_v36 = vsel %vm11637_vm11, 0, %v4570_v55  ;;  %v4691_v9 = vand.u32 2147483647, %v11612_v20  ;;  %v4642_v47 = vmul.u32 %v4635_v57, %v4626_v21 }
 0x456   : > { %v7790_v17 = vpop.eup %7789  ;;  %v4479_v60 = vxor.u32 2147483648, %v7788_v5  ;;  %v4557_v41 = vshrl.u32 %v4539_v33, %v4555_v19  ;;  %v4560_v23 = vadd.s32 127, %v4559_v4  ;;  %vm4644_vm3 = vc.u32 %v11662_v63, %v11666_v25  ;;  %v11706_v4 = vld [vmem:[%s8105_s3 + $0x160] sm:$0xff] }
 0x457   : > { %v4476_v49 = vxor.u32 2147483648, %v7790_v17  ;;  %v4645_v1 = vadd.s32 1, %v11667_v50  ;;  %vm4702_vm5 = vcmp.gt.s32.totalorder %v4701_v54, 0  ;;  %v4698_v62 = vand.u32 8388607, %v4691_v9 }
 0x458   : > { %v4480_v7 = vsel %vm4478_vm2, %v4479_v60, %v7790_v17  ;;  %v4558_v51 = vor.u32 %v4557_v41, %v4556_v6  ;;  %v4561_v22 = vshll.u32 %v4560_v23, 23  ;;  %v4703_v18 = vsel %vm4702_vm5, %v4701_v54, 0 }
 0x459   : > { %v4477_v42 = vsel %vm4475_vm0, %v7788_v5, %v4476_v49  ;;  %v4646_v11 = vsel %vm4644_vm3, %v4645_v1, %v11667_v50  ;;  %v4705_v56 = vand.u32 31, %v4703_v18  ;;  %v4576_v45 = vadd.s32 3, %v4572_v36 }
 0x45a   : > { %v4481_v0 = vsel %vm4474_vm15, %v4477_v42, %v4480_v7  ;;  %v4562_v40 = vor.u32 4788187, %v4561_v22  ;;  %v4565_v27 = vcvt.s32.f32 %v4558_v51  ;;  %v4647_v31 = vadd.s32 %v4646_v11, %v4642_v47 }
 0x45b   : > { %v4482_v57 = vsel %vm4471_vm14, nan, %v4481_v0  ;;  %v4706_v61 = vsub.s32 32, %v4705_v56  ;;  %v4708_v12 = vshll.u32 %v7982_v24, %v4705_v56  ;;  %v4711_v38 = vshll.u32 %v7983_v26, %v4705_v56 }
 0x45c   : > { %v4563_v34 = vand.u32 2147483647, %v4562_v40  ;;  %v4648_v53 = vadd.s32 536870912, %v4647_v31  ;;  %v4714_v52 = vshll.u32 %v7984_v28, %v4705_v56  ;;  %6915 = vst [vmem:[%s8389_s16 + $0x140] sm:$0xff] %v4482_v57  ;;  %v4717_v13 = vshll.u32 %v7985_v30, %v4705_v56 }
 0x45d   : > { %v4709_v59 = vshrl.u32 %v7983_v26, %v4706_v61  ;;  %v4712_v15 = vshrl.u32 %v7984_v28, %v4706_v61  ;;  %v4715_v29 = vshrl.u32 %v7985_v30, %v4706_v61  ;;  %v4704_v10 = vshrl.u32 %v4703_v18, 5 }
 0x45e   : > { %v4566_v58 = vmul.f32 %v4565_v27, %v4563_v34  ;;  %v11696_v37 = vshrl.u32 %v4648_v53, 30  ;;  %v4718_v46 = vshrl.u32 %v7986_v32, %v4706_v61  ;;  %v4699_v33 = vor.u32 8388608, %v4698_v62 }
 0x45f   : > { %v4720_v43 = vshll.u32 %v7986_v32, %v4705_v56  ;;  %v4721_v8 = vshrl.u32 %v7987_v39, %v4706_v61  ;;  %v11701_v55 = vand.u32 3, %v4576_v45  ;;  %v4707_v14 = vshrl.u32 %v7982_v24, %v4706_v61 }
 0x460   : > { %v4567_v3 = vxor.u32 2147483648, %v4566_v58  ;;  %v4650_v16 = vshll.u32 %v11696_v37, 30  ;;  %v4710_v21 = vor.u32 %v4709_v59, %v4708_v12  ;;  %v4713_v50 = vor.u32 %v4712_v15, %v4711_v38 }
 0x461   : > { %v4716_v19 = vor.u32 %v4715_v29, %v4714_v52  ;;  %v4719_v6 = vor.u32 %v4718_v46, %v4717_v13  ;;  %vm4723_vm4 = vcmp.lt.s32.totalorder %v4704_v10, 1  ;;  %vm4726_vm6 = vcmp.lt.s32.totalorder %v4704_v10, 4 }
 0x462   : > { %v4568_v54 = vsel %vm4485_vm9, %v4567_v3, %v4566_v58  ;;  %v11710_v5 = vsub.s32 %v4647_v31, %v4650_v16  ;;  %v4722_v17 = vor.u32 %v4721_v8, %v4720_v43  ;;  %vm4725_vm7 = vcmp.lt.s32.totalorder %v4704_v10, 3 }
 0x463   : > { %v4571_v36 = vsel %vm11637_vm11, %v11439_v35, %v4568_v54  ;;  %v4739_v60 = vshll.u32 %v4699_v33, 8  ;;  %vm4724_vm8 = vcmp.lt.s32.totalorder %v4704_v10, 2  ;;  %v4728_v23 = vsel %vm4726_vm6, %v4716_v19, 2102212464 }
 0x464   : > { %7791 = vcosq.f32 %v4571_v36  ;;  %v4653_v41 = vsub.s32 0, %v11710_v5  ;;  %v4731_v47 = vsel %vm4723_vm4, %v4710_v21, %v4713_v50  ;;  %v4732_v49 = vsel %vm4726_vm6, %v4719_v6, 920167782 }
 0x465   : > { %7793 = vsinq.f32 %v4571_v36  ;;  %v4798_v1 = vand.u32 2139095040, %v11706_v4  ;;  %v4727_v2 = vsel %vm4723_vm4, %v4707_v14, %v4710_v21  ;;  %v4733_v51 = vsel %vm4725_vm7, %v4716_v19, %v4732_v49 }
 0x466   : > { %v7218_v7 = vmin.u32 %v4653_v41, %v11710_v5  ;;  %v4729_v22 = vsel %vm4725_vm7, %v4713_v50, %v4728_v23  ;;  %v4734_v18 = vsel %vm4724_vm8, %v4731_v47, %v4733_v51  ;;  %v4735_v42 = vsel %vm4723_vm4, %v4713_v50, %v4716_v19 }
 0x467   : > { %v4736_v11 = vsel %vm4726_vm6, %v4722_v17, 1326507024  ;;  %vm4578_vm9 = vcmp.lt.s32.totalorder %v11701_v55, 2  ;;  %vm4589_vm11 = vcmp.lt.s32.totalorder %v11545_v44, 0  ;;  %v4799_v27 = vshrl.u32 %v4798_v1, 23 }
 0x468   : > { %v4655_v62 = vclz %v7218_v7  ;;  %v4737_v56 = vsel %vm4725_vm7, %v4719_v6, %v4736_v11  ;;  %v11730_v0 = vmul.u32.u64.low %v4739_v60, %v4734_v18  ;;  %v11731_v40 = vmul.u32.u64.high %v4739_v60, %v4734_v18, %v11730_v0  ;;  %v11759_v6 = vld [vmem:[%s8105_s3 + $0x168] sm:$0xff] }
 0x469   : > { %v4673_v57 = vsub.s32 4, %v11696_v37  ;;  %v4730_v45 = vsel %vm4724_vm8, %v4727_v2, %v4729_v22  ;;  %v4738_v61 = vsel %vm4724_vm8, %v4735_v42, %v4737_v56  ;;  %v4795_v53 = vand.u32 2147483647, %v11706_v4 }
 0x46a   : > { %v7219_v31 = vadd.s32 4294967294, %v4655_v62  ;;  %v11737_v12 = vmul.u32.u64.low %v4739_v60, %v4738_v61  ;;  %v11738_v34 = vmul.u32.u64.high %v4739_v60, %v4738_v61, %v11737_v12  ;;  %v7225_v38 = vadd.s32 4294967169, %v4799_v27 }
 0x46b   : > { %vm4579_vm10 = vcmp.eq.s32.totalorder %v11701_v55, 0  ;;  %vm4582_vm12 = vcmp.eq.s32.totalorder %v11701_v55, 2  ;;  %v4643_v52 = vadd.s32 %v11666_v25, %v11662_v63  ;;  %v4746_v15 = vmul.u32 %v4739_v60, %v4730_v45 }
 0x46c   : > { %vm7220_vm13 = vcmp.lt.s32.totalorder %v7219_v31, 0  ;;  %v4749_v29 = vadd.s32 1, %v11731_v40  ;;  %v4805_v13 = vadd.s32 1, %v7225_v38  ;;  %v4674_v43 = vsel %vm4589_vm11, %v4673_v57, %v11696_v37 }
 0x46d   : > { %v4658_v59 = vsel %vm7220_vm13, 0, %v7219_v31  ;;  %vm4748_vm15 = vc.u32 %v11738_v34, %v11730_v0  ;;  %v4802_v63 = vand.u32 8388607, %v4795_v53  ;;  %vm4575_vm1 = vweird.f32 %v11439_v35 }
 0x46e   : > { %v7792_v58 = vpop.eup %7791  ;;  %v4659_v10 = vsub.s32 32, %v4658_v59  ;;  %v4660_v46 = vshll.u32 %v11710_v5, %v4658_v59  ;;  %v4663_v33 = vsub.s32 4294967266, %v4658_v59  ;;  %vm4806_vm14 = vcmp.gt.s32.totalorder %v4805_v13, 0 }
 0x46f   : > { %v7794_v8 = vpop.eup %7793  ;;  %v4583_v3 = vxor.u32 2147483648, %v7792_v58  ;;  %v4750_v21 = vsel %vm4748_vm15, %v4749_v29, %v11731_v40  ;;  %v4807_v19 = vsel %vm4806_vm14, %v4805_v13, 0  ;;  %vm11765_vm0 = vcmp.le.f32.partialorder %v4587_v48, 0.7853982 }
 0x470   : > { %v4580_v25 = vxor.u32 2147483648, %v7794_v8  ;;  %v4661_v16 = vshrl.u32 %v4643_v52, %v4659_v10  ;;  %v4664_v14 = vadd.s32 127, %v4663_v33  ;;  %v4751_v37 = vadd.s32 %v4750_v21, %v4746_v15 }
 0x471   : > { %v4584_v50 = vsel %vm4582_vm12, %v4583_v3, %v7794_v8  ;;  %v4676_v60 = vsel %vm11765_vm0, 0, %v4674_v43  ;;  %v4809_v23 = vand.u32 31, %v4807_v19  ;;  %v4803_v7 = vor.u32 8388608, %v4802_v63 }
 0x472   : > { %v4581_v54 = vsel %vm4579_vm10, %v7792_v58, %v4580_v25  ;;  %v4662_v36 = vor.u32 %v4661_v16, %v4660_v46  ;;  %v4665_v17 = vshll.u32 %v4664_v14, 23  ;;  %v4752_v41 = vadd.s32 536870912, %v4751_v37 }
 0x473   : > { %v4585_v35 = vsel %vm4578_vm9, %v4581_v54, %v4584_v50  ;;  %v4808_v48 = vshrl.u32 %v4807_v19, 5  ;;  %v4810_v51 = vsub.s32 32, %v4809_v23  ;;  %v4902_v22 = vand.u32 2139095040, %v11759_v6 }
 0x474   : > { %v4586_v47 = vsel %vm4575_vm1, nan, %v4585_v35  ;;  %v4666_v49 = vor.u32 4788187, %v4665_v17  ;;  %v4669_v1 = vcvt.s32.f32 %v4662_v36  ;;  %v11773_v2 = vshrl.u32 %v4752_v41, 30 }
 0x475   : > { %6916 = vst [vmem:[%s8389_s16 + $0x148] sm:$0xff] %v4586_v47  ;;  %v4812_v55 = vshll.u32 %v7982_v24, %v4809_v23  ;;  %v4815_v42 = vshll.u32 %v7983_v26, %v4809_v23  ;;  %v4818_v11 = vshll.u32 %v7984_v28, %v4809_v23  ;;  %v4813_v56 = vshrl.u32 %v7983_v26, %v4810_v51 }
 0x476   : > { %v4667_v18 = vand.u32 2147483647, %v4666_v49  ;;  %v4754_v62 = vshll.u32 %v11773_v2, 30  ;;  %v4821_v40 = vshll.u32 %v7985_v30, %v4809_v23  ;;  %v4824_v27 = vshll.u32 %v7986_v32, %v4809_v23 }
 0x477   : > { %v4816_v57 = vshrl.u32 %v7984_v28, %v4810_v51  ;;  %v4819_v45 = vshrl.u32 %v7985_v30, %v4810_v51  ;;  %v4822_v61 = vshrl.u32 %v7986_v32, %v4810_v51  ;;  %v4680_v12 = vadd.s32 3, %v4676_v60 }
 0x478   : > { %v4670_v31 = vmul.f32 %v4669_v1, %v4667_v18  ;;  %v11787_v38 = vsub.s32 %v4751_v37, %v4754_v62  ;;  %v4825_v52 = vshrl.u32 %v7987_v39, %v4810_v51  ;;  %v11790_v59 = vshll.u32 %v4803_v7, 8 }
 0x479   : > { %v4814_v29 = vor.u32 %v4813_v56, %v4812_v55  ;;  %v4817_v13 = vor.u32 %v4816_v57, %v4815_v42  ;;  %v4903_v58 = vshrl.u32 %v4902_v22, 23  ;;  %v4811_v46 = vshrl.u32 %v7982_v24, %v4810_v51 }
 0x47a   : > { %v4671_v15 = vxor.u32 2147483648, %v4670_v31  ;;  %v4757_v10 = vsub.s32 0, %v11787_v38  ;;  %v4823_v33 = vor.u32 %v4822_v61, %v4821_v40  ;;  %vm4827_vm2 = vcmp.lt.s32.totalorder %v4808_v48, 1 }
 0x47b   : > { %v4820_v8 = vor.u32 %v4819_v45, %v4818_v11  ;;  %v4826_v3 = vor.u32 %v4825_v52, %v4824_v27  ;;  %vm4830_vm3 = vcmp.lt.s32.totalorder %v4808_v48, 4  ;;  %vm4828_vm5 = vcmp.lt.s32.totalorder %v4808_v48, 2 }
 0x47c   : > { %v4672_v43 = vsel %vm4589_vm11, %v4671_v15, %v4670_v31  ;;  %v7222_v25 = vmin.u32 %v4757_v10, %v11787_v38  ;;  %vm4829_vm4 = vcmp.lt.s32.totalorder %v4808_v48, 3  ;;  %vm4693_vm6 = vcmp.lt.s32.totalorder %v11612_v20, 0 }
 0x47d   : > { %v4675_v63 = vsel %vm11765_vm0, %v11545_v44, %v4672_v43  ;;  %v4832_v16 = vsel %vm4830_vm3, %v4820_v8, 2102212464  ;;  %v4835_v14 = vsel %vm4827_vm2, %v4814_v29, %v4817_v13  ;;  %v4836_v21 = vsel %vm4830_vm3, %v4823_v33, 920167782 }
 0x47e   : > { %7795 = vcosq.f32 %v4675_v63  ;;  %v4759_v50 = vclz %v7222_v25  ;;  %v4899_v37 = vand.u32 2147483647, %v11759_v6  ;;  %v7229_v19 = vadd.s32 4294967169, %v4903_v58 }
 0x47f   : > { %7797 = vsinq.f32 %v4675_v63  ;;  %v4831_v54 = vsel %vm4827_vm2, %v4811_v46, %v4814_v29  ;;  %v4833_v5 = vsel %vm4829_vm4, %v4817_v13, %v4832_v16  ;;  %v4837_v36 = vsel %vm4829_vm4, %v4820_v8, %v4836_v21 }
 0x480   : > { %v4839_v17 = vsel %vm4827_vm2, %v4817_v13, %v4820_v8  ;;  %vm11811_vm7 = vcmp.le.f32.partialorder %v4691_v9, 0.7853982  ;;  %v4747_v60 = vadd.s32 %v11730_v0, %v11738_v34  ;;  %v7223_v41 = vadd.s32 4294967294, %v4759_v50 }
 0x481   : > { %v4838_v23 = vsel %vm4828_vm5, %v4835_v14, %v4837_v36  ;;  %v4840_v47 = vsel %vm4830_vm3, %v4826_v3, 1326507024  ;;  %v4777_v49 = vsub.s32 4, %v11773_v2  ;;  %vm4679_vm8 = vweird.f32 %v11545_v44 }
 0x482   : > { %v4841_v1 = vsel %vm4829_vm4, %v4823_v33, %v4840_v47  ;;  %v11822_v7 = vmul.u32.u64.low %v11790_v59, %v4838_v23  ;;  %v11823_v51 = vmul.u32.u64.high %v11790_v59, %v4838_v23, %v11822_v7  ;;  %vm7224_vm9 = vcmp.lt.s32.totalorder %v7223_v41, 0 }
 0x483   : > { %v4834_v9 = vsel %vm4828_vm5, %v4831_v54, %v4833_v5  ;;  %v4842_v0 = vsel %vm4828_vm5, %v4839_v17, %v4841_v1  ;;  %v4909_v34 = vadd.s32 1, %v7229_v19  ;;  %v4681_v22 = vand.u32 3, %v4680_v12 }
 0x484   : > { %v4762_v18 = vsel %vm7224_vm9, 0, %v7223_v41  ;;  %v11830_v55 = vmul.u32.u64.low %v11790_v59, %v4842_v0  ;;  %v11831_v42 = vmul.u32.u64.high %v11790_v59, %v4842_v0, %v11830_v55  ;;  %v4850_v40 = vmul.u32 %v11790_v59, %v4834_v9 }
 0x485   : > { %v4763_v11 = vsub.s32 32, %v4762_v18  ;;  %v4764_v62 = vshll.u32 %v11787_v38, %v4762_v18  ;;  %v4767_v56 = vsub.s32 4294967266, %v4762_v18  ;;  %vm4910_vm11 = vcmp.gt.s32.totalorder %v4909_v34, 0 }
 0x486   : > { %v4853_v27 = vadd.s32 1, %v11823_v51  ;;  %v4906_v48 = vand.u32 8388607, %v4899_v37  ;;  %v4911_v31 = vsel %vm4910_vm11, %v4909_v34, 0  ;;  %v4778_v61 = vsel %vm4693_vm6, %v4777_v49, %v11773_v2 }
 0x487   : > { %v4765_v57 = vshrl.u32 %v4747_v60, %v4763_v11  ;;  %v4768_v45 = vadd.s32 127, %v4767_v56  ;;  %v4913_v12 = vand.u32 31, %v4911_v31  ;;  %vm4682_vm10 = vcmp.lt.s32.totalorder %v4681_v22, 2 }
 0x488   : > { %v7796_v52 = vpop.eup %7795  ;;  %vm4683_vm12 = vcmp.eq.s32.totalorder %v4681_v22, 0  ;;  %vm4686_vm13 = vcmp.eq.s32.totalorder %v4681_v22, 2  ;;  %vm4852_vm15 = vc.u32 %v11831_v42, %v11822_v7  ;;  %v4780_v10 = vsel %vm11811_vm7, 0, %v4778_v61 }
 0x489   : > { %v7798_v38 = vpop.eup %7797  ;;  %v4687_v59 = vxor.u32 2147483648, %v7796_v52  ;;  %v4766_v15 = vor.u32 %v4765_v57, %v4764_v62  ;;  %v4769_v29 = vshll.u32 %v4768_v45, 23  ;;  %v4854_v13 = vsel %vm4852_vm15, %v4853_v27, %v11823_v51 }
 0x48a   : > { %v4684_v58 = vxor.u32 2147483648, %v7798_v38  ;;  %v4855_v46 = vadd.s32 %v4854_v13, %v4850_v40  ;;  %v4914_v2 = vsub.s32 32, %v4913_v12  ;;  %v4907_v3 = vor.u32 8388608, %v4906_v48 }
 0x48b   : > { %v4688_v33 = vsel %vm4686_vm13, %v4687_v59, %v7798_v38  ;;  %v4770_v43 = vor.u32 4788187, %v4769_v29  ;;  %v4773_v8 = vcvt.s32.f32 %v4766_v15  ;;  %v4916_v16 = vshll.u32 %v7982_v24, %v4913_v12 }
 0x48c   : > { %v4685_v63 = vsel %vm4683_vm12, %v7796_v52, %v4684_v58  ;;  %v4856_v25 = vadd.s32 536870912, %v4855_v46  ;;  %v4919_v14 = vshll.u32 %v7983_v26, %v4913_v12  ;;  %v4917_v19 = vshrl.u32 %v7983_v26, %v4914_v2 }
 0x48d   : > { %v4689_v21 = vsel %vm4682_vm10, %v4685_v63, %v4688_v33  ;;  %v4771_v50 = vand.u32 2147483647, %v4770_v43  ;;  %v4920_v54 = vshrl.u32 %v7984_v28, %v4914_v2  ;;  %v4922_v17 = vshll.u32 %v7984_v28, %v4913_v12 }
 0x48e   : > { %v4690_v5 = vsel %vm4679_vm8, nan, %v4689_v21  ;;  %v4857_v36 = vshrl.u32 %v4856_v25, 30  ;;  %v4923_v60 = vshrl.u32 %v7985_v30, %v4914_v2  ;;  %v4912_v23 = vshrl.u32 %v4911_v31, 5 }
 0x48f   : > { %v4774_v41 = vmul.f32 %v4773_v8, %v4771_v50  ;;  %v4925_v47 = vshll.u32 %v7985_v30, %v4913_v12  ;;  %v4926_v49 = vshrl.u32 %v7986_v32, %v4914_v2  ;;  %6917 = vst [vmem:[%s8389_s16 + $0x150] sm:$0xff] %v4690_v5  ;;  %v4784_v1 = vadd.s32 3, %v4780_v10 }
 0x490   : > { %v4858_v51 = vshll.u32 %v4857_v36, 30  ;;  %v4928_v9 = vshll.u32 %v7986_v32, %v4913_v12  ;;  %v11860_v0 = vshll.u32 %v4907_v3, 8  ;;  %v4915_v34 = vshrl.u32 %v7982_v24, %v4914_v2  ;;  %v11876_v12 = vld [vmem:[%s8105_s3 + $0x170] sm:$0xff] }
 0x491   : > { %v4775_v44 = vxor.u32 2147483648, %v4774_v41  ;;  %v4927_v22 = vor.u32 %v4926_v49, %v4925_v47  ;;  %v4929_v18 = vshrl.u32 %v7987_v39, %v4914_v2  ;;  %v4918_v11 = vor.u32 %v4917_v19, %v4916_v16 }
 0x492   : > { %v11864_v55 = vsub.s32 %v4855_v46, %v4858_v51  ;;  %v4921_v62 = vor.u32 %v4920_v54, %v4919_v14  ;;  %v4924_v56 = vor.u32 %v4923_v60, %v4922_v17  ;;  %vm4931_vm14 = vcmp.lt.s32.totalorder %v4912_v23, 1 }
 0x493   : > { %v4776_v40 = vsel %vm4693_vm6, %v4775_v44, %v4774_v41  ;;  %v4930_v27 = vor.u32 %v4929_v18, %v4928_v9  ;;  %vm4934_vm1 = vcmp.lt.s32.totalorder %v4912_v23, 4  ;;  %vm4932_vm0 = vcmp.lt.s32.totalorder %v4912_v23, 2 }
 0x494   : > { %v4779_v48 = vsel %vm11811_vm7, %v11612_v20, %v4776_v40  ;;  %v4861_v31 = vsub.s32 0, %v11864_v55  ;;  %vm4933_vm2 = vcmp.lt.s32.totalorder %v4912_v23, 3  ;;  %v4935_v57 = vsel %vm4931_vm14, %v4915_v34, %v4918_v11 }
 0x495   : > { %7799 = vcosq.f32 %v4779_v48  ;;  %v4936_v45 = vsel %vm4934_vm1, %v4924_v56, 2102212464  ;;  %v4940_v61 = vsel %vm4934_vm1, %v4927_v22, 920167782  ;;  %v4939_v35 = vsel %vm4931_vm14, %v4918_v11, %v4921_v62 }
 0x496   : > { %7801 = vsinq.f32 %v4779_v48  ;;  %v7226_v52 = vmin.u32 %v4861_v31, %v11864_v55  ;;  %v4937_v38 = vsel %vm4933_vm2, %v4921_v62, %v4936_v45  ;;  %v4785_v59 = vand.u32 3, %v4784_v1 }
 0x497   : > { %v4941_v15 = vsel %vm4933_vm2, %v4924_v56, %v4940_v61  ;;  %v4943_v29 = vsel %vm4931_vm14, %v4921_v62, %v4924_v56  ;;  %v4944_v13 = vsel %vm4934_vm1, %v4930_v27, 1326507024  ;;  %vm11886_vm3 = vcmp.le.f32.partialorder %v4795_v53, 0.7853982 }
 0x498   : > { %vm4797_vm5 = vcmp.lt.s32.totalorder %v11706_v4, 0  ;;  %v4863_v10 = vclz %v7226_v52  ;;  %v4881_v46 = vsub.s32 4, %v4857_v36  ;;  %v4938_v2 = vsel %vm4932_vm0, %v4935_v57, %v4937_v38 }
 0x499   : > { %v4942_v33 = vsel %vm4932_vm0, %v4939_v35, %v4941_v15  ;;  %v4945_v43 = vsel %vm4933_vm2, %v4927_v22, %v4944_v13  ;;  %v5006_v8 = vand.u32 2139095040, %v11876_v12  ;;  %vm4783_vm4 = vweird.f32 %v11612_v20 }
 0x49a   : > { %v7227_v3 = vadd.s32 4294967294, %v4863_v10  ;;  %v4946_v53 = vsel %vm4932_vm0, %v4943_v29, %v4945_v43  ;;  %v11898_v63 = vmul.u32.u64.low %v11860_v0, %v4942_v33  ;;  %v11899_v25 = vmul.u32.u64.high %v11860_v0, %v4942_v33, %v11898_v63  ;;  %v11928_v29 = vld [vmem:[%s8105_s3 + $0x178] sm:$0xff] }
 0x49b   : > { %vm4786_vm6 = vcmp.lt.s32.totalorder %v4785_v59, 2  ;;  %v11903_v16 = vmul.u32.u64.low %v11860_v0, %v4946_v53  ;;  %v11904_v14 = vmul.u32.u64.high %v11860_v0, %v4946_v53, %v11903_v16  ;;  %v5007_v21 = vshrl.u32 %v5006_v8, 23 }
 0x49c   : > { %vm4787_vm7 = vcmp.eq.s32.totalorder %v4785_v59, 0  ;;  %v4851_v50 = vadd.s32 %v11822_v7, %v11831_v42  ;;  %vm7228_vm8 = vcmp.lt.s32.totalorder %v7227_v3, 0  ;;  %v4882_v19 = vsel %vm4797_vm5, %v4881_v46, %v4857_v36 }
 0x49d   : > { %v4866_v54 = vsel %vm7228_vm8, 0, %v7227_v3  ;;  %v4954_v5 = vmul.u32 %v11860_v0, %v4938_v2  ;;  %v5003_v17 = vand.u32 2147483647, %v11876_v12  ;;  %v7233_v60 = vadd.s32 4294967169, %v5007_v21 }
 0x49e   : > { %v4867_v41 = vsub.s32 32, %v4866_v54  ;;  %v4868_v23 = vshll.u32 %v11864_v55, %v4866_v54  ;;  %v4871_v47 = vsub.s32 4294967266, %v4866_v54  ;;  %v4957_v49 = vadd.s32 1, %v11899_v25 }
 0x49f   : > { %v7800_v1 = vpop.eup %7799  ;;  %vm4790_vm9 = vcmp.eq.s32.totalorder %v4785_v59, 2  ;;  %v4884_v7 = vsel %vm11886_vm3, 0, %v4882_v19  ;;  %vm4956_vm11 = vc.u32 %v11904_v14, %v11898_v63  ;;  %v5013_v42 = vadd.s32 1, %v7233_v60 }
 0x4a0   : > { %v7802_v36 = vpop.eup %7801  ;;  %v4791_v51 = vxor.u32 2147483648, %v7800_v1  ;;  %v4869_v9 = vshrl.u32 %v4851_v50, %v4867_v41  ;;  %v4872_v0 = vadd.s32 127, %v4871_v47  ;;  %v4958_v44 = vsel %vm4956_vm11, %v4957_v49, %v11899_v25 }
 0x4a1   : > { %v4788_v34 = vxor.u32 2147483648, %v7802_v36  ;;  %v4959_v22 = vadd.s32 %v4958_v44, %v4954_v5  ;;  %v5010_v18 = vand.u32 8388607, %v5003_v17  ;;  %vm5014_vm10 = vcmp.gt.s32.totalorder %v5013_v42, 0 }
 0x4a2   : > { %v4792_v55 = vsel %vm4790_vm9, %v4791_v51, %v7802_v36  ;;  %v4870_v11 = vor.u32 %v4869_v9, %v4868_v23  ;;  %v4873_v62 = vshll.u32 %v4872_v0, 23  ;;  %v5015_v56 = vsel %vm5014_vm10, %v5013_v42, 0 }
 0x4a3   : > { %v4789_v40 = vsel %vm4787_vm7, %v7800_v1, %v4788_v34  ;;  %v4960_v27 = vadd.s32 536870912, %v4959_v22  ;;  %v5017_v48 = vand.u32 31, %v5015_v56  ;;  %v4888_v61 = vadd.s32 3, %v4884_v7 }
 0x4a4   : > { %v4793_v31 = vsel %vm4786_vm6, %v4789_v40, %v4792_v55  ;;  %v4874_v57 = vor.u32 4788187, %v4873_v62  ;;  %v4877_v45 = vcvt.s32.f32 %v4870_v11  ;;  %v5011_v35 = vor.u32 8388608, %v5010_v18 }
 0x4a5   : > { %v4794_v52 = vsel %vm4783_vm4, nan, %v4793_v31  ;;  %v11925_v38 = vshrl.u32 %v4960_v27, 30  ;;  %v5018_v15 = vsub.s32 32, %v5017_v48  ;;  %v5016_v10 = vshrl.u32 %v5015_v56, 5 }
 0x4a6   : > { %v4875_v13 = vand.u32 2147483647, %v4874_v57  ;;  %v5020_v46 = vshll.u32 %v7982_v24, %v5017_v48  ;;  %v5023_v2 = vshll.u32 %v7983_v26, %v5017_v48  ;;  %6918 = vst [vmem:[%s8389_s16 + $0x158] sm:$0xff] %v4794_v52  ;;  %v5026_v20 = vshll.u32 %v7984_v28, %v5017_v48 }
 0x4a7   : > { %v4962_v59 = vshll.u32 %v11925_v38, 30  ;;  %v5021_v33 = vshrl.u32 %v7983_v26, %v5018_v15  ;;  %v5029_v43 = vshll.u32 %v7985_v30, %v5017_v48  ;;  %v5024_v3 = vshrl.u32 %v7984_v28, %v5018_v15 }
 0x4a8   : > { %v4878_v8 = vmul.f32 %v4877_v45, %v4875_v13  ;;  %v5027_v53 = vshrl.u32 %v7985_v30, %v5018_v15  ;;  %v5030_v25 = vshrl.u32 %v7986_v32, %v5018_v15  ;;  %v11940_v16 = vand.u32 3, %v4888_v61 }
 0x4a9   : > { %v11942_v21 = vsub.s32 %v4959_v22, %v4962_v59  ;;  %v5032_v50 = vshll.u32 %v7986_v32, %v5017_v48  ;;  %v5110_v19 = vand.u32 2139095040, %v11928_v29  ;;  %v4955_v5 = vadd.s32 %v11898_v63, %v11904_v14 }
 0x4aa   : > { %v4879_v54 = vxor.u32 2147483648, %v4878_v8  ;;  %v5019_v60 = vshrl.u32 %v7982_v24, %v5018_v15  ;;  %v11949_v41 = vshll.u32 %v5011_v35, 8  ;;  %v5022_v47 = vor.u32 %v5021_v33, %v5020_v46 }
 0x4ab   : > { %v4965_v23 = vsub.s32 0, %v11942_v21  ;;  %v5025_v49 = vor.u32 %v5024_v3, %v5023_v2  ;;  %v5033_v1 = vshrl.u32 %v7987_v39, %v5018_v15  ;;  %v5028_v42 = vor.u32 %v5027_v53, %v5026_v20 }
 0x4ac   : > { %v4880_v7 = vsel %vm4797_vm5, %v4879_v54, %v4878_v8  ;;  %v5031_v36 = vor.u32 %v5030_v25, %v5029_v43  ;;  %vm5035_vm12 = vcmp.lt.s32.totalorder %v5016_v10, 1  ;;  %v5111_v9 = vshrl.u32 %v5110_v19, 23 }
 0x4ad   : > { %v4883_v63 = vsel %vm11886_vm3, %v11706_v4, %v4880_v7  ;;  %v7230_v14 = vmin.u32 %v4965_v23, %v11942_v21  ;;  %v5034_v51 = vor.u32 %v5033_v1, %v5032_v50  ;;  %vm4901_vm13 = vcmp.lt.s32.totalorder %v11759_v6, 0 }
 0x4ae   : > { %7803 = vcosq.f32 %v4883_v63  ;;  %vm5036_vm15 = vcmp.lt.s32.totalorder %v5016_v10, 2  ;;  %vm5037_vm14 = vcmp.lt.s32.totalorder %v5016_v10, 3  ;;  %vm5038_vm1 = vcmp.lt.s32.totalorder %v5016_v10, 4 }
 0x4af   : > { %7805 = vsinq.f32 %v4883_v63  ;;  %v4967_v0 = vclz %v7230_v14  ;;  %v5039_v44 = vsel %vm5035_vm12, %v5019_v60, %v5022_v47  ;;  %v5043_v34 = vsel %vm5035_vm12, %v5022_v47, %v5025_v49 }
 0x4b0   : > { %v4985_v22 = vsub.s32 4, %v11925_v38  ;;  %v5040_v58 = vsel %vm5038_vm1, %v5028_v42, 2102212464  ;;  %v5044_v18 = vsel %vm5038_vm1, %v5031_v36, 920167782  ;;  %v5047_v55 = vsel %vm5035_vm12, %v5025_v49, %v5028_v42 }
 0x4b1   : > { %v7231_v11 = vadd.s32 4294967294, %v4967_v0  ;;  %v5041_v62 = vsel %vm5037_vm14, %v5025_v49, %v5040_v58  ;;  %v5045_v56 = vsel %vm5037_vm14, %v5028_v42, %v5044_v18  ;;  %v5048_v40 = vsel %vm5038_vm1, %v5034_v51, 1326507024 }
 0x4b2   : > { %v5042_v27 = vsel %vm5036_vm15, %v5039_v44, %v5041_v62  ;;  %v5046_v48 = vsel %vm5036_vm15, %v5043_v34, %v5045_v56  ;;  %v5049_v31 = vsel %vm5037_vm14, %v5031_v36, %v5048_v40  ;;  %v7237_v57 = vadd.s32 4294967169, %v5111_v9 }
 0x4b3   : > { %vm7232_vm0 = vcmp.lt.s32.totalorder %v7231_v11, 0  ;;  %v5050_v45 = vsel %vm5036_vm15, %v5047_v55, %v5049_v31  ;;  %v11971_v61 = vmul.u32.u64.low %v11949_v41, %v5046_v48  ;;  %v11972_v52 = vmul.u32.u64.high %v11949_v41, %v5046_v48, %v11971_v61 }
 0x4b4   : > { %v4970_v35 = vsel %vm7232_vm0, 0, %v7231_v11  ;;  %v11976_v15 = vmul.u32.u64.low %v11949_v41, %v5050_v45  ;;  %v11977_v13 = vmul.u32.u64.high %v11949_v41, %v5050_v45, %v11976_v15  ;;  %v5107_v46 = vand.u32 2147483647, %v11928_v29 }
 0x4b5   : > { %vm11982_vm2 = vcmp.le.f32.partialorder %v4899_v37, 0.7853982  ;;  %v4971_v10 = vsub.s32 32, %v4970_v35  ;;  %v4972_v59 = vshll.u32 %v11942_v21, %v4970_v35  ;;  %v4975_v33 = vsub.s32 4294967266, %v4970_v35 }
 0x4b6   : > { %vm4890_vm3 = vcmp.lt.s32.totalorder %v11940_v16, 2  ;;  %vm4891_vm5 = vcmp.eq.s32.totalorder %v11940_v16, 0  ;;  %v5058_v20 = vmul.u32 %v11949_v41, %v5042_v27  ;;  %v5117_v43 = vadd.s32 1, %v7237_v57 }
 0x4b7   : > { %v4973_v8 = vshrl.u32 %v4955_v5, %v4971_v10  ;;  %v4976_v3 = vadd.s32 127, %v4975_v33  ;;  %v4986_v37 = vsel %vm4901_vm13, %v4985_v22, %v11925_v38  ;;  %v5061_v53 = vadd.s32 1, %v11972_v52 }
 0x4b8   : > { %v7804_v25 = vpop.eup %7803  ;;  %vm4894_vm4 = vcmp.eq.s32.totalorder %v11940_v16, 2  ;;  %vm5060_vm6 = vc.u32 %v11977_v13, %v11971_v61  ;;  %v5114_v21 = vand.u32 8388607, %v5107_v46  ;;  %vm5118_vm7 = vcmp.gt.s32.totalorder %v5117_v43, 0 }
 0x4b9   : > { %v7806_v50 = vpop.eup %7805  ;;  %v4895_v19 = vxor.u32 2147483648, %v7804_v25  ;;  %v4974_v54 = vor.u32 %v4973_v8, %v4972_v59  ;;  %v4977_v5 = vshll.u32 %v4976_v3, 23  ;;  %v5062_v60 = vsel %vm5060_vm6, %v5061_v53, %v11972_v52  ;;  %v12034_v3 = vld [vmem:[%s8105_s3 + $0x180] sm:$0xff] }
 0x4ba   : > { %v4892_v41 = vxor.u32 2147483648, %v7806_v50  ;;  %v4988_v38 = vsel %vm11982_vm2, 0, %v4986_v37  ;;  %v5063_v23 = vadd.s32 %v5062_v60, %v5058_v20  ;;  %v5119_v47 = vsel %vm5118_vm7, %v5117_v43, 0 }
 0x4bb   : > { %vm4887_vm8 = vweird.f32 %v11706_v4  ;;  %v4896_v49 = vsel %vm4894_vm4, %v4895_v19, %v7806_v50  ;;  %v4978_v1 = vor.u32 4788187, %v4977_v5  ;;  %v4981_v7 = vcvt.s32.f32 %v4974_v54 }
 0x4bc   : > { %v4893_v42 = vsel %vm4891_vm5, %v7804_v25, %v4892_v41  ;;  %v5064_v36 = vadd.s32 536870912, %v5063_v23  ;;  %v5121_v63 = vand.u32 31, %v5119_v47  ;;  %v4992_v9 = vadd.s32 3, %v4988_v38 }
 0x4bd   : > { %v4897_v14 = vsel %vm4890_vm3, %v4893_v42, %v4896_v49  ;;  %v4979_v51 = vand.u32 2147483647, %v4978_v1  ;;  %v5115_v0 = vor.u32 8388608, %v5114_v21  ;;  %v5120_v22 = vshrl.u32 %v5119_v47, 5 }
 0x4be   : > { %v4898_v44 = vsel %vm4887_vm8, nan, %v4897_v14  ;;  %v12007_v34 = vshrl.u32 %v5064_v36, 30  ;;  %v5122_v4 = vsub.s32 32, %v5121_v63  ;;  %v5124_v18 = vshll.u32 %v7982_v24, %v5121_v63 }
 0x4bf   : > { %v4982_v58 = vmul.f32 %v4981_v7, %v4979_v51  ;;  %v5127_v55 = vshll.u32 %v7983_v26, %v5121_v63  ;;  %6919 = vst [vmem:[%s8389_s16 + $0x160] sm:$0xff] %v4898_v44  ;;  %v5130_v16 = vshll.u32 %v7984_v28, %v5121_v63  ;;  %v5133_v56 = vshll.u32 %v7985_v30, %v5121_v63 }
 0x4c0   : > { %v5066_v11 = vshll.u32 %v12007_v34, 30  ;;  %v5125_v62 = vshrl.u32 %v7983_v26, %v5122_v4  ;;  %v5128_v27 = vshrl.u32 %v7984_v28, %v5122_v4  ;;  %v5131_v48 = vshrl.u32 %v7985_v30, %v5122_v4 }
 0x4c1   : > { %v4983_v40 = vxor.u32 2147483648, %v4982_v58  ;;  %v5134_v31 = vshrl.u32 %v7986_v32, %v5122_v4  ;;  %v12019_v57 = vand.u32 3, %v4992_v9  ;;  %vm5139_vm9 = vcmp.lt.s32.totalorder %v5120_v22, 1 }
 0x4c2   : > { %v12021_v45 = vsub.s32 %v5063_v23, %v5066_v11  ;;  %v12023_v52 = vshll.u32 %v5115_v0, 8  ;;  %v5126_v15 = vor.u32 %v5125_v62, %v5124_v18  ;;  %v5129_v10 = vor.u32 %v5128_v27, %v5127_v55 }
 0x4c3   : > { %v4984_v35 = vsel %vm4901_vm13, %v4983_v40, %v4982_v58  ;;  %v5136_v59 = vshll.u32 %v7986_v32, %v5121_v63  ;;  %v5123_v43 = vshrl.u32 %v7982_v24, %v5122_v4  ;;  %v5135_v8 = vor.u32 %v5134_v31, %v5133_v56 }
 0x4c4   : > { %v4987_v33 = vsel %vm11982_vm2, %v11759_v6, %v4984_v35  ;;  %v5069_v20 = vsub.s32 0, %v12021_v45  ;;  %v5132_v37 = vor.u32 %v5131_v48, %v5130_v16  ;;  %v5137_v53 = vshrl.u32 %v7987_v39, %v5122_v4 }
 0x4c5   : > { %7807 = vcosq.f32 %v4987_v33  ;;  %vm5142_vm11 = vcmp.lt.s32.totalorder %v5120_v22, 4  ;;  %vm5140_vm10 = vcmp.lt.s32.totalorder %v5120_v22, 2  ;;  %vm5141_vm12 = vcmp.lt.s32.totalorder %v5120_v22, 3 }
 0x4c6   : > { %7809 = vsinq.f32 %v4987_v33  ;;  %v7234_v25 = vmin.u32 %v5069_v20, %v12021_v45  ;;  %v5138_v21 = vor.u32 %v5137_v53, %v5136_v59  ;;  %v5144_v2 = vsel %vm5142_vm11, %v5132_v37, 2102212464 }
 0x4c7   : > { %v5147_v50 = vsel %vm5139_vm9, %v5126_v15, %v5129_v10  ;;  %v5148_v19 = vsel %vm5142_vm11, %v5135_v8, 920167782  ;;  %v5059_v54 = vadd.s32 %v11971_v61, %v11977_v13  ;;  %v5143_v60 = vsel %vm5139_vm9, %v5123_v43, %v5126_v15 }
 0x4c8   : > { %v5071_v5 = vclz %v7234_v25  ;;  %v5214_v41 = vand.u32 2139095040, %v12034_v3  ;;  %v5145_v38 = vsel %vm5141_vm12, %v5129_v10, %v5144_v2  ;;  %v5149_v23 = vsel %vm5141_vm12, %v5132_v37, %v5148_v19 }
 0x4c9   : > { %v5151_v47 = vsel %vm5139_vm9, %v5129_v10, %v5132_v37  ;;  %v5152_v49 = vsel %vm5142_vm11, %v5138_v21, 1326507024  ;;  %vm4991_vm13 = vweird.f32 %v11759_v6  ;;  %v5089_v7 = vsub.s32 4, %v12007_v34 }
 0x4ca   : > { %v7235_v1 = vadd.s32 4294967294, %v5071_v5  ;;  %v5150_v61 = vsel %vm5140_vm10, %v5147_v50, %v5149_v23  ;;  %v5153_v13 = vsel %vm5141_vm12, %v5135_v8, %v5152_v49  ;;  %v5146_v42 = vsel %vm5140_vm10, %v5143_v60, %v5145_v38 }
 0x4cb   : > { %v5154_v36 = vsel %vm5140_vm10, %v5151_v47, %v5153_v13  ;;  %v12056_v63 = vmul.u32.u64.low %v12023_v52, %v5150_v61  ;;  %v12057_v14 = vmul.u32.u64.high %v12023_v52, %v5150_v61, %v12056_v63  ;;  %v5215_v0 = vshrl.u32 %v5214_v41, 23  ;;  %v12101_v47 = vld [vmem:[%s8105_s3 + $0x188] sm:$0xff] }
 0x4cc   : > { %vm7236_vm15 = vcmp.lt.s32.totalorder %v7235_v1, 0  ;;  %v12061_v51 = vmul.u32.u64.low %v12023_v52, %v5154_v36  ;;  %v12062_v9 = vmul.u32.u64.high %v12023_v52, %v5154_v36, %v12061_v51  ;;  %vm4994_vm14 = vcmp.lt.s32.totalorder %v12019_v57, 2 }
 0x4cd   : > { %vm12067_vm1 = vcmp.le.f32.partialorder %v5003_v17, 0.7853982  ;;  %vm5005_vm0 = vcmp.lt.s32.totalorder %v11876_v12, 0  ;;  %v5074_v22 = vsel %vm7236_vm15, 0, %v7235_v1  ;;  %v7241_v55 = vadd.s32 4294967169, %v5215_v0 }
 0x4ce   : > { %v5075_v4 = vsub.s32 32, %v5074_v22  ;;  %v5076_v58 = vshll.u32 %v12021_v45, %v5074_v22  ;;  %v5079_v18 = vsub.s32 4294967266, %v5074_v22  ;;  %vm4995_vm2 = vcmp.eq.s32.totalorder %v12019_v57, 0 }
 0x4cf   : > { %v7808_v11 = vpop.eup %7807  ;;  %vm4998_vm3 = vcmp.eq.s32.totalorder %v12019_v57, 2  ;;  %v5162_v62 = vmul.u32 %v12023_v52, %v5146_v42  ;;  %v5165_v17 = vadd.s32 1, %v12057_v14  ;;  %v5090_v48 = vsel %vm5005_vm0, %v5089_v7, %v12007_v34 }
 0x4d0   : > { %v7810_v16 = vpop.eup %7809  ;;  %v4999_v56 = vxor.u32 2147483648, %v7808_v11  ;;  %v5077_v40 = vshrl.u32 %v5059_v54, %v5075_v4  ;;  %v5080_v27 = vadd.s32 127, %v5079_v18  ;;  %vm5164_vm5 = vc.u32 %v12062_v9, %v12056_v63 }
 0x4d1   : > { %v4996_v31 = vxor.u32 2147483648, %v7810_v16  ;;  %v5211_v45 = vand.u32 2147483647, %v12034_v3  ;;  %v5221_v35 = vadd.s32 1, %v7241_v55  ;;  %v5166_v59 = vsel %vm5164_vm5, %v5165_v17, %v12057_v14 }
 0x4d2   : > { %v5000_v15 = vsel %vm4998_vm3, %v4999_v56, %v7810_v16  ;;  %v5078_v10 = vor.u32 %v5077_v40, %v5076_v58  ;;  %v5081_v52 = vshll.u32 %v5080_v27, 23  ;;  %v5092_v20 = vsel %vm12067_vm1, 0, %v5090_v48 }
 0x4d3   : > { %v4997_v33 = vsel %vm4995_vm2, %v7808_v11, %v4996_v31  ;;  %v5167_v34 = vadd.s32 %v5166_v59, %v5162_v62  ;;  %vm5222_vm4 = vcmp.gt.s32.totalorder %v5221_v35, 0  ;;  %v5096_v19 = vadd.s32 3, %v5092_v20 }
 0x4d4   : > { %v5001_v43 = vsel %vm4994_vm14, %v4997_v33, %v5000_v15  ;;  %v5082_v8 = vor.u32 4788187, %v5081_v52  ;;  %v5085_v37 = vcvt.s32.f32 %v5078_v10  ;;  %v5223_v53 = vsel %vm5222_vm4, %v5221_v35, 0 }
 0x4d5   : > { %v5002_v25 = vsel %vm4991_vm13, nan, %v5001_v43  ;;  %v5168_v21 = vadd.s32 536870912, %v5167_v34  ;;  %v5225_v2 = vand.u32 31, %v5223_v53  ;;  %v5218_v5 = vand.u32 8388607, %v5211_v45 }
 0x4d6   : > { %v5083_v50 = vand.u32 2147483647, %v5082_v8  ;;  %6920 = vst [vmem:[%s8389_s16 + $0x168] sm:$0xff] %v5002_v25  ;;  %v12095_v60 = vshrl.u32 %v5223_v53, 5  ;;  %v12109_v51 = vand.u32 3, %v5096_v19  ;;  %vm5109_vm6 = vcmp.lt.s32.totalorder %v11928_v29, 0 }
 0x4d7   : > { %v5169_v54 = vshrl.u32 %v5168_v21, 30  ;;  %v5226_v57 = vsub.s32 32, %v5225_v2  ;;  %v5228_v38 = vshll.u32 %v7982_v24, %v5225_v2  ;;  %v5231_v23 = vshll.u32 %v7983_v26, %v5225_v2 }
 0x4d8   : > { %v5086_v41 = vmul.f32 %v5085_v37, %v5083_v50  ;;  %v5234_v6 = vshll.u32 %v7984_v28, %v5225_v2  ;;  %v5237_v7 = vshll.u32 %v7985_v30, %v5225_v2  ;;  %v5240_v61 = vshll.u32 %v7986_v32, %v5225_v2 }
 0x4d9   : > { %v5170_v49 = vshll.u32 %v5169_v54, 30  ;;  %v5229_v1 = vshrl.u32 %v7983_v26, %v5226_v57  ;;  %v5232_v42 = vshrl.u32 %v7984_v28, %v5226_v57  ;;  %v5235_v36 = vshrl.u32 %v7985_v30, %v5226_v57 }
 0x4da   : > { %v5087_v13 = vxor.u32 2147483648, %v5086_v41  ;;  %v5238_v14 = vshrl.u32 %v7986_v32, %v5226_v57  ;;  %v5219_v22 = vor.u32 8388608, %v5218_v5  ;;  %v5241_v4 = vshrl.u32 %v7987_v39, %v5226_v57 }
 0x4db   : > { %v12111_v0 = vsub.s32 %v5167_v34, %v5170_v49  ;;  %v5227_v18 = vshrl.u32 %v7982_v24, %v5226_v57  ;;  %v5230_v55 = vor.u32 %v5229_v1, %v5228_v38  ;;  %v5318_v11 = vand.u32 2139095040, %v12101_v47 }
 0x4dc   : > { %v5088_v58 = vsel %vm5005_vm0, %v5087_v13, %v5086_v41  ;;  %v5233_v16 = vor.u32 %v5232_v42, %v5231_v23  ;;  %v5236_v56 = vor.u32 %v5235_v36, %v5234_v6  ;;  %v5239_v40 = vor.u32 %v5238_v14, %v5237_v7 }
 0x4dd   : > { %v5091_v62 = vsel %vm12067_vm1, %v11876_v12, %v5088_v58  ;;  %v5173_v17 = vsub.s32 0, %v12111_v0  ;;  %v5242_v27 = vor.u32 %v5241_v4, %v5240_v61  ;;  %vm5243_vm7 = vcmp.lt.s32.totalorder %v12095_v60, 1 }
 0x4de   : > { %7811 = vcosq.f32 %v5091_v62  ;;  %vm12126_vm8 = vcmp.le.f32.partialorder %v5107_v46, 0.7853982  ;;  %v5259_v44 = vshll.u32 %v5219_v22, 8  ;;  %v5193_v35 = vsub.s32 4, %v5169_v54 }
 0x4df   : > { %7813 = vsinq.f32 %v5091_v62  ;;  %v7238_v31 = vmin.u32 %v5173_v17, %v12111_v0  ;;  %vm5245_vm9 = vcmp.lt.s32.totalorder %v12095_v60, 3  ;;  %vm5246_vm11 = vcmp.lt.s32.totalorder %v12095_v60, 4 }
 0x4e0   : > { %v5319_v15 = vshrl.u32 %v5318_v11, 23  ;;  %vm5244_vm10 = vcmp.lt.s32.totalorder %v12095_v60, 2  ;;  %v5251_v52 = vsel %vm5243_vm7, %v5230_v55, %v5233_v16  ;;  %v5255_v59 = vsel %vm5243_vm7, %v5233_v16, %v5236_v56 }
 0x4e1   : > { %v5175_v10 = vclz %v7238_v31  ;;  %vm5098_vm12 = vcmp.lt.s32.totalorder %v12109_v51, 2  ;;  %v5247_v46 = vsel %vm5243_vm7, %v5227_v18, %v5230_v55  ;;  %v5248_v33 = vsel %vm5246_vm11, %v5236_v56, 2102212464 }
 0x4e2   : > { %v5252_v20 = vsel %vm5246_vm11, %v5239_v40, 920167782  ;;  %v5256_v34 = vsel %vm5246_vm11, %v5242_v27, 1326507024  ;;  %vm5095_vm13 = vweird.f32 %v11876_v12  ;;  %v5249_v8 = vsel %vm5245_vm9, %v5233_v16, %v5248_v33 }
 0x4e3   : > { %v7239_v43 = vadd.s32 4294967294, %v5175_v10  ;;  %v5253_v37 = vsel %vm5245_vm9, %v5236_v56, %v5252_v20  ;;  %v5257_v53 = vsel %vm5245_vm9, %v5239_v40, %v5256_v34  ;;  %v5163_v25 = vadd.s32 %v12056_v63, %v12062_v9 }
 0x4e4   : > { %v5254_v21 = vsel %vm5244_vm10, %v5251_v52, %v5253_v37  ;;  %v5258_v2 = vsel %vm5244_vm10, %v5255_v59, %v5257_v53  ;;  %v7245_v50 = vadd.s32 4294967169, %v5319_v15  ;;  %v5194_v19 = vsel %vm5109_vm6, %v5193_v35, %v5169_v54 }
 0x4e5   : > { %vm7240_vm15 = vcmp.lt.s32.totalorder %v7239_v43, 0  ;;  %v12150_v5 = vmul.u32.u64.low %v5259_v44, %v5258_v2  ;;  %v12151_v57 = vmul.u32.u64.high %v5259_v44, %v5258_v2, %v12150_v5  ;;  %v5250_v38 = vsel %vm5244_vm10, %v5247_v46, %v5249_v8 }
 0x4e6   : > { %v5178_v41 = vsel %vm7240_vm15, 0, %v7239_v43  ;;  %v12155_v23 = vmul.u32.u64.low %v5259_v44, %v5254_v21  ;;  %v12156_v63 = vmul.u32.u64.high %v5259_v44, %v5254_v21, %v12155_v23  ;;  %v5325_v1 = vadd.s32 1, %v7245_v50 }
 0x4e7   : > { %v5179_v9 = vsub.s32 32, %v5178_v41  ;;  %v5180_v6 = vshll.u32 %v12111_v0, %v5178_v41  ;;  %v5183_v49 = vsub.s32 4294967266, %v5178_v41  ;;  %vm5099_vm14 = vcmp.eq.s32.totalorder %v12109_v51, 0 }
 0x4e8   : > { %v7812_v7 = vpop.eup %7811  ;;  %vm5102_vm1 = vcmp.eq.s32.totalorder %v12109_v51, 2  ;;  %v5196_v54 = vsel %vm12126_vm8, 0, %v5194_v19  ;;  %v5315_v60 = vand.u32 2147483647, %v12101_v47  ;;  %v5266_v14 = vmul.u32 %v5259_v44, %v5250_v38 }
 0x4e9   : > { %v7814_v61 = vpop.eup %7813  ;;  %v5103_v13 = vxor.u32 2147483648, %v7812_v7  ;;  %v5181_v42 = vshrl.u32 %v5163_v25, %v5179_v9  ;;  %v5184_v36 = vadd.s32 127, %v5183_v49  ;;  %vm5268_vm0 = vc.u32 %v12151_v57, %v12155_v23  ;;  %v12195_v49 = vld [vmem:[%s8105_s3 + $0x190] sm:$0xff] }
 0x4ea   : > { %v5100_v22 = vxor.u32 2147483648, %v7814_v61  ;;  %v5269_v0 = vadd.s32 1, %v12156_v63  ;;  %vm5326_vm2 = vcmp.gt.s32.totalorder %v5325_v1, 0  ;;  %v5322_v17 = vand.u32 8388607, %v5315_v60 }
 0x4eb   : > { %v5104_v4 = vsel %vm5102_vm1, %v5103_v13, %v7814_v61  ;;  %v5182_v58 = vor.u32 %v5181_v42, %v5180_v6  ;;  %v5185_v18 = vshll.u32 %v5184_v36, 23  ;;  %v5327_v55 = vsel %vm5326_vm2, %v5325_v1, 0 }
 0x4ec   : > { %v5101_v11 = vsel %vm5099_vm14, %v7812_v7, %v5100_v22  ;;  %v5270_v62 = vsel %vm5268_vm0, %v5269_v0, %v12156_v63  ;;  %v5329_v16 = vand.u32 31, %v5327_v55  ;;  %v5200_v35 = vadd.s32 3, %v5196_v54 }
 0x4ed   : > { %v5105_v56 = vsel %vm5098_vm12, %v5101_v11, %v5104_v4  ;;  %v5186_v40 = vor.u32 4788187, %v5185_v18  ;;  %v5189_v27 = vcvt.s32.f32 %v5182_v58  ;;  %v5271_v31 = vadd.s32 %v5270_v62, %v5266_v14 }
 0x4ee   : > { %v5106_v44 = vsel %vm5095_vm13, nan, %v5105_v56  ;;  %v5330_v15 = vsub.s32 32, %v5329_v16  ;;  %v5332_v10 = vshll.u32 %v7982_v24, %v5329_v16  ;;  %v5335_v46 = vshll.u32 %v7983_v26, %v5329_v16 }
 0x4ef   : > { %v5187_v52 = vand.u32 2147483647, %v5186_v40  ;;  %v5272_v59 = vadd.s32 536870912, %v5271_v31  ;;  %v5338_v33 = vshll.u32 %v7984_v28, %v5329_v16  ;;  %6921 = vst [vmem:[%s8389_s16 + $0x170] sm:$0xff] %v5106_v44  ;;  %v5341_v12 = vshll.u32 %v7985_v30, %v5329_v16 }
 0x4f0   : > { %v5333_v51 = vshrl.u32 %v7983_v26, %v5330_v15  ;;  %v5336_v20 = vshrl.u32 %v7984_v28, %v5330_v15  ;;  %v5339_v34 = vshrl.u32 %v7985_v30, %v5330_v15  ;;  %v5328_v37 = vshrl.u32 %v5327_v55, 5 }
 0x4f1   : > { %v5190_v43 = vmul.f32 %v5189_v27, %v5187_v52  ;;  %v12185_v8 = vshrl.u32 %v5272_v59, 30  ;;  %v5342_v53 = vshrl.u32 %v7986_v32, %v5330_v15  ;;  %v5323_v25 = vor.u32 8388608, %v5322_v17 }
 0x4f2   : > { %v5344_v21 = vshll.u32 %v7986_v32, %v5329_v16  ;;  %v5345_v2 = vshrl.u32 %v7987_v39, %v5330_v15  ;;  %v12190_v19 = vand.u32 3, %v5200_v35  ;;  %v5331_v41 = vshrl.u32 %v7982_v24, %v5330_v15 }
 0x4f3   : > { %v5191_v50 = vxor.u32 2147483648, %v5190_v43  ;;  %v5274_v5 = vshll.u32 %v12185_v8, 30  ;;  %v5334_v38 = vor.u32 %v5333_v51, %v5332_v10  ;;  %v5337_v63 = vor.u32 %v5336_v20, %v5335_v46 }
 0x4f4   : > { %v5340_v9 = vor.u32 %v5339_v34, %v5338_v33  ;;  %v5343_v6 = vor.u32 %v5342_v53, %v5341_v12  ;;  %vm5347_vm3 = vcmp.lt.s32.totalorder %v5328_v37, 1  ;;  %vm5350_vm5 = vcmp.lt.s32.totalorder %v5328_v37, 4 }
 0x4f5   : > { %v5192_v1 = vsel %vm5109_vm6, %v5191_v50, %v5190_v43  ;;  %v12199_v7 = vsub.s32 %v5271_v31, %v5274_v5  ;;  %v5346_v61 = vor.u32 %v5345_v2, %v5344_v21  ;;  %vm5349_vm4 = vcmp.lt.s32.totalorder %v5328_v37, 3 }
 0x4f6   : > { %v5195_v54 = vsel %vm12126_vm8, %v11928_v29, %v5192_v1  ;;  %v5363_v13 = vshll.u32 %v5323_v25, 8  ;;  %vm5348_vm7 = vcmp.lt.s32.totalorder %v5328_v37, 2  ;;  %v5352_v36 = vsel %vm5350_vm5, %v5340_v9, 2102212464 }
 0x4f7   : > { %7815 = vcosq.f32 %v5195_v54  ;;  %v5277_v42 = vsub.s32 0, %v12199_v7  ;;  %v5355_v14 = vsel %vm5347_vm3, %v5334_v38, %v5337_v63  ;;  %v5356_v22 = vsel %vm5350_vm5, %v5343_v6, 920167782 }
 0x4f8   : > { %7817 = vsinq.f32 %v5195_v54  ;;  %v5422_v0 = vand.u32 2139095040, %v12195_v49  ;;  %v5351_v48 = vsel %vm5347_vm3, %v5331_v41, %v5334_v38  ;;  %v5357_v58 = vsel %vm5349_vm4, %v5340_v9, %v5356_v22 }
 0x4f9   : > { %v7242_v4 = vmin.u32 %v5277_v42, %v12199_v7  ;;  %v5353_v18 = vsel %vm5349_vm4, %v5337_v63, %v5352_v36  ;;  %v5358_v55 = vsel %vm5348_vm7, %v5355_v14, %v5357_v58  ;;  %v5359_v11 = vsel %vm5347_vm3, %v5337_v63, %v5340_v9 }
 0x4fa   : > { %v5360_v62 = vsel %vm5350_vm5, %v5346_v61, 1326507024  ;;  %vm5202_vm6 = vcmp.lt.s32.totalorder %v12190_v19, 2  ;;  %vm5213_vm8 = vcmp.lt.s32.totalorder %v12034_v3, 0  ;;  %v5423_v27 = vshrl.u32 %v5422_v0, 23 }
 0x4fb   : > { %v5279_v17 = vclz %v7242_v4  ;;  %v5361_v16 = vsel %vm5349_vm4, %v5343_v6, %v5360_v62  ;;  %v12219_v56 = vmul.u32.u64.low %v5363_v13, %v5358_v55  ;;  %v12220_v40 = vmul.u32.u64.high %v5363_v13, %v5358_v55, %v12219_v56  ;;  %v12248_v6 = vld [vmem:[%s8105_s3 + $0x198] sm:$0xff] }
 0x4fc   : > { %v5297_v44 = vsub.s32 4, %v12185_v8  ;;  %v5354_v35 = vsel %vm5348_vm7, %v5351_v48, %v5353_v18  ;;  %v5362_v15 = vsel %vm5348_vm7, %v5359_v11, %v5361_v16  ;;  %v5419_v59 = vand.u32 2147483647, %v12195_v49 }
 0x4fd   : > { %v7243_v31 = vadd.s32 4294967294, %v5279_v17  ;;  %v12226_v10 = vmul.u32.u64.low %v5363_v13, %v5362_v15  ;;  %v12227_v52 = vmul.u32.u64.high %v5363_v13, %v5362_v15, %v12226_v10  ;;  %v7249_v46 = vadd.s32 4294967169, %v5423_v27 }
 0x4fe   : > { %vm5203_vm9 = vcmp.eq.s32.totalorder %v12190_v19, 0  ;;  %vm5206_vm11 = vcmp.eq.s32.totalorder %v12190_v19, 2  ;;  %v5267_v33 = vadd.s32 %v12155_v23, %v12151_v57  ;;  %v5370_v20 = vmul.u32 %v5363_v13, %v5354_v35 }
 0x4ff   : > { %vm7244_vm10 = vcmp.lt.s32.totalorder %v7243_v31, 0  ;;  %v5373_v34 = vadd.s32 1, %v12220_v40  ;;  %v5429_v12 = vadd.s32 1, %v7249_v46  ;;  %v5298_v21 = vsel %vm5213_vm8, %v5297_v44, %v12185_v8 }
 0x500   : > { %v5282_v51 = vsel %vm7244_vm10, 0, %v7243_v31  ;;  %vm5372_vm12 = vc.u32 %v12227_v52, %v12219_v56  ;;  %v5426_v57 = vand.u32 8388607, %v5419_v59  ;;  %vm5199_vm15 = vweird.f32 %v11928_v29 }
 0x501   : > { %v7816_v43 = vpop.eup %7815  ;;  %v5283_v37 = vsub.s32 32, %v5282_v51  ;;  %v5284_v53 = vshll.u32 %v12199_v7, %v5282_v51  ;;  %v5287_v25 = vsub.s32 4294967266, %v5282_v51  ;;  %vm5430_vm13 = vcmp.gt.s32.totalorder %v5429_v12, 0 }
 0x502   : > { %v7818_v2 = vpop.eup %7817  ;;  %v5207_v50 = vxor.u32 2147483648, %v7816_v43  ;;  %v5374_v38 = vsel %vm5372_vm12, %v5373_v34, %v12220_v40  ;;  %v5431_v9 = vsel %vm5430_vm13, %v5429_v12, 0  ;;  %vm12254_vm14 = vcmp.le.f32.partialorder %v5211_v45, 0.7853982 }
 0x503   : > { %v5204_v23 = vxor.u32 2147483648, %v7818_v2  ;;  %v5285_v5 = vshrl.u32 %v5267_v33, %v5283_v37  ;;  %v5288_v41 = vadd.s32 127, %v5287_v25  ;;  %v5375_v8 = vadd.s32 %v5374_v38, %v5370_v20 }
 0x504   : > { %v5208_v63 = vsel %vm5206_vm11, %v5207_v50, %v7818_v2  ;;  %v5300_v13 = vsel %vm12254_vm14, 0, %v5298_v21  ;;  %v5433_v36 = vand.u32 31, %v5431_v9  ;;  %v5427_v4 = vor.u32 8388608, %v5426_v57 }
 0x505   : > { %v5205_v1 = vsel %vm5203_vm9, %v7816_v43, %v5204_v23  ;;  %v5286_v54 = vor.u32 %v5285_v5, %v5284_v53  ;;  %v5289_v61 = vshll.u32 %v5288_v41, 23  ;;  %v5376_v42 = vadd.s32 536870912, %v5375_v8 }
 0x506   : > { %v5209_v29 = vsel %vm5202_vm6, %v5205_v1, %v5208_v63  ;;  %v5432_v45 = vshrl.u32 %v5431_v9, 5  ;;  %v5434_v58 = vsub.s32 32, %v5433_v36  ;;  %v5526_v18 = vand.u32 2139095040, %v12248_v6 }
 0x507   : > { %v5210_v14 = vsel %vm5199_vm15, nan, %v5209_v29  ;;  %v5290_v22 = vor.u32 4788187, %v5289_v61  ;;  %v5293_v0 = vcvt.s32.f32 %v5286_v54  ;;  %v12262_v48 = vshrl.u32 %v5376_v42, 30 }
 0x508   : > { %6922 = vst [vmem:[%s8389_s16 + $0x178] sm:$0xff] %v5210_v14  ;;  %v5436_v19 = vshll.u32 %v7982_v24, %v5433_v36  ;;  %v5439_v11 = vshll.u32 %v7983_v26, %v5433_v36  ;;  %v5442_v62 = vshll.u32 %v7984_v28, %v5433_v36  ;;  %v5437_v16 = vshrl.u32 %v7983_v26, %v5434_v58 }
 0x509   : > { %v5291_v55 = vand.u32 2147483647, %v5290_v22  ;;  %v5378_v17 = vshll.u32 %v12262_v48, 30  ;;  %v5445_v40 = vshll.u32 %v7985_v30, %v5433_v36  ;;  %v5448_v27 = vshll.u32 %v7986_v32, %v5433_v36 }
 0x50a   : > { %v5440_v44 = vshrl.u32 %v7984_v28, %v5434_v58  ;;  %v5443_v35 = vshrl.u32 %v7985_v30, %v5434_v58  ;;  %v5446_v15 = vshrl.u32 %v7986_v32, %v5434_v58  ;;  %v5304_v10 = vadd.s32 3, %v5300_v13 }
 0x50b   : > { %v5294_v31 = vmul.f32 %v5293_v0, %v5291_v55  ;;  %v12276_v46 = vsub.s32 %v5375_v8, %v5378_v17  ;;  %v5449_v33 = vshrl.u32 %v7987_v39, %v5434_v58  ;;  %v12279_v51 = vshll.u32 %v5427_v4, 8 }
 0x50c   : > { %v5438_v34 = vor.u32 %v5437_v16, %v5436_v19  ;;  %v5441_v12 = vor.u32 %v5440_v44, %v5439_v11  ;;  %v5527_v43 = vshrl.u32 %v5526_v18, 23  ;;  %v5435_v53 = vshrl.u32 %v7982_v24, %v5434_v58 }
 0x50d   : > { %v5295_v20 = vxor.u32 2147483648, %v5294_v31  ;;  %v5381_v37 = vsub.s32 0, %v12276_v46  ;;  %v5447_v25 = vor.u32 %v5446_v15, %v5445_v40  ;;  %vm5451_vm1 = vcmp.lt.s32.totalorder %v5432_v45, 1 }
 0x50e   : > { %v5444_v2 = vor.u32 %v5443_v35, %v5442_v62  ;;  %v5450_v50 = vor.u32 %v5449_v33, %v5448_v27  ;;  %vm5454_vm0 = vcmp.lt.s32.totalorder %v5432_v45, 4  ;;  %vm5452_vm2 = vcmp.lt.s32.totalorder %v5432_v45, 2 }
 0x50f   : > { %v5296_v21 = vsel %vm5213_vm8, %v5295_v20, %v5294_v31  ;;  %v7246_v23 = vmin.u32 %v5381_v37, %v12276_v46  ;;  %vm5453_vm3 = vcmp.lt.s32.totalorder %v5432_v45, 3  ;;  %vm5317_vm5 = vcmp.lt.s32.totalorder %v12101_v47, 0 }
 0x510   : > { %v5299_v57 = vsel %vm12254_vm14, %v12034_v3, %v5296_v21  ;;  %v5456_v5 = vsel %vm5454_vm0, %v5444_v2, 2102212464  ;;  %v5459_v41 = vsel %vm5451_vm1, %v5438_v34, %v5441_v12  ;;  %v5460_v38 = vsel %vm5454_vm0, %v5447_v25, 920167782 }
 0x511   : > { %7819 = vcosq.f32 %v5299_v57  ;;  %v5383_v63 = vclz %v7246_v23  ;;  %v5523_v8 = vand.u32 2147483647, %v12248_v6  ;;  %v7253_v9 = vadd.s32 4294967169, %v5527_v43 }
 0x512   : > { %7821 = vsinq.f32 %v5299_v57  ;;  %v5455_v1 = vsel %vm5451_vm1, %v5435_v53, %v5438_v34  ;;  %v5457_v7 = vsel %vm5453_vm3, %v5441_v12, %v5456_v5  ;;  %v5461_v54 = vsel %vm5453_vm3, %v5444_v2, %v5460_v38 }
 0x513   : > { %v5463_v61 = vsel %vm5451_vm1, %v5441_v12, %v5444_v2  ;;  %vm12300_vm4 = vcmp.le.f32.partialorder %v5315_v60, 0.7853982  ;;  %v5371_v13 = vadd.s32 %v12219_v56, %v12227_v52  ;;  %v7247_v42 = vadd.s32 4294967294, %v5383_v63 }
 0x514   : > { %v5462_v36 = vsel %vm5452_vm2, %v5459_v41, %v5461_v54  ;;  %v5464_v14 = vsel %vm5454_vm0, %v5450_v50, 1326507024  ;;  %v5401_v22 = vsub.s32 4, %v12262_v48  ;;  %vm5303_vm7 = vweird.f32 %v12034_v3 }
 0x515   : > { %v5465_v0 = vsel %vm5453_vm3, %v5447_v25, %v5464_v14  ;;  %v12311_v4 = vmul.u32.u64.low %v12279_v51, %v5462_v36  ;;  %v12312_v58 = vmul.u32.u64.high %v12279_v51, %v5462_v36, %v12311_v4  ;;  %vm7248_vm6 = vcmp.lt.s32.totalorder %v7247_v42, 0 }
 0x516   : > { %v5458_v60 = vsel %vm5452_vm2, %v5455_v1, %v5457_v7  ;;  %v5466_v56 = vsel %vm5452_vm2, %v5463_v61, %v5465_v0  ;;  %v5533_v52 = vadd.s32 1, %v7253_v9  ;;  %v5305_v18 = vand.u32 3, %v5304_v10 }
 0x517   : > { %v5386_v55 = vsel %vm7248_vm6, 0, %v7247_v42  ;;  %v12319_v19 = vmul.u32.u64.low %v12279_v51, %v5466_v56  ;;  %v12320_v11 = vmul.u32.u64.high %v12279_v51, %v5466_v56, %v12319_v19  ;;  %v5474_v40 = vmul.u32 %v12279_v51, %v5458_v60 }
 0x518   : > { %v5387_v62 = vsub.s32 32, %v5386_v55  ;;  %v5388_v17 = vshll.u32 %v12276_v46, %v5386_v55  ;;  %v5391_v16 = vsub.s32 4294967266, %v5386_v55  ;;  %vm5534_vm8 = vcmp.gt.s32.totalorder %v5533_v52, 0 }
 0x519   : > { %v5477_v27 = vadd.s32 1, %v12312_v58  ;;  %v5530_v45 = vand.u32 8388607, %v5523_v8  ;;  %v5535_v31 = vsel %vm5534_vm8, %v5533_v52, 0  ;;  %v5402_v15 = vsel %vm5317_vm5, %v5401_v22, %v12262_v48 }
 0x51a   : > { %v5389_v44 = vshrl.u32 %v5371_v13, %v5387_v62  ;;  %v5392_v35 = vadd.s32 127, %v5391_v16  ;;  %v5537_v10 = vand.u32 31, %v5535_v31  ;;  %vm5306_vm9 = vcmp.lt.s32.totalorder %v5305_v18, 2 }
 0x51b   : > { %v7820_v33 = vpop.eup %7819  ;;  %vm5307_vm11 = vcmp.eq.s32.totalorder %v5305_v18, 0  ;;  %vm5310_vm10 = vcmp.eq.s32.totalorder %v5305_v18, 2  ;;  %vm5476_vm12 = vc.u32 %v12320_v11, %v12311_v4  ;;  %v5404_v37 = vsel %vm12300_vm4, 0, %v5402_v15 }
 0x51c   : > { %v7822_v46 = vpop.eup %7821  ;;  %v5311_v51 = vxor.u32 2147483648, %v7820_v33  ;;  %v5390_v20 = vor.u32 %v5389_v44, %v5388_v17  ;;  %v5393_v34 = vshll.u32 %v5392_v35, 23  ;;  %v5478_v12 = vsel %vm5476_vm12, %v5477_v27, %v12312_v58 }
 0x51d   : > { %v5308_v43 = vxor.u32 2147483648, %v7822_v46  ;;  %v5479_v53 = vadd.s32 %v5478_v12, %v5474_v40  ;;  %v5538_v48 = vsub.s32 32, %v5537_v10  ;;  %v5531_v50 = vor.u32 8388608, %v5530_v45 }
 0x51e   : > { %v5312_v25 = vsel %vm5310_vm10, %v5311_v51, %v7822_v46  ;;  %v5394_v21 = vor.u32 4788187, %v5393_v34  ;;  %v5397_v2 = vcvt.s32.f32 %v5390_v20  ;;  %v5540_v5 = vshll.u32 %v7982_v24, %v5537_v10 }
 0x51f   : > { %v5309_v57 = vsel %vm5307_vm11, %v7820_v33, %v5308_v43  ;;  %v5480_v23 = vadd.s32 536870912, %v5479_v53  ;;  %v5543_v41 = vshll.u32 %v7983_v26, %v5537_v10  ;;  %v5541_v9 = vshrl.u32 %v7983_v26, %v5538_v48 }
 0x520   : > { %v5313_v38 = vsel %vm5306_vm9, %v5309_v57, %v5312_v25  ;;  %v5395_v63 = vand.u32 2147483647, %v5394_v21  ;;  %v5544_v1 = vshrl.u32 %v7984_v28, %v5538_v48  ;;  %v5546_v61 = vshll.u32 %v7984_v28, %v5537_v10 }
 0x521   : > { %v5314_v7 = vsel %vm5303_vm7, nan, %v5313_v38  ;;  %v5481_v54 = vshrl.u32 %v5480_v23, 30  ;;  %v5547_v13 = vshrl.u32 %v7985_v30, %v5538_v48  ;;  %v5536_v36 = vshrl.u32 %v5535_v31, 5 }
 0x522   : > { %v5398_v42 = vmul.f32 %v5397_v2, %v5395_v63  ;;  %v5549_v14 = vshll.u32 %v7985_v30, %v5537_v10  ;;  %v5550_v22 = vshrl.u32 %v7986_v32, %v5538_v48  ;;  %6923 = vst [vmem:[%s8389_s16 + $0x180] sm:$0xff] %v5314_v7  ;;  %v5408_v0 = vadd.s32 3, %v5404_v37 }
 0x523   : > { %v5482_v58 = vshll.u32 %v5481_v54, 30  ;;  %v5552_v60 = vshll.u32 %v7986_v32, %v5537_v10  ;;  %v12349_v56 = vshll.u32 %v5531_v50, 8  ;;  %v5539_v52 = vshrl.u32 %v7982_v24, %v5538_v48  ;;  %v12365_v10 = vld [vmem:[%s8105_s3 + $0x1a0] sm:$0xff] }
 0x524   : > { %v5399_v3 = vxor.u32 2147483648, %v5398_v42  ;;  %v5551_v18 = vor.u32 %v5550_v22, %v5549_v14  ;;  %v5553_v55 = vshrl.u32 %v7987_v39, %v5538_v48  ;;  %v5542_v62 = vor.u32 %v5541_v9, %v5540_v5 }
 0x525   : > { %v12353_v19 = vsub.s32 %v5479_v53, %v5482_v58  ;;  %v5545_v17 = vor.u32 %v5544_v1, %v5543_v41  ;;  %v5548_v16 = vor.u32 %v5547_v13, %v5546_v61  ;;  %vm5555_vm13 = vcmp.lt.s32.totalorder %v5536_v36, 1 }
 0x526   : > { %v5400_v40 = vsel %vm5317_vm5, %v5399_v3, %v5398_v42  ;;  %v5554_v27 = vor.u32 %v5553_v55, %v5552_v60  ;;  %vm5558_vm15 = vcmp.lt.s32.totalorder %v5536_v36, 4  ;;  %vm5556_vm14 = vcmp.lt.s32.totalorder %v5536_v36, 2 }
 0x527   : > { %v5403_v45 = vsel %vm12300_vm4, %v12101_v47, %v5400_v40  ;;  %v5485_v31 = vsub.s32 0, %v12353_v19  ;;  %vm5557_vm1 = vcmp.lt.s32.totalorder %v5536_v36, 3  ;;  %v5559_v44 = vsel %vm5555_vm13, %v5539_v52, %v5542_v62 }
 0x528   : > { %7823 = vcosq.f32 %v5403_v45  ;;  %v5560_v35 = vsel %vm5558_vm15, %v5548_v16, 2102212464  ;;  %v5564_v15 = vsel %vm5558_vm15, %v5551_v18, 920167782  ;;  %v5563_v29 = vsel %vm5555_vm13, %v5542_v62, %v5545_v17 }
 0x529   : > { %7825 = vsinq.f32 %v5403_v45  ;;  %v7250_v33 = vmin.u32 %v5485_v31, %v12353_v19  ;;  %v5561_v46 = vsel %vm5557_vm1, %v5545_v17, %v5560_v35  ;;  %v5409_v51 = vand.u32 3, %v5408_v0 }
 0x52a   : > { %v5565_v20 = vsel %vm5557_vm1, %v5548_v16, %v5564_v15  ;;  %v5567_v34 = vsel %vm5555_vm13, %v5545_v17, %v5548_v16  ;;  %v5568_v12 = vsel %vm5558_vm15, %v5554_v27, 1326507024  ;;  %vm12375_vm0 = vcmp.le.f32.partialorder %v5419_v59, 0.7853982 }
 0x52b   : > { %vm5421_vm2 = vcmp.lt.s32.totalorder %v12195_v49, 0  ;;  %v5487_v37 = vclz %v7250_v33  ;;  %v5505_v53 = vsub.s32 4, %v5481_v54  ;;  %v5562_v48 = vsel %vm5556_vm14, %v5559_v44, %v5561_v46 }
 0x52c   : > { %v5566_v25 = vsel %vm5556_vm14, %v5563_v29, %v5565_v20  ;;  %v5569_v21 = vsel %vm5557_vm1, %v5551_v18, %v5568_v12  ;;  %v5630_v2 = vand.u32 2139095040, %v12365_v10  ;;  %vm5407_vm3 = vweird.f32 %v12101_v47 }
 0x52d   : > { %v7251_v50 = vadd.s32 4294967294, %v5487_v37  ;;  %v5570_v59 = vsel %vm5556_vm14, %v5567_v34, %v5569_v21  ;;  %v12387_v57 = vmul.u32.u64.low %v12349_v56, %v5566_v25  ;;  %v12388_v23 = vmul.u32.u64.high %v12349_v56, %v5566_v25, %v12387_v57  ;;  %v12417_v34 = vld [vmem:[%s8105_s3 + $0x1a8] sm:$0xff] }
 0x52e   : > { %vm5410_vm5 = vcmp.lt.s32.totalorder %v5409_v51, 2  ;;  %v12392_v5 = vmul.u32.u64.low %v12349_v56, %v5570_v59  ;;  %v12393_v41 = vmul.u32.u64.high %v12349_v56, %v5570_v59, %v12392_v5  ;;  %v5631_v38 = vshrl.u32 %v5630_v2, 23 }
 0x52f   : > { %vm5411_vm4 = vcmp.eq.s32.totalorder %v5409_v51, 0  ;;  %v5475_v63 = vadd.s32 %v12311_v4, %v12320_v11  ;;  %vm7252_vm7 = vcmp.lt.s32.totalorder %v7251_v50, 0  ;;  %v5506_v9 = vsel %vm5421_vm2, %v5505_v53, %v5481_v54 }
 0x530   : > { %v5490_v1 = vsel %vm7252_vm7, 0, %v7251_v50  ;;  %v5578_v7 = vmul.u32 %v12349_v56, %v5562_v48  ;;  %v5627_v61 = vand.u32 2147483647, %v12365_v10  ;;  %v7257_v13 = vadd.s32 4294967169, %v5631_v38 }
 0x531   : > { %v5491_v42 = vsub.s32 32, %v5490_v1  ;;  %v5492_v36 = vshll.u32 %v12353_v19, %v5490_v1  ;;  %v5495_v14 = vsub.s32 4294967266, %v5490_v1  ;;  %v5581_v22 = vadd.s32 1, %v12388_v23 }
 0x532   : > { %v7824_v0 = vpop.eup %7823  ;;  %vm5414_vm6 = vcmp.eq.s32.totalorder %v5409_v51, 2  ;;  %v5508_v4 = vsel %vm12375_vm0, 0, %v5506_v9  ;;  %vm5580_vm8 = vc.u32 %v12393_v41, %v12387_v57  ;;  %v5637_v11 = vadd.s32 1, %v7257_v13 }
 0x533   : > { %v7826_v54 = vpop.eup %7825  ;;  %v5415_v58 = vxor.u32 2147483648, %v7824_v0  ;;  %v5493_v60 = vshrl.u32 %v5475_v63, %v5491_v42  ;;  %v5496_v56 = vadd.s32 127, %v5495_v14  ;;  %v5582_v3 = vsel %vm5580_vm8, %v5581_v22, %v12388_v23 }
 0x534   : > { %v5412_v52 = vxor.u32 2147483648, %v7826_v54  ;;  %v5583_v18 = vadd.s32 %v5582_v3, %v5578_v7  ;;  %v5634_v55 = vand.u32 8388607, %v5627_v61  ;;  %vm5638_vm9 = vcmp.gt.s32.totalorder %v5637_v11, 0 }
 0x535   : > { %v5416_v19 = vsel %vm5414_vm6, %v5415_v58, %v7826_v54  ;;  %v5494_v62 = vor.u32 %v5493_v60, %v5492_v36  ;;  %v5497_v17 = vshll.u32 %v5496_v56, 23  ;;  %v5639_v16 = vsel %vm5638_vm9, %v5637_v11, 0 }
 0x536   : > { %v5413_v40 = vsel %vm5411_vm4, %v7824_v0, %v5412_v52  ;;  %v5584_v27 = vadd.s32 536870912, %v5583_v18  ;;  %v5641_v45 = vand.u32 31, %v5639_v16  ;;  %v5512_v15 = vadd.s32 3, %v5508_v4 }
 0x537   : > { %v5417_v31 = vsel %vm5410_vm5, %v5413_v40, %v5416_v19  ;;  %v5498_v44 = vor.u32 4788187, %v5497_v17  ;;  %v5501_v35 = vcvt.s32.f32 %v5494_v62  ;;  %v5635_v29 = vor.u32 8388608, %v5634_v55 }
 0x538   : > { %v5418_v33 = vsel %vm5407_vm3, nan, %v5417_v31  ;;  %v12414_v46 = vshrl.u32 %v5584_v27, 30  ;;  %v5642_v20 = vsub.s32 32, %v5641_v45  ;;  %v5640_v37 = vshrl.u32 %v5639_v16, 5 }
 0x539   : > { %v5499_v12 = vand.u32 2147483647, %v5498_v44  ;;  %v5644_v53 = vshll.u32 %v7982_v24, %v5641_v45  ;;  %v5647_v48 = vshll.u32 %v7983_v26, %v5641_v45  ;;  %6924 = vst [vmem:[%s8389_s16 + $0x188] sm:$0xff] %v5418_v33  ;;  %v5650_v47 = vshll.u32 %v7984_v28, %v5641_v45 }
 0x53a   : > { %v5586_v51 = vshll.u32 %v12414_v46, 30  ;;  %v5645_v25 = vshrl.u32 %v7983_v26, %v5642_v20  ;;  %v5653_v21 = vshll.u32 %v7985_v30, %v5641_v45  ;;  %v5648_v50 = vshrl.u32 %v7984_v28, %v5642_v20 }
 0x53b   : > { %v5502_v2 = vmul.f32 %v5501_v35, %v5499_v12  ;;  %v5651_v59 = vshrl.u32 %v7985_v30, %v5642_v20  ;;  %v5654_v23 = vshrl.u32 %v7986_v32, %v5642_v20  ;;  %v12429_v5 = vand.u32 3, %v5512_v15 }
 0x53c   : > { %v12431_v38 = vsub.s32 %v5583_v18, %v5586_v51  ;;  %v5656_v63 = vshll.u32 %v7986_v32, %v5641_v45  ;;  %v5734_v9 = vand.u32 2139095040, %v12417_v34  ;;  %v5579_v7 = vadd.s32 %v12387_v57, %v12393_v41 }
 0x53d   : > { %v5503_v1 = vxor.u32 2147483648, %v5502_v2  ;;  %v5643_v13 = vshrl.u32 %v7982_v24, %v5642_v20  ;;  %v12438_v42 = vshll.u32 %v5635_v29, 8  ;;  %v5646_v14 = vor.u32 %v5645_v25, %v5644_v53 }
 0x53e   : > { %v5589_v36 = vsub.s32 0, %v12431_v38  ;;  %v5649_v22 = vor.u32 %v5648_v50, %v5647_v48  ;;  %v5657_v0 = vshrl.u32 %v7987_v39, %v5642_v20  ;;  %v5652_v11 = vor.u32 %v5651_v59, %v5650_v47 }
 0x53f   : > { %v5504_v4 = vsel %vm5421_vm2, %v5503_v1, %v5502_v2  ;;  %v5655_v54 = vor.u32 %v5654_v23, %v5653_v21  ;;  %vm5659_vm11 = vcmp.lt.s32.totalorder %v5640_v37, 1  ;;  %v5735_v60 = vshrl.u32 %v5734_v9, 23 }
 0x540   : > { %v5507_v57 = vsel %vm12375_vm0, %v12195_v49, %v5504_v4  ;;  %v7254_v41 = vmin.u32 %v5589_v36, %v12431_v38  ;;  %v5658_v58 = vor.u32 %v5657_v0, %v5656_v63  ;;  %vm5525_vm10 = vcmp.lt.s32.totalorder %v12248_v6, 0 }
 0x541   : > { %7827 = vcosq.f32 %v5507_v57  ;;  %vm5660_vm12 = vcmp.lt.s32.totalorder %v5640_v37, 2  ;;  %vm5661_vm13 = vcmp.lt.s32.totalorder %v5640_v37, 3  ;;  %vm5662_vm15 = vcmp.lt.s32.totalorder %v5640_v37, 4 }
 0x542   : > { %7829 = vsinq.f32 %v5507_v57  ;;  %v5591_v56 = vclz %v7254_v41  ;;  %v5663_v3 = vsel %vm5659_vm11, %v5643_v13, %v5646_v14  ;;  %v5667_v52 = vsel %vm5659_vm11, %v5646_v14, %v5649_v22 }
 0x543   : > { %v5609_v18 = vsub.s32 4, %v12414_v46  ;;  %v5664_v43 = vsel %vm5662_vm15, %v5652_v11, 2102212464  ;;  %v5668_v55 = vsel %vm5662_vm15, %v5655_v54, 920167782  ;;  %v5671_v19 = vsel %vm5659_vm11, %v5649_v22, %v5652_v11 }
 0x544   : > { %v7255_v62 = vadd.s32 4294967294, %v5591_v56  ;;  %v5665_v17 = vsel %vm5661_vm13, %v5649_v22, %v5664_v43  ;;  %v5669_v16 = vsel %vm5661_vm13, %v5652_v11, %v5668_v55  ;;  %v5672_v40 = vsel %vm5662_vm15, %v5658_v58, 1326507024 }
 0x545   : > { %v5666_v27 = vsel %vm5660_vm12, %v5663_v3, %v5665_v17  ;;  %v5670_v45 = vsel %vm5660_vm12, %v5667_v52, %v5669_v16  ;;  %v5673_v31 = vsel %vm5661_vm13, %v5655_v54, %v5672_v40  ;;  %v7261_v44 = vadd.s32 4294967169, %v5735_v60 }
 0x546   : > { %vm7256_vm14 = vcmp.lt.s32.totalorder %v7255_v62, 0  ;;  %v5674_v35 = vsel %vm5660_vm12, %v5671_v19, %v5673_v31  ;;  %v12460_v15 = vmul.u32.u64.low %v12438_v42, %v5670_v45  ;;  %v12461_v33 = vmul.u32.u64.high %v12438_v42, %v5670_v45, %v12460_v15 }
 0x547   : > { %v5594_v29 = vsel %vm7256_vm14, 0, %v7255_v62  ;;  %v12465_v20 = vmul.u32.u64.low %v12438_v42, %v5674_v35  ;;  %v12466_v12 = vmul.u32.u64.high %v12438_v42, %v5674_v35, %v12465_v20  ;;  %v5731_v53 = vand.u32 2147483647, %v12417_v34 }
 0x548   : > { %vm12471_vm1 = vcmp.le.f32.partialorder %v5523_v8, 0.7853982  ;;  %v5595_v37 = vsub.s32 32, %v5594_v29  ;;  %v5596_v51 = vshll.u32 %v12431_v38, %v5594_v29  ;;  %v5599_v25 = vsub.s32 4294967266, %v5594_v29 }
 0x549   : > { %vm5514_vm0 = vcmp.lt.s32.totalorder %v12429_v5, 2  ;;  %vm5515_vm2 = vcmp.eq.s32.totalorder %v12429_v5, 0  ;;  %v5682_v47 = vmul.u32 %v12438_v42, %v5666_v27  ;;  %v5741_v21 = vadd.s32 1, %v7261_v44 }
 0x54a   : > { %v5597_v2 = vshrl.u32 %v5579_v7, %v5595_v37  ;;  %v5600_v50 = vadd.s32 127, %v5599_v25  ;;  %v5610_v8 = vsel %vm5525_vm10, %v5609_v18, %v12414_v46  ;;  %v5685_v59 = vadd.s32 1, %v12461_v33 }
 0x54b   : > { %v7828_v23 = vpop.eup %7827  ;;  %vm5518_vm3 = vcmp.eq.s32.totalorder %v12429_v5, 2  ;;  %vm5684_vm5 = vc.u32 %v12466_v12, %v12460_v15  ;;  %v5738_v38 = vand.u32 8388607, %v5731_v53  ;;  %vm5742_vm4 = vcmp.gt.s32.totalorder %v5741_v21, 0 }
 0x54c   : > { %v7830_v63 = vpop.eup %7829  ;;  %v5519_v9 = vxor.u32 2147483648, %v7828_v23  ;;  %v5598_v1 = vor.u32 %v5597_v2, %v5596_v51  ;;  %v5601_v7 = vshll.u32 %v5600_v50, 23  ;;  %v5686_v13 = vsel %vm5684_vm5, %v5685_v59, %v12461_v33  ;;  %v12523_v50 = vld [vmem:[%s8105_s3 + $0x1b0] sm:$0xff] }
 0x54d   : > { %v5516_v42 = vxor.u32 2147483648, %v7830_v63  ;;  %v5612_v46 = vsel %vm12471_vm1, 0, %v5610_v8  ;;  %v5687_v36 = vadd.s32 %v5686_v13, %v5682_v47  ;;  %v5743_v14 = vsel %vm5742_vm4, %v5741_v21, 0 }
 0x54e   : > { %vm5511_vm7 = vweird.f32 %v12195_v49  ;;  %v5520_v22 = vsel %vm5518_vm3, %v5519_v9, %v7830_v63  ;;  %v5602_v0 = vor.u32 4788187, %v5601_v7  ;;  %v5605_v4 = vcvt.s32.f32 %v5598_v1 }
 0x54f   : > { %v5517_v11 = vsel %vm5515_vm2, %v7828_v23, %v5516_v42  ;;  %v5688_v54 = vadd.s32 536870912, %v5687_v36  ;;  %v5745_v57 = vand.u32 31, %v5743_v14  ;;  %v5616_v60 = vadd.s32 3, %v5612_v46 }
 0x550   : > { %v5521_v41 = vsel %vm5514_vm0, %v5517_v11, %v5520_v22  ;;  %v5603_v58 = vand.u32 2147483647, %v5602_v0  ;;  %v5739_v56 = vor.u32 8388608, %v5738_v38  ;;  %v5744_v18 = vshrl.u32 %v5743_v14, 5 }
 0x551   : > { %v5522_v3 = vsel %vm5511_vm7, nan, %v5521_v41  ;;  %v12496_v52 = vshrl.u32 %v5688_v54, 30  ;;  %v5746_v49 = vsub.s32 32, %v5745_v57  ;;  %v5748_v55 = vshll.u32 %v7982_v24, %v5745_v57 }
 0x552   : > { %v5606_v43 = vmul.f32 %v5605_v4, %v5603_v58  ;;  %v5751_v19 = vshll.u32 %v7983_v26, %v5745_v57  ;;  %6925 = vst [vmem:[%s8389_s16 + $0x190] sm:$0xff] %v5522_v3  ;;  %v5754_v5 = vshll.u32 %v7984_v28, %v5745_v57  ;;  %v5757_v16 = vshll.u32 %v7985_v30, %v5745_v57 }
 0x553   : > { %v5690_v62 = vshll.u32 %v12496_v52, 30  ;;  %v5749_v17 = vshrl.u32 %v7983_v26, %v5746_v49  ;;  %v5752_v27 = vshrl.u32 %v7984_v28, %v5746_v49  ;;  %v5755_v45 = vshrl.u32 %v7985_v30, %v5746_v49 }
 0x554   : > { %v5607_v40 = vxor.u32 2147483648, %v5606_v43  ;;  %v5758_v31 = vshrl.u32 %v7986_v32, %v5746_v49  ;;  %v12508_v44 = vand.u32 3, %v5616_v60  ;;  %vm5763_vm6 = vcmp.lt.s32.totalorder %v5744_v18, 1 }
 0x555   : > { %v12510_v35 = vsub.s32 %v5687_v36, %v5690_v62  ;;  %v12512_v33 = vshll.u32 %v5739_v56, 8  ;;  %v5750_v20 = vor.u32 %v5749_v17, %v5748_v55  ;;  %v5753_v37 = vor.u32 %v5752_v27, %v5751_v19 }
 0x556   : > { %v5608_v29 = vsel %vm5525_vm10, %v5607_v40, %v5606_v43  ;;  %v5760_v51 = vshll.u32 %v7986_v32, %v5745_v57  ;;  %v5747_v21 = vshrl.u32 %v7982_v24, %v5746_v49  ;;  %v5759_v2 = vor.u32 %v5758_v31, %v5757_v16 }
 0x557   : > { %v5611_v25 = vsel %vm12471_vm1, %v12248_v6, %v5608_v29  ;;  %v5693_v47 = vsub.s32 0, %v12510_v35  ;;  %v5756_v8 = vor.u32 %v5755_v45, %v5754_v5  ;;  %v5761_v59 = vshrl.u32 %v7987_v39, %v5746_v49 }
 0x558   : > { %7831 = vcosq.f32 %v5611_v25  ;;  %vm5766_vm8 = vcmp.lt.s32.totalorder %v5744_v18, 4  ;;  %vm5764_vm9 = vcmp.lt.s32.totalorder %v5744_v18, 2  ;;  %vm5765_vm11 = vcmp.lt.s32.totalorder %v5744_v18, 3 }
 0x559   : > { %7833 = vsinq.f32 %v5611_v25  ;;  %v7258_v23 = vmin.u32 %v5693_v47, %v12510_v35  ;;  %v5762_v38 = vor.u32 %v5761_v59, %v5760_v51  ;;  %v5768_v48 = vsel %vm5766_vm8, %v5756_v8, 2102212464 }
 0x55a   : > { %v5771_v63 = vsel %vm5763_vm6, %v5750_v20, %v5753_v37  ;;  %v5772_v9 = vsel %vm5766_vm8, %v5759_v2, 920167782  ;;  %v5683_v1 = vadd.s32 %v12460_v15, %v12466_v12  ;;  %v5767_v13 = vsel %vm5763_vm6, %v5747_v21, %v5750_v20 }
 0x55b   : > { %v5695_v7 = vclz %v7258_v23  ;;  %v5838_v42 = vand.u32 2139095040, %v12523_v50  ;;  %v5769_v46 = vsel %vm5765_vm11, %v5753_v37, %v5768_v48  ;;  %v5773_v36 = vsel %vm5765_vm11, %v5756_v8, %v5772_v9 }
 0x55c   : > { %v5775_v14 = vsel %vm5763_vm6, %v5753_v37, %v5756_v8  ;;  %v5776_v22 = vsel %vm5766_vm8, %v5762_v38, 1326507024  ;;  %vm5615_vm10 = vweird.f32 %v12248_v6  ;;  %v5713_v4 = vsub.s32 4, %v12496_v52 }
 0x55d   : > { %v7259_v0 = vadd.s32 4294967294, %v5695_v7  ;;  %v5774_v15 = vsel %vm5764_vm9, %v5771_v63, %v5773_v36  ;;  %v5777_v12 = vsel %vm5765_vm11, %v5759_v2, %v5776_v22  ;;  %v5770_v11 = vsel %vm5764_vm9, %v5767_v13, %v5769_v46 }
 0x55e   : > { %v5778_v54 = vsel %vm5764_vm9, %v5775_v14, %v5777_v12  ;;  %v12545_v57 = vmul.u32.u64.low %v12512_v33, %v5774_v15  ;;  %v12546_v41 = vmul.u32.u64.high %v12512_v33, %v5774_v15, %v12545_v57  ;;  %v5839_v56 = vshrl.u32 %v5838_v42, 23  ;;  %v12590_v14 = vld [vmem:[%s8105_s3 + $0x1b8] sm:$0xff] }
 0x55f   : > { %vm7260_vm12 = vcmp.lt.s32.totalorder %v7259_v0, 0  ;;  %v12550_v58 = vmul.u32.u64.low %v12512_v33, %v5778_v54  ;;  %v12551_v60 = vmul.u32.u64.high %v12512_v33, %v5778_v54, %v12550_v58  ;;  %vm5618_vm13 = vcmp.lt.s32.totalorder %v12508_v44, 2 }
 0x560   : > { %vm12556_vm15 = vcmp.le.f32.partialorder %v5627_v61, 0.7853982  ;;  %vm5629_vm14 = vcmp.lt.s32.totalorder %v12365_v10, 0  ;;  %v5698_v18 = vsel %vm7260_vm12, 0, %v7259_v0  ;;  %v7265_v19 = vadd.s32 4294967169, %v5839_v56 }
 0x561   : > { %v5699_v49 = vsub.s32 32, %v5698_v18  ;;  %v5700_v43 = vshll.u32 %v12510_v35, %v5698_v18  ;;  %v5703_v55 = vsub.s32 4294967266, %v5698_v18  ;;  %vm5619_vm1 = vcmp.eq.s32.totalorder %v12508_v44, 0 }
 0x562   : > { %v7832_v62 = vpop.eup %7831  ;;  %vm5622_vm0 = vcmp.eq.s32.totalorder %v12508_v44, 2  ;;  %v5786_v17 = vmul.u32 %v12512_v33, %v5770_v11  ;;  %v5789_v61 = vadd.s32 1, %v12546_v41  ;;  %v5714_v45 = vsel %vm5629_vm14, %v5713_v4, %v12496_v52 }
 0x563   : > { %v7834_v5 = vpop.eup %7833  ;;  %v5623_v16 = vxor.u32 2147483648, %v7832_v62  ;;  %v5701_v40 = vshrl.u32 %v5683_v1, %v5699_v49  ;;  %v5704_v27 = vadd.s32 127, %v5703_v55  ;;  %vm5788_vm2 = vc.u32 %v12551_v60, %v12545_v57 }
 0x564   : > { %v5620_v31 = vxor.u32 2147483648, %v7834_v5  ;;  %v5835_v35 = vand.u32 2147483647, %v12523_v50  ;;  %v5845_v29 = vadd.s32 1, %v7265_v19  ;;  %v5790_v51 = vsel %vm5788_vm2, %v5789_v61, %v12546_v41 }
 0x565   : > { %v5624_v20 = vsel %vm5622_vm0, %v5623_v16, %v7834_v5  ;;  %v5702_v37 = vor.u32 %v5701_v40, %v5700_v43  ;;  %v5705_v33 = vshll.u32 %v5704_v27, 23  ;;  %v5716_v47 = vsel %vm12556_vm15, 0, %v5714_v45 }
 0x566   : > { %v5621_v25 = vsel %vm5619_vm1, %v7832_v62, %v5620_v31  ;;  %v5791_v52 = vadd.s32 %v5790_v51, %v5786_v17  ;;  %vm5846_vm3 = vcmp.gt.s32.totalorder %v5845_v29, 0  ;;  %v5720_v9 = vadd.s32 3, %v5716_v47 }
 0x567   : > { %v5625_v21 = vsel %vm5618_vm13, %v5621_v25, %v5624_v20  ;;  %v5706_v2 = vor.u32 4788187, %v5705_v33  ;;  %v5709_v8 = vcvt.s32.f32 %v5702_v37  ;;  %v5847_v59 = vsel %vm5846_vm3, %v5845_v29, 0 }
 0x568   : > { %v5626_v23 = vsel %vm5615_vm10, nan, %v5625_v21  ;;  %v5792_v38 = vadd.s32 536870912, %v5791_v52  ;;  %v5849_v48 = vand.u32 31, %v5847_v59  ;;  %v5842_v7 = vand.u32 8388607, %v5835_v35 }
 0x569   : > { %v5707_v63 = vand.u32 2147483647, %v5706_v2  ;;  %6926 = vst [vmem:[%s8389_s16 + $0x198] sm:$0xff] %v5626_v23  ;;  %v12584_v13 = vshrl.u32 %v5847_v59, 5  ;;  %v12598_v58 = vand.u32 3, %v5720_v9  ;;  %vm5733_vm5 = vcmp.lt.s32.totalorder %v12417_v34, 0 }
 0x56a   : > { %v5793_v1 = vshrl.u32 %v5792_v38, 30  ;;  %v5850_v44 = vsub.s32 32, %v5849_v48  ;;  %v5852_v46 = vshll.u32 %v7982_v24, %v5849_v48  ;;  %v5855_v36 = vshll.u32 %v7983_v26, %v5849_v48 }
 0x56b   : > { %v5710_v42 = vmul.f32 %v5709_v8, %v5707_v63  ;;  %v5858_v6 = vshll.u32 %v7984_v28, %v5849_v48  ;;  %v5861_v4 = vshll.u32 %v7985_v30, %v5849_v48  ;;  %v5864_v15 = vshll.u32 %v7986_v32, %v5849_v48 }
 0x56c   : > { %v5794_v22 = vshll.u32 %v5793_v1, 30  ;;  %v5853_v0 = vshrl.u32 %v7983_v26, %v5850_v44  ;;  %v5856_v11 = vshrl.u32 %v7984_v28, %v5850_v44  ;;  %v5859_v54 = vshrl.u32 %v7985_v30, %v5850_v44 }
 0x56d   : > { %v5711_v12 = vxor.u32 2147483648, %v5710_v42  ;;  %v5862_v41 = vshrl.u32 %v7986_v32, %v5850_v44  ;;  %v5843_v18 = vor.u32 8388608, %v5842_v7  ;;  %v5865_v49 = vshrl.u32 %v7987_v39, %v5850_v44 }
 0x56e   : > { %v12600_v56 = vsub.s32 %v5791_v52, %v5794_v22  ;;  %v5851_v55 = vshrl.u32 %v7982_v24, %v5850_v44  ;;  %v5854_v19 = vor.u32 %v5853_v0, %v5852_v46  ;;  %v5942_v62 = vand.u32 2139095040, %v12590_v14 }
 0x56f   : > { %v5712_v43 = vsel %vm5629_vm14, %v5711_v12, %v5710_v42  ;;  %v5857_v5 = vor.u32 %v5856_v11, %v5855_v36  ;;  %v5860_v16 = vor.u32 %v5859_v54, %v5858_v6  ;;  %v5863_v40 = vor.u32 %v5862_v41, %v5861_v4 }
 0x570   : > { %v5715_v17 = vsel %vm12556_vm15, %v12365_v10, %v5712_v43  ;;  %v5797_v61 = vsub.s32 0, %v12600_v56  ;;  %v5866_v27 = vor.u32 %v5865_v49, %v5864_v15  ;;  %vm5867_vm4 = vcmp.lt.s32.totalorder %v12584_v13, 1 }
 0x571   : > { %7835 = vcosq.f32 %v5715_v17  ;;  %vm12615_vm7 = vcmp.le.f32.partialorder %v5731_v53, 0.7853982  ;;  %v5883_v3 = vshll.u32 %v5843_v18, 8  ;;  %v5817_v29 = vsub.s32 4, %v5793_v1 }
 0x572   : > { %7837 = vsinq.f32 %v5715_v17  ;;  %v7262_v31 = vmin.u32 %v5797_v61, %v12600_v56  ;;  %vm5869_vm6 = vcmp.lt.s32.totalorder %v12584_v13, 3  ;;  %vm5870_vm8 = vcmp.lt.s32.totalorder %v12584_v13, 4 }
 0x573   : > { %v5943_v20 = vshrl.u32 %v5942_v62, 23  ;;  %vm5868_vm9 = vcmp.lt.s32.totalorder %v12584_v13, 2  ;;  %v5875_v33 = vsel %vm5867_vm4, %v5854_v19, %v5857_v5  ;;  %v5879_v51 = vsel %vm5867_vm4, %v5857_v5, %v5860_v16 }
 0x574   : > { %v5799_v37 = vclz %v7262_v31  ;;  %vm5722_vm11 = vcmp.lt.s32.totalorder %v12598_v58, 2  ;;  %v5871_v53 = vsel %vm5867_vm4, %v5851_v55, %v5854_v19  ;;  %v5872_v25 = vsel %vm5870_vm8, %v5860_v16, 2102212464 }
 0x575   : > { %v5876_v47 = vsel %vm5870_vm8, %v5863_v40, 920167782  ;;  %v5880_v52 = vsel %vm5870_vm8, %v5866_v27, 1326507024  ;;  %vm5719_vm10 = vweird.f32 %v12365_v10  ;;  %v5873_v2 = vsel %vm5869_vm6, %v5857_v5, %v5872_v25 }
 0x576   : > { %v7263_v21 = vadd.s32 4294967294, %v5799_v37  ;;  %v5877_v8 = vsel %vm5869_vm6, %v5860_v16, %v5876_v47  ;;  %v5881_v59 = vsel %vm5869_vm6, %v5863_v40, %v5880_v52  ;;  %v5787_v23 = vadd.s32 %v12545_v57, %v12551_v60 }
 0x577   : > { %v5878_v38 = vsel %vm5868_vm9, %v5875_v33, %v5877_v8  ;;  %v5882_v48 = vsel %vm5868_vm9, %v5879_v51, %v5881_v59  ;;  %v7269_v63 = vadd.s32 4294967169, %v5943_v20  ;;  %v5818_v9 = vsel %vm5733_vm5, %v5817_v29, %v5793_v1 }
 0x578   : > { %vm7264_vm12 = vcmp.lt.s32.totalorder %v7263_v21, 0  ;;  %v12639_v7 = vmul.u32.u64.low %v5883_v3, %v5882_v48  ;;  %v12640_v44 = vmul.u32.u64.high %v5883_v3, %v5882_v48, %v12639_v7  ;;  %v5874_v46 = vsel %vm5868_vm9, %v5871_v53, %v5873_v2 }
 0x579   : > { %v5802_v42 = vsel %vm7264_vm12, 0, %v7263_v21  ;;  %v12644_v36 = vmul.u32.u64.low %v5883_v3, %v5878_v38  ;;  %v12645_v57 = vmul.u32.u64.high %v5883_v3, %v5878_v38, %v12644_v36  ;;  %v5949_v0 = vadd.s32 1, %v7269_v63 }
 0x57a   : > { %v5803_v60 = vsub.s32 32, %v5802_v42  ;;  %v5804_v6 = vshll.u32 %v12600_v56, %v5802_v42  ;;  %v5807_v22 = vsub.s32 4294967266, %v5802_v42  ;;  %vm5723_vm13 = vcmp.eq.s32.totalorder %v12598_v58, 0 }
 0x57b   : > { %v7836_v4 = vpop.eup %7835  ;;  %vm5726_vm15 = vcmp.eq.s32.totalorder %v12598_v58, 2  ;;  %v5820_v1 = vsel %vm12615_vm7, 0, %v5818_v9  ;;  %v5939_v13 = vand.u32 2147483647, %v12590_v14  ;;  %v5890_v41 = vmul.u32 %v5883_v3, %v5874_v46 }
 0x57c   : > { %v7838_v15 = vpop.eup %7837  ;;  %v5727_v12 = vxor.u32 2147483648, %v7836_v4  ;;  %v5805_v11 = vshrl.u32 %v5787_v23, %v5803_v60  ;;  %v5808_v54 = vadd.s32 127, %v5807_v22  ;;  %vm5892_vm14 = vc.u32 %v12640_v44, %v12644_v36  ;;  %v12684_v22 = vld [vmem:[%s8105_s3 + $0x1c0] sm:$0xff] }
 0x57d   : > { %v5724_v18 = vxor.u32 2147483648, %v7838_v15  ;;  %v5893_v56 = vadd.s32 1, %v12645_v57  ;;  %vm5950_vm1 = vcmp.gt.s32.totalorder %v5949_v0, 0  ;;  %v5946_v61 = vand.u32 8388607, %v5939_v13 }
 0x57e   : > { %v5728_v49 = vsel %vm5726_vm15, %v5727_v12, %v7838_v15  ;;  %v5806_v43 = vor.u32 %v5805_v11, %v5804_v6  ;;  %v5809_v55 = vshll.u32 %v5808_v54, 23  ;;  %v5951_v19 = vsel %vm5950_vm1, %v5949_v0, 0 }
 0x57f   : > { %v5725_v62 = vsel %vm5723_vm13, %v7836_v4, %v5724_v18  ;;  %v5894_v17 = vsel %vm5892_vm14, %v5893_v56, %v12645_v57  ;;  %v5953_v5 = vand.u32 31, %v5951_v19  ;;  %v5824_v29 = vadd.s32 3, %v5820_v1 }
 0x580   : > { %v5729_v16 = vsel %vm5722_vm11, %v5725_v62, %v5728_v49  ;;  %v5810_v40 = vor.u32 4788187, %v5809_v55  ;;  %v5813_v27 = vcvt.s32.f32 %v5806_v43  ;;  %v5895_v31 = vadd.s32 %v5894_v17, %v5890_v41 }
 0x581   : > { %v5730_v3 = vsel %vm5719_vm10, nan, %v5729_v16  ;;  %v5954_v20 = vsub.s32 32, %v5953_v5  ;;  %v5956_v37 = vshll.u32 %v7982_v24, %v5953_v5  ;;  %v5959_v53 = vshll.u32 %v7983_v26, %v5953_v5 }
 0x582   : > { %v5811_v33 = vand.u32 2147483647, %v5810_v40  ;;  %v5896_v51 = vadd.s32 536870912, %v5895_v31  ;;  %v5962_v25 = vshll.u32 %v7984_v28, %v5953_v5  ;;  %6927 = vst [vmem:[%s8389_s16 + $0x1a0] sm:$0xff] %v5730_v3  ;;  %v5965_v10 = vshll.u32 %v7985_v30, %v5953_v5 }
 0x583   : > { %v5957_v58 = vshrl.u32 %v7983_v26, %v5954_v20  ;;  %v5960_v47 = vshrl.u32 %v7984_v28, %v5954_v20  ;;  %v5963_v52 = vshrl.u32 %v7985_v30, %v5954_v20  ;;  %v5952_v8 = vshrl.u32 %v5951_v19, 5 }
 0x584   : > { %v5814_v21 = vmul.f32 %v5813_v27, %v5811_v33  ;;  %v12674_v2 = vshrl.u32 %v5896_v51, 30  ;;  %v5966_v59 = vshrl.u32 %v7986_v32, %v5954_v20  ;;  %v5947_v23 = vor.u32 8388608, %v5946_v61 }
 0x585   : > { %v5968_v38 = vshll.u32 %v7986_v32, %v5953_v5  ;;  %v5969_v48 = vshrl.u32 %v7987_v39, %v5954_v20  ;;  %v12679_v9 = vand.u32 3, %v5824_v29  ;;  %v5955_v42 = vshrl.u32 %v7982_v24, %v5954_v20 }
 0x586   : > { %v5815_v63 = vxor.u32 2147483648, %v5814_v21  ;;  %v5898_v7 = vshll.u32 %v12674_v2, 30  ;;  %v5958_v46 = vor.u32 %v5957_v58, %v5956_v37  ;;  %v5961_v57 = vor.u32 %v5960_v47, %v5959_v53 }
 0x587   : > { %v5964_v60 = vor.u32 %v5963_v52, %v5962_v25  ;;  %v5967_v6 = vor.u32 %v5966_v59, %v5965_v10  ;;  %vm5971_vm0 = vcmp.lt.s32.totalorder %v5952_v8, 1  ;;  %vm5974_vm2 = vcmp.lt.s32.totalorder %v5952_v8, 4 }
 0x588   : > { %v5816_v0 = vsel %vm5733_vm5, %v5815_v63, %v5814_v21  ;;  %v12688_v4 = vsub.s32 %v5895_v31, %v5898_v7  ;;  %v5970_v15 = vor.u32 %v5969_v48, %v5968_v38  ;;  %vm5973_vm3 = vcmp.lt.s32.totalorder %v5952_v8, 3 }
 0x589   : > { %v5819_v1 = vsel %vm12615_vm7, %v12417_v34, %v5816_v0  ;;  %v5987_v12 = vshll.u32 %v5947_v23, 8  ;;  %vm5972_vm4 = vcmp.lt.s32.totalorder %v5952_v8, 2  ;;  %v5976_v54 = vsel %vm5974_vm2, %v5964_v60, 2102212464 }
 0x58a   : > { %7839 = vcosq.f32 %v5819_v1  ;;  %v5901_v11 = vsub.s32 0, %v12688_v4  ;;  %v5979_v41 = vsel %vm5971_vm0, %v5958_v46, %v5961_v57  ;;  %v5980_v18 = vsel %vm5974_vm2, %v5967_v6, 920167782 }
 0x58b   : > { %7841 = vsinq.f32 %v5819_v1  ;;  %v6046_v56 = vand.u32 2139095040, %v12684_v22  ;;  %v5975_v45 = vsel %vm5971_vm0, %v5955_v42, %v5958_v46  ;;  %v5981_v43 = vsel %vm5973_vm3, %v5964_v60, %v5980_v18 }
 0x58c   : > { %v7266_v49 = vmin.u32 %v5901_v11, %v12688_v4  ;;  %v5977_v55 = vsel %vm5973_vm3, %v5961_v57, %v5976_v54  ;;  %v5982_v19 = vsel %vm5972_vm4, %v5979_v41, %v5981_v43  ;;  %v5983_v62 = vsel %vm5971_vm0, %v5961_v57, %v5964_v60 }
 0x58d   : > { %v5984_v17 = vsel %vm5974_vm2, %v5970_v15, 1326507024  ;;  %vm5826_vm5 = vcmp.lt.s32.totalorder %v12679_v9, 2  ;;  %vm5837_vm7 = vcmp.lt.s32.totalorder %v12523_v50, 0  ;;  %v6047_v27 = vshrl.u32 %v6046_v56, 23 }
 0x58e   : > { %v5903_v61 = vclz %v7266_v49  ;;  %v5985_v5 = vsel %vm5973_vm3, %v5967_v6, %v5984_v17  ;;  %v12708_v16 = vmul.u32.u64.low %v5987_v12, %v5982_v19  ;;  %v12709_v40 = vmul.u32.u64.high %v5987_v12, %v5982_v19, %v12708_v16  ;;  %v12737_v6 = vld [vmem:[%s8105_s3 + $0x1c8] sm:$0xff] }
 0x58f   : > { %v5921_v3 = vsub.s32 4, %v12674_v2  ;;  %v5978_v29 = vsel %vm5972_vm4, %v5975_v45, %v5977_v55  ;;  %v5986_v20 = vsel %vm5972_vm4, %v5983_v62, %v5985_v5  ;;  %v6043_v51 = vand.u32 2147483647, %v12684_v22 }
 0x590   : > { %v7267_v31 = vadd.s32 4294967294, %v5903_v61  ;;  %v12715_v37 = vmul.u32.u64.low %v5987_v12, %v5986_v20  ;;  %v12716_v33 = vmul.u32.u64.high %v5987_v12, %v5986_v20, %v12715_v37  ;;  %v7273_v53 = vadd.s32 4294967169, %v6047_v27 }
 0x591   : > { %vm5827_vm6 = vcmp.eq.s32.totalorder %v12679_v9, 0  ;;  %vm5830_vm8 = vcmp.eq.s32.totalorder %v12679_v9, 2  ;;  %v5891_v25 = vadd.s32 %v12644_v36, %v12640_v44  ;;  %v5994_v47 = vmul.u32 %v5987_v12, %v5978_v29 }
 0x592   : > { %vm7268_vm9 = vcmp.lt.s32.totalorder %v7267_v31, 0  ;;  %v5997_v52 = vadd.s32 1, %v12709_v40  ;;  %v6053_v10 = vadd.s32 1, %v7273_v53  ;;  %v5922_v38 = vsel %vm5837_vm7, %v5921_v3, %v12674_v2 }
 0x593   : > { %v5906_v58 = vsel %vm7268_vm9, 0, %v7267_v31  ;;  %vm5996_vm11 = vc.u32 %v12716_v33, %v12708_v16  ;;  %v6050_v44 = vand.u32 8388607, %v6043_v51  ;;  %vm5823_vm12 = vweird.f32 %v12417_v34 }
 0x594   : > { %v7840_v21 = vpop.eup %7839  ;;  %v5907_v8 = vsub.s32 32, %v5906_v58  ;;  %v5908_v59 = vshll.u32 %v12688_v4, %v5906_v58  ;;  %v5911_v23 = vsub.s32 4294967266, %v5906_v58  ;;  %vm6054_vm10 = vcmp.gt.s32.totalorder %v6053_v10, 0 }
 0x595   : > { %v7842_v48 = vpop.eup %7841  ;;  %v5831_v63 = vxor.u32 2147483648, %v7840_v21  ;;  %v5998_v46 = vsel %vm5996_vm11, %v5997_v52, %v12709_v40  ;;  %v6055_v60 = vsel %vm6054_vm10, %v6053_v10, 0  ;;  %vm12743_vm13 = vcmp.le.f32.partialorder %v5835_v35, 0.7853982 }
 0x596   : > { %v5828_v36 = vxor.u32 2147483648, %v7842_v48  ;;  %v5909_v7 = vshrl.u32 %v5891_v25, %v5907_v8  ;;  %v5912_v42 = vadd.s32 127, %v5911_v23  ;;  %v5999_v2 = vadd.s32 %v5998_v46, %v5994_v47 }
 0x597   : > { %v5832_v57 = vsel %vm5830_vm8, %v5831_v63, %v7842_v48  ;;  %v5924_v12 = vsel %vm12743_vm13, 0, %v5922_v38  ;;  %v6057_v54 = vand.u32 31, %v6055_v60  ;;  %v6051_v49 = vor.u32 8388608, %v6050_v44 }
 0x598   : > { %v5829_v0 = vsel %vm5827_vm6, %v7840_v21, %v5828_v36  ;;  %v5910_v1 = vor.u32 %v5909_v7, %v5908_v59  ;;  %v5913_v15 = vshll.u32 %v5912_v42, 23  ;;  %v6000_v11 = vadd.s32 536870912, %v5999_v2 }
 0x599   : > { %v5833_v34 = vsel %vm5826_vm5, %v5829_v0, %v5832_v57  ;;  %v6056_v35 = vshrl.u32 %v6055_v60, 5  ;;  %v6058_v43 = vsub.s32 32, %v6057_v54  ;;  %v6150_v55 = vand.u32 2139095040, %v12737_v6 }
 0x59a   : > { %v5834_v41 = vsel %vm5823_vm12, nan, %v5833_v34  ;;  %v5914_v18 = vor.u32 4788187, %v5913_v15  ;;  %v5917_v56 = vcvt.s32.f32 %v5910_v1  ;;  %v12751_v45 = vshrl.u32 %v6000_v11, 30 }
 0x59b   : > { %6928 = vst [vmem:[%s8389_s16 + $0x1a8] sm:$0xff] %v5834_v41  ;;  %v6060_v9 = vshll.u32 %v7982_v24, %v6057_v54  ;;  %v6063_v62 = vshll.u32 %v7983_v26, %v6057_v54  ;;  %v6066_v17 = vshll.u32 %v7984_v28, %v6057_v54  ;;  %v6061_v5 = vshrl.u32 %v7983_v26, %v6058_v43 }
 0x59c   : > { %v5915_v19 = vand.u32 2147483647, %v5914_v18  ;;  %v6002_v61 = vshll.u32 %v12751_v45, 30  ;;  %v6069_v40 = vshll.u32 %v7985_v30, %v6057_v54  ;;  %v6072_v27 = vshll.u32 %v7986_v32, %v6057_v54 }
 0x59d   : > { %v6064_v3 = vshrl.u32 %v7984_v28, %v6058_v43  ;;  %v6067_v29 = vshrl.u32 %v7985_v30, %v6058_v43  ;;  %v6070_v20 = vshrl.u32 %v7986_v32, %v6058_v43  ;;  %v5928_v37 = vadd.s32 3, %v5924_v12 }
 0x59e   : > { %v5918_v31 = vmul.f32 %v5917_v56, %v5915_v19  ;;  %v12765_v53 = vsub.s32 %v5999_v2, %v6002_v61  ;;  %v6073_v25 = vshrl.u32 %v7987_v39, %v6058_v43  ;;  %v12768_v58 = vshll.u32 %v6051_v49, 8 }
 0x59f   : > { %v6062_v52 = vor.u32 %v6061_v5, %v6060_v9  ;;  %v6065_v10 = vor.u32 %v6064_v3, %v6063_v62  ;;  %v6151_v21 = vshrl.u32 %v6150_v55, 23  ;;  %v6059_v59 = vshrl.u32 %v7982_v24, %v6058_v43 }
 0x5a0   : > { %v5919_v47 = vxor.u32 2147483648, %v5918_v31  ;;  %v6005_v8 = vsub.s32 0, %v12765_v53  ;;  %v6071_v23 = vor.u32 %v6070_v20, %v6069_v40  ;;  %vm6075_vm15 = vcmp.lt.s32.totalorder %v6056_v35, 1 }
 0x5a1   : > { %v6068_v48 = vor.u32 %v6067_v29, %v6066_v17  ;;  %v6074_v63 = vor.u32 %v6073_v25, %v6072_v27  ;;  %vm6078_vm14 = vcmp.lt.s32.totalorder %v6056_v35, 4  ;;  %vm6076_vm1 = vcmp.lt.s32.totalorder %v6056_v35, 2 }
 0x5a2   : > { %v5920_v38 = vsel %vm5837_vm7, %v5919_v47, %v5918_v31  ;;  %v7270_v36 = vmin.u32 %v6005_v8, %v12765_v53  ;;  %vm6077_vm0 = vcmp.lt.s32.totalorder %v6056_v35, 3  ;;  %vm5941_vm2 = vcmp.lt.s32.totalorder %v12590_v14, 0 }
 0x5a3   : > { %v5923_v44 = vsel %vm12743_vm13, %v12523_v50, %v5920_v38  ;;  %v6080_v7 = vsel %vm6078_vm14, %v6068_v48, 2102212464  ;;  %v6083_v42 = vsel %vm6075_vm15, %v6062_v52, %v6065_v10  ;;  %v6084_v46 = vsel %vm6078_vm14, %v6071_v23, 920167782 }
 0x5a4   : > { %7843 = vcosq.f32 %v5923_v44  ;;  %v6007_v57 = vclz %v7270_v36  ;;  %v6147_v2 = vand.u32 2147483647, %v12737_v6  ;;  %v7277_v60 = vadd.s32 4294967169, %v6151_v21 }
 0x5a5   : > { %7845 = vsinq.f32 %v5923_v44  ;;  %v6079_v0 = vsel %vm6075_vm15, %v6059_v59, %v6062_v52  ;;  %v6081_v4 = vsel %vm6077_vm0, %v6065_v10, %v6080_v7  ;;  %v6085_v1 = vsel %vm6077_vm0, %v6068_v48, %v6084_v46 }
 0x5a6   : > { %v6087_v15 = vsel %vm6075_vm15, %v6065_v10, %v6068_v48  ;;  %vm12789_vm3 = vcmp.le.f32.partialorder %v5939_v13, 0.7853982  ;;  %v5995_v12 = vadd.s32 %v12708_v16, %v12716_v33  ;;  %v7271_v11 = vadd.s32 4294967294, %v6007_v57 }
 0x5a7   : > { %v6086_v54 = vsel %vm6076_vm1, %v6083_v42, %v6085_v1  ;;  %v6088_v41 = vsel %vm6078_vm14, %v6074_v63, 1326507024  ;;  %v6025_v18 = vsub.s32 4, %v12751_v45  ;;  %vm5927_vm4 = vweird.f32 %v12523_v50 }
 0x5a8   : > { %v6089_v56 = vsel %vm6077_vm0, %v6071_v23, %v6088_v41  ;;  %v12800_v49 = vmul.u32.u64.low %v12768_v58, %v6086_v54  ;;  %v12801_v43 = vmul.u32.u64.high %v12768_v58, %v6086_v54, %v12800_v49  ;;  %vm7272_vm5 = vcmp.lt.s32.totalorder %v7271_v11, 0 }
 0x5a9   : > { %v6082_v13 = vsel %vm6076_vm1, %v6079_v0, %v6081_v4  ;;  %v6090_v16 = vsel %vm6076_vm1, %v6087_v15, %v6089_v56  ;;  %v6157_v33 = vadd.s32 1, %v7277_v60  ;;  %v5929_v55 = vand.u32 3, %v5928_v37 }
 0x5aa   : > { %v6010_v19 = vsel %vm7272_vm5, 0, %v7271_v11  ;;  %v12808_v9 = vmul.u32.u64.low %v12768_v58, %v6090_v16  ;;  %v12809_v62 = vmul.u32.u64.high %v12768_v58, %v6090_v16, %v12808_v9  ;;  %v6098_v40 = vmul.u32 %v12768_v58, %v6082_v13 }
 0x5ab   : > { %v6011_v17 = vsub.s32 32, %v6010_v19  ;;  %v6012_v61 = vshll.u32 %v12765_v53, %v6010_v19  ;;  %v6015_v5 = vsub.s32 4294967266, %v6010_v19  ;;  %vm6158_vm7 = vcmp.gt.s32.totalorder %v6157_v33, 0 }
 0x5ac   : > { %v6101_v27 = vadd.s32 1, %v12801_v43  ;;  %v6154_v35 = vand.u32 8388607, %v6147_v2  ;;  %v6159_v31 = vsel %vm6158_vm7, %v6157_v33, 0  ;;  %v6026_v20 = vsel %vm5941_vm2, %v6025_v18, %v12751_v45 }
 0x5ad   : > { %v6013_v3 = vshrl.u32 %v5995_v12, %v6011_v17  ;;  %v6016_v29 = vadd.s32 127, %v6015_v5  ;;  %v6161_v37 = vand.u32 31, %v6159_v31  ;;  %vm5930_vm6 = vcmp.lt.s32.totalorder %v5929_v55, 2 }
 0x5ae   : > { %v7844_v25 = vpop.eup %7843  ;;  %vm5931_vm8 = vcmp.eq.s32.totalorder %v5929_v55, 0  ;;  %vm5934_vm9 = vcmp.eq.s32.totalorder %v5929_v55, 2  ;;  %vm6100_vm11 = vc.u32 %v12809_v62, %v12800_v49  ;;  %v6028_v8 = vsel %vm12789_vm3, 0, %v6026_v20 }
 0x5af   : > { %v7846_v53 = vpop.eup %7845  ;;  %v5935_v58 = vxor.u32 2147483648, %v7844_v25  ;;  %v6014_v47 = vor.u32 %v6013_v3, %v6012_v61  ;;  %v6017_v52 = vshll.u32 %v6016_v29, 23  ;;  %v6102_v10 = vsel %vm6100_vm11, %v6101_v27, %v12801_v43 }
 0x5b0   : > { %v5932_v21 = vxor.u32 2147483648, %v7846_v53  ;;  %v6103_v59 = vadd.s32 %v6102_v10, %v6098_v40  ;;  %v6162_v45 = vsub.s32 32, %v6161_v37  ;;  %v6155_v63 = vor.u32 8388608, %v6154_v35 }
 0x5b1   : > { %v5936_v23 = vsel %vm5934_vm9, %v5935_v58, %v7846_v53  ;;  %v6018_v38 = vor.u32 4788187, %v6017_v52  ;;  %v6021_v48 = vcvt.s32.f32 %v6014_v47  ;;  %v6164_v7 = vshll.u32 %v7982_v24, %v6161_v37 }
 0x5b2   : > { %v5933_v44 = vsel %vm5931_vm8, %v7844_v25, %v5932_v21  ;;  %v6104_v36 = vadd.s32 536870912, %v6103_v59  ;;  %v6167_v42 = vshll.u32 %v7983_v26, %v6161_v37  ;;  %v6165_v60 = vshrl.u32 %v7983_v26, %v6162_v45 }
 0x5b3   : > { %v5937_v46 = vsel %vm5930_vm6, %v5933_v44, %v5936_v23  ;;  %v6019_v57 = vand.u32 2147483647, %v6018_v38  ;;  %v6168_v0 = vshrl.u32 %v7984_v28, %v6162_v45  ;;  %v6170_v15 = vshll.u32 %v7984_v28, %v6161_v37 }
 0x5b4   : > { %v5938_v4 = vsel %vm5927_vm4, nan, %v5937_v46  ;;  %v6105_v1 = vshrl.u32 %v6104_v36, 30  ;;  %v6171_v12 = vshrl.u32 %v7985_v30, %v6162_v45  ;;  %v6160_v54 = vshrl.u32 %v6159_v31, 5 }
 0x5b5   : > { %v6022_v11 = vmul.f32 %v6021_v48, %v6019_v57  ;;  %v6173_v41 = vshll.u32 %v7985_v30, %v6161_v37  ;;  %v6174_v18 = vshrl.u32 %v7986_v32, %v6162_v45  ;;  %6929 = vst [vmem:[%s8389_s16 + $0x1b0] sm:$0xff] %v5938_v4  ;;  %v6032_v56 = vadd.s32 3, %v6028_v8 }
 0x5b6   : > { %v6106_v43 = vshll.u32 %v6105_v1, 30  ;;  %v6176_v13 = vshll.u32 %v7986_v32, %v6161_v37  ;;  %v12838_v16 = vshll.u32 %v6155_v63, 8  ;;  %v6163_v33 = vshrl.u32 %v7982_v24, %v6162_v45  ;;  %v12854_v37 = vld [vmem:[%s8105_s3 + $0x1d0] sm:$0xff] }
 0x5b7   : > { %v6023_v50 = vxor.u32 2147483648, %v6022_v11  ;;  %v6175_v55 = vor.u32 %v6174_v18, %v6173_v41  ;;  %v6177_v19 = vshrl.u32 %v7987_v39, %v6162_v45  ;;  %v6166_v17 = vor.u32 %v6165_v60, %v6164_v7 }
 0x5b8   : > { %v12842_v9 = vsub.s32 %v6103_v59, %v6106_v43  ;;  %v6169_v61 = vor.u32 %v6168_v0, %v6167_v42  ;;  %v6172_v5 = vor.u32 %v6171_v12, %v6170_v15  ;;  %vm6179_vm10 = vcmp.lt.s32.totalorder %v6160_v54, 1 }
 0x5b9   : > { %v6024_v40 = vsel %vm5941_vm2, %v6023_v50, %v6022_v11  ;;  %v6178_v27 = vor.u32 %v6177_v19, %v6176_v13  ;;  %vm6182_vm12 = vcmp.lt.s32.totalorder %v6160_v54, 4  ;;  %vm6180_vm13 = vcmp.lt.s32.totalorder %v6160_v54, 2 }
 0x5ba   : > { %v6027_v35 = vsel %vm12789_vm3, %v12590_v14, %v6024_v40  ;;  %v6109_v31 = vsub.s32 0, %v12842_v9  ;;  %vm6181_vm15 = vcmp.lt.s32.totalorder %v6160_v54, 3  ;;  %v6183_v3 = vsel %vm6179_vm10, %v6163_v33, %v6166_v17 }
 0x5bb   : > { %7847 = vcosq.f32 %v6027_v35  ;;  %v6184_v29 = vsel %vm6182_vm12, %v6172_v5, 2102212464  ;;  %v6188_v20 = vsel %vm6182_vm12, %v6175_v55, 920167782  ;;  %v6187_v34 = vsel %vm6179_vm10, %v6166_v17, %v6169_v61 }
 0x5bc   : > { %7849 = vsinq.f32 %v6027_v35  ;;  %v7274_v25 = vmin.u32 %v6109_v31, %v12842_v9  ;;  %v6185_v53 = vsel %vm6181_vm15, %v6169_v61, %v6184_v29  ;;  %v6033_v58 = vand.u32 3, %v6032_v56 }
 0x5bd   : > { %v6189_v47 = vsel %vm6181_vm15, %v6172_v5, %v6188_v20  ;;  %v6191_v52 = vsel %vm6179_vm10, %v6169_v61, %v6172_v5  ;;  %v6192_v10 = vsel %vm6182_vm12, %v6178_v27, 1326507024  ;;  %vm12864_vm14 = vcmp.le.f32.partialorder %v6043_v51, 0.7853982 }
 0x5be   : > { %vm6045_vm1 = vcmp.lt.s32.totalorder %v12684_v22, 0  ;;  %v6111_v8 = vclz %v7274_v25  ;;  %v6129_v59 = vsub.s32 4, %v6105_v1  ;;  %v6186_v45 = vsel %vm6180_vm13, %v6183_v3, %v6185_v53 }
 0x5bf   : > { %v6190_v23 = vsel %vm6180_vm13, %v6187_v34, %v6189_v47  ;;  %v6193_v38 = vsel %vm6181_vm15, %v6175_v55, %v6192_v10  ;;  %v6254_v48 = vand.u32 2139095040, %v12854_v37  ;;  %vm6031_vm0 = vweird.f32 %v12590_v14 }
 0x5c0   : > { %v7275_v63 = vadd.s32 4294967294, %v6111_v8  ;;  %v6194_v51 = vsel %vm6180_vm13, %v6191_v52, %v6193_v38  ;;  %v12876_v44 = vmul.u32.u64.low %v12838_v16, %v6190_v23  ;;  %v12877_v36 = vmul.u32.u64.high %v12838_v16, %v6190_v23, %v12876_v44  ;;  %v12906_v52 = vld [vmem:[%s8105_s3 + $0x1d8] sm:$0xff] }
 0x5c1   : > { %vm6034_vm2 = vcmp.lt.s32.totalorder %v6033_v58, 2  ;;  %v12881_v7 = vmul.u32.u64.low %v12838_v16, %v6194_v51  ;;  %v12882_v42 = vmul.u32.u64.high %v12838_v16, %v6194_v51, %v12881_v7  ;;  %v6255_v46 = vshrl.u32 %v6254_v48, 23 }
 0x5c2   : > { %vm6035_vm3 = vcmp.eq.s32.totalorder %v6033_v58, 0  ;;  %v6099_v57 = vadd.s32 %v12800_v49, %v12809_v62  ;;  %vm7276_vm4 = vcmp.lt.s32.totalorder %v7275_v63, 0  ;;  %v6130_v60 = vsel %vm6045_vm1, %v6129_v59, %v6105_v1 }
 0x5c3   : > { %v6114_v0 = vsel %vm7276_vm4, 0, %v7275_v63  ;;  %v6202_v4 = vmul.u32 %v12838_v16, %v6186_v45  ;;  %v6251_v15 = vand.u32 2147483647, %v12854_v37  ;;  %v7281_v12 = vadd.s32 4294967169, %v6255_v46 }
 0x5c4   : > { %v6115_v11 = vsub.s32 32, %v6114_v0  ;;  %v6116_v54 = vshll.u32 %v12842_v9, %v6114_v0  ;;  %v6119_v41 = vsub.s32 4294967266, %v6114_v0  ;;  %v6205_v18 = vadd.s32 1, %v12877_v36 }
 0x5c5   : > { %v7848_v56 = vpop.eup %7847  ;;  %vm6038_vm5 = vcmp.eq.s32.totalorder %v6033_v58, 2  ;;  %v6132_v49 = vsel %vm12864_vm14, 0, %v6130_v60  ;;  %vm6204_vm7 = vc.u32 %v12882_v42, %v12876_v44  ;;  %v6261_v62 = vadd.s32 1, %v7281_v12 }
 0x5c6   : > { %v7850_v1 = vpop.eup %7849  ;;  %v6039_v43 = vxor.u32 2147483648, %v7848_v56  ;;  %v6117_v13 = vshrl.u32 %v6099_v57, %v6115_v11  ;;  %v6120_v16 = vadd.s32 127, %v6119_v41  ;;  %v6206_v50 = vsel %vm6204_vm7, %v6205_v18, %v12877_v36 }
 0x5c7   : > { %v6036_v33 = vxor.u32 2147483648, %v7850_v1  ;;  %v6207_v55 = vadd.s32 %v6206_v50, %v6202_v4  ;;  %v6258_v19 = vand.u32 8388607, %v6251_v15  ;;  %vm6262_vm6 = vcmp.gt.s32.totalorder %v6261_v62, 0 }
 0x5c8   : > { %v6040_v9 = vsel %vm6038_vm5, %v6039_v43, %v7850_v1  ;;  %v6118_v17 = vor.u32 %v6117_v13, %v6116_v54  ;;  %v6121_v61 = vshll.u32 %v6120_v16, 23  ;;  %v6263_v5 = vsel %vm6262_vm6, %v6261_v62, 0 }
 0x5c9   : > { %v6037_v40 = vsel %vm6035_vm3, %v7848_v56, %v6036_v33  ;;  %v6208_v27 = vadd.s32 536870912, %v6207_v55  ;;  %v6265_v35 = vand.u32 31, %v6263_v5  ;;  %v6136_v20 = vadd.s32 3, %v6132_v49 }
 0x5ca   : > { %v6041_v31 = vsel %vm6034_vm2, %v6037_v40, %v6040_v9  ;;  %v6122_v3 = vor.u32 4788187, %v6121_v61  ;;  %v6125_v29 = vcvt.s32.f32 %v6118_v17  ;;  %v6259_v34 = vor.u32 8388608, %v6258_v19 }
 0x5cb   : > { %v6042_v25 = vsel %vm6031_vm0, nan, %v6041_v31  ;;  %v12903_v53 = vshrl.u32 %v6208_v27, 30  ;;  %v6266_v47 = vsub.s32 32, %v6265_v35  ;;  %v6264_v8 = vshrl.u32 %v6263_v5, 5 }
 0x5cc   : > { %v6123_v10 = vand.u32 2147483647, %v6122_v3  ;;  %v6268_v59 = vshll.u32 %v7982_v24, %v6265_v35  ;;  %v6271_v45 = vshll.u32 %v7983_v26, %v6265_v35  ;;  %6930 = vst [vmem:[%s8389_s16 + $0x1b8] sm:$0xff] %v6042_v25  ;;  %v6274_v14 = vshll.u32 %v7984_v28, %v6265_v35 }
 0x5cd   : > { %v6210_v58 = vshll.u32 %v12903_v53, 30  ;;  %v6269_v23 = vshrl.u32 %v7983_v26, %v6266_v47  ;;  %v6277_v38 = vshll.u32 %v7985_v30, %v6265_v35  ;;  %v6272_v63 = vshrl.u32 %v7984_v28, %v6266_v47 }
 0x5ce   : > { %v6126_v48 = vmul.f32 %v6125_v29, %v6123_v10  ;;  %v6275_v51 = vshrl.u32 %v7985_v30, %v6266_v47  ;;  %v6278_v36 = vshrl.u32 %v7986_v32, %v6266_v47  ;;  %v12918_v7 = vand.u32 3, %v6136_v20 }
 0x5cf   : > { %v12920_v46 = vsub.s32 %v6207_v55, %v6210_v58  ;;  %v6280_v57 = vshll.u32 %v7986_v32, %v6265_v35  ;;  %v6358_v60 = vand.u32 2139095040, %v12906_v52  ;;  %v6203_v4 = vadd.s32 %v12876_v44, %v12882_v42 }
 0x5d0   : > { %v6127_v0 = vxor.u32 2147483648, %v6126_v48  ;;  %v6267_v12 = vshrl.u32 %v7982_v24, %v6266_v47  ;;  %v12927_v11 = vshll.u32 %v6259_v34, 8  ;;  %v6270_v41 = vor.u32 %v6269_v23, %v6268_v59 }
 0x5d1   : > { %v6213_v54 = vsub.s32 0, %v12920_v46  ;;  %v6273_v18 = vor.u32 %v6272_v63, %v6271_v45  ;;  %v6281_v56 = vshrl.u32 %v7987_v39, %v6266_v47  ;;  %v6276_v62 = vor.u32 %v6275_v51, %v6274_v14 }
 0x5d2   : > { %v6128_v49 = vsel %vm6045_vm1, %v6127_v0, %v6126_v48  ;;  %v6279_v1 = vor.u32 %v6278_v36, %v6277_v38  ;;  %vm6283_vm8 = vcmp.lt.s32.totalorder %v6264_v8, 1  ;;  %v6359_v13 = vshrl.u32 %v6358_v60, 23 }
 0x5d3   : > { %v6131_v44 = vsel %vm12864_vm14, %v12684_v22, %v6128_v49  ;;  %v7278_v42 = vmin.u32 %v6213_v54, %v12920_v46  ;;  %v6282_v43 = vor.u32 %v6281_v56, %v6280_v57  ;;  %vm6149_vm9 = vcmp.lt.s32.totalorder %v12737_v6, 0 }
 0x5d4   : > { %7851 = vcosq.f32 %v6131_v44  ;;  %vm6284_vm11 = vcmp.lt.s32.totalorder %v6264_v8, 2  ;;  %vm6285_vm10 = vcmp.lt.s32.totalorder %v6264_v8, 3  ;;  %vm6286_vm12 = vcmp.lt.s32.totalorder %v6264_v8, 4 }
 0x5d5   : > { %7853 = vsinq.f32 %v6131_v44  ;;  %v6215_v16 = vclz %v7278_v42  ;;  %v6287_v50 = vsel %vm6283_vm8, %v6267_v12, %v6270_v41  ;;  %v6291_v33 = vsel %vm6283_vm8, %v6270_v41, %v6273_v18 }
 0x5d6   : > { %v6233_v55 = vsub.s32 4, %v12903_v53  ;;  %v6288_v21 = vsel %vm6286_vm12, %v6276_v62, 2102212464  ;;  %v6292_v19 = vsel %vm6286_vm12, %v6279_v1, 920167782  ;;  %v6295_v9 = vsel %vm6283_vm8, %v6273_v18, %v6276_v62 }
 0x5d7   : > { %v7279_v17 = vadd.s32 4294967294, %v6215_v16  ;;  %v6289_v61 = vsel %vm6285_vm10, %v6273_v18, %v6288_v21  ;;  %v6293_v5 = vsel %vm6285_vm10, %v6276_v62, %v6292_v19  ;;  %v6296_v40 = vsel %vm6286_vm12, %v6282_v43, 1326507024 }
 0x5d8   : > { %v6290_v27 = vsel %vm6284_vm11, %v6287_v50, %v6289_v61  ;;  %v6294_v35 = vsel %vm6284_vm11, %v6291_v33, %v6293_v5  ;;  %v6297_v31 = vsel %vm6285_vm10, %v6279_v1, %v6296_v40  ;;  %v7285_v3 = vadd.s32 4294967169, %v6359_v13 }
 0x5d9   : > { %vm7280_vm13 = vcmp.lt.s32.totalorder %v7279_v17, 0  ;;  %v6298_v29 = vsel %vm6284_vm11, %v6295_v9, %v6297_v31  ;;  %v12949_v20 = vmul.u32.u64.low %v12927_v11, %v6294_v35  ;;  %v12950_v25 = vmul.u32.u64.high %v12927_v11, %v6294_v35, %v12949_v20 }
 0x5da   : > { %v6218_v34 = vsel %vm7280_vm13, 0, %v7279_v17  ;;  %v12954_v47 = vmul.u32.u64.low %v12927_v11, %v6298_v29  ;;  %v12955_v10 = vmul.u32.u64.high %v12927_v11, %v6298_v29, %v12954_v47  ;;  %v6355_v59 = vand.u32 2147483647, %v12906_v52 }
 0x5db   : > { %vm12960_vm15 = vcmp.le.f32.partialorder %v6147_v2, 0.7853982  ;;  %v6219_v8 = vsub.s32 32, %v6218_v34  ;;  %v6220_v58 = vshll.u32 %v12920_v46, %v6218_v34  ;;  %v6223_v23 = vsub.s32 4294967266, %v6218_v34 }
 0x5dc   : > { %vm6138_vm14 = vcmp.lt.s32.totalorder %v12918_v7, 2  ;;  %vm6139_vm1 = vcmp.eq.s32.totalorder %v12918_v7, 0  ;;  %v6306_v14 = vmul.u32 %v12927_v11, %v6290_v27  ;;  %v6365_v38 = vadd.s32 1, %v7285_v3 }
 0x5dd   : > { %v6221_v48 = vshrl.u32 %v6203_v4, %v6219_v8  ;;  %v6224_v63 = vadd.s32 127, %v6223_v23  ;;  %v6234_v2 = vsel %vm6149_vm9, %v6233_v55, %v12903_v53  ;;  %v6309_v51 = vadd.s32 1, %v12950_v25 }
 0x5de   : > { %v7852_v36 = vpop.eup %7851  ;;  %vm6142_vm0 = vcmp.eq.s32.totalorder %v12918_v7, 2  ;;  %vm6308_vm2 = vc.u32 %v12955_v10, %v12949_v20  ;;  %v6362_v46 = vand.u32 8388607, %v6355_v59  ;;  %vm6366_vm3 = vcmp.gt.s32.totalorder %v6365_v38, 0 }
 0x5df   : > { %v7854_v57 = vpop.eup %7853  ;;  %v6143_v60 = vxor.u32 2147483648, %v7852_v36  ;;  %v6222_v0 = vor.u32 %v6221_v48, %v6220_v58  ;;  %v6225_v4 = vshll.u32 %v6224_v63, 23  ;;  %v6310_v12 = vsel %vm6308_vm2, %v6309_v51, %v12950_v25  ;;  %v13012_v63 = vld [vmem:[%s8105_s3 + $0x1e0] sm:$0xff] }
 0x5e0   : > { %v6140_v11 = vxor.u32 2147483648, %v7854_v57  ;;  %v6236_v53 = vsel %vm12960_vm15, 0, %v6234_v2  ;;  %v6311_v54 = vadd.s32 %v6310_v12, %v6306_v14  ;;  %v6367_v41 = vsel %vm6366_vm3, %v6365_v38, 0 }
 0x5e1   : > { %vm6135_vm4 = vweird.f32 %v12684_v22  ;;  %v6144_v18 = vsel %vm6142_vm0, %v6143_v60, %v7854_v57  ;;  %v6226_v56 = vor.u32 4788187, %v6225_v4  ;;  %v6229_v49 = vcvt.s32.f32 %v6222_v0 }
 0x5e2   : > { %v6141_v62 = vsel %vm6139_vm1, %v7852_v36, %v6140_v11  ;;  %v6312_v1 = vadd.s32 536870912, %v6311_v54  ;;  %v6369_v44 = vand.u32 31, %v6367_v41  ;;  %v6240_v13 = vadd.s32 3, %v6236_v53 }
 0x5e3   : > { %v6145_v42 = vsel %vm6138_vm14, %v6141_v62, %v6144_v18  ;;  %v6227_v43 = vand.u32 2147483647, %v6226_v56  ;;  %v6363_v16 = vor.u32 8388608, %v6362_v46  ;;  %v6368_v55 = vshrl.u32 %v6367_v41, 5 }
 0x5e4   : > { %v6146_v50 = vsel %vm6135_vm4, nan, %v6145_v42  ;;  %v12985_v33 = vshrl.u32 %v6312_v1, 30  ;;  %v6370_v22 = vsub.s32 32, %v6369_v44  ;;  %v6372_v19 = vshll.u32 %v7982_v24, %v6369_v44 }
 0x5e5   : > { %v6230_v21 = vmul.f32 %v6229_v49, %v6227_v43  ;;  %v6375_v9 = vshll.u32 %v7983_v26, %v6369_v44  ;;  %6931 = vst [vmem:[%s8389_s16 + $0x1c0] sm:$0xff] %v6146_v50  ;;  %v6378_v7 = vshll.u32 %v7984_v28, %v6369_v44  ;;  %v6381_v5 = vshll.u32 %v7985_v30, %v6369_v44 }
 0x5e6   : > { %v6314_v17 = vshll.u32 %v12985_v33, 30  ;;  %v6373_v61 = vshrl.u32 %v7983_v26, %v6370_v22  ;;  %v6376_v27 = vshrl.u32 %v7984_v28, %v6370_v22  ;;  %v6379_v35 = vshrl.u32 %v7985_v30, %v6370_v22 }
 0x5e7   : > { %v6231_v40 = vxor.u32 2147483648, %v6230_v21  ;;  %v6382_v31 = vshrl.u32 %v7986_v32, %v6370_v22  ;;  %v12997_v3 = vand.u32 3, %v6240_v13  ;;  %vm6387_vm5 = vcmp.lt.s32.totalorder %v6368_v55, 1 }
 0x5e8   : > { %v12999_v29 = vsub.s32 %v6311_v54, %v6314_v17  ;;  %v13001_v25 = vshll.u32 %v6363_v16, 8  ;;  %v6374_v47 = vor.u32 %v6373_v61, %v6372_v19  ;;  %v6377_v8 = vor.u32 %v6376_v27, %v6375_v9 }
 0x5e9   : > { %v6232_v34 = vsel %vm6149_vm9, %v6231_v40, %v6230_v21  ;;  %v6384_v58 = vshll.u32 %v7986_v32, %v6369_v44  ;;  %v6371_v38 = vshrl.u32 %v7982_v24, %v6370_v22  ;;  %v6383_v48 = vor.u32 %v6382_v31, %v6381_v5 }
 0x5ea   : > { %v6235_v23 = vsel %vm12960_vm15, %v12737_v6, %v6232_v34  ;;  %v6317_v14 = vsub.s32 0, %v12999_v29  ;;  %v6380_v2 = vor.u32 %v6379_v35, %v6378_v7  ;;  %v6385_v51 = vshrl.u32 %v7987_v39, %v6370_v22 }
 0x5eb   : > { %7855 = vcosq.f32 %v6235_v23  ;;  %vm6390_vm7 = vcmp.lt.s32.totalorder %v6368_v55, 4  ;;  %vm6388_vm6 = vcmp.lt.s32.totalorder %v6368_v55, 2  ;;  %vm6389_vm8 = vcmp.lt.s32.totalorder %v6368_v55, 3 }
 0x5ec   : > { %7857 = vsinq.f32 %v6235_v23  ;;  %v7282_v36 = vmin.u32 %v6317_v14, %v12999_v29  ;;  %v6386_v46 = vor.u32 %v6385_v51, %v6384_v58  ;;  %v6392_v45 = vsel %vm6390_vm7, %v6380_v2, 2102212464 }
 0x5ed   : > { %v6395_v57 = vsel %vm6387_vm5, %v6374_v47, %v6377_v8  ;;  %v6396_v60 = vsel %vm6390_vm7, %v6383_v48, 920167782  ;;  %v6307_v0 = vadd.s32 %v12949_v20, %v12955_v10  ;;  %v6391_v12 = vsel %vm6387_vm5, %v6371_v38, %v6374_v47 }
 0x5ee   : > { %v6319_v4 = vclz %v7282_v36  ;;  %v6462_v11 = vand.u32 2139095040, %v13012_v63  ;;  %v6393_v53 = vsel %vm6389_vm8, %v6377_v8, %v6392_v45  ;;  %v6397_v54 = vsel %vm6389_vm8, %v6380_v2, %v6396_v60 }
 0x5ef   : > { %v6399_v41 = vsel %vm6387_vm5, %v6377_v8, %v6380_v2  ;;  %v6400_v18 = vsel %vm6390_vm7, %v6386_v46, 1326507024  ;;  %vm6239_vm9 = vweird.f32 %v12737_v6  ;;  %v6337_v49 = vsub.s32 4, %v12985_v33 }
 0x5f0   : > { %v7283_v56 = vadd.s32 4294967294, %v6319_v4  ;;  %v6398_v20 = vsel %vm6388_vm6, %v6395_v57, %v6397_v54  ;;  %v6401_v10 = vsel %vm6389_vm8, %v6383_v48, %v6400_v18  ;;  %v6394_v62 = vsel %vm6388_vm6, %v6391_v12, %v6393_v53 }
 0x5f1   : > { %v6402_v1 = vsel %vm6388_vm6, %v6399_v41, %v6401_v10  ;;  %v13034_v44 = vmul.u32.u64.low %v13001_v25, %v6398_v20  ;;  %v13035_v42 = vmul.u32.u64.high %v13001_v25, %v6398_v20, %v13034_v44  ;;  %v6463_v16 = vshrl.u32 %v6462_v11, 23  ;;  %v13081_v41 = vld [vmem:[%s8105_s3 + $0x1e8] sm:$0xff] }
 0x5f2   : > { %vm7284_vm11 = vcmp.lt.s32.totalorder %v7283_v56, 0  ;;  %v13039_v43 = vmul.u32.u64.low %v13001_v25, %v6402_v1  ;;  %v13040_v13 = vmul.u32.u64.high %v13001_v25, %v6402_v1, %v13039_v43  ;;  %vm6242_vm10 = vcmp.lt.s32.totalorder %v12997_v3, 2 }
 0x5f3   : > { %vm13045_vm12 = vcmp.le.f32.partialorder %v6251_v15, 0.7853982  ;;  %vm6253_vm13 = vcmp.lt.s32.totalorder %v12854_v37, 0  ;;  %v6322_v55 = vsel %vm7284_vm11, 0, %v7283_v56  ;;  %v7289_v9 = vadd.s32 4294967169, %v6463_v16 }
 0x5f4   : > { %v6323_v22 = vsub.s32 32, %v6322_v55  ;;  %v6324_v21 = vshll.u32 %v12999_v29, %v6322_v55  ;;  %v6327_v19 = vsub.s32 4294967266, %v6322_v55  ;;  %vm6243_vm15 = vcmp.eq.s32.totalorder %v12997_v3, 0 }
 0x5f5   : > { %v7856_v17 = vpop.eup %7855  ;;  %vm6246_vm14 = vcmp.eq.s32.totalorder %v12997_v3, 2  ;;  %v6410_v61 = vmul.u32 %v13001_v25, %v6394_v62  ;;  %v6413_v15 = vadd.s32 1, %v13035_v42  ;;  %v6338_v35 = vsel %vm6253_vm13, %v6337_v49, %v12985_v33 }
 0x5f6   : > { %v7858_v7 = vpop.eup %7857  ;;  %v6247_v5 = vxor.u32 2147483648, %v7856_v17  ;;  %v6325_v40 = vshrl.u32 %v6307_v0, %v6323_v22  ;;  %v6328_v27 = vadd.s32 127, %v6327_v19  ;;  %vm6412_vm1 = vc.u32 %v13040_v13, %v13034_v44 }
 0x5f7   : > { %v6244_v31 = vxor.u32 2147483648, %v7858_v7  ;;  %v6459_v29 = vand.u32 2147483647, %v13012_v63  ;;  %v6469_v34 = vadd.s32 1, %v7289_v9  ;;  %v6414_v58 = vsel %vm6412_vm1, %v6413_v15, %v13035_v42 }
 0x5f8   : > { %v6248_v47 = vsel %vm6246_vm14, %v6247_v5, %v7858_v7  ;;  %v6326_v8 = vor.u32 %v6325_v40, %v6324_v21  ;;  %v6329_v25 = vshll.u32 %v6328_v27, 23  ;;  %v6340_v14 = vsel %vm13045_vm12, 0, %v6338_v35 }
 0x5f9   : > { %v6245_v23 = vsel %vm6243_vm15, %v7856_v17, %v6244_v31  ;;  %v6415_v33 = vadd.s32 %v6414_v58, %v6410_v61  ;;  %vm6470_vm0 = vcmp.gt.s32.totalorder %v6469_v34, 0  ;;  %v6344_v60 = vadd.s32 3, %v6340_v14 }
 0x5fa   : > { %v6249_v38 = vsel %vm6242_vm10, %v6245_v23, %v6248_v47  ;;  %v6330_v48 = vor.u32 4788187, %v6329_v25  ;;  %v6333_v2 = vcvt.s32.f32 %v6326_v8  ;;  %v6471_v51 = vsel %vm6470_vm0, %v6469_v34, 0 }
 0x5fb   : > { %v6250_v36 = vsel %vm6239_vm9, nan, %v6249_v38  ;;  %v6416_v46 = vadd.s32 536870912, %v6415_v33  ;;  %v6473_v45 = vand.u32 31, %v6471_v51  ;;  %v6466_v4 = vand.u32 8388607, %v6459_v29 }
 0x5fc   : > { %v6331_v57 = vand.u32 2147483647, %v6330_v48  ;;  %6932 = vst [vmem:[%s8389_s16 + $0x1c8] sm:$0xff] %v6250_v36  ;;  %v13075_v12 = vshrl.u32 %v6471_v51, 5  ;;  %v13090_v43 = vand.u32 3, %v6344_v60  ;;  %v6566_v17 = vand.u32 2139095040, %v13081_v41 }
 0x5fd   : > { %v13071_v0 = vshrl.u32 %v6416_v46, 30  ;;  %v6474_v3 = vsub.s32 32, %v6473_v45  ;;  %v6476_v53 = vshll.u32 %v7982_v24, %v6473_v45  ;;  %v6479_v54 = vshll.u32 %v7983_v26, %v6473_v45 }
 0x5fe   : > { %v6334_v11 = vmul.f32 %v6333_v2, %v6331_v57  ;;  %v6482_v6 = vshll.u32 %v7984_v28, %v6473_v45  ;;  %v6485_v49 = vshll.u32 %v7985_v30, %v6473_v45  ;;  %v6488_v20 = vshll.u32 %v7986_v32, %v6473_v45 }
 0x5ff   : > { %v6418_v18 = vshll.u32 %v13071_v0, 30  ;;  %v6477_v56 = vshrl.u32 %v7983_v26, %v6474_v3  ;;  %v6480_v62 = vshrl.u32 %v7984_v28, %v6474_v3  ;;  %v6483_v1 = vshrl.u32 %v7985_v30, %v6474_v3 }
 0x600   : > { %v6335_v10 = vxor.u32 2147483648, %v6334_v11  ;;  %v6486_v42 = vshrl.u32 %v7986_v32, %v6474_v3  ;;  %v6467_v55 = vor.u32 8388608, %v6466_v4  ;;  %v6489_v22 = vshrl.u32 %v7987_v39, %v6474_v3 }
 0x601   : > { %v13092_v16 = vsub.s32 %v6415_v33, %v6418_v18  ;;  %v6475_v19 = vshrl.u32 %v7982_v24, %v6474_v3  ;;  %v6478_v9 = vor.u32 %v6477_v56, %v6476_v53  ;;  %v6481_v7 = vor.u32 %v6480_v62, %v6479_v54 }
 0x602   : > { %v6336_v21 = vsel %vm6253_vm13, %v6335_v10, %v6334_v11  ;;  %v6484_v5 = vor.u32 %v6483_v1, %v6482_v6  ;;  %v6487_v40 = vor.u32 %v6486_v42, %v6485_v49  ;;  %v6490_v27 = vor.u32 %v6489_v22, %v6488_v20 }
 0x603   : > { %v6339_v61 = vsel %vm13045_vm12, %v12854_v37, %v6336_v21  ;;  %v6421_v15 = vsub.s32 0, %v13092_v16  ;;  %vm6491_vm2 = vcmp.lt.s32.totalorder %v13075_v12, 1  ;;  %vm6357_vm3 = vcmp.lt.s32.totalorder %v12906_v52, 0 }
 0x604   : > { %7859 = vcosq.f32 %v6339_v61  ;;  %vm6493_vm4 = vcmp.lt.s32.totalorder %v13075_v12, 3  ;;  %vm6494_vm5 = vcmp.lt.s32.totalorder %v13075_v12, 4  ;;  %v6507_v50 = vshll.u32 %v6467_v55, 8 }
 0x605   : > { %7861 = vsinq.f32 %v6339_v61  ;;  %v7286_v35 = vmin.u32 %v6421_v15, %v13092_v16  ;;  %v6567_v31 = vshrl.u32 %v6566_v17, 23  ;;  %vm6492_vm7 = vcmp.lt.s32.totalorder %v13075_v12, 2 }
 0x606   : > { %v6499_v47 = vsel %vm6491_vm2, %v6478_v9, %v6481_v7  ;;  %v6503_v8 = vsel %vm6491_vm2, %v6481_v7, %v6484_v5  ;;  %vm6346_vm6 = vcmp.lt.s32.totalorder %v13090_v43, 2  ;;  %v6495_v25 = vsel %vm6491_vm2, %v6475_v19, %v6478_v9 }
 0x607   : > { %v6423_v34 = vclz %v7286_v35  ;;  %v6496_v58 = vsel %vm6494_vm5, %v6484_v5, 2102212464  ;;  %v6500_v23 = vsel %vm6494_vm5, %v6487_v40, 920167782  ;;  %v6504_v14 = vsel %vm6494_vm5, %v6490_v27, 1326507024 }
 0x608   : > { %vm6343_vm8 = vweird.f32 %v12854_v37  ;;  %v6497_v38 = vsel %vm6493_vm4, %v6481_v7, %v6496_v58  ;;  %v6501_v48 = vsel %vm6493_vm4, %v6484_v5, %v6500_v23  ;;  %v6505_v2 = vsel %vm6493_vm4, %v6487_v40, %v6504_v14 }
 0x609   : > { %v7287_v33 = vadd.s32 4294967294, %v6423_v34  ;;  %v6441_v51 = vsub.s32 4, %v13071_v0  ;;  %v6502_v36 = vsel %vm6492_vm7, %v6499_v47, %v6501_v48  ;;  %v6506_v46 = vsel %vm6492_vm7, %v6503_v8, %v6505_v2 }
 0x60a   : > { %v7293_v45 = vadd.s32 4294967169, %v6567_v31  ;;  %vm13124_vm9 = vcmp.le.f32.partialorder %v6355_v59, 0.7853982  ;;  %v6411_v60 = vadd.s32 %v13034_v44, %v13040_v13  ;;  %v6498_v53 = vsel %vm6492_vm7, %v6495_v25, %v6497_v38 }
 0x60b   : > { %vm7288_vm11 = vcmp.lt.s32.totalorder %v7287_v33, 0  ;;  %v13130_v4 = vmul.u32.u64.low %v6507_v50, %v6506_v46  ;;  %v13131_v3 = vmul.u32.u64.high %v6507_v50, %v6506_v46, %v13130_v4  ;;  %vm6347_vm10 = vcmp.eq.s32.totalorder %v13090_v43, 0 }
 0x60c   : > { %v6426_v11 = vsel %vm7288_vm11, 0, %v7287_v33  ;;  %v13135_v54 = vmul.u32.u64.low %v6507_v50, %v6502_v36  ;;  %v13136_v6 = vmul.u32.u64.high %v6507_v50, %v6502_v36, %v13135_v54  ;;  %v6573_v49 = vadd.s32 1, %v7293_v45 }
 0x60d   : > { %v6427_v18 = vsub.s32 32, %v6426_v11  ;;  %v6428_v59 = vshll.u32 %v13092_v16, %v6426_v11  ;;  %v6431_v56 = vsub.s32 4294967266, %v6426_v11  ;;  %vm6350_vm12 = vcmp.eq.s32.totalorder %v13090_v43, 2 }
 0x60e   : > { %v7860_v20 = vpop.eup %7859  ;;  %v6442_v44 = vsel %vm6357_vm3, %v6441_v51, %v13071_v0  ;;  %v6563_v13 = vand.u32 2147483647, %v13081_v41  ;;  %v6514_v42 = vmul.u32 %v6507_v50, %v6498_v53  ;;  %vm6516_vm13 = vc.u32 %v13131_v3, %v13135_v54 }
 0x60f   : > { %v7862_v12 = vpop.eup %7861  ;;  %v6351_v10 = vxor.u32 2147483648, %v7860_v20  ;;  %v6429_v62 = vshrl.u32 %v6411_v60, %v6427_v18  ;;  %v6432_v1 = vadd.s32 127, %v6431_v56  ;;  %v6517_v16 = vadd.s32 1, %v13136_v6  ;;  %v13176_v56 = vld [vmem:[%s8105_s3 + $0x1f0] sm:$0xff] }
 0x610   : > { %v6348_v55 = vxor.u32 2147483648, %v7862_v12  ;;  %vm6574_vm15 = vcmp.gt.s32.totalorder %v6573_v49, 0  ;;  %v6570_v61 = vand.u32 8388607, %v6563_v13  ;;  %v6444_v50 = vsel %vm13124_vm9, 0, %v6442_v44 }
 0x611   : > { %v6352_v22 = vsel %vm6350_vm12, %v6351_v10, %v7862_v12  ;;  %v6430_v21 = vor.u32 %v6429_v62, %v6428_v59  ;;  %v6433_v19 = vshll.u32 %v6432_v1, 23  ;;  %v6575_v9 = vsel %vm6574_vm15, %v6573_v49, 0 }
 0x612   : > { %v6349_v0 = vsel %vm6347_vm10, %v7860_v20, %v6348_v55  ;;  %v6518_v17 = vsel %vm6516_vm13, %v6517_v16, %v13136_v6  ;;  %v6577_v15 = vand.u32 31, %v6575_v9  ;;  %v6576_v48 = vshrl.u32 %v6575_v9, 5 }
 0x613   : > { %v6353_v7 = vsel %vm6346_vm6, %v6349_v0, %v6352_v22  ;;  %v6434_v5 = vor.u32 4788187, %v6433_v19  ;;  %v6437_v40 = vcvt.s32.f32 %v6430_v21  ;;  %v6519_v27 = vadd.s32 %v6518_v17, %v6514_v42 }
 0x614   : > { %v6354_v35 = vsel %vm6343_vm8, nan, %v6353_v7  ;;  %v6578_v31 = vsub.s32 32, %v6577_v15  ;;  %v6580_v34 = vshll.u32 %v7982_v24, %v6577_v15  ;;  %v6583_v25 = vshll.u32 %v7983_v26, %v6577_v15 }
 0x615   : > { %v6435_v47 = vand.u32 2147483647, %v6434_v5  ;;  %v6520_v8 = vadd.s32 536870912, %v6519_v27  ;;  %v6586_v58 = vshll.u32 %v7984_v28, %v6577_v15  ;;  %6933 = vst [vmem:[%s8389_s16 + $0x1d0] sm:$0xff] %v6354_v35  ;;  %v6589_v14 = vshll.u32 %v7985_v30, %v6577_v15 }
 0x616   : > { %v6581_v43 = vshrl.u32 %v7983_v26, %v6578_v31  ;;  %v6584_v23 = vshrl.u32 %v7984_v28, %v6578_v31  ;;  %v6587_v37 = vshrl.u32 %v7985_v30, %v6578_v31  ;;  %v6590_v2 = vshrl.u32 %v7986_v32, %v6578_v31 }
 0x617   : > { %v6438_v33 = vmul.f32 %v6437_v40, %v6435_v47  ;;  %v13168_v38 = vshrl.u32 %v6520_v8, 30  ;;  %v6571_v51 = vor.u32 8388608, %v6570_v61  ;;  %v6592_v36 = vshll.u32 %v7986_v32, %v6577_v15 }
 0x618   : > { %v6593_v46 = vshrl.u32 %v7987_v39, %v6578_v31  ;;  %v6448_v60 = vadd.s32 3, %v6444_v50  ;;  %v6579_v11 = vshrl.u32 %v7982_v24, %v6578_v31  ;;  %v6582_v53 = vor.u32 %v6581_v43, %v6580_v34 }
 0x619   : > { %v6439_v45 = vxor.u32 2147483648, %v6438_v33  ;;  %v6522_v4 = vshll.u32 %v13168_v38, 30  ;;  %v6585_v6 = vor.u32 %v6584_v23, %v6583_v25  ;;  %v6588_v18 = vor.u32 %v6587_v37, %v6586_v58 }
 0x61a   : > { %v6591_v59 = vor.u32 %v6590_v2, %v6589_v14  ;;  %vm6595_vm14 = vcmp.lt.s32.totalorder %v6576_v48, 1  ;;  %vm6598_vm1 = vcmp.lt.s32.totalorder %v6576_v48, 4  ;;  %v6594_v12 = vor.u32 %v6593_v46, %v6592_v36 }
 0x61b   : > { %v6440_v49 = vsel %vm6357_vm3, %v6439_v45, %v6438_v33  ;;  %v13180_v20 = vsub.s32 %v6519_v27, %v6522_v4  ;;  %vm6597_vm0 = vcmp.lt.s32.totalorder %v6576_v48, 3  ;;  %v6611_v10 = vshll.u32 %v6571_v51, 8 }
 0x61c   : > { %v6443_v44 = vsel %vm13124_vm9, %v12906_v52, %v6440_v49  ;;  %vm6596_vm2 = vcmp.lt.s32.totalorder %v6576_v48, 2  ;;  %v6600_v1 = vsel %vm6598_vm1, %v6588_v18, 2102212464  ;;  %v6603_v42 = vsel %vm6595_vm14, %v6582_v53, %v6585_v6 }
 0x61d   : > { %7863 = vcosq.f32 %v6443_v44  ;;  %v6525_v62 = vsub.s32 0, %v13180_v20  ;;  %v6604_v55 = vsel %vm6598_vm1, %v6591_v59, 920167782  ;;  %v6670_v16 = vand.u32 2139095040, %v13176_v56 }
 0x61e   : > { %7865 = vsinq.f32 %v6443_v44  ;;  %v6449_v22 = vand.u32 3, %v6448_v60  ;;  %v6599_v21 = vsel %vm6595_vm14, %v6579_v11, %v6582_v53  ;;  %v6605_v19 = vsel %vm6597_vm0, %v6588_v18, %v6604_v55 }
 0x61f   : > { %v7290_v57 = vmin.u32 %v6525_v62, %v13180_v20  ;;  %v6601_v9 = vsel %vm6597_vm0, %v6585_v6, %v6600_v1  ;;  %v6606_v0 = vsel %vm6596_vm2, %v6603_v42, %v6605_v19  ;;  %v6607_v17 = vsel %vm6595_vm14, %v6585_v6, %v6588_v18 }
 0x620   : > { %v6608_v61 = vsel %vm6598_vm1, %v6594_v12, 1326507024  ;;  %vm6447_vm3 = vweird.f32 %v12906_v52  ;;  %v13199_v5 = vmul.u32.u64.low %v6611_v10, %v6606_v0  ;;  %v13200_v40 = vmul.u32.u64.high %v6611_v10, %v6606_v0, %v13199_v5 }
 0x621   : > { %v6527_v15 = vclz %v7290_v57  ;;  %v6609_v7 = vsel %vm6597_vm0, %v6591_v59, %v6608_v61  ;;  %v6671_v27 = vshrl.u32 %v6670_v16, 23  ;;  %vm6450_vm4 = vcmp.lt.s32.totalorder %v6449_v22, 2  ;;  %v13222_v59 = vld [vmem:[%s8105_s3 + $0x1f8] sm:$0xff] }
 0x622   : > { %v6602_v50 = vsel %vm6596_vm2, %v6599_v21, %v6601_v9  ;;  %v6610_v31 = vsel %vm6596_vm2, %v6607_v17, %v6609_v7  ;;  %v6667_v8 = vand.u32 2147483647, %v13176_v56  ;;  %vm6451_vm5 = vcmp.eq.s32.totalorder %v6449_v22, 0 }
 0x623   : > { %v7291_v35 = vadd.s32 4294967294, %v6527_v15  ;;  %v13205_v34 = vmul.u32.u64.low %v6611_v10, %v6610_v31  ;;  %v13206_v47 = vmul.u32.u64.high %v6611_v10, %v6610_v31, %v13205_v34  ;;  %v7297_v25 = vadd.s32 4294967169, %v6671_v27 }
 0x624   : > { %vm6454_vm7 = vcmp.eq.s32.totalorder %v6449_v22, 2  ;;  %v6515_v58 = vadd.s32 %v13135_v54, %v13131_v3  ;;  %v6618_v23 = vmul.u32 %v6611_v10, %v6602_v50  ;;  %v6621_v37 = vadd.s32 1, %v13200_v40 }
 0x625   : > { %vm7292_vm6 = vcmp.lt.s32.totalorder %v7291_v35, 0  ;;  %v6677_v14 = vadd.s32 1, %v7297_v25  ;;  %v6545_v36 = vsub.s32 4, %v13168_v38  ;;  %vm6620_vm8 = vc.u32 %v13206_v47, %v13199_v5 }
 0x626   : > { %v6530_v43 = vsel %vm7292_vm6, 0, %v7291_v35  ;;  %v6674_v3 = vand.u32 8388607, %v6667_v8  ;;  %v6622_v11 = vsel %vm6620_vm8, %v6621_v37, %v13200_v40  ;;  %vm6461_vm11 = vcmp.lt.s32.totalorder %v13012_v63, 0 }
 0x627   : > { %v7864_v33 = vpop.eup %7863  ;;  %v6531_v48 = vsub.s32 32, %v6530_v43  ;;  %v6532_v2 = vshll.u32 %v13180_v20, %v6530_v43  ;;  %v6535_v51 = vsub.s32 4294967266, %v6530_v43  ;;  %vm6678_vm9 = vcmp.gt.s32.totalorder %v6677_v14, 0 }
 0x628   : > { %v7866_v46 = vpop.eup %7865  ;;  %v6455_v45 = vxor.u32 2147483648, %v7864_v33  ;;  %v6623_v6 = vadd.s32 %v6622_v11, %v6618_v23  ;;  %v6679_v18 = vsel %vm6678_vm9, %v6677_v14, 0  ;;  %vm13227_vm10 = vcmp.le.f32.partialorder %v6459_v29, 0.7853982 }
 0x629   : > { %v6452_v54 = vxor.u32 2147483648, %v7866_v46  ;;  %v6533_v60 = vshrl.u32 %v6515_v58, %v6531_v48  ;;  %v6536_v4 = vadd.s32 127, %v6535_v51  ;;  %v6546_v62 = vsel %vm6461_vm11, %v6545_v36, %v13168_v38 }
 0x62a   : > { %v6456_v53 = vsel %vm6454_vm7, %v6455_v45, %v7866_v46  ;;  %v6624_v1 = vadd.s32 536870912, %v6623_v6  ;;  %v6681_v42 = vand.u32 31, %v6679_v18  ;;  %v6675_v21 = vor.u32 8388608, %v6674_v3 }
 0x62b   : > { %v6453_v49 = vsel %vm6451_vm5, %v7864_v33, %v6452_v54  ;;  %v6534_v44 = vor.u32 %v6533_v60, %v6532_v2  ;;  %v6537_v12 = vshll.u32 %v6536_v4, 23  ;;  %v6680_v19 = vshrl.u32 %v6679_v18, 5 }
 0x62c   : > { %v6457_v10 = vsel %vm6450_vm4, %v6453_v49, %v6456_v53  ;;  %v13237_v29 = vshrl.u32 %v6624_v1, 30  ;;  %v6682_v9 = vsub.s32 32, %v6681_v42  ;;  %v6774_v0 = vand.u32 2139095040, %v13222_v59 }
 0x62d   : > { %v6458_v55 = vsel %vm6447_vm3, nan, %v6457_v10  ;;  %v6538_v16 = vor.u32 4788187, %v6537_v12  ;;  %v6541_v57 = vcvt.s32.f32 %v6534_v44  ;;  %v6684_v17 = vshll.u32 %v7982_v24, %v6681_v42 }
 0x62e   : > { %6934 = vst [vmem:[%s8389_s16 + $0x1d8] sm:$0xff] %v6458_v55  ;;  %v6687_v38 = vshll.u32 %v7983_v26, %v6681_v42  ;;  %v6690_v61 = vshll.u32 %v7984_v28, %v6681_v42  ;;  %v6626_v52 = vshll.u32 %v13237_v29, 30  ;;  %v6685_v15 = vshrl.u32 %v7983_v26, %v6682_v9 }
 0x62f   : > { %v6539_v22 = vand.u32 2147483647, %v6538_v16  ;;  %v6693_v7 = vshll.u32 %v7985_v30, %v6681_v42  ;;  %v6696_v40 = vshll.u32 %v7986_v32, %v6681_v42  ;;  %v6688_v35 = vshrl.u32 %v7984_v28, %v6682_v9 }
 0x630   : > { %v6691_v50 = vshrl.u32 %v7985_v30, %v6682_v9  ;;  %v6694_v31 = vshrl.u32 %v7986_v32, %v6682_v9  ;;  %v6548_v34 = vsel %vm13227_vm10, 0, %v6546_v62  ;;  %v13253_v25 = vsub.s32 %v6623_v6, %v6626_v52 }
 0x631   : > { %v6542_v27 = vmul.f32 %v6541_v57, %v6539_v22  ;;  %v6697_v58 = vshrl.u32 %v7987_v39, %v6682_v9  ;;  %v13256_v43 = vshll.u32 %v6675_v21, 8  ;;  %v6686_v37 = vor.u32 %v6685_v15, %v6684_v17 }
 0x632   : > { %v6689_v14 = vor.u32 %v6688_v35, %v6687_v38  ;;  %v6775_v33 = vshrl.u32 %v6774_v0, 23  ;;  %v6629_v48 = vsub.s32 0, %v13253_v25  ;;  %v6683_v2 = vshrl.u32 %v7982_v24, %v6682_v9 }
 0x633   : > { %v6543_v23 = vxor.u32 2147483648, %v6542_v27  ;;  %v6695_v51 = vor.u32 %v6694_v31, %v6693_v7  ;;  %vm6699_vm12 = vcmp.lt.s32.totalorder %v6680_v19, 1  ;;  %v6692_v46 = vor.u32 %v6691_v50, %v6690_v61 }
 0x634   : > { %v6698_v45 = vor.u32 %v6697_v58, %v6696_v40  ;;  %vm6702_vm13 = vcmp.lt.s32.totalorder %v6680_v19, 4  ;;  %v7294_v54 = vmin.u32 %v6629_v48, %v13253_v25  ;;  %vm6700_vm15 = vcmp.lt.s32.totalorder %v6680_v19, 2 }
 0x635   : > { %v6544_v36 = vsel %vm6461_vm11, %v6543_v23, %v6542_v27  ;;  %vm6701_vm14 = vcmp.lt.s32.totalorder %v6680_v19, 3  ;;  %v6704_v60 = vsel %vm6702_vm13, %v6692_v46, 2102212464  ;;  %v6707_v4 = vsel %vm6699_vm12, %v6686_v37, %v6689_v14 }
 0x636   : > { %v6547_v3 = vsel %vm13227_vm10, %v13012_v63, %v6544_v36  ;;  %v6708_v11 = vsel %vm6702_vm13, %v6695_v51, 920167782  ;;  %v6552_v53 = vadd.s32 3, %v6548_v34  ;;  %v6631_v6 = vclz %v7294_v54 }
 0x637   : > { %7867 = vcosq.f32 %v6547_v3  ;;  %v7301_v18 = vadd.s32 4294967169, %v6775_v33  ;;  %v6703_v49 = vsel %vm6699_vm12, %v6683_v2, %v6686_v37  ;;  %v6705_v20 = vsel %vm6701_vm14, %v6689_v14, %v6704_v60 }
 0x638   : > { %7869 = vsinq.f32 %v6547_v3  ;;  %v6709_v44 = vsel %vm6701_vm14, %v6692_v46, %v6708_v11  ;;  %v6711_v12 = vsel %vm6699_vm12, %v6689_v14, %v6692_v46  ;;  %vm6565_vm1 = vcmp.lt.s32.totalorder %v13081_v41, 0 }
 0x639   : > { %v7295_v10 = vadd.s32 4294967294, %v6631_v6  ;;  %v6710_v62 = vsel %vm6700_vm15, %v6707_v4, %v6709_v44  ;;  %v6712_v1 = vsel %vm6702_vm13, %v6698_v45, 1326507024  ;;  %v6771_v42 = vand.u32 2147483647, %v13222_v59 }
 0x63a   : > { %v6619_v55 = vadd.s32 %v13199_v5, %v13206_v47  ;;  %v6713_v16 = vsel %vm6701_vm14, %v6695_v51, %v6712_v1  ;;  %v13281_v57 = vmul.u32.u64.low %v13256_v43, %v6710_v62  ;;  %v13282_v21 = vmul.u32.u64.high %v13256_v43, %v6710_v62, %v13281_v57 }
 0x63b   : > { %vm6551_vm0 = vweird.f32 %v13012_v63  ;;  %vm7296_vm2 = vcmp.lt.s32.totalorder %v7295_v10, 0  ;;  %v6706_v9 = vsel %vm6700_vm15, %v6703_v49, %v6705_v20  ;;  %v6714_v0 = vsel %vm6700_vm15, %v6711_v12, %v6713_v16 }
 0x63c   : > { %v6781_v22 = vadd.s32 1, %v7301_v18  ;;  %v6553_v17 = vand.u32 3, %v6552_v53  ;;  %v6634_v38 = vsel %vm7296_vm2, 0, %v7295_v10  ;;  %v6649_v7 = vsub.s32 4, %v13237_v29 }
 0x63d   : > { %v13289_v61 = vmul.u32.u64.low %v13256_v43, %v6714_v0  ;;  %v13290_v5 = vmul.u32.u64.high %v13256_v43, %v6714_v0, %v13289_v61  ;;  %v6635_v47 = vsub.s32 32, %v6634_v38  ;;  %v6636_v52 = vshll.u32 %v13253_v25, %v6634_v38 }
 0x63e   : > { %v6639_v15 = vsub.s32 4294967266, %v6634_v38  ;;  %vm6782_vm3 = vcmp.gt.s32.totalorder %v6781_v22, 0  ;;  %v6722_v40 = vmul.u32 %v13256_v43, %v6706_v9  ;;  %v6725_v27 = vadd.s32 1, %v13282_v21 }
 0x63f   : > { %v6783_v19 = vsel %vm6782_vm3, %v6781_v22, 0  ;;  %vm13298_vm4 = vcmp.le.f32.partialorder %v6563_v13, 0.7853982  ;;  %v6637_v50 = vshrl.u32 %v6619_v55, %v6635_v47  ;;  %v6778_v34 = vand.u32 8388607, %v6771_v42 }
 0x640   : > { %v6640_v31 = vadd.s32 127, %v6639_v15  ;;  %v6785_v25 = vand.u32 31, %v6783_v19  ;;  %vm6554_vm5 = vcmp.lt.s32.totalorder %v6553_v17, 2  ;;  %vm6555_vm7 = vcmp.eq.s32.totalorder %v6553_v17, 0 }
 0x641   : > { %v7868_v58 = vpop.eup %7867  ;;  %vm6558_vm6 = vcmp.eq.s32.totalorder %v6553_v17, 2  ;;  %vm6724_vm8 = vc.u32 %v13290_v5, %v13281_v57  ;;  %v6638_v37 = vor.u32 %v6637_v50, %v6636_v52  ;;  %v6650_v48 = vsel %vm6565_vm1, %v6649_v7, %v13237_v29 }
 0x642   : > { %v7870_v43 = vpop.eup %7869  ;;  %v6559_v23 = vxor.u32 2147483648, %v7868_v58  ;;  %v6641_v13 = vshll.u32 %v6640_v31, 23  ;;  %v6726_v14 = vsel %vm6724_vm8, %v6725_v27, %v13282_v21  ;;  %v6786_v51 = vsub.s32 32, %v6785_v25 }
 0x643   : > { %v6556_v33 = vxor.u32 2147483648, %v7870_v43  ;;  %v6727_v2 = vadd.s32 %v6726_v14, %v6722_v40  ;;  %v6645_v45 = vcvt.s32.f32 %v6638_v37  ;;  %v6779_v3 = vor.u32 8388608, %v6778_v34 }
 0x644   : > { %v6560_v36 = vsel %vm6558_vm6, %v6559_v23, %v7870_v43  ;;  %v6642_v46 = vor.u32 4788187, %v6641_v13  ;;  %v6788_v4 = vshll.u32 %v7982_v24, %v6785_v25  ;;  %v6791_v11 = vshll.u32 %v7983_v26, %v6785_v25 }
 0x645   : > { %v6557_v54 = vsel %vm6555_vm7, %v7868_v58, %v6556_v33  ;;  %v6728_v60 = vadd.s32 536870912, %v6727_v2  ;;  %v6789_v18 = vshrl.u32 %v7983_v26, %v6786_v51  ;;  %v6792_v29 = vshrl.u32 %v7984_v28, %v6786_v51 }
 0x646   : > { %v6561_v53 = vsel %vm6554_vm5, %v6557_v54, %v6560_v36  ;;  %v6643_v6 = vand.u32 2147483647, %v6642_v46  ;;  %v6794_v44 = vshll.u32 %v7984_v28, %v6785_v25  ;;  %v6795_v12 = vshrl.u32 %v7985_v30, %v6786_v51 }
 0x647   : > { %v6562_v49 = vsel %vm6551_vm0, nan, %v6561_v53  ;;  %v13318_v20 = vshrl.u32 %v6728_v60, 30  ;;  %v6784_v62 = vshrl.u32 %v6783_v19, 5  ;;  %v6797_v1 = vshll.u32 %v7985_v30, %v6785_v25 }
 0x648   : > { %v6646_v10 = vmul.f32 %v6645_v45, %v6643_v6  ;;  %v6798_v55 = vshrl.u32 %v7986_v32, %v6786_v51  ;;  %6935 = vst [vmem:[%s8389_s16 + $0x1e0] sm:$0xff] %v6562_v49  ;;  %v6652_v26 = vsel %vm13298_vm4, 0, %v6650_v48  ;;  %v6800_v63 = vshll.u32 %v7986_v32, %v6785_v25 }
 0x649   : > { %v6730_v16 = vshll.u32 %v13318_v20, 30  ;;  %v6819_v21 = vshll.u32 %v6779_v3, 8  ;;  %v6787_v28 = vshrl.u32 %v7982_v24, %v6786_v51  ;;  %v6801_v22 = vshrl.u32 %v7987_v39, %v6786_v51 }
 0x64a   : > { %v6647_v9 = vxor.u32 2147483648, %v6646_v10  ;;  %v6799_v0 = vor.u32 %v6798_v55, %v6797_v1  ;;  %v6790_v38 = vor.u32 %v6789_v18, %v6788_v4  ;;  %v6793_v30 = vor.u32 %v6792_v29, %v6791_v11 }
 0x64b   : > { %v6731_v17 = vsub.s32 %v6727_v2, %v6730_v16  ;;  %v6796_v61 = vor.u32 %v6795_v12, %v6794_v44  ;;  %v6802_v52 = vor.u32 %v6801_v22, %v6800_v63  ;;  %vm6803_vm9 = vcmp.lt.s32.totalorder %v6784_v62, 1 }
 0x64c   : > { %v6648_v47 = vsel %vm6565_vm1, %v6647_v9, %v6646_v10  ;;  %vm6806_vm11 = vcmp.lt.s32.totalorder %v6784_v62, 4  ;;  %vm6804_vm10 = vcmp.lt.s32.totalorder %v6784_v62, 2  ;;  %vm6805_vm12 = vcmp.lt.s32.totalorder %v6784_v62, 3 }
 0x64d   : > { %v6651_v32 = vsel %vm13298_vm4, %v13081_v41, %v6648_v47  ;;  %v6733_v15 = vsub.s32 0, %v6731_v17  ;;  %v6807_v24 = vsel %vm6803_vm9, %v6787_v28, %v6790_v38  ;;  %v6808_v39 = vsel %vm6806_vm11, %v6796_v61, 2102212464 }
 0x64e   : > { %7871 = vcosq.f32 %v6651_v32  ;;  %v6812_v7 = vsel %vm6806_vm11, %v6799_v0, 920167782  ;;  %v6809_v27 = vsel %vm6805_vm12, %v6793_v30, %v6808_v39  ;;  %v6811_v19 = vsel %vm6803_vm9, %v6790_v38, %v6793_v30 }
 0x64f   : > { %7873 = vsinq.f32 %v6651_v32  ;;  %v7298_v40 = vmin.u32 %v6733_v15, %v6731_v17  ;;  %v6656_v50 = vadd.s32 3, %v6652_v26  ;;  %v6813_v35 = vsel %vm6805_vm12, %v6796_v61, %v6812_v7 }
 0x650   : > { %v6815_v31 = vsel %vm6803_vm9, %v6793_v30, %v6796_v61  ;;  %v6816_v34 = vsel %vm6806_vm11, %v6802_v52, 1326507024  ;;  %v6810_v58 = vsel %vm6804_vm10, %v6807_v24, %v6809_v27  ;;  %v6814_v43 = vsel %vm6804_vm10, %v6811_v19, %v6813_v35 }
 0x651   : > { %v6735_v25 = vclz %v7298_v40  ;;  %v6817_v23 = vsel %vm6805_vm12, %v6799_v0, %v6816_v34  ;;  %v13348_v14 = vmul.u32.u64.low %v6819_v21, %v6814_v43  ;;  %v13349_v33 = vmul.u32.u64.high %v6819_v21, %v6814_v43, %v13348_v14 }
 0x652   : > { %v6818_v13 = vsel %vm6804_vm10, %v6815_v31, %v6817_v23  ;;  %v6657_v48 = vand.u32 3, %v6656_v50  ;;  %v6723_v36 = vadd.s32 %v13281_v57, %v13290_v5  ;;  %v6826_v45 = vmul.u32 %v6819_v21, %v6810_v58 }
 0x653   : > { %v7299_v37 = vadd.s32 4294967294, %v6735_v25  ;;  %v13351_v2 = vmul.u32.u64.low %v6819_v21, %v6818_v13  ;;  %v13352_v51 = vmul.u32.u64.high %v6819_v21, %v6818_v13, %v13351_v2  ;;  %v6829_v4 = vadd.s32 1, %v13349_v33 }
 0x654   : > { %vm6659_vm15 = vcmp.eq.s32.totalorder %v6657_v48, 0  ;;  %vm6662_vm14 = vcmp.eq.s32.totalorder %v6657_v48, 2  ;;  %vm6658_vm0 = vcmp.lt.s32.totalorder %v6657_v48, 2  ;;  %vm6655_vm2 = vweird.f32 %v13081_v41 }
 0x655   : > { %vm7300_vm13 = vcmp.lt.s32.totalorder %v7299_v37, 0  ;;  %vm6828_vm1 = vc.u32 %v13352_v51, %v13348_v14  ;;  %v6753_v28 = vsub.s32 4, %v13318_v20  ;;  %vm6669_vm3 = vcmp.lt.s32.totalorder %v13176_v56, 0 }
 0x656   : > { %v6738_v46 = vsel %vm7300_vm13, 0, %v7299_v37  ;;  %v6830_v49 = vsel %vm6828_vm1, %v6829_v4, %v13349_v33  ;;  %vm6668_vm4 = vcmp.le.f32.partialorder %v6667_v8, 0.7853982  ;;  %v6827_v7 = vadd.s32 %v13348_v14, %v13352_v51 }
 0x657   : > { %v6739_v3 = vsub.s32 32, %v6738_v46  ;;  %v6740_v54 = vshll.u32 %v6731_v17, %v6738_v46  ;;  %v6743_v60 = vsub.s32 4294967266, %v6738_v46  ;;  %v6831_v5 = vadd.s32 %v6830_v49, %v6826_v45 }
 0x658   : > { %v7872_v11 = vpop.eup %7871  ;;  %v6754_v38 = vsel %vm6669_vm3, %v6753_v28, %v13318_v20  ;;  %vm6759_vm9 = vweird.f32 %v13176_v56  ;;  %vm6773_vm11 = vcmp.lt.s32.totalorder %v13222_v59, 0  ;;  %vm6772_vm10 = vcmp.le.f32.partialorder %v6771_v42, 0.7853982 }
 0x659   : > { %v7874_v53 = vpop.eup %7873  ;;  %v6663_v6 = vxor.u32 2147483648, %v7872_v11  ;;  %v6741_v18 = vshrl.u32 %v6723_v36, %v6739_v3  ;;  %v6744_v29 = vadd.s32 127, %v6743_v60  ;;  %v6832_v1 = vadd.s32 536870912, %v6831_v5 }
 0x65a   : > { %v6660_v57 = vxor.u32 2147483648, %v7874_v53  ;;  %v6756_v52 = vsel %vm6668_vm4, 0, %v6754_v38 }
 0x65b   : > { %v6664_v44 = vsel %vm6662_vm14, %v6663_v6, %v7874_v53  ;;  %v6742_v12 = vor.u32 %v6741_v18, %v6740_v54  ;;  %v6745_v10 = vshll.u32 %v6744_v29, 23  ;;  %v6833_v21 = vshrl.u32 %v6832_v1, 30 }
 0x65c   : > { %v6661_v62 = vsel %vm6659_vm15, %v7872_v11, %v6660_v57  ;;  %v6760_v24 = vadd.s32 3, %v6756_v52  ;;  %vm6863_vm14 = vweird.f32 %v13222_v59 }
 0x65d   : > { %v6665_v55 = vsel %vm6658_vm0, %v6661_v62, %v6664_v44  ;;  %v6746_v26 = vor.u32 4788187, %v6745_v10  ;;  %v6749_v16 = vcvt.s32.f32 %v6742_v12  ;;  %v6834_v0 = vshll.u32 %v6833_v21, 30 }
 0x65e   : > { %v6666_v63 = vsel %vm6655_vm2, nan, %v6665_v55  ;;  %v6761_v40 = vand.u32 3, %v6760_v24  ;;  %v6857_v51 = vsub.s32 4, %v6833_v21 }
 0x65f   : > { %v6747_v9 = vand.u32 2147483647, %v6746_v26  ;;  %6936 = vst [vmem:[%s8389_s16 + $0x1e8] sm:$0xff] %v6666_v63  ;;  %v6835_v17 = vsub.s32 %v6831_v5, %v6834_v0 }
 0x660   : > { %vm6766_vm7 = vcmp.eq.s32.totalorder %v6761_v40, 2  ;;  %vm6763_vm6 = vcmp.eq.s32.totalorder %v6761_v40, 0  ;;  %vm6762_vm8 = vcmp.lt.s32.totalorder %v6761_v40, 2  ;;  %v6858_v3 = vsel %vm6773_vm11, %v6857_v51, %v6833_v21 }
 0x661   : > { %v6750_v22 = vmul.f32 %v6749_v16, %v6747_v9  ;;  %v6837_v30 = vsub.s32 0, %v6835_v17  ;;  %v6860_v60 = vsel %vm6772_vm10, 0, %v6858_v3 }
 0x662   : > { %v6864_v4 = vadd.s32 3, %v6860_v60 }
 0x663   : > { %v6751_v41 = vxor.u32 2147483648, %v6750_v22  ;;  %v7302_v32 = vmin.u32 %v6837_v30, %v6835_v17 }
 0x664   : > { %v6865_v11 = vand.u32 3, %v6864_v4 }
 0x665   : > { %v6752_v61 = vsel %vm6669_vm3, %v6751_v41, %v6750_v22  ;;  %v6839_v15 = vclz %v7302_v32 }
 0x666   : > { %v6755_v47 = vsel %vm6668_vm4, %v13176_v56, %v6752_v61  ;;  %vm6870_vm12 = vcmp.eq.s32.totalorder %v6865_v11, 2  ;;  %vm6867_vm13 = vcmp.eq.s32.totalorder %v6865_v11, 0  ;;  %vm6866_vm15 = vcmp.lt.s32.totalorder %v6865_v11, 2 }
 0x667   : > { %7875 = vcosq.f32 %v6755_v47  ;;  %v7303_v39 = vadd.s32 4294967294, %v6839_v15 }
 0x668   : > { %7877 = vsinq.f32 %v6755_v47 }
 0x669   : > { %vm7304_vm5 = vcmp.lt.s32.totalorder %v7303_v39, 0 }
 0x66a   : > { %v6842_v27 = vsel %vm7304_vm5, 0, %v7303_v39 }
 0x66b   : > { %v6843_v8 = vsub.s32 32, %v6842_v27  ;;  %v6844_v19 = vshll.u32 %v6835_v17, %v6842_v27  ;;  %v6847_v50 = vsub.s32 4294967266, %v6842_v27 }
 0x66d   : > { %v6845_v20 = vshrl.u32 %v6827_v7, %v6843_v8  ;;  %v6848_v35 = vadd.s32 127, %v6847_v50 }
 0x66f   : > { %v6846_v58 = vor.u32 %v6845_v20, %v6844_v19  ;;  %v6849_v43 = vshll.u32 %v6848_v35, 23 }
 0x671   : > { %v7876_v31 = vpop.eup %7875  ;;  %v6850_v13 = vor.u32 4788187, %v6849_v43  ;;  %v6853_v14 = vcvt.s32.f32 %v6846_v58 }
 0x672   : > { %v7878_v34 = vpop.eup %7877  ;;  %v6767_v25 = vxor.u32 2147483648, %v7876_v31 }
 0x673   : > { %v6764_v23 = vxor.u32 2147483648, %v7878_v34  ;;  %v6851_v2 = vand.u32 2147483647, %v6850_v13 }
 0x674   : > { %v6768_v37 = vsel %vm6766_vm7, %v6767_v25, %v7878_v34 }
 0x675   : > { %v6765_v33 = vsel %vm6763_vm6, %v7876_v31, %v6764_v23  ;;  %v6854_v46 = vmul.f32 %v6853_v14, %v6851_v2 }
 0x676   : > { %v6769_v48 = vsel %vm6762_vm8, %v6765_v33, %v6768_v37 }
 0x677   : > { %v6770_v36 = vsel %vm6759_vm9, nan, %v6769_v48  ;;  %v6855_v45 = vxor.u32 2147483648, %v6854_v46 }
 0x678   : > { %6937 = vst [vmem:[%s8389_s16 + $0x1f0] sm:$0xff] %v6770_v36 }
 0x679   : > { %v6856_v54 = vsel %vm6773_vm11, %v6855_v45, %v6854_v46 }
 0x67a   : > { %v6859_v56 = vsel %vm6772_vm10, %v13222_v59, %v6856_v54 }
 0x67b   : > { %7879 = vcosq.f32 %v6859_v56 }
 0x67c   : > { %7881 = vsinq.f32 %v6859_v56 }
 0x685   : > { %v7880_v53 = vpop.eup %7879 }
 0x686   : > { %v7882_v6 = vpop.eup %7881  ;;  %v6871_v18 = vxor.u32 2147483648, %v7880_v53  ;;  %6946 = sbr.rel (!%p8045_p9) target bundleno = 1705 (0x6a9), region = 32 }
 0x687   : > { %v6868_v29 = vxor.u32 2147483648, %v7882_v6 }
 0x688   : > { %v6872_v42 = vsel %vm6870_vm12, %v6871_v18, %v7882_v6 }
 0x689   : > { %v6869_v49 = vsel %vm6867_vm13, %v7880_v53, %v6868_v29 }
 0x68a   : > { %v6873_v57 = vsel %vm6866_vm15, %v6869_v49, %v6872_v42 }
 0x68b   : > { %v6874_v5 = vsel %vm6863_vm14, nan, %v6873_v57 }
 0x68c   : > { %6938 = vst [vmem:[%s8389_s16 + $0x1f8] sm:$0xff] %v6874_v5 }
 0x68d   : > { %s13575_s30 = smov (!%p6949_p6, %s6948_s30), 2 }
 0x68e   : > { %s13380_s2 = sshll.u32 %s13575_s30, 12 }
 0x68f   : > { %s6954_s4 = ssub.s32 8192, %s13380_s2 }
 0x690   : > { %6955 = vsyncadd %s6940_s23, %s6954_s4  ;;  %p7309_p10 = scmp.ne.s32.totalorder %s13380_s2, 0  ;;  %s7321_s17 = sshll.u32 %s8022_s10, 13 }
 0x691   : > { %s13390_s13 = scalar_lea.hbm %s13439_s1, %s7321_s17  ;;  %s6961_s14 = sshll.u32 %s8389_s16, 4  ;;  %s13393_s14 = int_to_ptr.vmem [resolvable:$true] %s6961_s14 }
 0x692   : > { %s7911_s19 = scalar_lea.vmem %s13393_s14, %s13380_s2  ;;  %s7988_s20 = smov [#allocation5]  }
 0x693   : > { %p7912_p9 = scmp.ne.s32.totalorder %s13393_s14, %s7911_s19  ;;  %s7915_s21 = sshll.u32 %s7988_s20, 4  ;;  %s7916_s21 = int_to_ptr.vmem [resolvable:$false] %s7915_s21 }
 0x694   : > { %s7917_s10 = scalar_lea.vmem %s7916_s21, 16384  ;;  %p7918_p12 = scmp.lt.s32.totalorder %s13393_s14, %s7916_s21 }
 0x695   : > { %p7913_p13 = pnand %p7912_p9, %p7309_p10  ;;  %p7919_p0 = scmp.lt.s32.totalorder %s7917_s10, %s7911_s19 }
 0x697   : > { %p7914_p11 = pneg %p7913_p13  ;;  %p7920_p1 = por %p7919_p0, %p7918_p12 }
 0x699   : > { %p7921_p3 = pnand %p7920_p1, %p7914_p11 }
 0x69b   : > { %7924 = shalt.err (!%p7921_p3)
}
 0x69c   : > { %s7925_s22 = scalar_lea.hbm %s13390_s13, %s13380_s2  ;;  %s7929_s28 = scalar_lea.hbm %s13439_s1, 20480 }
 0x69d   : > { %p7926_p4 = scmp.ne.s32.totalorder %s13390_s13, %s7925_s22  ;;  %p7930_p7 = scmp.lt.u32.totalorder %s13390_s13, %s13439_s1 }
 0x69e   : > { %p7931_p8 = scmp.lt.u32.totalorder %s7929_s28, %s7925_s22  ;;  %p7933_p9 = scmp.lt.u32.totalorder %s7925_s22, %s13390_s13 }
 0x69f   : > { %p7927_p5 = pnand %p7926_p4, %p7309_p10 }
 0x6a0   : > { %p7932_p6 = por %p7931_p8, %p7930_p7 }
 0x6a1   : > { %p7928_p2 = pneg %p7927_p5 }
 0x6a2   : > { %p7934_p13 = por %p7933_p9, %p7932_p6 }
 0x6a4   : > { %p7935_p11 = pnand %p7934_p13, %p7928_p2 }
 0x6a6   : > { %7938 = shalt.err (!%p7935_p11)
}
 0x6a7   : > { %s7989_s16 = smov 4096   ;;  %s7990_s25 = smov 256  }
 0x6a8   : > { %6967 = dma.vmem_to_hbm [thread:$0]  (%p7309_p10), %s13393_s14, %s13380_s2, %s13390_s13, %s6940_s23, %s7989_s16, %s7989_s16, %s7990_s25  }
 0x6a9 PF: > { %p7584_p12 = scmp.ge.s32.totalorder %s7977_s9, 2  ;;  %s6976_s30 = sand.u32 1, %s7965_s6  }
 0x6aa   : > { %p13567_p0 = scmp.ne.s32.totalorder %s13442_s18, 0  ;;  %s6977_s4 = scalar_lea.sflag [#allocation4], %s6976_s30 }
 0x6ac   : > { %p7581_p1 = pnand %p7584_p12, %p13567_p0 }
 0x6ae   : > { %7960 = dma.done.wait (!%p7581_p1), %s6977_s4, 8192  }
 0x6af   : > { %7962 = vsyncadd (!%p7581_p1), %s6977_s4, 4294959104  ;;  %p14_p3 = scmp.ge.s32.totalorder %s8026_s12, 5   ;;  %s13568_s6 = smov %s7969_s7 }
 0x6b0   : > { %s13569_s7 = smov %s7973_s8  ;;  %s13570_s8 = smov %s8038_s15 }
 0x6b1   : > { %s13571_s9 = smov %s8026_s12  ;;  %16 = sbr.rel (!%p14_p3) target bundleno = 5 (0x5), region = 69 }
 0x6b8   :  { %6982 = vsyncpa [#allocation3], 1 }
 0x6b9   :  { %6984 = vsyncpa [#allocation3 + $0x1], 1 }
 0x6ba   :  { %6985 = vsyncpa [#allocation4], 1 }
 0x6bb   :  { %6987 = vsyncpa [#allocation4 + $0x1], 1 }

</bundles_post_ra>
